<compile_context>
chip_gen: v7x
topology: tpu7x:2x2x1
jax: 0.10.0
libtpu: 0.0.40
codegen_flags: <defaults>
</compile_context>

<pallas_src>
import jax
import jax.numpy as jnp
from jax import lax
from jax.experimental import pallas as pl
from jax.experimental.pallas import tpu as pltpu

# ----------------------------- configuration (small shapes) -----------------
B = 2                    # batch of captions
NUM_RETRIEVAL = 2        # num_retrieval
BN = B * NUM_RETRIEVAL   # retrieved sequences total
N_DB = 8                 # database entries
T_MOTION = 16            # max_seq_len
MOTION_DIM = 12          # motions.shape[-1]
LATENT_DIM = 32          # latent_dim / output_dim / clip feature width
FFN_DIM = 64             # ffn_cfg ffn_dim
FF_SIZE = 64             # transformer dim_feedforward
NUM_HEADS = 4
HEAD_DIM = LATENT_DIM // NUM_HEADS
NUM_MOTION_LAYERS = 2
NUM_TEXT_LAYERS = 2      # num_layers of nn.TransformerEncoder
STRIDE = 4
KINEMATIC_COEF = 0.1
T_TEXT = 77              # hard-coded in the reference forward
S_PAD = 80               # T_TEXT rounded up to a sublane multiple (8)
TEXT_FEAT_DIM = 32
LN_EPS = 1e-5
SEQ_PER_BLOCK = 2        # sequences handled per text-kernel grid step
NUM_TEXT_BLOCKS = BN // SEQ_PER_BLOCK


# ----------------------------- in-kernel math helpers ------------------------
def _gelu_tanh(x):
    # tanh-approx GELU: tanh runs on the EUP slot instead of a ~10-op VALU
    # polynomial + divide.  ~1e-3 relative drift vs PyTorch's exact erf GELU.
    return 0.5 * x * (1.0 + jnp.tanh(0.7978845608028654 * (x + 0.044715 * x * x * x)))


def _layer_norm(x, gamma, beta):
    mu = jnp.mean(x, axis=-1, keepdims=True)
    var = jnp.mean((x - mu) ** 2, axis=-1, keepdims=True)
    return (x - mu) * lax.rsqrt(var + LN_EPS) * gamma + beta


# ----------------------------- kernel 1: fused motion branch -----------------
# motion_proj + positional embedding + all motion FFN residual blocks, on the
# flattened [B*R*T, md] row block (single matmul per projection / FFN layer).
def motion_encoder_kernel(x_ref, pw_ref, pb_ref, pos_ref,
                          w1_ref, b1_ref, w2_ref, b2_ref, out_ref):
    x = x_ref[...]                                                   # [BN*T, md]
    reps = x_ref.shape[0] // pos_ref.shape[0]                        # static
    y = jnp.dot(x, pw_ref[...], preferred_element_type=jnp.float32)
    y = y + pb_ref[...] + jnp.tile(pos_ref[...], (reps, 1))          # in-kernel tile
    for l in range(NUM_MOTION_LAYERS):                               # static unroll
        h = jnp.dot(y, w1_ref[l], preferred_element_type=jnp.float32) + b1_ref[l]
        h = _gelu_tanh(h)                                            # dropout = 0
        y = y + jnp.dot(h, w2_ref[l], preferred_element_type=jnp.float32) + b2_ref[l]
    out_ref[...] = y.astype(out_ref.dtype)


def run_motion_encoder(x_flat, pw, pb, pos, w1s, b1s, w2s, b2s):
    rows = x_flat.shape[0]
    return pl.pallas_call(
        motion_encoder_kernel,
        out_shape=jax.ShapeDtypeStruct((rows, LATENT_DIM), jnp.float32),
    )(x_flat, pw, pb, pos, w1s, b1s, w2s, b2s)


# ----------------------------- kernel 2: fused text encoder ------------------
def _mha_one_seq(q, k, v, head_masks, key_bias):
    """Multi-head attention for one sequence; q already scaled.
    Heads are selected with constant lane masks (disjoint), so no transposes,
    no lane slicing of k/v, and no concatenate: summing the masked PV results
    reproduces the concatenated multi-head output exactly."""
    o = None
    for h in range(NUM_HEADS):                                       # static unroll
        s = lax.dot_general(q * head_masks[h], k,
                            (((1,), (1,)), ((), ())),                # contract last dims
                            preferred_element_type=jnp.float32)      # [Sq, S_PAD]
        s = s + key_bias                                             # mask pad keys
        m = jnp.max(s, axis=-1, keepdims=True)
        e = jnp.exp(s - m)
        p = e * pl.reciprocal(jnp.sum(e, axis=-1, keepdims=True), approx=True)
        pv = jnp.dot(p, v * head_masks[h], preferred_element_type=jnp.float32)
        o = pv if o is None else o + pv
    return o                                                         # [Sq, D]


def text_encoder_kernel(idx_ref, xa_ref, xb_ref, wqkv_ref, bqkv_ref, wo_ref,
                        w1_ref, b1_ref, w2_ref, vecs_ref, out_ref):
    del idx_ref                                                      # used only by index_maps
    D = LATENT_DIM
    scale = 1.0 / float(HEAD_DIM) ** 0.5

    # two gathered sequences flattened into one [2*S_PAD, D] row block
    x = jnp.concatenate([xa_ref[0], xb_ref[0]], axis=0).astype(jnp.float32)

    lane = lax.broadcasted_iota(jnp.int32, (1, D), 1)
    head_masks = [((lane >= h * HEAD_DIM) & (lane < (h + 1) * HEAD_DIM))
                  .astype(jnp.float32) for h in range(NUM_HEADS)]
    key_bias = jnp.where(
        lax.broadcasted_iota(jnp.int32, (1, S_PAD), 1) < T_TEXT, 0.0, -1e30
    ).astype(jnp.float32)                                            # pad keys -> -inf

    # layers 0 .. L-2: full-sequence outputs ---------------------------------
    for l in range(NUM_TEXT_LAYERS - 1):                             # static unroll
        vl = vecs_ref[l]
        bo, g1, be1, bff2, g2, be2 = (vl[c:c + 1] for c in range(6))
        qkv = jnp.dot(x, wqkv_ref[l], preferred_element_type=jnp.float32) + bqkv_ref[l]
        q = qkv[:, :D] * scale
        k = qkv[:, D:2 * D]
        v = qkv[:, 2 * D:]
        o_parts = []
        for j in range(SEQ_PER_BLOCK):                               # static unroll
            r0 = j * S_PAD
            o_parts.append(_mha_one_seq(q[r0:r0 + S_PAD], k[r0:r0 + S_PAD],
                                        v[r0:r0 + S_PAD], head_masks, key_bias))
        o = jnp.concatenate(o_parts, axis=0)                         # sublane-aligned
        attn = jnp.dot(o, wo_ref[l], preferred_element_type=jnp.float32) + bo
        y = _layer_norm(x + attn, g1, be1)                           # post-norm
        h1 = _gelu_tanh(jnp.dot(y, w1_ref[l], preferred_element_type=jnp.float32) + b1_ref[l])
        ff = jnp.dot(h1, w2_ref[l], preferred_element_type=jnp.float32) + bff2
        x = _layer_norm(y + ff, g2, be2)

    # last layer: only the final real token per sequence (exact: attention is
    # unmasked and the reference consumes only re_text[:, :, -1:, :]) ---------
    l = NUM_TEXT_LAYERS - 1
    vl = vecs_ref[l]
    bo, g1, be1, bff2, g2, be2 = (vl[c:c + 1] for c in range(6))
    qkv = jnp.dot(x, wqkv_ref[l], preferred_element_type=jnp.float32) + bqkv_ref[l]
    k = qkv[:, D:2 * D]
    v = qkv[:, 2 * D:]
    for j in range(SEQ_PER_BLOCK):                                   # static unroll
        r0 = j * S_PAD
        rl = r0 + T_TEXT - 1
        q_last = qkv[rl:rl + 1, :D] * scale                          # [1, D]
        o = _mha_one_seq(q_last, k[r0:r0 + S_PAD], v[r0:r0 + S_PAD],
                         head_masks, key_bias)
        attn = jnp.dot(o, wo_ref[l], preferred_element_type=jnp.float32) + bo
        y = _layer_norm(x[rl:rl + 1, :] + attn, g1, be1)
        h1 = _gelu_tanh(jnp.dot(y, w1_ref[l], preferred_element_type=jnp.float32) + b1_ref[l])
        ff = jnp.dot(h1, w2_ref[l], preferred_element_type=jnp.float32) + bff2
        out_ref[0:1, j:j + 1, :] = _layer_norm(y + ff, g2, be2)[None].astype(out_ref.dtype)


def run_text_encoder(all_indexes, clip_pad, p):
    n_layers, d, _ = p['wqkv'].shape[0], LATENT_DIM, None
    ff = p['w1'].shape[2]
    s_pad = clip_pad.shape[1]

    def rep(shape):                                                  # replicated weights
        return pl.BlockSpec(shape, lambda i, idx: (0,) * len(shape))

    in_specs = [
        # the two sequences of this grid step, gathered straight from the
        # database via the scalar-prefetched index array:
        pl.BlockSpec((1, s_pad, d), lambda i, idx: (idx[SEQ_PER_BLOCK * i], 0, 0)),
        pl.BlockSpec((1, s_pad, d), lambda i, idx: (idx[SEQ_PER_BLOCK * i + 1], 0, 0)),
        rep((n_layers, d, 3 * d)),                                   # wqkv
        rep((n_layers, 1, 3 * d)),                                   # bqkv
        rep((n_layers, d, d)),                                       # wo
        rep((n_layers, d, ff)),                                      # w1
        rep((n_layers, 1, ff)),                                      # b1
        rep((n_layers, ff, d)),                                      # w2
        rep((n_layers, 6, d)),                                       # packed [bo,g1,be1,b2,g2,be2]
    ]
    out = pl.pallas_call(
        text_encoder_kernel,
        out_shape=jax.ShapeDtypeStruct((NUM_TEXT_BLOCKS, SEQ_PER_BLOCK, d), jnp.float32),
        grid_spec=pltpu.PrefetchScalarGridSpec(
            num_scalar_prefetch=1,
            grid=(NUM_TEXT_BLOCKS,),
            in_specs=in_specs,
            out_specs=pl.BlockSpec((1, SEQ_PER_BLOCK, d), lambda i, idx: (i, 0, 0)),
        ),
        compiler_params=pltpu.CompilerParams(dimension_semantics=("parallel",)),
    )(all_indexes, clip_pad, clip_pad, p['wqkv'], p['bqkv'], p['wo'],
      p['w1'], p['b1'], p['w2'], p['vecs'])
    return out.reshape(BN, d)


# ----------------------------- forward (module semantics) --------------------
def retrieval_database_forward(params, db, query_text_features, lengths):
    b = query_text_features.shape[0]

    # retrieve(): semantic * kinematic score.  Plain XLA — at N_DB=8 a
    # pallas_call launch costs more than the [B,Dt]@[Dt,N_db] matmul.
    # TODO(synk): clip_model.encode_text / tokenize and the hash-based result
    # cache have no Pallas equivalent; query features are provided directly.
    # TODO(synk): training-mode filtering "m_length != length" (data-dependent
    # Python loop) not reproduced; eval-mode behaviour (take first num_retrieval).
    q = query_text_features
    tf = db['text_features']
    qn = jnp.sqrt(jnp.sum(q * q, -1, keepdims=True))                  # [B, 1]
    tn = jnp.sqrt(jnp.sum(tf * tf, -1, keepdims=True))                # [N, 1]
    semantic = (q @ tf.T) / jnp.maximum(qn * tn.T, 1e-8)              # cosine_similarity
    mlen = db['m_lengths'].astype(jnp.float32)[None, :]
    lens = lengths.astype(jnp.float32)[:, None]
    rel = jnp.abs(mlen - lens)
    # NOTE: the spec reassigns rel_length = |m_len - len| BEFORE the clamp, so
    # the divisor is clamp(|m_len - len|, min=len) = max(|m_len - len|, len).
    rel = rel / jnp.maximum(rel, lens)
    scores = semantic * jnp.exp(-rel * KINEMATIC_COEF)
    order = jnp.argsort(-scores, axis=-1)                             # descending
    all_indexes = order[:, :NUM_RETRIEVAL].reshape(-1).astype(jnp.int32)   # [B*R]

    all_motions = db['motions'][all_indexes]                          # [BN, T, md]
    all_m_lengths = db['m_lengths'][all_indexes]                      # [BN]
    bn, t, md = all_motions.shape

    # generate_src_mask
    src_mask = (jnp.arange(t)[None, :] < all_m_lengths[:, None]).astype(jnp.float32)
    raw_src_mask = src_mask

    # fused motion branch (Pallas): proj + pos-emb + all FFN blocks.
    # (src_mask is passed in the reference but ignored by FFN.forward **kwargs)
    mf = params['motion_ffn']
    re_motion_flat = run_motion_encoder(
        all_motions.reshape(bn * t, md),
        params['motion_proj_w'], params['motion_proj_b'], params['motion_pos'],
        mf['w1'], mf['b1'], mf['w2'], mf['b2'])
    re_motion = re_motion_flat.reshape(b, NUM_RETRIEVAL, t, LATENT_DIM)[:, :, ::STRIDE, :]
    src_mask_s = src_mask[:, ::STRIDE].reshape(b, NUM_RETRIEVAL, -1)

    # fused text branch (Pallas): gather + both TransformerEncoderLayers in one
    # call; the last layer only computes the final real token, which is all the
    # reference consumes (re_text[:, :, -1:, :]).
    re_text = run_text_encoder(all_indexes, db['clip_seq_features_pad'],
                               params['text'])                        # [BN, D]
    re_text = re_text.reshape(b, NUM_RETRIEVAL, 1, LATENT_DIM)

    return dict(re_text=re_text,
                re_motion=re_motion,
                re_mask=src_mask_s,
                raw_motion=all_motions,
                raw_motion_length=all_m_lengths,
                raw_motion_mask=raw_src_mask)


# ----------------------------- deterministic init ----------------------------
def init_params(key):
    keys = iter(jax.random.split(key, 128))

    def nrm(shape, scale=0.02):
        return (scale * jax.random.normal(next(keys), shape)).astype(jnp.float32)

    params = {
        'motion_proj_w': nrm((MOTION_DIM, LATENT_DIM)),
        'motion_proj_b': nrm((1, LATENT_DIM)),
        'motion_pos': nrm((T_MOTION, LATENT_DIM), scale=1.0),   # torch.randn
    }

    # motion FFN blocks, stacked along [L, ...]
    w1s, b1s, w2s, b2s = [], [], [], []
    for _ in range(NUM_MOTION_LAYERS):
        w1s.append(nrm((LATENT_DIM, FFN_DIM)))
        b1s.append(nrm((1, FFN_DIM)))
        # FFN.linear2 = zero_module(nn.Linear(...)) -> zero weights & bias
        w2s.append(jnp.zeros((FFN_DIM, LATENT_DIM), jnp.float32))
        b2s.append(jnp.zeros((1, LATENT_DIM), jnp.float32))
    params['motion_ffn'] = dict(w1=jnp.stack(w1s), b1=jnp.stack(b1s),
                                w2=jnp.stack(w2s), b2=jnp.stack(b2s))

    # text TransformerEncoder layers, stacked along [L, ...], QKV fused,
    # small [1,D] vectors packed into one [L, 6, D] slab.
    wqkv, bqkv, wo, w1, b1, w2, vecs = [], [], [], [], [], [], []
    for _ in range(NUM_TEXT_LAYERS):
        wq_, wk_, wv_ = (nrm((LATENT_DIM, LATENT_DIM)) for _ in range(3))
        bq_, bk_, bv_ = (nrm((1, LATENT_DIM)) for _ in range(3))
        wqkv.append(jnp.concatenate([wq_, wk_, wv_], axis=1))     # [D, 3D]
        bqkv.append(jnp.concatenate([bq_, bk_, bv_], axis=1))     # [1, 3D]
        wo.append(nrm((LATENT_DIM, LATENT_DIM)))
        bo_ = nrm((1, LATENT_DIM))
        g1_ = jnp.ones((1, LATENT_DIM), jnp.float32)
        be1_ = jnp.zeros((1, LATENT_DIM), jnp.float32)
        w1.append(nrm((LATENT_DIM, FF_SIZE)))
        b1.append(nrm((1, FF_SIZE)))
        w2.append(nrm((FF_SIZE, LATENT_DIM)))
        b2_ = nrm((1, LATENT_DIM))
        g2_ = jnp.ones((1, LATENT_DIM), jnp.float32)
        be2_ = jnp.zeros((1, LATENT_DIM), jnp.float32)
        vecs.append(jnp.concatenate([bo_, g1_, be1_, b2_, g2_, be2_], axis=0))  # [6, D]
    params['text'] = dict(wqkv=jnp.stack(wqkv), bqkv=jnp.stack(bqkv),
                          wo=jnp.stack(wo), w1=jnp.stack(w1), b1=jnp.stack(b1),
                          w2=jnp.stack(w2), vecs=jnp.stack(vecs))
    return params


def init_database(key):
    k1, k2, k3, k4 = jax.random.split(key, 4)
    clip_seq = jax.random.normal(k4, (N_DB, T_TEXT, LATENT_DIM), jnp.float32)
    # one-time database preprocessing: pad the 77-token sequences to 80 rows
    # (zero rows, masked out inside the text kernel) so per-sequence blocks are
    # sublane-aligned and can be gathered / flattened without relayouts.
    clip_seq_pad = jnp.pad(clip_seq, ((0, 0), (0, S_PAD - T_TEXT), (0, 0)))
    return dict(
        text_features=jax.random.normal(k1, (N_DB, TEXT_FEAT_DIM), jnp.float32),
        motions=jax.random.normal(k2, (N_DB, T_MOTION, MOTION_DIM), jnp.float32),
        m_lengths=jax.random.randint(k3, (N_DB,), 4, T_MOTION + 1).astype(jnp.int32),
        clip_seq_features=clip_seq,
        clip_seq_features_pad=clip_seq_pad,
    )


# ----------------------------- main ------------------------------------------
if __name__ == "__main__":
    root = jax.random.PRNGKey(0)
    kp, kd, kq = jax.random.split(root, 3)
    params = init_params(kp)
    db = init_database(kd)
    # synthetic CLIP text features for the B captions (deterministic)
    query_feats = jax.random.normal(kq, (B, TEXT_FEAT_DIM), jnp.float32)
    lengths = jnp.array([10, 7], dtype=jnp.int32)

    forward = jax.jit(retrieval_database_forward)
    out = forward(params, db, query_feats, lengths)
    jax.block_until_ready(out)
    print("KERNEL_OK")
</pallas_src>

<mosaic_0001>
module attributes {stable_mosaic.version = 11 : i64} {
  func.func @motion_encoder_kernel(%arg0: memref<64x12xf32, #tpu.memory_space<vmem>>, %arg1: memref<12x32xf32, #tpu.memory_space<vmem>>, %arg2: memref<1x32xf32, #tpu.memory_space<vmem>>, %arg3: memref<16x32xf32, #tpu.memory_space<vmem>>, %arg4: memref<2x32x64xf32, #tpu.memory_space<vmem>>, %arg5: memref<2x1x64xf32, #tpu.memory_space<vmem>>, %arg6: memref<2x64x32xf32, #tpu.memory_space<vmem>>, %arg7: memref<2x1x32xf32, #tpu.memory_space<vmem>>, %arg8: memref<64x32xf32, #tpu.memory_space<vmem>>) attributes {dimension_semantics = [], scalar_prefetch = 0 : i64, scratch_operands = 0 : i64, tpu.core_type = #tpu.core_type<tc>} {
    %c0 = arith.constant 0 : index
    %c0_0 = arith.constant 0 : index
    %0 = vector.load %arg0[%c0, %c0_0] : memref<64x12xf32, #tpu.memory_space<vmem>>, vector<64x12xf32>
    %c0_1 = arith.constant 0 : index
    %c0_2 = arith.constant 0 : index
    %1 = vector.load %arg1[%c0_1, %c0_2] : memref<12x32xf32, #tpu.memory_space<vmem>>, vector<12x32xf32>
    %cst = arith.constant dense<0.000000e+00> : vector<64x32xf32>
    %2 = tpu.matmul %0, %1, %cst {dimension_numbers = #tpu.dot_dimension_numbers<[1], [0], [0], [1], [0, 0, 1, 1], [], []>} : vector<64x12xf32>, vector<12x32xf32>, vector<64x32xf32> -> vector<64x32xf32>
    %c0_3 = arith.constant 0 : index
    %c0_4 = arith.constant 0 : index
    %3 = vector.load %arg2[%c0_3, %c0_4] : memref<1x32xf32, #tpu.memory_space<vmem>>, vector<1x32xf32>
    %4 = vector.broadcast %3 : vector<1x32xf32> to vector<64x32xf32>
    %5 = arith.addf %2, %4 : vector<64x32xf32>
    %c0_5 = arith.constant 0 : index
    %c0_6 = arith.constant 0 : index
    %6 = vector.load %arg3[%c0_5, %c0_6] : memref<16x32xf32, #tpu.memory_space<vmem>>, vector<16x32xf32>
    %7 = tpu.concatenate %6, %6, %6, %6 in 0 : vector<16x32xf32>, vector<16x32xf32>, vector<16x32xf32>, vector<16x32xf32> -> vector<64x32xf32>
    %8 = arith.addf %5, %7 : vector<64x32xf32>
    %c0_7 = arith.constant 0 : index
    %c0_8 = arith.constant 0 : index
    %c0_9 = arith.constant 0 : index
    %9 = vector.load %arg4[%c0_7, %c0_8, %c0_9] : memref<2x32x64xf32, #tpu.memory_space<vmem>>, vector<1x32x64xf32>
    %10 = vector.shape_cast %9 : vector<1x32x64xf32> to vector<32x64xf32>
    %cst_10 = arith.constant dense<0.000000e+00> : vector<64x64xf32>
    %11 = tpu.matmul %8, %10, %cst_10 {dimension_numbers = #tpu.dot_dimension_numbers<[1], [0], [0], [1], [0, 0, 1, 1], [], []>} : vector<64x32xf32>, vector<32x64xf32>, vector<64x64xf32> -> vector<64x64xf32>
    %c0_11 = arith.constant 0 : index
    %c0_12 = arith.constant 0 : index
    %c0_13 = arith.constant 0 : index
    %12 = vector.load %arg5[%c0_11, %c0_12, %c0_13] : memref<2x1x64xf32, #tpu.memory_space<vmem>>, vector<1x1x64xf32>
    %13 = vector.shape_cast %12 : vector<1x1x64xf32> to vector<1x64xf32>
    %14 = vector.broadcast %13 : vector<1x64xf32> to vector<64x64xf32>
    %15 = arith.addf %11, %14 : vector<64x64xf32>
    %cst_14 = arith.constant 5.000000e-01 : f32
    %16 = vector.broadcast %cst_14 : f32 to vector<64x64xf32>
    %17 = arith.mulf %16, %15 : vector<64x64xf32>
    %cst_15 = arith.constant 4.471500e-02 : f32
    %18 = vector.broadcast %cst_15 : f32 to vector<64x64xf32>
    %19 = arith.mulf %18, %15 : vector<64x64xf32>
    %20 = arith.mulf %19, %15 : vector<64x64xf32>
    %21 = arith.mulf %20, %15 : vector<64x64xf32>
    %22 = arith.addf %15, %21 : vector<64x64xf32>
    %cst_16 = arith.constant 0.797884583 : f32
    %23 = vector.broadcast %cst_16 : f32 to vector<64x64xf32>
    %24 = arith.mulf %23, %22 : vector<64x64xf32>
    %25 = math.tanh %24 : vector<64x64xf32>
    %cst_17 = arith.constant 1.000000e+00 : f32
    %26 = vector.broadcast %cst_17 : f32 to vector<64x64xf32>
    %27 = arith.addf %26, %25 : vector<64x64xf32>
    %28 = arith.mulf %17, %27 : vector<64x64xf32>
    %c0_18 = arith.constant 0 : index
    %c0_19 = arith.constant 0 : index
    %c0_20 = arith.constant 0 : index
    %29 = vector.load %arg6[%c0_18, %c0_19, %c0_20] : memref<2x64x32xf32, #tpu.memory_space<vmem>>, vector<1x64x32xf32>
    %30 = vector.shape_cast %29 : vector<1x64x32xf32> to vector<64x32xf32>
    %cst_21 = arith.constant dense<0.000000e+00> : vector<64x32xf32>
    %31 = tpu.matmul %28, %30, %cst_21 {dimension_numbers = #tpu.dot_dimension_numbers<[1], [0], [0], [1], [0, 0, 1, 1], [], []>} : vector<64x64xf32>, vector<64x32xf32>, vector<64x32xf32> -> vector<64x32xf32>
    %32 = arith.addf %8, %31 : vector<64x32xf32>
    %c0_22 = arith.constant 0 : index
    %c0_23 = arith.constant 0 : index
    %c0_24 = arith.constant 0 : index
    %33 = vector.load %arg7[%c0_22, %c0_23, %c0_24] : memref<2x1x32xf32, #tpu.memory_space<vmem>>, vector<1x1x32xf32>
    %34 = vector.shape_cast %33 : vector<1x1x32xf32> to vector<1x32xf32>
    %35 = vector.broadcast %34 : vector<1x32xf32> to vector<64x32xf32>
    %36 = arith.addf %32, %35 : vector<64x32xf32>
    %c1 = arith.constant 1 : index
    %c0_25 = arith.constant 0 : index
    %c0_26 = arith.constant 0 : index
    %37 = vector.load %arg4[%c1, %c0_25, %c0_26] : memref<2x32x64xf32, #tpu.memory_space<vmem>>, vector<1x32x64xf32>
    %38 = vector.shape_cast %37 : vector<1x32x64xf32> to vector<32x64xf32>
    %cst_27 = arith.constant dense<0.000000e+00> : vector<64x64xf32>
    %39 = tpu.matmul %36, %38, %cst_27 {dimension_numbers = #tpu.dot_dimension_numbers<[1], [0], [0], [1], [0, 0, 1, 1], [], []>} : vector<64x32xf32>, vector<32x64xf32>, vector<64x64xf32> -> vector<64x64xf32>
    %c1_28 = arith.constant 1 : index
    %c0_29 = arith.constant 0 : index
    %c0_30 = arith.constant 0 : index
    %40 = vector.load %arg5[%c1_28, %c0_29, %c0_30] : memref<2x1x64xf32, #tpu.memory_space<vmem>>, vector<1x1x64xf32>
    %41 = vector.shape_cast %40 : vector<1x1x64xf32> to vector<1x64xf32>
    %42 = vector.broadcast %41 : vector<1x64xf32> to vector<64x64xf32>
    %43 = arith.addf %39, %42 : vector<64x64xf32>
    %cst_31 = arith.constant 5.000000e-01 : f32
    %44 = vector.broadcast %cst_31 : f32 to vector<64x64xf32>
    %45 = arith.mulf %44, %43 : vector<64x64xf32>
    %cst_32 = arith.constant 4.471500e-02 : f32
    %46 = vector.broadcast %cst_32 : f32 to vector<64x64xf32>
    %47 = arith.mulf %46, %43 : vector<64x64xf32>
    %48 = arith.mulf %47, %43 : vector<64x64xf32>
    %49 = arith.mulf %48, %43 : vector<64x64xf32>
    %50 = arith.addf %43, %49 : vector<64x64xf32>
    %cst_33 = arith.constant 0.797884583 : f32
    %51 = vector.broadcast %cst_33 : f32 to vector<64x64xf32>
    %52 = arith.mulf %51, %50 : vector<64x64xf32>
    %53 = math.tanh %52 : vector<64x64xf32>
    %cst_34 = arith.constant 1.000000e+00 : f32
    %54 = vector.broadcast %cst_34 : f32 to vector<64x64xf32>
    %55 = arith.addf %54, %53 : vector<64x64xf32>
    %56 = arith.mulf %45, %55 : vector<64x64xf32>
    %c1_35 = arith.constant 1 : index
    %c0_36 = arith.constant 0 : index
    %c0_37 = arith.constant 0 : index
    %57 = vector.load %arg6[%c1_35, %c0_36, %c0_37] : memref<2x64x32xf32, #tpu.memory_space<vmem>>, vector<1x64x32xf32>
    %58 = vector.shape_cast %57 : vector<1x64x32xf32> to vector<64x32xf32>
    %cst_38 = arith.constant dense<0.000000e+00> : vector<64x32xf32>
    %59 = tpu.matmul %56, %58, %cst_38 {dimension_numbers = #tpu.dot_dimension_numbers<[1], [0], [0], [1], [0, 0, 1, 1], [], []>} : vector<64x64xf32>, vector<64x32xf32>, vector<64x32xf32> -> vector<64x32xf32>
    %60 = arith.addf %36, %59 : vector<64x32xf32>
    %c1_39 = arith.constant 1 : index
    %c0_40 = arith.constant 0 : index
    %c0_41 = arith.constant 0 : index
    %61 = vector.load %arg7[%c1_39, %c0_40, %c0_41] : memref<2x1x32xf32, #tpu.memory_space<vmem>>, vector<1x1x32xf32>
    %62 = vector.shape_cast %61 : vector<1x1x32xf32> to vector<1x32xf32>
    %63 = vector.broadcast %62 : vector<1x32xf32> to vector<64x32xf32>
    %64 = arith.addf %60, %63 : vector<64x32xf32>
    %c0_42 = arith.constant 0 : index
    %c0_43 = arith.constant 0 : index
    %65 = vector.load %arg8[%c0_42, %c0_43] : memref<64x32xf32, #tpu.memory_space<vmem>>, vector<64x32xf32>
    tpu.vector_store %arg8[%c0_42, %c0_43], %64 {strides = array<i32>} : memref<64x32xf32, #tpu.memory_space<vmem>>, vector<64x32xf32>,
    return
  }
}

module attributes {stable_mosaic.version = 11 : i64} {
  func.func @text_encoder_kernel(%arg0: i32, %arg1: memref<4xi32, #tpu.memory_space<smem>>, %arg2: memref<1x80x32xf32, #tpu.memory_space<vmem>>, %arg3: memref<1x80x32xf32, #tpu.memory_space<vmem>>, %arg4: memref<2x32x96xf32, #tpu.memory_space<vmem>>, %arg5: memref<2x1x96xf32, #tpu.memory_space<vmem>>, %arg6: memref<2x32x32xf32, #tpu.memory_space<vmem>>, %arg7: memref<2x32x64xf32, #tpu.memory_space<vmem>>, %arg8: memref<2x1x64xf32, #tpu.memory_space<vmem>>, %arg9: memref<2x64x32xf32, #tpu.memory_space<vmem>>, %arg10: memref<2x6x32xf32, #tpu.memory_space<vmem>>, %arg11: memref<1x2x32xf32, #tpu.memory_space<vmem>>) attributes {dimension_semantics = [#tpu.dimension_semantics<parallel>], iteration_bounds = array<i64: 2>, scalar_prefetch = 1 : i64, scratch_operands = 0 : i64, tpu.core_type = #tpu.core_type<tc>, window_params = [{transform_indices = @transform_0, window_bounds = array<i64: 1, 80, 32>}, {transform_indices = @transform_1, window_bounds = array<i64: 1, 80, 32>}, {pipeline_mode = #tpu.pipeline_mode<synchronous>, transform_indices = @transform_2, window_bounds = array<i64: 2, 32, 96>}, {pipeline_mode = #tpu.pipeline_mode<synchronous>, transform_indices = @transform_3, window_bounds = array<i64: 2, 1, 96>}, {pipeline_mode = #tpu.pipeline_mode<synchronous>, transform_indices = @transform_4, window_bounds = array<i64: 2, 32, 32>}, {pipeline_mode = #tpu.pipeline_mode<synchronous>, transform_indices = @transform_5, window_bounds = array<i64: 2, 32, 64>}, {pipeline_mode = #tpu.pipeline_mode<synchronous>, transform_indices = @transform_6, window_bounds = array<i64: 2, 1, 64>}, {pipeline_mode = #tpu.pipeline_mode<synchronous>, transform_indices = @transform_7, window_bounds = array<i64: 2, 64, 32>}, {pipeline_mode = #tpu.pipeline_mode<synchronous>, transform_indices = @transform_8, window_bounds = array<i64: 2, 6, 32>}, {transform_indices = @transform_9, window_bounds = array<i64: 1, 2, 32>}]} {
    %c0 = arith.constant 0 : index
    %c0_0 = arith.constant 0 : index
    %c0_1 = arith.constant 0 : index
    %0 = vector.load %arg2[%c0, %c0_0, %c0_1] : memref<1x80x32xf32, #tpu.memory_space<vmem>>, vector<1x80x32xf32>
    %1 = vector.shape_cast %0 : vector<1x80x32xf32> to vector<80x32xf32>
    %c0_2 = arith.constant 0 : index
    %c0_3 = arith.constant 0 : index
    %c0_4 = arith.constant 0 : index
    %2 = vector.load %arg3[%c0_2, %c0_3, %c0_4] : memref<1x80x32xf32, #tpu.memory_space<vmem>>, vector<1x80x32xf32>
    %3 = vector.shape_cast %2 : vector<1x80x32xf32> to vector<80x32xf32>
    %4 = tpu.concatenate %1, %3 in 0 : vector<80x32xf32>, vector<80x32xf32> -> vector<160x32xf32>
    %5 = tpu.iota {dimensions = array<i32: 1>} : vector<1x32xi32>
    %c0_i32 = arith.constant 0 : i32
    %6 = vector.broadcast %c0_i32 : i32 to vector<1x32xi32>
    %7 = arith.cmpi sge, %5, %6 : vector<1x32xi32>
    %c8_i32 = arith.constant 8 : i32
    %8 = vector.broadcast %c8_i32 : i32 to vector<1x32xi32>
    %9 = arith.cmpi slt, %5, %8 : vector<1x32xi32>
    %10 = arith.andi %7, %9 : vector<1x32xi1>
    %11 = arith.extui %10 : vector<1x32xi1> to vector<1x32xi32>
    %12 = arith.sitofp %11 : vector<1x32xi32> to vector<1x32xf32>
    %c8_i32_5 = arith.constant 8 : i32
    %13 = vector.broadcast %c8_i32_5 : i32 to vector<1x32xi32>
    %14 = arith.cmpi sge, %5, %13 : vector<1x32xi32>
    %c16_i32 = arith.constant 16 : i32
    %15 = vector.broadcast %c16_i32 : i32 to vector<1x32xi32>
    %16 = arith.cmpi slt, %5, %15 : vector<1x32xi32>
    %17 = arith.andi %14, %16 : vector<1x32xi1>
    %18 = arith.extui %17 : vector<1x32xi1> to vector<1x32xi32>
    %19 = arith.sitofp %18 : vector<1x32xi32> to vector<1x32xf32>
    %c16_i32_6 = arith.constant 16 : i32
    %20 = vector.broadcast %c16_i32_6 : i32 to vector<1x32xi32>
    %21 = arith.cmpi sge, %5, %20 : vector<1x32xi32>
    %c24_i32 = arith.constant 24 : i32
    %22 = vector.broadcast %c24_i32 : i32 to vector<1x32xi32>
    %23 = arith.cmpi slt, %5, %22 : vector<1x32xi32>
    %24 = arith.andi %21, %23 : vector<1x32xi1>
    %25 = arith.extui %24 : vector<1x32xi1> to vector<1x32xi32>
    %26 = arith.sitofp %25 : vector<1x32xi32> to vector<1x32xf32>
    %c24_i32_7 = arith.constant 24 : i32
    %27 = vector.broadcast %c24_i32_7 : i32 to vector<1x32xi32>
    %28 = arith.cmpi sge, %5, %27 : vector<1x32xi32>
    %c32_i32 = arith.constant 32 : i32
    %29 = vector.broadcast %c32_i32 : i32 to vector<1x32xi32>
    %30 = arith.cmpi slt, %5, %29 : vector<1x32xi32>
    %31 = arith.andi %28, %30 : vector<1x32xi1>
    %32 = arith.extui %31 : vector<1x32xi1> to vector<1x32xi32>
    %33 = arith.sitofp %32 : vector<1x32xi32> to vector<1x32xf32>
    %34 = tpu.iota {dimensions = array<i32: 1>} : vector<1x80xi32>
    %c77_i32 = arith.constant 77 : i32
    %35 = vector.broadcast %c77_i32 : i32 to vector<1x80xi32>
    %36 = arith.cmpi slt, %34, %35 : vector<1x80xi32>
    %cst = arith.constant 0.000000e+00 : f32
    %cst_8 = arith.constant -1.000000e+30 : f32
    %37 = vector.broadcast %cst : f32 to vector<1x80xf32>
    %38 = vector.broadcast %cst_8 : f32 to vector<1x80xf32>
    %39 = arith.select %36, %37, %38 : vector<1x80xi1>, vector<1x80xf32>
    %c0_9 = arith.constant 0 : index
    %c0_10 = arith.constant 0 : index
    %c0_11 = arith.constant 0 : index
    %40 = vector.load %arg10[%c0_9, %c0_10, %c0_11] : memref<2x6x32xf32, #tpu.memory_space<vmem>>, vector<1x6x32xf32>
    %41 = vector.shape_cast %40 : vector<1x6x32xf32> to vector<6x32xf32>
    %42 = vector.extract_strided_slice %41 {offsets = [0, 0], sizes = [1, 32], strides = [1, 1]} : vector<6x32xf32> to vector<1x32xf32>
    %43 = vector.extract_strided_slice %41 {offsets = [1, 0], sizes = [1, 32], strides = [1, 1]} : vector<6x32xf32> to vector<1x32xf32>
    %44 = vector.extract_strided_slice %41 {offsets = [2, 0], sizes = [1, 32], strides = [1, 1]} : vector<6x32xf32> to vector<1x32xf32>
    %45 = vector.extract_strided_slice %41 {offsets = [3, 0], sizes = [1, 32], strides = [1, 1]} : vector<6x32xf32> to vector<1x32xf32>
    %46 = vector.extract_strided_slice %41 {offsets = [4, 0], sizes = [1, 32], strides = [1, 1]} : vector<6x32xf32> to vector<1x32xf32>
    %47 = vector.extract_strided_slice %41 {offsets = [5, 0], sizes = [1, 32], strides = [1, 1]} : vector<6x32xf32> to vector<1x32xf32>
    %c0_12 = arith.constant 0 : index
    %c0_13 = arith.constant 0 : index
    %c0_14 = arith.constant 0 : index
    %48 = vector.load %arg4[%c0_12, %c0_13, %c0_14] : memref<2x32x96xf32, #tpu.memory_space<vmem>>, vector<1x32x96xf32>
    %49 = vector.shape_cast %48 : vector<1x32x96xf32> to vector<32x96xf32>
    %cst_15 = arith.constant dense<0.000000e+00> : vector<160x96xf32>
    %50 = tpu.matmul %4, %49, %cst_15 {dimension_numbers = #tpu.dot_dimension_numbers<[1], [0], [0], [1], [0, 0, 1, 1], [], []>} : vector<160x32xf32>, vector<32x96xf32>, vector<160x96xf32> -> vector<160x96xf32>
    %c0_16 = arith.constant 0 : index
    %c0_17 = arith.constant 0 : index
    %c0_18 = arith.constant 0 : index
    %51 = vector.load %arg5[%c0_16, %c0_17, %c0_18] : memref<2x1x96xf32, #tpu.memory_space<vmem>>, vector<1x1x96xf32>
    %52 = vector.shape_cast %51 : vector<1x1x96xf32> to vector<1x96xf32>
    %53 = vector.broadcast %52 : vector<1x96xf32> to vector<160x96xf32>
    %54 = arith.addf %50, %53 : vector<160x96xf32>
    %55 = vector.extract_strided_slice %54 {offsets = [0, 0], sizes = [160, 32], strides = [1, 1]} : vector<160x96xf32> to vector<160x32xf32>
    %cst_19 = arith.constant 0.353553385 : f32
    %56 = vector.broadcast %cst_19 : f32 to vector<160x32xf32>
    %57 = arith.mulf %55, %56 : vector<160x32xf32>
    %58 = vector.extract_strided_slice %54 {offsets = [0, 32], sizes = [160, 32], strides = [1, 1]} : vector<160x96xf32> to vector<160x32xf32>
    %59 = vector.extract_strided_slice %54 {offsets = [0, 64], sizes = [160, 32], strides = [1, 1]} : vector<160x96xf32> to vector<160x32xf32>
    %60 = vector.extract_strided_slice %57 {offsets = [0, 0], sizes = [80, 32], strides = [1, 1]} : vector<160x32xf32> to vector<80x32xf32>
    %61 = vector.extract_strided_slice %58 {offsets = [0, 0], sizes = [80, 32], strides = [1, 1]} : vector<160x32xf32> to vector<80x32xf32>
    %62 = vector.extract_strided_slice %59 {offsets = [0, 0], sizes = [80, 32], strides = [1, 1]} : vector<160x32xf32> to vector<80x32xf32>
    %63 = vector.broadcast %12 : vector<1x32xf32> to vector<80x32xf32>
    %64 = arith.mulf %60, %63 : vector<80x32xf32>
    %cst_20 = arith.constant dense<0.000000e+00> : vector<80x80xf32>
    %65 = tpu.matmul %64, %61, %cst_20 {dimension_numbers = #tpu.dot_dimension_numbers<[1], [1], [0], [0], [0, 0, 1, 0], [], []>} : vector<80x32xf32>, vector<80x32xf32>, vector<80x80xf32> -> vector<80x80xf32>
    %66 = vector.broadcast %39 : vector<1x80xf32> to vector<80x80xf32>
    %67 = arith.addf %65, %66 : vector<80x80xf32>
    %cst_21 = arith.constant dense<0xFF800000> : vector<80xf32>
    %68 = vector.multi_reduction <maximumf>, %67, %cst_21 [1] : vector<80x80xf32> to vector<80xf32>
    %69 = vector.shape_cast %68 : vector<80xf32> to vector<80x1xf32>
    %70 = vector.broadcast %69 : vector<80x1xf32> to vector<80x80xf32>
    %71 = arith.subf %67, %70 : vector<80x80xf32>
    %72 = math.exp %71 : vector<80x80xf32>
    %cst_22 = arith.constant dense<0.000000e+00> : vector<80xf32>
    %73 = vector.multi_reduction <add>, %72, %cst_22 [1] : vector<80x80xf32> to vector<80xf32>
    %74 = vector.shape_cast %73 : vector<80xf32> to vector<80x1xf32>
    %75 = tpu.reciprocal %74 {approx = true} : vector<80x1xf32> -> vector<80x1xf32>
    %76 = vector.broadcast %75 : vector<80x1xf32> to vector<80x80xf32>
    %77 = arith.mulf %72, %76 : vector<80x80xf32>
    %78 = vector.broadcast %12 : vector<1x32xf32> to vector<80x32xf32>
    %79 = arith.mulf %62, %78 : vector<80x32xf32>
    %cst_23 = arith.constant dense<0.000000e+00> : vector<80x32xf32>
    %80 = tpu.matmul %77, %79, %cst_23 {dimension_numbers = #tpu.dot_dimension_numbers<[1], [0], [0], [1], [0, 0, 1, 1], [], []>} : vector<80x80xf32>, vector<80x32xf32>, vector<80x32xf32> -> vector<80x32xf32>
    %81 = vector.broadcast %19 : vector<1x32xf32> to vector<80x32xf32>
    %82 = arith.mulf %60, %81 : vector<80x32xf32>
    %cst_24 = arith.constant dense<0.000000e+00> : vector<80x80xf32>
    %83 = tpu.matmul %82, %61, %cst_24 {dimension_numbers = #tpu.dot_dimension_numbers<[1], [1], [0], [0], [0, 0, 1, 0], [], []>} : vector<80x32xf32>, vector<80x32xf32>, vector<80x80xf32> -> vector<80x80xf32>
    %84 = vector.broadcast %39 : vector<1x80xf32> to vector<80x80xf32>
    %85 = arith.addf %83, %84 : vector<80x80xf32>
    %cst_25 = arith.constant dense<0xFF800000> : vector<80xf32>
    %86 = vector.multi_reduction <maximumf>, %85, %cst_25 [1] : vector<80x80xf32> to vector<80xf32>
    %87 = vector.shape_cast %86 : vector<80xf32> to vector<80x1xf32>
    %88 = vector.broadcast %87 : vector<80x1xf32> to vector<80x80xf32>
    %89 = arith.subf %85, %88 : vector<80x80xf32>
    %90 = math.exp %89 : vector<80x80xf32>
    %cst_26 = arith.constant dense<0.000000e+00> : vector<80xf32>
    %91 = vector.multi_reduction <add>, %90, %cst_26 [1] : vector<80x80xf32> to vector<80xf32>
    %92 = vector.shape_cast %91 : vector<80xf32> to vector<80x1xf32>
    %93 = tpu.reciprocal %92 {approx = true} : vector<80x1xf32> -> vector<80x1xf32>
    %94 = vector.broadcast %93 : vector<80x1xf32> to vector<80x80xf32>
    %95 = arith.mulf %90, %94 : vector<80x80xf32>
    %96 = vector.broadcast %19 : vector<1x32xf32> to vector<80x32xf32>
    %97 = arith.mulf %62, %96 : vector<80x32xf32>
    %cst_27 = arith.constant dense<0.000000e+00> : vector<80x32xf32>
    %98 = tpu.matmul %95, %97, %cst_27 {dimension_numbers = #tpu.dot_dimension_numbers<[1], [0], [0], [1], [0, 0, 1, 1], [], []>} : vector<80x80xf32>, vector<80x32xf32>, vector<80x32xf32> -> vector<80x32xf32>
    %99 = arith.addf %80, %98 : vector<80x32xf32>
    %100 = vector.broadcast %26 : vector<1x32xf32> to vector<80x32xf32>
    %101 = arith.mulf %60, %100 : vector<80x32xf32>
    %cst_28 = arith.constant dense<0.000000e+00> : vector<80x80xf32>
    %102 = tpu.matmul %101, %61, %cst_28 {dimension_numbers = #tpu.dot_dimension_numbers<[1], [1], [0], [0], [0, 0, 1, 0], [], []>} : vector<80x32xf32>, vector<80x32xf32>, vector<80x80xf32> -> vector<80x80xf32>
    %103 = vector.broadcast %39 : vector<1x80xf32> to vector<80x80xf32>
    %104 = arith.addf %102, %103 : vector<80x80xf32>
    %cst_29 = arith.constant dense<0xFF800000> : vector<80xf32>
    %105 = vector.multi_reduction <maximumf>, %104, %cst_29 [1] : vector<80x80xf32> to vector<80xf32>
    %106 = vector.shape_cast %105 : vector<80xf32> to vector<80x1xf32>
    %107 = vector.broadcast %106 : vector<80x1xf32> to vector<80x80xf32>
    %108 = arith.subf %104, %107 : vector<80x80xf32>
    %109 = math.exp %108 : vector<80x80xf32>
    %cst_30 = arith.constant dense<0.000000e+00> : vector<80xf32>
    %110 = vector.multi_reduction <add>, %109, %cst_30 [1] : vector<80x80xf32> to vector<80xf32>
    %111 = vector.shape_cast %110 : vector<80xf32> to vector<80x1xf32>
    %112 = tpu.reciprocal %111 {approx = true} : vector<80x1xf32> -> vector<80x1xf32>
    %113 = vector.broadcast %112 : vector<80x1xf32> to vector<80x80xf32>
    %114 = arith.mulf %109, %113 : vector<80x80xf32>
    %115 = vector.broadcast %26 : vector<1x32xf32> to vector<80x32xf32>
    %116 = arith.mulf %62, %115 : vector<80x32xf32>
    %cst_31 = arith.constant dense<0.000000e+00> : vector<80x32xf32>
    %117 = tpu.matmul %114, %116, %cst_31 {dimension_numbers = #tpu.dot_dimension_numbers<[1], [0], [0], [1], [0, 0, 1, 1], [], []>} : vector<80x80xf32>, vector<80x32xf32>, vector<80x32xf32> -> vector<80x32xf32>
    %118 = arith.addf %99, %117 : vector<80x32xf32>
    %119 = vector.broadcast %33 : vector<1x32xf32> to vector<80x32xf32>
    %120 = arith.mulf %60, %119 : vector<80x32xf32>
    %cst_32 = arith.constant dense<0.000000e+00> : vector<80x80xf32>
    %121 = tpu.matmul %120, %61, %cst_32 {dimension_numbers = #tpu.dot_dimension_numbers<[1], [1], [0], [0], [0, 0, 1, 0], [], []>} : vector<80x32xf32>, vector<80x32xf32>, vector<80x80xf32> -> vector<80x80xf32>
    %122 = vector.broadcast %39 : vector<1x80xf32> to vector<80x80xf32>
    %123 = arith.addf %121, %122 : vector<80x80xf32>
    %cst_33 = arith.constant dense<0xFF800000> : vector<80xf32>
    %124 = vector.multi_reduction <maximumf>, %123, %cst_33 [1] : vector<80x80xf32> to vector<80xf32>
    %125 = vector.shape_cast %124 : vector<80xf32> to vector<80x1xf32>
    %126 = vector.broadcast %125 : vector<80x1xf32> to vector<80x80xf32>
    %127 = arith.subf %123, %126 : vector<80x80xf32>
    %128 = math.exp %127 : vector<80x80xf32>
    %cst_34 = arith.constant dense<0.000000e+00> : vector<80xf32>
    %129 = vector.multi_reduction <add>, %128, %cst_34 [1] : vector<80x80xf32> to vector<80xf32>
    %130 = vector.shape_cast %129 : vector<80xf32> to vector<80x1xf32>
    %131 = tpu.reciprocal %130 {approx = true} : vector<80x1xf32> -> vector<80x1xf32>
    %132 = vector.broadcast %131 : vector<80x1xf32> to vector<80x80xf32>
    %133 = arith.mulf %128, %132 : vector<80x80xf32>
    %134 = vector.broadcast %33 : vector<1x32xf32> to vector<80x32xf32>
    %135 = arith.mulf %62, %134 : vector<80x32xf32>
    %cst_35 = arith.constant dense<0.000000e+00> : vector<80x32xf32>
    %136 = tpu.matmul %133, %135, %cst_35 {dimension_numbers = #tpu.dot_dimension_numbers<[1], [0], [0], [1], [0, 0, 1, 1], [], []>} : vector<80x80xf32>, vector<80x32xf32>, vector<80x32xf32> -> vector<80x32xf32>
    %137 = arith.addf %118, %136 : vector<80x32xf32>
    %138 = vector.extract_strided_slice %57 {offsets = [80, 0], sizes = [80, 32], strides = [1, 1]} : vector<160x32xf32> to vector<80x32xf32>
    %139 = vector.extract_strided_slice %58 {offsets = [80, 0], sizes = [80, 32], strides = [1, 1]} : vector<160x32xf32> to vector<80x32xf32>
    %140 = vector.extract_strided_slice %59 {offsets = [80, 0], sizes = [80, 32], strides = [1, 1]} : vector<160x32xf32> to vector<80x32xf32>
    %141 = vector.broadcast %12 : vector<1x32xf32> to vector<80x32xf32>
    %142 = arith.mulf %138, %141 : vector<80x32xf32>
    %cst_36 = arith.constant dense<0.000000e+00> : vector<80x80xf32>
    %143 = tpu.matmul %142, %139, %cst_36 {dimension_numbers = #tpu.dot_dimension_numbers<[1], [1], [0], [0], [0, 0, 1, 0], [], []>} : vector<80x32xf32>, vector<80x32xf32>, vector<80x80xf32> -> vector<80x80xf32>
    %144 = vector.broadcast %39 : vector<1x80xf32> to vector<80x80xf32>
    %145 = arith.addf %143, %144 : vector<80x80xf32>
    %cst_37 = arith.constant dense<0xFF800000> : vector<80xf32>
    %146 = vector.multi_reduction <maximumf>, %145, %cst_37 [1] : vector<80x80xf32> to vector<80xf32>
    %147 = vector.shape_cast %146 : vector<80xf32> to vector<80x1xf32>
    %148 = vector.broadcast %147 : vector<80x1xf32> to vector<80x80xf32>
    %149 = arith.subf %145, %148 : vector<80x80xf32>
    %150 = math.exp %149 : vector<80x80xf32>
    %cst_38 = arith.constant dense<0.000000e+00> : vector<80xf32>
    %151 = vector.multi_reduction <add>, %150, %cst_38 [1] : vector<80x80xf32> to vector<80xf32>
    %152 = vector.shape_cast %151 : vector<80xf32> to vector<80x1xf32>
    %153 = tpu.reciprocal %152 {approx = true} : vector<80x1xf32> -> vector<80x1xf32>
    %154 = vector.broadcast %153 : vector<80x1xf32> to vector<80x80xf32>
    %155 = arith.mulf %150, %154 : vector<80x80xf32>
    %156 = vector.broadcast %12 : vector<1x32xf32> to vector<80x32xf32>
    %157 = arith.mulf %140, %156 : vector<80x32xf32>
    %cst_39 = arith.constant dense<0.000000e+00> : vector<80x32xf32>
    %158 = tpu.matmul %155, %157, %cst_39 {dimension_numbers = #tpu.dot_dimension_numbers<[1], [0], [0], [1], [0, 0, 1, 1], [], []>} : vector<80x80xf32>, vector<80x32xf32>, vector<80x32xf32> -> vector<80x32xf32>
    %159 = vector.broadcast %19 : vector<1x32xf32> to vector<80x32xf32>
    %160 = arith.mulf %138, %159 : vector<80x32xf32>
    %cst_40 = arith.constant dense<0.000000e+00> : vector<80x80xf32>
    %161 = tpu.matmul %160, %139, %cst_40 {dimension_numbers = #tpu.dot_dimension_numbers<[1], [1], [0], [0], [0, 0, 1, 0], [], []>} : vector<80x32xf32>, vector<80x32xf32>, vector<80x80xf32> -> vector<80x80xf32>
    %162 = vector.broadcast %39 : vector<1x80xf32> to vector<80x80xf32>
    %163 = arith.addf %161, %162 : vector<80x80xf32>
    %cst_41 = arith.constant dense<0xFF800000> : vector<80xf32>
    %164 = vector.multi_reduction <maximumf>, %163, %cst_41 [1] : vector<80x80xf32> to vector<80xf32>
    %165 = vector.shape_cast %164 : vector<80xf32> to vector<80x1xf32>
    %166 = vector.broadcast %165 : vector<80x1xf32> to vector<80x80xf32>
    %167 = arith.subf %163, %166 : vector<80x80xf32>
    %168 = math.exp %167 : vector<80x80xf32>
    %cst_42 = arith.constant dense<0.000000e+00> : vector<80xf32>
    %169 = vector.multi_reduction <add>, %168, %cst_42 [1] : vector<80x80xf32> to vector<80xf32>
    %170 = vector.shape_cast %169 : vector<80xf32> to vector<80x1xf32>
    %171 = tpu.reciprocal %170 {approx = true} : vector<80x1xf32> -> vector<80x1xf32>
    %172 = vector.broadcast %171 : vector<80x1xf32> to vector<80x80xf32>
    %173 = arith.mulf %168, %172 : vector<80x80xf32>
    %174 = vector.broadcast %19 : vector<1x32xf32> to vector<80x32xf32>
    %175 = arith.mulf %140, %174 : vector<80x32xf32>
    %cst_43 = arith.constant dense<0.000000e+00> : vector<80x32xf32>
    %176 = tpu.matmul %173, %175, %cst_43 {dimension_numbers = #tpu.dot_dimension_numbers<[1], [0], [0], [1], [0, 0, 1, 1], [], []>} : vector<80x80xf32>, vector<80x32xf32>, vector<80x32xf32> -> vector<80x32xf32>
    %177 = arith.addf %158, %176 : vector<80x32xf32>
    %178 = vector.broadcast %26 : vector<1x32xf32> to vector<80x32xf32>
    %179 = arith.mulf %138, %178 : vector<80x32xf32>
    %cst_44 = arith.constant dense<0.000000e+00> : vector<80x80xf32>
    %180 = tpu.matmul %179, %139, %cst_44 {dimension_numbers = #tpu.dot_dimension_numbers<[1], [1], [0], [0], [0, 0, 1, 0], [], []>} : vector<80x32xf32>, vector<80x32xf32>, vector<80x80xf32> -> vector<80x80xf32>
    %181 = vector.broadcast %39 : vector<1x80xf32> to vector<80x80xf32>
    %182 = arith.addf %180, %181 : vector<80x80xf32>
    %cst_45 = arith.constant dense<0xFF800000> : vector<80xf32>
    %183 = vector.multi_reduction <maximumf>, %182, %cst_45 [1] : vector<80x80xf32> to vector<80xf32>
    %184 = vector.shape_cast %183 : vector<80xf32> to vector<80x1xf32>
    %185 = vector.broadcast %184 : vector<80x1xf32> to vector<80x80xf32>
    %186 = arith.subf %182, %185 : vector<80x80xf32>
    %187 = math.exp %186 : vector<80x80xf32>
    %cst_46 = arith.constant dense<0.000000e+00> : vector<80xf32>
    %188 = vector.multi_reduction <add>, %187, %cst_46 [1] : vector<80x80xf32> to vector<80xf32>
    %189 = vector.shape_cast %188 : vector<80xf32> to vector<80x1xf32>
    %190 = tpu.reciprocal %189 {approx = true} : vector<80x1xf32> -> vector<80x1xf32>
    %191 = vector.broadcast %190 : vector<80x1xf32> to vector<80x80xf32>
    %192 = arith.mulf %187, %191 : vector<80x80xf32>
    %193 = vector.broadcast %26 : vector<1x32xf32> to vector<80x32xf32>
    %194 = arith.mulf %140, %193 : vector<80x32xf32>
    %cst_47 = arith.constant dense<0.000000e+00> : vector<80x32xf32>
    %195 = tpu.matmul %192, %194, %cst_47 {dimension_numbers = #tpu.dot_dimension_numbers<[1], [0], [0], [1], [0, 0, 1, 1], [], []>} : vector<80x80xf32>, vector<80x32xf32>, vector<80x32xf32> -> vector<80x32xf32>
    %196 = arith.addf %177, %195 : vector<80x32xf32>
    %197 = vector.broadcast %33 : vector<1x32xf32> to vector<80x32xf32>
    %198 = arith.mulf %138, %197 : vector<80x32xf32>
    %cst_48 = arith.constant dense<0.000000e+00> : vector<80x80xf32>
    %199 = tpu.matmul %198, %139, %cst_48 {dimension_numbers = #tpu.dot_dimension_numbers<[1], [1], [0], [0], [0, 0, 1, 0], [], []>} : vector<80x32xf32>, vector<80x32xf32>, vector<80x80xf32> -> vector<80x80xf32>
    %200 = vector.broadcast %39 : vector<1x80xf32> to vector<80x80xf32>
    %201 = arith.addf %199, %200 : vector<80x80xf32>
    %cst_49 = arith.constant dense<0xFF800000> : vector<80xf32>
    %202 = vector.multi_reduction <maximumf>, %201, %cst_49 [1] : vector<80x80xf32> to vector<80xf32>
    %203 = vector.shape_cast %202 : vector<80xf32> to vector<80x1xf32>
    %204 = vector.broadcast %203 : vector<80x1xf32> to vector<80x80xf32>
    %205 = arith.subf %201, %204 : vector<80x80xf32>
    %206 = math.exp %205 : vector<80x80xf32>
    %cst_50 = arith.constant dense<0.000000e+00> : vector<80xf32>
    %207 = vector.multi_reduction <add>, %206, %cst_50 [1] : vector<80x80xf32> to vector<80xf32>
    %208 = vector.shape_cast %207 : vector<80xf32> to vector<80x1xf32>
    %209 = tpu.reciprocal %208 {approx = true} : vector<80x1xf32> -> vector<80x1xf32>
    %210 = vector.broadcast %209 : vector<80x1xf32> to vector<80x80xf32>
    %211 = arith.mulf %206, %210 : vector<80x80xf32>
    %212 = vector.broadcast %33 : vector<1x32xf32> to vector<80x32xf32>
    %213 = arith.mulf %140, %212 : vector<80x32xf32>
    %cst_51 = arith.constant dense<0.000000e+00> : vector<80x32xf32>
    %214 = tpu.matmul %211, %213, %cst_51 {dimension_numbers = #tpu.dot_dimension_numbers<[1], [0], [0], [1], [0, 0, 1, 1], [], []>} : vector<80x80xf32>, vector<80x32xf32>, vector<80x32xf32> -> vector<80x32xf32>
    %215 = arith.addf %196, %214 : vector<80x32xf32>
    %216 = tpu.concatenate %137, %215 in 0 : vector<80x32xf32>, vector<80x32xf32> -> vector<160x32xf32>
    %c0_52 = arith.constant 0 : index
    %c0_53 = arith.constant 0 : index
    %c0_54 = arith.constant 0 : index
    %217 = vector.load %arg6[%c0_52, %c0_53, %c0_54] : memref<2x32x32xf32, #tpu.memory_space<vmem>>, vector<1x32x32xf32>
    %218 = vector.shape_cast %217 : vector<1x32x32xf32> to vector<32x32xf32>
    %cst_55 = arith.constant dense<0.000000e+00> : vector<160x32xf32>
    %219 = tpu.matmul %216, %218, %cst_55 {dimension_numbers = #tpu.dot_dimension_numbers<[1], [0], [0], [1], [0, 0, 1, 1], [], []>} : vector<160x32xf32>, vector<32x32xf32>, vector<160x32xf32> -> vector<160x32xf32>
    %220 = vector.broadcast %42 : vector<1x32xf32> to vector<160x32xf32>
    %221 = arith.addf %219, %220 : vector<160x32xf32>
    %222 = arith.addf %4, %221 : vector<160x32xf32>
    %cst_56 = arith.constant dense<0.000000e+00> : vector<160xf32>
    %223 = vector.multi_reduction <add>, %222, %cst_56 [1] : vector<160x32xf32> to vector<160xf32>
    %224 = vector.shape_cast %223 : vector<160xf32> to vector<160x1xf32>
    %cst_57 = arith.constant 3.200000e+01 : f32
    %225 = vector.broadcast %cst_57 : f32 to vector<160x1xf32>
    %226 = arith.divf %224, %225 : vector<160x1xf32>
    %227 = vector.broadcast %226 : vector<160x1xf32> to vector<160x32xf32>
    %228 = arith.subf %222, %227 : vector<160x32xf32>
    %229 = arith.mulf %228, %228 : vector<160x32xf32>
    %cst_58 = arith.constant dense<0.000000e+00> : vector<160xf32>
    %230 = vector.multi_reduction <add>, %229, %cst_58 [1] : vector<160x32xf32> to vector<160xf32>
    %231 = vector.shape_cast %230 : vector<160xf32> to vector<160x1xf32>
    %cst_59 = arith.constant 3.200000e+01 : f32
    %232 = vector.broadcast %cst_59 : f32 to vector<160x1xf32>
    %233 = arith.divf %231, %232 : vector<160x1xf32>
    %234 = vector.broadcast %226 : vector<160x1xf32> to vector<160x32xf32>
    %235 = arith.subf %222, %234 : vector<160x32xf32>
    %cst_60 = arith.constant 9.99999974E-6 : f32
    %236 = vector.broadcast %cst_60 : f32 to vector<160x1xf32>
    %237 = arith.addf %233, %236 : vector<160x1xf32>
    %238 = math.rsqrt %237 : vector<160x1xf32>
    %239 = vector.broadcast %238 : vector<160x1xf32> to vector<160x32xf32>
    %240 = arith.mulf %235, %239 : vector<160x32xf32>
    %241 = vector.broadcast %43 : vector<1x32xf32> to vector<160x32xf32>
    %242 = arith.mulf %240, %241 : vector<160x32xf32>
    %243 = vector.broadcast %44 : vector<1x32xf32> to vector<160x32xf32>
    %244 = arith.addf %242, %243 : vector<160x32xf32>
    %c0_61 = arith.constant 0 : index
    %c0_62 = arith.constant 0 : index
    %c0_63 = arith.constant 0 : index
    %245 = vector.load %arg7[%c0_61, %c0_62, %c0_63] : memref<2x32x64xf32, #tpu.memory_space<vmem>>, vector<1x32x64xf32>
    %246 = vector.shape_cast %245 : vector<1x32x64xf32> to vector<32x64xf32>
    %cst_64 = arith.constant dense<0.000000e+00> : vector<160x64xf32>
    %247 = tpu.matmul %244, %246, %cst_64 {dimension_numbers = #tpu.dot_dimension_numbers<[1], [0], [0], [1], [0, 0, 1, 1], [], []>} : vector<160x32xf32>, vector<32x64xf32>, vector<160x64xf32> -> vector<160x64xf32>
    %c0_65 = arith.constant 0 : index
    %c0_66 = arith.constant 0 : index
    %c0_67 = arith.constant 0 : index
    %248 = vector.load %arg8[%c0_65, %c0_66, %c0_67] : memref<2x1x64xf32, #tpu.memory_space<vmem>>, vector<1x1x64xf32>
    %249 = vector.shape_cast %248 : vector<1x1x64xf32> to vector<1x64xf32>
    %250 = vector.broadcast %249 : vector<1x64xf32> to vector<160x64xf32>
    %251 = arith.addf %247, %250 : vector<160x64xf32>
    %cst_68 = arith.constant 5.000000e-01 : f32
    %252 = vector.broadcast %cst_68 : f32 to vector<160x64xf32>
    %253 = arith.mulf %252, %251 : vector<160x64xf32>
    %cst_69 = arith.constant 4.471500e-02 : f32
    %254 = vector.broadcast %cst_69 : f32 to vector<160x64xf32>
    %255 = arith.mulf %254, %251 : vector<160x64xf32>
    %256 = arith.mulf %255, %251 : vector<160x64xf32>
    %257 = arith.mulf %256, %251 : vector<160x64xf32>
    %258 = arith.addf %251, %257 : vector<160x64xf32>
    %cst_70 = arith.constant 0.797884583 : f32
    %259 = vector.broadcast %cst_70 : f32 to vector<160x64xf32>
    %260 = arith.mulf %259, %258 : vector<160x64xf32>
    %261 = math.tanh %260 : vector<160x64xf32>
    %cst_71 = arith.constant 1.000000e+00 : f32
    %262 = vector.broadcast %cst_71 : f32 to vector<160x64xf32>
    %263 = arith.addf %262, %261 : vector<160x64xf32>
    %264 = arith.mulf %253, %263 : vector<160x64xf32>
    %c0_72 = arith.constant 0 : index
    %c0_73 = arith.constant 0 : index
    %c0_74 = arith.constant 0 : index
    %265 = vector.load %arg9[%c0_72, %c0_73, %c0_74] : memref<2x64x32xf32, #tpu.memory_space<vmem>>, vector<1x64x32xf32>
    %266 = vector.shape_cast %265 : vector<1x64x32xf32> to vector<64x32xf32>
    %cst_75 = arith.constant dense<0.000000e+00> : vector<160x32xf32>
    %267 = tpu.matmul %264, %266, %cst_75 {dimension_numbers = #tpu.dot_dimension_numbers<[1], [0], [0], [1], [0, 0, 1, 1], [], []>} : vector<160x64xf32>, vector<64x32xf32>, vector<160x32xf32> -> vector<160x32xf32>
    %268 = vector.broadcast %45 : vector<1x32xf32> to vector<160x32xf32>
    %269 = arith.addf %267, %268 : vector<160x32xf32>
    %270 = arith.addf %244, %269 : vector<160x32xf32>
    %cst_76 = arith.constant dense<0.000000e+00> : vector<160xf32>
    %271 = vector.multi_reduction <add>, %270, %cst_76 [1] : vector<160x32xf32> to vector<160xf32>
    %272 = vector.shape_cast %271 : vector<160xf32> to vector<160x1xf32>
    %cst_77 = arith.constant 3.200000e+01 : f32
    %273 = vector.broadcast %cst_77 : f32 to vector<160x1xf32>
    %274 = arith.divf %272, %273 : vector<160x1xf32>
    %275 = vector.broadcast %274 : vector<160x1xf32> to vector<160x32xf32>
    %276 = arith.subf %270, %275 : vector<160x32xf32>
    %277 = arith.mulf %276, %276 : vector<160x32xf32>
    %cst_78 = arith.constant dense<0.000000e+00> : vector<160xf32>
    %278 = vector.multi_reduction <add>, %277, %cst_78 [1] : vector<160x32xf32> to vector<160xf32>
    %279 = vector.shape_cast %278 : vector<160xf32> to vector<160x1xf32>
    %cst_79 = arith.constant 3.200000e+01 : f32
    %280 = vector.broadcast %cst_79 : f32 to vector<160x1xf32>
    %281 = arith.divf %279, %280 : vector<160x1xf32>
    %282 = vector.broadcast %274 : vector<160x1xf32> to vector<160x32xf32>
    %283 = arith.subf %270, %282 : vector<160x32xf32>
    %cst_80 = arith.constant 9.99999974E-6 : f32
    %284 = vector.broadcast %cst_80 : f32 to vector<160x1xf32>
    %285 = arith.addf %281, %284 : vector<160x1xf32>
    %286 = math.rsqrt %285 : vector<160x1xf32>
    %287 = vector.broadcast %286 : vector<160x1xf32> to vector<160x32xf32>
    %288 = arith.mulf %283, %287 : vector<160x32xf32>
    %289 = vector.broadcast %46 : vector<1x32xf32> to vector<160x32xf32>
    %290 = arith.mulf %288, %289 : vector<160x32xf32>
    %291 = vector.broadcast %47 : vector<1x32xf32> to vector<160x32xf32>
    %292 = arith.addf %290, %291 : vector<160x32xf32>
    %c1 = arith.constant 1 : index
    %c0_81 = arith.constant 0 : index
    %c0_82 = arith.constant 0 : index
    %293 = vector.load %arg10[%c1, %c0_81, %c0_82] : memref<2x6x32xf32, #tpu.memory_space<vmem>>, vector<1x6x32xf32>
    %294 = vector.shape_cast %293 : vector<1x6x32xf32> to vector<6x32xf32>
    %295 = vector.extract_strided_slice %294 {offsets = [0, 0], sizes = [1, 32], strides = [1, 1]} : vector<6x32xf32> to vector<1x32xf32>
    %296 = vector.extract_strided_slice %294 {offsets = [1, 0], sizes = [1, 32], strides = [1, 1]} : vector<6x32xf32> to vector<1x32xf32>
    %297 = vector.extract_strided_slice %294 {offsets = [2, 0], sizes = [1, 32], strides = [1, 1]} : vector<6x32xf32> to vector<1x32xf32>
    %298 = vector.extract_strided_slice %294 {offsets = [3, 0], sizes = [1, 32], strides = [1, 1]} : vector<6x32xf32> to vector<1x32xf32>
    %299 = vector.extract_strided_slice %294 {offsets = [4, 0], sizes = [1, 32], strides = [1, 1]} : vector<6x32xf32> to vector<1x32xf32>
    %300 = vector.extract_strided_slice %294 {offsets = [5, 0], sizes = [1, 32], strides = [1, 1]} : vector<6x32xf32> to vector<1x32xf32>
    %c1_83 = arith.constant 1 : index
    %c0_84 = arith.constant 0 : index
    %c0_85 = arith.constant 0 : index
    %301 = vector.load %arg4[%c1_83, %c0_84, %c0_85] : memref<2x32x96xf32, #tpu.memory_space<vmem>>, vector<1x32x96xf32>
    %302 = vector.shape_cast %301 : vector<1x32x96xf32> to vector<32x96xf32>
    %cst_86 = arith.constant dense<0.000000e+00> : vector<160x96xf32>
    %303 = tpu.matmul %292, %302, %cst_86 {dimension_numbers = #tpu.dot_dimension_numbers<[1], [0], [0], [1], [0, 0, 1, 1], [], []>} : vector<160x32xf32>, vector<32x96xf32>, vector<160x96xf32> -> vector<160x96xf32>
    %c1_87 = arith.constant 1 : index
    %c0_88 = arith.constant 0 : index
    %c0_89 = arith.constant 0 : index
    %304 = vector.load %arg5[%c1_87, %c0_88, %c0_89] : memref<2x1x96xf32, #tpu.memory_space<vmem>>, vector<1x1x96xf32>
    %305 = vector.shape_cast %304 : vector<1x1x96xf32> to vector<1x96xf32>
    %306 = vector.broadcast %305 : vector<1x96xf32> to vector<160x96xf32>
    %307 = arith.addf %303, %306 : vector<160x96xf32>
    %308 = vector.extract_strided_slice %307 {offsets = [0, 32], sizes = [160, 32], strides = [1, 1]} : vector<160x96xf32> to vector<160x32xf32>
    %309 = vector.extract_strided_slice %307 {offsets = [0, 64], sizes = [160, 32], strides = [1, 1]} : vector<160x96xf32> to vector<160x32xf32>
    %310 = vector.extract_strided_slice %307 {offsets = [76, 0], sizes = [1, 32], strides = [1, 1]} : vector<160x96xf32> to vector<1x32xf32>
    %cst_90 = arith.constant 0.353553385 : f32
    %311 = vector.broadcast %cst_90 : f32 to vector<1x32xf32>
    %312 = arith.mulf %310, %311 : vector<1x32xf32>
    %313 = vector.extract_strided_slice %308 {offsets = [0, 0], sizes = [80, 32], strides = [1, 1]} : vector<160x32xf32> to vector<80x32xf32>
    %314 = vector.extract_strided_slice %309 {offsets = [0, 0], sizes = [80, 32], strides = [1, 1]} : vector<160x32xf32> to vector<80x32xf32>
    %315 = arith.mulf %312, %12 : vector<1x32xf32>
    %cst_91 = arith.constant dense<0.000000e+00> : vector<1x80xf32>
    %316 = tpu.matmul %315, %313, %cst_91 {dimension_numbers = #tpu.dot_dimension_numbers<[1], [1], [0], [0], [0, 0, 1, 0], [], []>} : vector<1x32xf32>, vector<80x32xf32>, vector<1x80xf32> -> vector<1x80xf32>
    %317 = arith.addf %316, %39 : vector<1x80xf32>
    %cst_92 = arith.constant dense<0xFF800000> : vector<1xf32>
    %318 = vector.multi_reduction <maximumf>, %317, %cst_92 [1] : vector<1x80xf32> to vector<1xf32>
    %319 = vector.shape_cast %318 : vector<1xf32> to vector<1x1xf32>
    %320 = vector.broadcast %319 : vector<1x1xf32> to vector<1x80xf32>
    %321 = arith.subf %317, %320 : vector<1x80xf32>
    %322 = math.exp %321 : vector<1x80xf32>
    %cst_93 = arith.constant dense<0.000000e+00> : vector<1xf32>
    %323 = vector.multi_reduction <add>, %322, %cst_93 [1] : vector<1x80xf32> to vector<1xf32>
    %324 = vector.shape_cast %323 : vector<1xf32> to vector<1x1xf32>
    %325 = tpu.reciprocal %324 {approx = true} : vector<1x1xf32> -> vector<1x1xf32>
    %326 = vector.broadcast %325 : vector<1x1xf32> to vector<1x80xf32>
    %327 = arith.mulf %322, %326 : vector<1x80xf32>
    %328 = vector.broadcast %12 : vector<1x32xf32> to vector<80x32xf32>
    %329 = arith.mulf %314, %328 : vector<80x32xf32>
    %cst_94 = arith.constant dense<0.000000e+00> : vector<1x32xf32>
    %330 = tpu.matmul %327, %329, %cst_94 {dimension_numbers = #tpu.dot_dimension_numbers<[1], [0], [0], [1], [0, 0, 1, 1], [], []>} : vector<1x80xf32>, vector<80x32xf32>, vector<1x32xf32> -> vector<1x32xf32>
    %331 = arith.mulf %312, %19 : vector<1x32xf32>
    %cst_95 = arith.constant dense<0.000000e+00> : vector<1x80xf32>
    %332 = tpu.matmul %331, %313, %cst_95 {dimension_numbers = #tpu.dot_dimension_numbers<[1], [1], [0], [0], [0, 0, 1, 0], [], []>} : vector<1x32xf32>, vector<80x32xf32>, vector<1x80xf32> -> vector<1x80xf32>
    %333 = arith.addf %332, %39 : vector<1x80xf32>
    %cst_96 = arith.constant dense<0xFF800000> : vector<1xf32>
    %334 = vector.multi_reduction <maximumf>, %333, %cst_96 [1] : vector<1x80xf32> to vector<1xf32>
    %335 = vector.shape_cast %334 : vector<1xf32> to vector<1x1xf32>
    %336 = vector.broadcast %335 : vector<1x1xf32> to vector<1x80xf32>
    %337 = arith.subf %333, %336 : vector<1x80xf32>
    %338 = math.exp %337 : vector<1x80xf32>
    %cst_97 = arith.constant dense<0.000000e+00> : vector<1xf32>
    %339 = vector.multi_reduction <add>, %338, %cst_97 [1] : vector<1x80xf32> to vector<1xf32>
    %340 = vector.shape_cast %339 : vector<1xf32> to vector<1x1xf32>
    %341 = tpu.reciprocal %340 {approx = true} : vector<1x1xf32> -> vector<1x1xf32>
    %342 = vector.broadcast %341 : vector<1x1xf32> to vector<1x80xf32>
    %343 = arith.mulf %338, %342 : vector<1x80xf32>
    %344 = vector.broadcast %19 : vector<1x32xf32> to vector<80x32xf32>
    %345 = arith.mulf %314, %344 : vector<80x32xf32>
    %cst_98 = arith.constant dense<0.000000e+00> : vector<1x32xf32>
    %346 = tpu.matmul %343, %345, %cst_98 {dimension_numbers = #tpu.dot_dimension_numbers<[1], [0], [0], [1], [0, 0, 1, 1], [], []>} : vector<1x80xf32>, vector<80x32xf32>, vector<1x32xf32> -> vector<1x32xf32>
    %347 = arith.addf %330, %346 : vector<1x32xf32>
    %348 = arith.mulf %312, %26 : vector<1x32xf32>
    %cst_99 = arith.constant dense<0.000000e+00> : vector<1x80xf32>
    %349 = tpu.matmul %348, %313, %cst_99 {dimension_numbers = #tpu.dot_dimension_numbers<[1], [1], [0], [0], [0, 0, 1, 0], [], []>} : vector<1x32xf32>, vector<80x32xf32>, vector<1x80xf32> -> vector<1x80xf32>
    %350 = arith.addf %349, %39 : vector<1x80xf32>
    %cst_100 = arith.constant dense<0xFF800000> : vector<1xf32>
    %351 = vector.multi_reduction <maximumf>, %350, %cst_100 [1] : vector<1x80xf32> to vector<1xf32>
    %352 = vector.shape_cast %351 : vector<1xf32> to vector<1x1xf32>
    %353 = vector.broadcast %352 : vector<1x1xf32> to vector<1x80xf32>
    %354 = arith.subf %350, %353 : vector<1x80xf32>
    %355 = math.exp %354 : vector<1x80xf32>
    %cst_101 = arith.constant dense<0.000000e+00> : vector<1xf32>
    %356 = vector.multi_reduction <add>, %355, %cst_101 [1] : vector<1x80xf32> to vector<1xf32>
    %357 = vector.shape_cast %356 : vector<1xf32> to vector<1x1xf32>
    %358 = tpu.reciprocal %357 {approx = true} : vector<1x1xf32> -> vector<1x1xf32>
    %359 = vector.broadcast %358 : vector<1x1xf32> to vector<1x80xf32>
    %360 = arith.mulf %355, %359 : vector<1x80xf32>
    %361 = vector.broadcast %26 : vector<1x32xf32> to vector<80x32xf32>
    %362 = arith.mulf %314, %361 : vector<80x32xf32>
    %cst_102 = arith.constant dense<0.000000e+00> : vector<1x32xf32>
    %363 = tpu.matmul %360, %362, %cst_102 {dimension_numbers = #tpu.dot_dimension_numbers<[1], [0], [0], [1], [0, 0, 1, 1], [], []>} : vector<1x80xf32>, vector<80x32xf32>, vector<1x32xf32> -> vector<1x32xf32>
    %364 = arith.addf %347, %363 : vector<1x32xf32>
    %365 = arith.mulf %312, %33 : vector<1x32xf32>
    %cst_103 = arith.constant dense<0.000000e+00> : vector<1x80xf32>
    %366 = tpu.matmul %365, %313, %cst_103 {dimension_numbers = #tpu.dot_dimension_numbers<[1], [1], [0], [0], [0, 0, 1, 0], [], []>} : vector<1x32xf32>, vector<80x32xf32>, vector<1x80xf32> -> vector<1x80xf32>
    %367 = arith.addf %366, %39 : vector<1x80xf32>
    %cst_104 = arith.constant dense<0xFF800000> : vector<1xf32>
    %368 = vector.multi_reduction <maximumf>, %367, %cst_104 [1] : vector<1x80xf32> to vector<1xf32>
    %369 = vector.shape_cast %368 : vector<1xf32> to vector<1x1xf32>
    %370 = vector.broadcast %369 : vector<1x1xf32> to vector<1x80xf32>
    %371 = arith.subf %367, %370 : vector<1x80xf32>
    %372 = math.exp %371 : vector<1x80xf32>
    %cst_105 = arith.constant dense<0.000000e+00> : vector<1xf32>
    %373 = vector.multi_reduction <add>, %372, %cst_105 [1] : vector<1x80xf32> to vector<1xf32>
    %374 = vector.shape_cast %373 : vector<1xf32> to vector<1x1xf32>
    %375 = tpu.reciprocal %374 {approx = true} : vector<1x1xf32> -> vector<1x1xf32>
    %376 = vector.broadcast %375 : vector<1x1xf32> to vector<1x80xf32>
    %377 = arith.mulf %372, %376 : vector<1x80xf32>
    %378 = vector.broadcast %33 : vector<1x32xf32> to vector<80x32xf32>
    %379 = arith.mulf %314, %378 : vector<80x32xf32>
    %cst_106 = arith.constant dense<0.000000e+00> : vector<1x32xf32>
    %380 = tpu.matmul %377, %379, %cst_106 {dimension_numbers = #tpu.dot_dimension_numbers<[1], [0], [0], [1], [0, 0, 1, 1], [], []>} : vector<1x80xf32>, vector<80x32xf32>, vector<1x32xf32> -> vector<1x32xf32>
    %381 = arith.addf %364, %380 : vector<1x32xf32>
    %c1_107 = arith.constant 1 : index
    %c0_108 = arith.constant 0 : index
    %c0_109 = arith.constant 0 : index
    %382 = vector.load %arg6[%c1_107, %c0_108, %c0_109] : memref<2x32x32xf32, #tpu.memory_space<vmem>>, vector<1x32x32xf32>
    %383 = vector.shape_cast %382 : vector<1x32x32xf32> to vector<32x32xf32>
    %cst_110 = arith.constant dense<0.000000e+00> : vector<1x32xf32>
    %384 = tpu.matmul %381, %383, %cst_110 {dimension_numbers = #tpu.dot_dimension_numbers<[1], [0], [0], [1], [0, 0, 1, 1], [], []>} : vector<1x32xf32>, vector<32x32xf32>, vector<1x32xf32> -> vector<1x32xf32>
    %385 = arith.addf %384, %295 : vector<1x32xf32>
    %386 = vector.extract_strided_slice %292 {offsets = [76, 0], sizes = [1, 32], strides = [1, 1]} : vector<160x32xf32> to vector<1x32xf32>
    %387 = arith.addf %386, %385 : vector<1x32xf32>
    %cst_111 = arith.constant dense<0.000000e+00> : vector<1xf32>
    %388 = vector.multi_reduction <add>, %387, %cst_111 [1] : vector<1x32xf32> to vector<1xf32>
    %389 = vector.shape_cast %388 : vector<1xf32> to vector<1x1xf32>
    %cst_112 = arith.constant 3.200000e+01 : f32
    %390 = vector.broadcast %cst_112 : f32 to vector<1x1xf32>
    %391 = arith.divf %389, %390 : vector<1x1xf32>
    %392 = vector.broadcast %391 : vector<1x1xf32> to vector<1x32xf32>
    %393 = arith.subf %387, %392 : vector<1x32xf32>
    %394 = arith.mulf %393, %393 : vector<1x32xf32>
    %cst_113 = arith.constant dense<0.000000e+00> : vector<1xf32>
    %395 = vector.multi_reduction <add>, %394, %cst_113 [1] : vector<1x32xf32> to vector<1xf32>
    %396 = vector.shape_cast %395 : vector<1xf32> to vector<1x1xf32>
    %cst_114 = arith.constant 3.200000e+01 : f32
    %397 = vector.broadcast %cst_114 : f32 to vector<1x1xf32>
    %398 = arith.divf %396, %397 : vector<1x1xf32>
    %399 = vector.broadcast %391 : vector<1x1xf32> to vector<1x32xf32>
    %400 = arith.subf %387, %399 : vector<1x32xf32>
    %cst_115 = arith.constant 9.99999974E-6 : f32
    %401 = vector.broadcast %cst_115 : f32 to vector<1x1xf32>
    %402 = arith.addf %398, %401 : vector<1x1xf32>
    %403 = math.rsqrt %402 : vector<1x1xf32>
    %404 = vector.broadcast %403 : vector<1x1xf32> to vector<1x32xf32>
    %405 = arith.mulf %400, %404 : vector<1x32xf32>
    %406 = arith.mulf %405, %296 : vector<1x32xf32>
    %407 = arith.addf %406, %297 : vector<1x32xf32>
    %c1_116 = arith.constant 1 : index
    %c0_117 = arith.constant 0 : index
    %c0_118 = arith.constant 0 : index
    %408 = vector.load %arg7[%c1_116, %c0_117, %c0_118] : memref<2x32x64xf32, #tpu.memory_space<vmem>>, vector<1x32x64xf32>
    %409 = vector.shape_cast %408 : vector<1x32x64xf32> to vector<32x64xf32>
    %cst_119 = arith.constant dense<0.000000e+00> : vector<1x64xf32>
    %410 = tpu.matmul %407, %409, %cst_119 {dimension_numbers = #tpu.dot_dimension_numbers<[1], [0], [0], [1], [0, 0, 1, 1], [], []>} : vector<1x32xf32>, vector<32x64xf32>, vector<1x64xf32> -> vector<1x64xf32>
    %c1_120 = arith.constant 1 : index
    %c0_121 = arith.constant 0 : index
    %c0_122 = arith.constant 0 : index
    %411 = vector.load %arg8[%c1_120, %c0_121, %c0_122] : memref<2x1x64xf32, #tpu.memory_space<vmem>>, vector<1x1x64xf32>
    %412 = vector.shape_cast %411 : vector<1x1x64xf32> to vector<1x64xf32>
    %413 = arith.addf %410, %412 : vector<1x64xf32>
    %cst_123 = arith.constant 5.000000e-01 : f32
    %414 = vector.broadcast %cst_123 : f32 to vector<1x64xf32>
    %415 = arith.mulf %414, %413 : vector<1x64xf32>
    %cst_124 = arith.constant 4.471500e-02 : f32
    %416 = vector.broadcast %cst_124 : f32 to vector<1x64xf32>
    %417 = arith.mulf %416, %413 : vector<1x64xf32>
    %418 = arith.mulf %417, %413 : vector<1x64xf32>
    %419 = arith.mulf %418, %413 : vector<1x64xf32>
    %420 = arith.addf %413, %419 : vector<1x64xf32>
    %cst_125 = arith.constant 0.797884583 : f32
    %421 = vector.broadcast %cst_125 : f32 to vector<1x64xf32>
    %422 = arith.mulf %421, %420 : vector<1x64xf32>
    %423 = math.tanh %422 : vector<1x64xf32>
    %cst_126 = arith.constant 1.000000e+00 : f32
    %424 = vector.broadcast %cst_126 : f32 to vector<1x64xf32>
    %425 = arith.addf %424, %423 : vector<1x64xf32>
    %426 = arith.mulf %415, %425 : vector<1x64xf32>
    %c1_127 = arith.constant 1 : index
    %c0_128 = arith.constant 0 : index
    %c0_129 = arith.constant 0 : index
    %427 = vector.load %arg9[%c1_127, %c0_128, %c0_129] : memref<2x64x32xf32, #tpu.memory_space<vmem>>, vector<1x64x32xf32>
    %428 = vector.shape_cast %427 : vector<1x64x32xf32> to vector<64x32xf32>
    %cst_130 = arith.constant dense<0.000000e+00> : vector<1x32xf32>
    %429 = tpu.matmul %426, %428, %cst_130 {dimension_numbers = #tpu.dot_dimension_numbers<[1], [0], [0], [1], [0, 0, 1, 1], [], []>} : vector<1x64xf32>, vector<64x32xf32>, vector<1x32xf32> -> vector<1x32xf32>
    %430 = arith.addf %429, %298 : vector<1x32xf32>
    %431 = arith.addf %407, %430 : vector<1x32xf32>
    %cst_131 = arith.constant dense<0.000000e+00> : vector<1xf32>
    %432 = vector.multi_reduction <add>, %431, %cst_131 [1] : vector<1x32xf32> to vector<1xf32>
    %433 = vector.shape_cast %432 : vector<1xf32> to vector<1x1xf32>
    %cst_132 = arith.constant 3.200000e+01 : f32
    %434 = vector.broadcast %cst_132 : f32 to vector<1x1xf32>
    %435 = arith.divf %433, %434 : vector<1x1xf32>
    %436 = vector.broadcast %435 : vector<1x1xf32> to vector<1x32xf32>
    %437 = arith.subf %431, %436 : vector<1x32xf32>
    %438 = arith.mulf %437, %437 : vector<1x32xf32>
    %cst_133 = arith.constant dense<0.000000e+00> : vector<1xf32>
    %439 = vector.multi_reduction <add>, %438, %cst_133 [1] : vector<1x32xf32> to vector<1xf32>
    %440 = vector.shape_cast %439 : vector<1xf32> to vector<1x1xf32>
    %cst_134 = arith.constant 3.200000e+01 : f32
    %441 = vector.broadcast %cst_134 : f32 to vector<1x1xf32>
    %442 = arith.divf %440, %441 : vector<1x1xf32>
    %443 = vector.broadcast %435 : vector<1x1xf32> to vector<1x32xf32>
    %444 = arith.subf %431, %443 : vector<1x32xf32>
    %cst_135 = arith.constant 9.99999974E-6 : f32
    %445 = vector.broadcast %cst_135 : f32 to vector<1x1xf32>
    %446 = arith.addf %442, %445 : vector<1x1xf32>
    %447 = math.rsqrt %446 : vector<1x1xf32>
    %448 = vector.broadcast %447 : vector<1x1xf32> to vector<1x32xf32>
    %449 = arith.mulf %444, %448 : vector<1x32xf32>
    %450 = arith.mulf %449, %299 : vector<1x32xf32>
    %451 = arith.addf %450, %300 : vector<1x32xf32>
    %452 = vector.shape_cast %451 : vector<1x32xf32> to vector<1x1x32xf32>
    %c0_136 = arith.constant 0 : index
    %c0_137 = arith.constant 0 : index
    %c0_138 = arith.constant 0 : index
    %453 = vector.load %arg11[%c0_136, %c0_137, %c0_138] : memref<1x2x32xf32, #tpu.memory_space<vmem>>, vector<1x1x32xf32>
    tpu.vector_store %arg11[%c0_136, %c0_137, %c0_138], %452 {strides = array<i32>} : memref<1x2x32xf32, #tpu.memory_space<vmem>>, vector<1x1x32xf32>,
    %454 = vector.extract_strided_slice %307 {offsets = [156, 0], sizes = [1, 32], strides = [1, 1]} : vector<160x96xf32> to vector<1x32xf32>
    %cst_139 = arith.constant 0.353553385 : f32
    %455 = vector.broadcast %cst_139 : f32 to vector<1x32xf32>
    %456 = arith.mulf %454, %455 : vector<1x32xf32>
    %457 = vector.extract_strided_slice %308 {offsets = [80, 0], sizes = [80, 32], strides = [1, 1]} : vector<160x32xf32> to vector<80x32xf32>
    %458 = vector.extract_strided_slice %309 {offsets = [80, 0], sizes = [80, 32], strides = [1, 1]} : vector<160x32xf32> to vector<80x32xf32>
    %459 = arith.mulf %456, %12 : vector<1x32xf32>
    %cst_140 = arith.constant dense<0.000000e+00> : vector<1x80xf32>
    %460 = tpu.matmul %459, %457, %cst_140 {dimension_numbers = #tpu.dot_dimension_numbers<[1], [1], [0], [0], [0, 0, 1, 0], [], []>} : vector<1x32xf32>, vector<80x32xf32>, vector<1x80xf32> -> vector<1x80xf32>
    %461 = arith.addf %460, %39 : vector<1x80xf32>
    %cst_141 = arith.constant dense<0xFF800000> : vector<1xf32>
    %462 = vector.multi_reduction <maximumf>, %461, %cst_141 [1] : vector<1x80xf32> to vector<1xf32>
    %463 = vector.shape_cast %462 : vector<1xf32> to vector<1x1xf32>
    %464 = vector.broadcast %463 : vector<1x1xf32> to vector<1x80xf32>
    %465 = arith.subf %461, %464 : vector<1x80xf32>
    %466 = math.exp %465 : vector<1x80xf32>
    %cst_142 = arith.constant dense<0.000000e+00> : vector<1xf32>
    %467 = vector.multi_reduction <add>, %466, %cst_142 [1] : vector<1x80xf32> to vector<1xf32>
    %468 = vector.shape_cast %467 : vector<1xf32> to vector<1x1xf32>
    %469 = tpu.reciprocal %468 {approx = true} : vector<1x1xf32> -> vector<1x1xf32>
    %470 = vector.broadcast %469 : vector<1x1xf32> to vector<1x80xf32>
    %471 = arith.mulf %466, %470 : vector<1x80xf32>
    %472 = vector.broadcast %12 : vector<1x32xf32> to vector<80x32xf32>
    %473 = arith.mulf %458, %472 : vector<80x32xf32>
    %cst_143 = arith.constant dense<0.000000e+00> : vector<1x32xf32>
    %474 = tpu.matmul %471, %473, %cst_143 {dimension_numbers = #tpu.dot_dimension_numbers<[1], [0], [0], [1], [0, 0, 1, 1], [], []>} : vector<1x80xf32>, vector<80x32xf32>, vector<1x32xf32> -> vector<1x32xf32>
    %475 = arith.mulf %456, %19 : vector<1x32xf32>
    %cst_144 = arith.constant dense<0.000000e+00> : vector<1x80xf32>
    %476 = tpu.matmul %475, %457, %cst_144 {dimension_numbers = #tpu.dot_dimension_numbers<[1], [1], [0], [0], [0, 0, 1, 0], [], []>} : vector<1x32xf32>, vector<80x32xf32>, vector<1x80xf32> -> vector<1x80xf32>
    %477 = arith.addf %476, %39 : vector<1x80xf32>
    %cst_145 = arith.constant dense<0xFF800000> : vector<1xf32>
    %478 = vector.multi_reduction <maximumf>, %477, %cst_145 [1] : vector<1x80xf32> to vector<1xf32>
    %479 = vector.shape_cast %478 : vector<1xf32> to vector<1x1xf32>
    %480 = vector.broadcast %479 : vector<1x1xf32> to vector<1x80xf32>
    %481 = arith.subf %477, %480 : vector<1x80xf32>
    %482 = math.exp %481 : vector<1x80xf32>
    %cst_146 = arith.constant dense<0.000000e+00> : vector<1xf32>
    %483 = vector.multi_reduction <add>, %482, %cst_146 [1] : vector<1x80xf32> to vector<1xf32>
    %484 = vector.shape_cast %483 : vector<1xf32> to vector<1x1xf32>
    %485 = tpu.reciprocal %484 {approx = true} : vector<1x1xf32> -> vector<1x1xf32>
    %486 = vector.broadcast %485 : vector<1x1xf32> to vector<1x80xf32>
    %487 = arith.mulf %482, %486 : vector<1x80xf32>
    %488 = vector.broadcast %19 : vector<1x32xf32> to vector<80x32xf32>
    %489 = arith.mulf %458, %488 : vector<80x32xf32>
    %cst_147 = arith.constant dense<0.000000e+00> : vector<1x32xf32>
    %490 = tpu.matmul %487, %489, %cst_147 {dimension_numbers = #tpu.dot_dimension_numbers<[1], [0], [0], [1], [0, 0, 1, 1], [], []>} : vector<1x80xf32>, vector<80x32xf32>, vector<1x32xf32> -> vector<1x32xf32>
    %491 = arith.addf %474, %490 : vector<1x32xf32>
    %492 = arith.mulf %456, %26 : vector<1x32xf32>
    %cst_148 = arith.constant dense<0.000000e+00> : vector<1x80xf32>
    %493 = tpu.matmul %492, %457, %cst_148 {dimension_numbers = #tpu.dot_dimension_numbers<[1], [1], [0], [0], [0, 0, 1, 0], [], []>} : vector<1x32xf32>, vector<80x32xf32>, vector<1x80xf32> -> vector<1x80xf32>
    %494 = arith.addf %493, %39 : vector<1x80xf32>
    %cst_149 = arith.constant dense<0xFF800000> : vector<1xf32>
    %495 = vector.multi_reduction <maximumf>, %494, %cst_149 [1] : vector<1x80xf32> to vector<1xf32>
    %496 = vector.shape_cast %495 : vector<1xf32> to vector<1x1xf32>
    %497 = vector.broadcast %496 : vector<1x1xf32> to vector<1x80xf32>
    %498 = arith.subf %494, %497 : vector<1x80xf32>
    %499 = math.exp %498 : vector<1x80xf32>
    %cst_150 = arith.constant dense<0.000000e+00> : vector<1xf32>
    %500 = vector.multi_reduction <add>, %499, %cst_150 [1] : vector<1x80xf32> to vector<1xf32>
    %501 = vector.shape_cast %500 : vector<1xf32> to vector<1x1xf32>
    %502 = tpu.reciprocal %501 {approx = true} : vector<1x1xf32> -> vector<1x1xf32>
    %503 = vector.broadcast %502 : vector<1x1xf32> to vector<1x80xf32>
    %504 = arith.mulf %499, %503 : vector<1x80xf32>
    %505 = vector.broadcast %26 : vector<1x32xf32> to vector<80x32xf32>
    %506 = arith.mulf %458, %505 : vector<80x32xf32>
    %cst_151 = arith.constant dense<0.000000e+00> : vector<1x32xf32>
    %507 = tpu.matmul %504, %506, %cst_151 {dimension_numbers = #tpu.dot_dimension_numbers<[1], [0], [0], [1], [0, 0, 1, 1], [], []>} : vector<1x80xf32>, vector<80x32xf32>, vector<1x32xf32> -> vector<1x32xf32>
    %508 = arith.addf %491, %507 : vector<1x32xf32>
    %509 = arith.mulf %456, %33 : vector<1x32xf32>
    %cst_152 = arith.constant dense<0.000000e+00> : vector<1x80xf32>
    %510 = tpu.matmul %509, %457, %cst_152 {dimension_numbers = #tpu.dot_dimension_numbers<[1], [1], [0], [0], [0, 0, 1, 0], [], []>} : vector<1x32xf32>, vector<80x32xf32>, vector<1x80xf32> -> vector<1x80xf32>
    %511 = arith.addf %510, %39 : vector<1x80xf32>
    %cst_153 = arith.constant dense<0xFF800000> : vector<1xf32>
    %512 = vector.multi_reduction <maximumf>, %511, %cst_153 [1] : vector<1x80xf32> to vector<1xf32>
    %513 = vector.shape_cast %512 : vector<1xf32> to vector<1x1xf32>
    %514 = vector.broadcast %513 : vector<1x1xf32> to vector<1x80xf32>
    %515 = arith.subf %511, %514 : vector<1x80xf32>
    %516 = math.exp %515 : vector<1x80xf32>
    %cst_154 = arith.constant dense<0.000000e+00> : vector<1xf32>
    %517 = vector.multi_reduction <add>, %516, %cst_154 [1] : vector<1x80xf32> to vector<1xf32>
    %518 = vector.shape_cast %517 : vector<1xf32> to vector<1x1xf32>
    %519 = tpu.reciprocal %518 {approx = true} : vector<1x1xf32> -> vector<1x1xf32>
    %520 = vector.broadcast %519 : vector<1x1xf32> to vector<1x80xf32>
    %521 = arith.mulf %516, %520 : vector<1x80xf32>
    %522 = vector.broadcast %33 : vector<1x32xf32> to vector<80x32xf32>
    %523 = arith.mulf %458, %522 : vector<80x32xf32>
    %cst_155 = arith.constant dense<0.000000e+00> : vector<1x32xf32>
    %524 = tpu.matmul %521, %523, %cst_155 {dimension_numbers = #tpu.dot_dimension_numbers<[1], [0], [0], [1], [0, 0, 1, 1], [], []>} : vector<1x80xf32>, vector<80x32xf32>, vector<1x32xf32> -> vector<1x32xf32>
    %525 = arith.addf %508, %524 : vector<1x32xf32>
    %c1_156 = arith.constant 1 : index
    %c0_157 = arith.constant 0 : index
    %c0_158 = arith.constant 0 : index
    %526 = vector.load %arg6[%c1_156, %c0_157, %c0_158] : memref<2x32x32xf32, #tpu.memory_space<vmem>>, vector<1x32x32xf32>
    %527 = vector.shape_cast %526 : vector<1x32x32xf32> to vector<32x32xf32>
    %cst_159 = arith.constant dense<0.000000e+00> : vector<1x32xf32>
    %528 = tpu.matmul %525, %527, %cst_159 {dimension_numbers = #tpu.dot_dimension_numbers<[1], [0], [0], [1], [0, 0, 1, 1], [], []>} : vector<1x32xf32>, vector<32x32xf32>, vector<1x32xf32> -> vector<1x32xf32>
    %529 = arith.addf %528, %295 : vector<1x32xf32>
    %530 = vector.extract_strided_slice %292 {offsets = [156, 0], sizes = [1, 32], strides = [1, 1]} : vector<160x32xf32> to vector<1x32xf32>
    %531 = arith.addf %530, %529 : vector<1x32xf32>
    %cst_160 = arith.constant dense<0.000000e+00> : vector<1xf32>
    %532 = vector.multi_reduction <add>, %531, %cst_160 [1] : vector<1x32xf32> to vector<1xf32>
    %533 = vector.shape_cast %532 : vector<1xf32> to vector<1x1xf32>
    %cst_161 = arith.constant 3.200000e+01 : f32
    %534 = vector.broadcast %cst_161 : f32 to vector<1x1xf32>
    %535 = arith.divf %533, %534 : vector<1x1xf32>
    %536 = vector.broadcast %535 : vector<1x1xf32> to vector<1x32xf32>
    %537 = arith.subf %531, %536 : vector<1x32xf32>
    %538 = arith.mulf %537, %537 : vector<1x32xf32>
    %cst_162 = arith.constant dense<0.000000e+00> : vector<1xf32>
    %539 = vector.multi_reduction <add>, %538, %cst_162 [1] : vector<1x32xf32> to vector<1xf32>
    %540 = vector.shape_cast %539 : vector<1xf32> to vector<1x1xf32>
    %cst_163 = arith.constant 3.200000e+01 : f32
    %541 = vector.broadcast %cst_163 : f32 to vector<1x1xf32>
    %542 = arith.divf %540, %541 : vector<1x1xf32>
    %543 = vector.broadcast %535 : vector<1x1xf32> to vector<1x32xf32>
    %544 = arith.subf %531, %543 : vector<1x32xf32>
    %cst_164 = arith.constant 9.99999974E-6 : f32
    %545 = vector.broadcast %cst_164 : f32 to vector<1x1xf32>
    %546 = arith.addf %542, %545 : vector<1x1xf32>
    %547 = math.rsqrt %546 : vector<1x1xf32>
    %548 = vector.broadcast %547 : vector<1x1xf32> to vector<1x32xf32>
    %549 = arith.mulf %544, %548 : vector<1x32xf32>
    %550 = arith.mulf %549, %296 : vector<1x32xf32>
    %551 = arith.addf %550, %297 : vector<1x32xf32>
    %c1_165 = arith.constant 1 : index
    %c0_166 = arith.constant 0 : index
    %c0_167 = arith.constant 0 : index
    %552 = vector.load %arg7[%c1_165, %c0_166, %c0_167] : memref<2x32x64xf32, #tpu.memory_space<vmem>>, vector<1x32x64xf32>
    %553 = vector.shape_cast %552 : vector<1x32x64xf32> to vector<32x64xf32>
    %cst_168 = arith.constant dense<0.000000e+00> : vector<1x64xf32>
    %554 = tpu.matmul %551, %553, %cst_168 {dimension_numbers = #tpu.dot_dimension_numbers<[1], [0], [0], [1], [0, 0, 1, 1], [], []>} : vector<1x32xf32>, vector<32x64xf32>, vector<1x64xf32> -> vector<1x64xf32>
    %c1_169 = arith.constant 1 : index
    %c0_170 = arith.constant 0 : index
    %c0_171 = arith.constant 0 : index
    %555 = vector.load %arg8[%c1_169, %c0_170, %c0_171] : memref<2x1x64xf32, #tpu.memory_space<vmem>>, vector<1x1x64xf32>
    %556 = vector.shape_cast %555 : vector<1x1x64xf32> to vector<1x64xf32>
    %557 = arith.addf %554, %556 : vector<1x64xf32>
    %cst_172 = arith.constant 5.000000e-01 : f32
    %558 = vector.broadcast %cst_172 : f32 to vector<1x64xf32>
    %559 = arith.mulf %558, %557 : vector<1x64xf32>
    %cst_173 = arith.constant 4.471500e-02 : f32
    %560 = vector.broadcast %cst_173 : f32 to vector<1x64xf32>
    %561 = arith.mulf %560, %557 : vector<1x64xf32>
    %562 = arith.mulf %561, %557 : vector<1x64xf32>
    %563 = arith.mulf %562, %557 : vector<1x64xf32>
    %564 = arith.addf %557, %563 : vector<1x64xf32>
    %cst_174 = arith.constant 0.797884583 : f32
    %565 = vector.broadcast %cst_174 : f32 to vector<1x64xf32>
    %566 = arith.mulf %565, %564 : vector<1x64xf32>
    %567 = math.tanh %566 : vector<1x64xf32>
    %cst_175 = arith.constant 1.000000e+00 : f32
    %568 = vector.broadcast %cst_175 : f32 to vector<1x64xf32>
    %569 = arith.addf %568, %567 : vector<1x64xf32>
    %570 = arith.mulf %559, %569 : vector<1x64xf32>
    %c1_176 = arith.constant 1 : index
    %c0_177 = arith.constant 0 : index
    %c0_178 = arith.constant 0 : index
    %571 = vector.load %arg9[%c1_176, %c0_177, %c0_178] : memref<2x64x32xf32, #tpu.memory_space<vmem>>, vector<1x64x32xf32>
    %572 = vector.shape_cast %571 : vector<1x64x32xf32> to vector<64x32xf32>
    %cst_179 = arith.constant dense<0.000000e+00> : vector<1x32xf32>
    %573 = tpu.matmul %570, %572, %cst_179 {dimension_numbers = #tpu.dot_dimension_numbers<[1], [0], [0], [1], [0, 0, 1, 1], [], []>} : vector<1x64xf32>, vector<64x32xf32>, vector<1x32xf32> -> vector<1x32xf32>
    %574 = arith.addf %573, %298 : vector<1x32xf32>
    %575 = arith.addf %551, %574 : vector<1x32xf32>
    %cst_180 = arith.constant dense<0.000000e+00> : vector<1xf32>
    %576 = vector.multi_reduction <add>, %575, %cst_180 [1] : vector<1x32xf32> to vector<1xf32>
    %577 = vector.shape_cast %576 : vector<1xf32> to vector<1x1xf32>
    %cst_181 = arith.constant 3.200000e+01 : f32
    %578 = vector.broadcast %cst_181 : f32 to vector<1x1xf32>
    %579 = arith.divf %577, %578 : vector<1x1xf32>
    %580 = vector.broadcast %579 : vector<1x1xf32> to vector<1x32xf32>
    %581 = arith.subf %575, %580 : vector<1x32xf32>
    %582 = arith.mulf %581, %581 : vector<1x32xf32>
    %cst_182 = arith.constant dense<0.000000e+00> : vector<1xf32>
    %583 = vector.multi_reduction <add>, %582, %cst_182 [1] : vector<1x32xf32> to vector<1xf32>
    %584 = vector.shape_cast %583 : vector<1xf32> to vector<1x1xf32>
    %cst_183 = arith.constant 3.200000e+01 : f32
    %585 = vector.broadcast %cst_183 : f32 to vector<1x1xf32>
    %586 = arith.divf %584, %585 : vector<1x1xf32>
    %587 = vector.broadcast %579 : vector<1x1xf32> to vector<1x32xf32>
    %588 = arith.subf %575, %587 : vector<1x32xf32>
    %cst_184 = arith.constant 9.99999974E-6 : f32
    %589 = vector.broadcast %cst_184 : f32 to vector<1x1xf32>
    %590 = arith.addf %586, %589 : vector<1x1xf32>
    %591 = math.rsqrt %590 : vector<1x1xf32>
    %592 = vector.broadcast %591 : vector<1x1xf32> to vector<1x32xf32>
    %593 = arith.mulf %588, %592 : vector<1x32xf32>
    %594 = arith.mulf %593, %299 : vector<1x32xf32>
    %595 = arith.addf %594, %300 : vector<1x32xf32>
    %596 = vector.shape_cast %595 : vector<1x32xf32> to vector<1x1x32xf32>
    %c0_185 = arith.constant 0 : index
    %c1_186 = arith.constant 1 : index
    %c0_187 = arith.constant 0 : index
    %597 = vector.load %arg11[%c0_185, %c1_186, %c0_187] : memref<1x2x32xf32, #tpu.memory_space<vmem>>, vector<1x1x32xf32>
    tpu.vector_store %arg11[%c0_185, %c1_186, %c0_187], %596 {strides = array<i32>} : memref<1x2x32xf32, #tpu.memory_space<vmem>>, vector<1x1x32xf32>,
    return
  }
  func.func @transform_0(%arg0: i32, %arg1: memref<4xi32, #tpu.memory_space<smem>>) -> (i32, i32, i32) {
    %c2_i32 = arith.constant 2 : i32
    %0 = arith.muli %c2_i32, %arg0 : i32
    %1 = arith.index_cast %0 : i32 to index
    %2 = memref.load %arg1[%1] : memref<4xi32, #tpu.memory_space<smem>>
    %c0_i32 = arith.constant 0 : i32
    %c0_i32_0 = arith.constant 0 : i32
    %c0_i32_1 = arith.constant 0 : i32
    return %2, %c0_i32, %c0_i32_0 : i32, i32, i32
  }
  func.func @transform_1(%arg0: i32, %arg1: memref<4xi32, #tpu.memory_space<smem>>) -> (i32, i32, i32) {
    %c2_i32 = arith.constant 2 : i32
    %0 = arith.muli %c2_i32, %arg0 : i32
    %c1_i32 = arith.constant 1 : i32
    %1 = arith.addi %0, %c1_i32 : i32
    %2 = arith.index_cast %1 : i32 to index
    %3 = memref.load %arg1[%2] : memref<4xi32, #tpu.memory_space<smem>>
    %c0_i32 = arith.constant 0 : i32
    %c0_i32_0 = arith.constant 0 : i32
    %c0_i32_1 = arith.constant 0 : i32
    return %3, %c0_i32, %c0_i32_0 : i32, i32, i32
  }
  func.func @transform_2(%arg0: i32, %arg1: memref<4xi32, #tpu.memory_space<smem>>) -> (i32, i32, i32) {
    %c0_i32 = arith.constant 0 : i32
    %c0_i32_0 = arith.constant 0 : i32
    %c0_i32_1 = arith.constant 0 : i32
    %c0_i32_2 = arith.constant 0 : i32
    return %c0_i32, %c0_i32_0, %c0_i32_1 : i32, i32, i32
  }
  func.func @transform_3(%arg0: i32, %arg1: memref<4xi32, #tpu.memory_space<smem>>) -> (i32, i32, i32) {
    %c0_i32 = arith.constant 0 : i32
    %c0_i32_0 = arith.constant 0 : i32
    %c0_i32_1 = arith.constant 0 : i32
    %c0_i32_2 = arith.constant 0 : i32
    return %c0_i32, %c0_i32_0, %c0_i32_1 : i32, i32, i32
  }
  func.func @transform_4(%arg0: i32, %arg1: memref<4xi32, #tpu.memory_space<smem>>) -> (i32, i32, i32) {
    %c0_i32 = arith.constant 0 : i32
    %c0_i32_0 = arith.constant 0 : i32
    %c0_i32_1 = arith.constant 0 : i32
    %c0_i32_2 = arith.constant 0 : i32
    return %c0_i32, %c0_i32_0, %c0_i32_1 : i32, i32, i32
  }
  func.func @transform_5(%arg0: i32, %arg1: memref<4xi32, #tpu.memory_space<smem>>) -> (i32, i32, i32) {
    %c0_i32 = arith.constant 0 : i32
    %c0_i32_0 = arith.constant 0 : i32
    %c0_i32_1 = arith.constant 0 : i32
    %c0_i32_2 = arith.constant 0 : i32
    return %c0_i32, %c0_i32_0, %c0_i32_1 : i32, i32, i32
  }
  func.func @transform_6(%arg0: i32, %arg1: memref<4xi32, #tpu.memory_space<smem>>) -> (i32, i32, i32) {
    %c0_i32 = arith.constant 0 : i32
    %c0_i32_0 = arith.constant 0 : i32
    %c0_i32_1 = arith.constant 0 : i32
    %c0_i32_2 = arith.constant 0 : i32
    return %c0_i32, %c0_i32_0, %c0_i32_1 : i32, i32, i32
  }
  func.func @transform_7(%arg0: i32, %arg1: memref<4xi32, #tpu.memory_space<smem>>) -> (i32, i32, i32) {
    %c0_i32 = arith.constant 0 : i32
    %c0_i32_0 = arith.constant 0 : i32
    %c0_i32_1 = arith.constant 0 : i32
    %c0_i32_2 = arith.constant 0 : i32
    return %c0_i32, %c0_i32_0, %c0_i32_1 : i32, i32, i32
  }
  func.func @transform_8(%arg0: i32, %arg1: memref<4xi32, #tpu.memory_space<smem>>) -> (i32, i32, i32) {
    %c0_i32 = arith.constant 0 : i32
    %c0_i32_0 = arith.constant 0 : i32
    %c0_i32_1 = arith.constant 0 : i32
    %c0_i32_2 = arith.constant 0 : i32
    return %c0_i32, %c0_i32_0, %c0_i32_1 : i32, i32, i32
  }
  func.func @transform_9(%arg0: i32, %arg1: memref<4xi32, #tpu.memory_space<smem>>) -> (i32, i32, i32) {
    %c0_i32 = arith.constant 0 : i32
    %c0_i32_0 = arith.constant 0 : i32
    %c0_i32_1 = arith.constant 0 : i32
    return %arg0, %c0_i32, %c0_i32_0 : i32, i32, i32
  }
}

</mosaic_0001>

<bundles_post_ra>
// kernel: retrieval_database_forward.2
= control target key start
LH: loop header
LB: loop body
LE: loop exit
PB: predicated region body
PF: predicated region fallthrough
CT: control target
= control target key end

     0   :  { %vm71_vm0 = vcmask 1043456   ;;  %vm46_vm1 = vcmask 97280   ;;  %vm1285_vm2 = vmmov 1   ;;  %vm201_vm4 = vcmask 261120   ;;  %s1674_s1 = inlined_call_operand.vmem [shape: f32[12,32], index: 1, kind: input, shape index: {}]   ;;  %s1675_s0 = inlined_call_operand.vmem [shape: f32[64,12], index: 0, kind: input, shape index: {}]   ;;  %s1676_s4 = inlined_call_operand.vmem [shape: f32[2,32,64], index: 4, kind: input, shape index: {}]   ;;  %s1677_s2 = inlined_call_operand.vmem [shape: f32[1,32], index: 2, kind: input, shape index: {}]   ;;  %s1678_s3 = inlined_call_operand.vmem [shape: f32[16,32], index: 3, kind: input, shape index: {}]   ;;  %s1679_s6 = inlined_call_operand.vmem [shape: f32[2,64,32], index: 6, kind: input, shape index: {}]   ;;  %s1680_s5 = inlined_call_operand.vmem [shape: f32[2,1,64], index: 5, kind: input, shape index: {}]   ;;  %s1681_s7 = inlined_call_operand.vmem [shape: f32[2,1,32], index: 7, kind: input, shape index: {}]   ;;  %s1682_s8 = inlined_call_operand.vmem [shape: f32[64,32], index: 8, kind: output, shape index: {}]  }
   0x1   :  { %v37_v0 = vld [vmem:[%s1674_s1] sm:$0xff]  ;;  %v38_v1 = vld [vmem:[%s1674_s1 + $0x8] sm:$0xf]  ;;  %vm1191_vm3 = vmpackc.low %vm71_vm0, %vm1285_vm2  ;;  %vm411_vm5 = vcmask 523264  }
   0x2   :  { %v1190_v2 = vpack.c.bf16 %v38_v1, %v37_v0  ;;  %v29_v3 = vld [vmem:[%s1675_s0] sm:$0xff]  ;;  %v30_v5 = vld [vmem:[%s1675_s0 + $0x8] sm:$0xff]  ;;  %v31_v7 = vld [vmem:[%s1675_s0 + $0x10] sm:$0xff] }
   0x3   :  { %1082 = vmatprep.mubr.msk.f32.mxu0 %vm46_vm1, %v29_v3  ;;  %v190_v4 = vld [vmem:[%s1676_s4] sm:$0xff]  ;;  %v191_v6 = vld [vmem:[%s1676_s4 + $0x8] sm:$0xff]  ;;  %v32_v9 = vld [vmem:[%s1675_s0 + $0x18] sm:$0xff] }
   0x4   :  { %1192 = vmatprep.subr.msk.bf16.mxu0 %vm1191_vm3, %v1190_v2  ;;  %v1196_v8 = vpack.c.bf16 %v191_v6, %v190_v4  ;;  %v33_v10 = vld [vmem:[%s1675_s0 + $0x20] sm:$0xff]  ;;  %v34_v11 = vld [vmem:[%s1675_s0 + $0x28] sm:$0xff]  ;;  %v35_v12 = vld [vmem:[%s1675_s0 + $0x30] sm:$0xff] }
   0x5   :  { %1195 = vmatpush3.bf16.msk.msra.mxu0 %vm1191_vm3, %v1190_v2  ;;  %v36_v13 = vld [vmem:[%s1675_s0 + $0x38] sm:$0xff]  ;;  %v192_v14 = vld [vmem:[%s1676_s4 + $0x10] sm:$0xff]  ;;  %v952_v17 = vld [vmem:[%s1677_s2] ss:$0 sm:$0xff] }
   0x6   :  { %1197 = vmatprep.subr.bf16.mxu1 %v1196_v8  ;;  %v193_v15 = vld [vmem:[%s1676_s4 + $0x18] sm:$0xff]  ;;  %v180_v21 = vld [vmem:[%s1678_s3] sm:$0xff]  ;;  %v181_v22 = vld [vmem:[%s1678_s3 + $0x8] sm:$0xff] }
   0x7   :  { %1199 = vmatpush3.bf16.msra.mxu1 %v1196_v8  ;;  %v1200_v16 = vpack.c.bf16 %v193_v15, %v192_v14  ;;  %v403_v44 = vld [vmem:[%s1679_s6] sm:$0xff]  ;;  %v404_v45 = vld [vmem:[%s1679_s6 + $0x8] sm:$0xff]  ;;  %v405_v47 = vld [vmem:[%s1679_s6 + $0x10] sm:$0xff] }
   0x8   :  { %1083 = vmatmul.mubr.msk.f32.vlgmr.msra.gmra.mrb[0].mxu0 %vm46_vm1, %v30_v5  ;;  %v1204_v46 = vpack.c.bf16 %v404_v45, %v403_v44  ;;  %v406_v48 = vld [vmem:[%s1679_s6 + $0x18] sm:$0xff]  ;;  %v407_v50 = vld [vmem:[%s1679_s6 + $0x20] sm:$0xff]  ;;  %v408_v51 = vld [vmem:[%s1679_s6 + $0x28] sm:$0xff] }
   0x9   :  { %1085 = vmatprep.mubr.msk.f32.mxu0 %vm46_vm1, %v31_v7  ;;  %1201 = vmatprep.subr.bf16.mxu1 %v1200_v16  ;;  %v1208_v49 = vpack.c.bf16 %v406_v48, %v405_v47  ;;  %v1212_v52 = vpack.c.bf16 %v408_v51, %v407_v50  ;;  %v409_v53 = vld [vmem:[%s1679_s6 + $0x30] sm:$0xff]  ;;  %v410_v54 = vld [vmem:[%s1679_s6 + $0x38] sm:$0xff]  ;;  %v980_v56 = vld [vmem:[%s1676_s4 + $0x20] sm:$0xff] }
   0xa   :  { %1205 = vmatprep.subr.bf16.mxu0 %v1204_v46  ;;  %v1216_v55 = vpack.c.bf16 %v410_v54, %v409_v53  ;;  %v981_v57 = vld [vmem:[%s1676_s4 + $0x28] sm:$0xff]  ;;  %v982_v58 = vld [vmem:[%s1676_s4 + $0x30] sm:$0xff]  ;;  %v983_v60 = vld [vmem:[%s1676_s4 + $0x38] sm:$0xff] }
   0xb   :  { %1203 = vmatpush3.bf16.msra.mxu1 %v1200_v16  ;;  %1207 = vmatpush3.bf16.msra.mxu0 %v1204_v46  ;;  %v1220_v59 = vpack.c.bf16 %v981_v57, %v980_v56  ;;  %v1224_v61 = vpack.c.bf16 %v983_v60, %v982_v58  ;;  %v962_v62 = vld [vmem:[%s1680_s5] ss:$0 sm:$0xff] }
   0xc   :  { %1086 = vmatmul.mubr.msk.f32.gmra.mrb[2].mxu0 %vm46_vm1, %v32_v9  ;;  %1209 = vmatprep.subr.bf16.mxu0 %v1208_v49 }
   0xd   :  { %1088 = vmatprep.mubr.msk.f32.mxu0 %vm46_vm1, %v33_v10  ;;  %1221 = vmatprep.subr.bf16.mxu1 %v1220_v59 }
   0xf   :  { %1211 = vmatpush3.bf16.msra.mxu0 %v1208_v49 }
  0x10   :  { %1089 = vmatmul.mubr.msk.f32.gmra.mrb[4].mxu0 %vm46_vm1, %v34_v11  ;;  %1213 = vmatprep.subr.bf16.mxu0 %v1212_v52 }
  0x11   :  { %1091 = vmatprep.mubr.msk.f32.mxu0 %vm46_vm1, %v35_v12 }
  0x13   :  { %1215 = vmatpush3.bf16.msra.mxu0 %v1212_v52 }
  0x14   :  { %1092 = vmatmul.mubr.msk.f32.gmra.mrb[6].mxu0 %vm46_vm1, %v36_v13  ;;  %1217 = vmatprep.subr.bf16.mxu0 %v1216_v55 }
  0x17   :  { %1219 = vmatpush3.bf16.msra.mxu0 %v1216_v55 }
  0xdb   :  { %v1084_v18 = vpop.f32.mrb[0].mxu0 }
  0xdc   :  { %v147_v19 = vadd.f32 %v1084_v18, %v952_v17  ;;  %v141_v20 = vpop.f32.mrb[1].mxu0 }
  0xdd   :  { %v142_v23 = vadd.f32 %v952_v17, %v141_v20 }
  0xde   :  { %v1392_v26 = vadd.f32 %v181_v22, %v147_v19 }
  0xdf   :  { %v1087_v24 = vpop.f32.mrb[2].mxu0  ;;  %v1390_v25 = vadd.f32 %v180_v21, %v142_v23 }
  0xe0   :  { %v157_v27 = vadd.f32 %v1087_v24, %v952_v17  ;;  %v151_v28 = vpop.f32.mrb[3].mxu0 }
  0xe1   :  { %v152_v29 = vadd.f32 %v952_v17, %v151_v28  ;;  %1102 = vmatprep.mubr.msk.f32.mxu1 %vm201_vm4, %v1390_v25 }
  0xe2   :  { %1103 = vmatmul.mubr.msk.f32.vlgmr.msra.gmra.mrb[0].mxu1 %vm201_vm4, %v1392_v26  ;;  %v1400_v32 = vadd.f32 %v181_v22, %v157_v27 }
  0xe3   :  { %v1398_v30 = vadd.f32 %v180_v21, %v152_v29  ;;  %v1090_v31 = vpop.f32.mrb[4].mxu0  ;;  %1223 = vmatpush3.bf16.msra.mxu1 %v1220_v59 }
  0xe4   :  { %v167_v33 = vadd.f32 %v1090_v31, %v952_v17  ;;  %v161_v34 = vpop.f32.mrb[5].mxu0  ;;  %1225 = vmatprep.subr.bf16.mxu1 %v1224_v61 }
  0xe5   :  { %v162_v35 = vadd.f32 %v952_v17, %v161_v34  ;;  %1105 = vmatprep.mubr.msk.f32.mxu1 %vm201_vm4, %v1398_v30 }
  0xe6   :  { %1106 = vmatmul.mubr.msk.f32.gmra.mrb[2].mxu1 %vm201_vm4, %v1400_v32  ;;  %v1408_v38 = vadd.f32 %v181_v22, %v167_v33 }
  0xe7   :  { %v1406_v36 = vadd.f32 %v180_v21, %v162_v35  ;;  %v1093_v37 = vpop.f32.mrb[6].mxu0  ;;  %1227 = vmatpush3.bf16.msra.mxu1 %v1224_v61 }
  0xe8   :  { %v177_v39 = vadd.f32 %v1093_v37, %v952_v17  ;;  %v171_v40 = vpop.f32.mrb[7].mxu0 }
  0xe9   :  { %v172_v41 = vadd.f32 %v952_v17, %v171_v40  ;;  %1108 = vmatprep.mubr.msk.f32.mxu1 %vm201_vm4, %v1406_v36 }
  0xea   :  { %1109 = vmatmul.mubr.msk.f32.gmra.mrb[4].mxu1 %vm201_vm4, %v1408_v38  ;;  %v1416_v43 = vadd.f32 %v181_v22, %v177_v39 }
  0xeb   :  { %v1414_v42 = vadd.f32 %v180_v21, %v172_v41 }
  0xed   :  { %1111 = vmatprep.mubr.msk.f32.mxu1 %vm201_vm4, %v1414_v42 }
  0xee   :  { %1112 = vmatmul.mubr.msk.f32.gmra.mrb[6].mxu1 %vm201_vm4, %v1416_v43 }
 0x1b5   :  { %v1104_v63 = vpop.f32.mrb[0].mxu1 }
 0x1b6   :  { %v1461_v0 = vadd.f32 %v1104_v63, %v962_v62  ;;  %v292_v1 = vpop.f32.mrb[1].mxu1 }
 0x1b7   :  { %v293_v2 = vadd.f32 %v962_v62, %v292_v1 }
 0x1b8   :  { %v340_v3 = vmul.f32 0.044715, %v1461_v0 }
 0x1b9   :  { %v339_v4 = vmul.f32 0.044715, %v293_v2  ;;  %v1107_v5 = vpop.f32.mrb[2].mxu1 }
 0x1ba   :  { %v348_v6 = vmul.f32 %v340_v3, %v1461_v0  ;;  %v1465_v7 = vadd.f32 %v1107_v5, %v962_v62  ;;  %v302_v8 = vpop.f32.mrb[3].mxu1 }
 0x1bb   :  { %v347_v9 = vmul.f32 %v339_v4, %v293_v2  ;;  %v1467_v10 = vadd.f32 %v962_v62, %v302_v8  ;;  %v331_v4 = vmul.f32 0.5, %v293_v2 }
 0x1bc   :  { %v356_v11 = vmul.f32 %v348_v6, %v1461_v0  ;;  %v342_v12 = vmul.f32 0.044715, %v1465_v7  ;;  %v332_v6 = vmul.f32 0.5, %v1461_v0 }
 0x1bd   :  { %v355_v13 = vmul.f32 %v347_v9, %v293_v2  ;;  %v341_v14 = vmul.f32 0.044715, %v1467_v10  ;;  %v1110_v15 = vpop.f32.mrb[4].mxu1 }
 0x1be   :  { %v364_v16 = vadd.f32 %v356_v11, %v1461_v0  ;;  %v350_v17 = vmul.f32 %v342_v12, %v1465_v7  ;;  %v1474_v18 = vadd.f32 %v1110_v15, %v962_v62  ;;  %v312_v19 = vpop.f32.mrb[5].mxu1 }
 0x1bf   :  { %v363_v20 = vadd.f32 %v355_v13, %v293_v2  ;;  %v349_v21 = vmul.f32 %v341_v14, %v1467_v10  ;;  %v1477_v22 = vadd.f32 %v962_v62, %v312_v19  ;;  %v333_v14 = vmul.f32 0.5, %v1467_v10 }
 0x1c0   :  { %v372_v23 = vmul.f32 0.7978846, %v364_v16  ;;  %v358_v24 = vmul.f32 %v350_v17, %v1465_v7  ;;  %v344_v27 = vmul.f32 0.044715, %v1474_v18  ;;  %v334_v2 = vmul.f32 0.5, %v1465_v7 }
 0x1c1   :  { %v357_v28 = vmul.f32 %v349_v21, %v1467_v10  ;;  %v343_v29 = vmul.f32 0.044715, %v1477_v22  ;;  %v1113_v31 = vpop.f32.mrb[6].mxu1  ;;  %v371_v33 = vmul.f32 0.7978846, %v363_v20  ;;  %v335_v21 = vmul.f32 0.5, %v1477_v22 }
 0x1c2   :  { %1253 = vtanh.f32 %v372_v23  ;;  %v366_v34 = vadd.f32 %v358_v24, %v1465_v7  ;;  %v352_v35 = vmul.f32 %v344_v27, %v1474_v18  ;;  %v1485_v37 = vadd.f32 %v1113_v31, %v962_v62  ;;  %v322_v39 = vpop.f32.mrb[7].mxu1 }
 0x1c3   :  { %v365_v40 = vadd.f32 %v357_v28, %v1467_v10  ;;  %v351_v41 = vmul.f32 %v343_v29, %v1477_v22  ;;  %v323_v44 = vadd.f32 %v962_v62, %v322_v39  ;;  %1255 = vtanh.f32 %v371_v33 }
 0x1c4   :  { %v360_v45 = vmul.f32 %v352_v35, %v1474_v18  ;;  %v346_v46 = vmul.f32 0.044715, %v1485_v37  ;;  %v374_v47 = vmul.f32 0.7978846, %v366_v34  ;;  %v336_v24 = vmul.f32 0.5, %v1474_v18 }
 0x1c5   :  { %v359_v48 = vmul.f32 %v351_v41, %v1477_v22  ;;  %v345_v49 = vmul.f32 0.044715, %v323_v44  ;;  %v373_v50 = vmul.f32 0.7978846, %v365_v40  ;;  %v337_v7 = vmul.f32 0.5, %v323_v44 }
 0x1c6   :  { %v368_v51 = vadd.f32 %v360_v45, %v1474_v18  ;;  %v354_v52 = vmul.f32 %v346_v46, %v1485_v37  ;;  %1257 = vtanh.f32 %v374_v47  ;;  %v338_v34 = vmul.f32 0.5, %v1485_v37  ;;  %v979_v40 = vld [vmem:[%s1681_s7] ss:$0 sm:$0xff] }
 0x1c7   :  { %v367_v53 = vadd.f32 %v359_v48, %v1477_v22  ;;  %v353_v54 = vmul.f32 %v345_v49, %v323_v44  ;;  %1259 = vtanh.f32 %v373_v50 }
 0x1c8   :  { %v362_v55 = vmul.f32 %v354_v52, %v1485_v37  ;;  %v376_v56 = vmul.f32 0.7978846, %v368_v51 }
 0x1c9   :  { %v361_v57 = vmul.f32 %v353_v54, %v323_v44  ;;  %v375_v58 = vmul.f32 0.7978846, %v367_v53 }
 0x1ca   :  { %v370_v59 = vadd.f32 %v362_v55, %v1485_v37  ;;  %1261 = vtanh.f32 %v376_v56 }
 0x1cb   :  { %v369_v60 = vadd.f32 %v361_v57, %v323_v44  ;;  %1263 = vtanh.f32 %v375_v58 }
 0x1cc   :  { %v1254_v61 = vpop.eup %1253  ;;  %v378_v62 = vmul.f32 0.7978846, %v370_v59  ;;  %v996_v59 = vld [vmem:[%s1679_s6 + $0x50] sm:$0xff] }
 0x1cd   :  { %v1256_v63 = vpop.eup %1255  ;;  %v388_v1 = vadd.f32 1.0, %v1254_v61  ;;  %v377_v3 = vmul.f32 0.7978846, %v369_v60  ;;  %v997_v60 = vld [vmem:[%s1679_s6 + $0x58] sm:$0xff] }
 0x1ce   :  { %v387_v5 = vadd.f32 1.0, %v1256_v63  ;;  %1265 = vtanh.f32 %v378_v62  ;;  %v1232_v61 = vpack.c.bf16 %v997_v60, %v996_v59  ;;  %v998_v62 = vld [vmem:[%s1679_s6 + $0x60] sm:$0xff]  ;;  %v999_v63 = vld [vmem:[%s1679_s6 + $0x68] sm:$0xff] }
 0x1cf   :  { %1267 = vtanh.f32 %v377_v3  ;;  %v396_v12 = vmul.f32 %v388_v1, %v332_v6  ;;  %v1236_v1 = vpack.c.bf16 %v999_v63, %v998_v62  ;;  %v1000_v3 = vld [vmem:[%s1679_s6 + $0x70] sm:$0xff]  ;;  %v985_v6 = vld [vmem:[%s1680_s5 + $0x1] ss:$0 sm:$0xff] }
 0x1d0   :  { %v1258_v8 = vpop.eup %1257  ;;  %v395_v9 = vmul.f32 %v387_v5, %v331_v4  ;;  %v1001_v4 = vld [vmem:[%s1679_s6 + $0x78] sm:$0xff] }
 0x1d1   :  { %v1260_v11 = vpop.eup %1259  ;;  %v390_v13 = vadd.f32 1.0, %v1258_v8  ;;  %v1240_v5 = vpack.c.bf16 %v1001_v4, %v1000_v3 }
 0x1d2   :  { %1130 = vmatprep.mubr.msk.f32.mxu0 %vm411_vm5, %v395_v9  ;;  %v389_v15 = vadd.f32 1.0, %v1260_v11 }
 0x1d3   :  { %1131 = vmatmul.mubr.msk.f32.vlgmr.msra.gmra.mrb[8].mxu0 %vm411_vm5, %v396_v12  ;;  %v398_v0 = vmul.f32 %v390_v13, %v334_v2 }
 0x1d4   :  { %v1262_v16 = vpop.eup %1261  ;;  %v397_v17 = vmul.f32 %v389_v15, %v333_v14 }
 0x1d5   :  { %v1264_v19 = vpop.eup %1263  ;;  %v392_v20 = vadd.f32 1.0, %v1262_v16 }
 0x1d6   :  { %1133 = vmatprep.mubr.msk.f32.mxu0 %vm411_vm5, %v397_v17  ;;  %v391_v23 = vadd.f32 1.0, %v1264_v19 }
 0x1d7   :  { %1134 = vmatmul.mubr.msk.f32.gmra.mrb[10].mxu0 %vm411_vm5, %v398_v0  ;;  %v400_v29 = vmul.f32 %v392_v20, %v336_v24 }
 0x1d8   :  { %v1266_v10 = vpop.eup %1265  ;;  %v399_v27 = vmul.f32 %v391_v23, %v335_v21 }
 0x1d9   :  { %v1268_v28 = vpop.eup %1267  ;;  %v394_v31 = vadd.f32 1.0, %v1266_v10 }
 0x1da   :  { %1136 = vmatprep.mubr.msk.f32.mxu0 %vm411_vm5, %v399_v27  ;;  %v393_v33 = vadd.f32 1.0, %v1268_v28 }
 0x1db   :  { %1137 = vmatmul.mubr.msk.f32.gmra.mrb[12].mxu0 %vm411_vm5, %v400_v29  ;;  %v402_v22 = vmul.f32 %v394_v31, %v338_v34 }
 0x1dc   :  { %v401_v35 = vmul.f32 %v393_v33, %v337_v7 }
 0x1de   :  { %1139 = vmatprep.mubr.msk.f32.mxu0 %vm411_vm5, %v401_v35 }
 0x1df   :  { %1140 = vmatmul.mubr.msk.f32.gmra.mrb[14].mxu0 %vm411_vm5, %v402_v22 }
 0x2a6   :  { %v1132_v18 = vpop.f32.mrb[8].mxu0 }
 0x2a7   :  { %v542_v39 = vadd.f32 %v1132_v18, %v1392_v26  ;;  %v502_v41 = vpop.f32.mrb[9].mxu0 }
 0x2a8   :  { %v541_v44 = vadd.f32 %v502_v41, %v1390_v25 }
 0x2a9   :  { %v1518_v37 = vadd.f32 %v979_v40, %v542_v39 }
 0x2aa   :  { %v1516_v45 = vadd.f32 %v979_v40, %v541_v44  ;;  %v1135_v46 = vpop.f32.mrb[10].mxu0 }
 0x2ab   :  { %v544_v47 = vadd.f32 %v1135_v46, %v1400_v32  ;;  %v512_v48 = vpop.f32.mrb[11].mxu0 }
 0x2ac   :  { %v543_v49 = vadd.f32 %v512_v48, %v1398_v30  ;;  %1150 = vmatprep.mubr.msk.f32.mxu1 %vm201_vm4, %v1516_v45 }
 0x2ad   :  { %1151 = vmatmul.mubr.msk.f32.vlgmr.msra.gmra.mrb[8].mxu1 %vm201_vm4, %v1518_v37  ;;  %v1528_v25 = vadd.f32 %v979_v40, %v544_v47 }
 0x2ae   :  { %v1526_v26 = vadd.f32 %v979_v40, %v543_v49  ;;  %v1138_v50 = vpop.f32.mrb[12].mxu0 }
 0x2af   :  { %v546_v51 = vadd.f32 %v1138_v50, %v1408_v38  ;;  %v522_v52 = vpop.f32.mrb[13].mxu0 }
 0x2b0   :  { %v545_v53 = vadd.f32 %v522_v52, %v1406_v36  ;;  %1153 = vmatprep.mubr.msk.f32.mxu1 %vm201_vm4, %v1526_v26 }
 0x2b1   :  { %1154 = vmatmul.mubr.msk.f32.gmra.mrb[10].mxu1 %vm201_vm4, %v1528_v25  ;;  %v1538_v54 = vadd.f32 %v979_v40, %v546_v51 }
 0x2b2   :  { %v1536_v30 = vadd.f32 %v979_v40, %v545_v53  ;;  %v1141_v32 = vpop.f32.mrb[14].mxu0 }
 0x2b3   :  { %v548_v55 = vadd.f32 %v1141_v32, %v1416_v43  ;;  %v532_v56 = vpop.f32.mrb[15].mxu0  ;;  %v995_v43 = vld [vmem:[%s1679_s6 + $0x48] sm:$0xff] }
 0x2b4   :  { %v547_v57 = vadd.f32 %v532_v56, %v1414_v42  ;;  %1156 = vmatprep.mubr.msk.f32.mxu1 %vm201_vm4, %v1536_v30  ;;  %v994_v42 = vld [vmem:[%s1679_s6 + $0x40] sm:$0xff] }
 0x2b5   :  { %1157 = vmatmul.mubr.msk.f32.gmra.mrb[12].mxu1 %vm201_vm4, %v1538_v54  ;;  %v1548_v38 = vadd.f32 %v979_v40, %v548_v55  ;;  %v1228_v58 = vpack.c.bf16 %v995_v43, %v994_v42 }
 0x2b6   :  { %v1546_v36 = vadd.f32 %v979_v40, %v547_v57 }
 0x2b7   :  { %1229 = vmatprep.subr.bf16.mxu0 %v1228_v58  ;;  %1244 = vmatprep.subr.bf16.mxu1 %v1228_v58 }
 0x2b8   :  { %1159 = vmatprep.mubr.msk.f32.mxu1 %vm201_vm4, %v1546_v36  ;;  %1231 = vmatpush3.bf16.msra.mxu0 %v1228_v58 }
 0x2b9   :  { %1160 = vmatmul.mubr.msk.f32.gmra.mrb[14].mxu1 %vm201_vm4, %v1548_v38  ;;  %1233 = vmatprep.subr.bf16.mxu0 %v1232_v61 }
 0x2ba   :  { %1248 = vmatpush3.bf16.msra.mxu1 %v1228_v58 }
 0x2bb   :  { %1245 = vmatprep.subr.bf16.mxu1 %v1232_v61 }
 0x2bc   :  { %1235 = vmatpush3.bf16.msra.mxu0 %v1232_v61 }
 0x2bd   :  { %1237 = vmatprep.subr.bf16.mxu0 %v1236_v1 }
 0x2be   :  { %1249 = vmatpush3.bf16.msra.mxu1 %v1232_v61 }
 0x2bf   :  { %1246 = vmatprep.subr.bf16.mxu1 %v1236_v1 }
 0x2c0   :  { %1239 = vmatpush3.bf16.msra.mxu0 %v1236_v1 }
 0x2c1   :  { %1241 = vmatprep.subr.bf16.mxu0 %v1240_v5 }
 0x2c2   :  { %1250 = vmatpush3.bf16.msra.mxu1 %v1236_v1 }
 0x2c3   :  { %1247 = vmatprep.subr.bf16.mxu1 %v1240_v5 }
 0x2c4   :  { %1243 = vmatpush3.bf16.msra.mxu0 %v1240_v5 }
 0x2c6   :  { %1251 = vmatpush3.bf16.msra.mxu1 %v1240_v5 }
 0x380   :  { %v1152_v8 = vpop.f32.mrb[8].mxu1 }
 0x381   :  { %v1581_v9 = vadd.f32 %v1152_v8, %v985_v6  ;;  %v667_v11 = vpop.f32.mrb[9].mxu1 }
 0x382   :  { %v668_v12 = vadd.f32 %v985_v6, %v667_v11 }
 0x383   :  { %v715_v13 = vmul.f32 0.044715, %v1581_v9 }
 0x384   :  { %v714_v14 = vmul.f32 0.044715, %v668_v12  ;;  %v1155_v15 = vpop.f32.mrb[10].mxu1 }
 0x385   :  { %v723_v2 = vmul.f32 %v715_v13, %v1581_v9  ;;  %v1585_v16 = vadd.f32 %v1155_v15, %v985_v6  ;;  %v677_v17 = vpop.f32.mrb[11].mxu1 }
 0x386   :  { %v722_v19 = vmul.f32 %v714_v14, %v668_v12  ;;  %v1587_v0 = vadd.f32 %v985_v6, %v677_v17  ;;  %v706_v14 = vmul.f32 0.5, %v668_v12 }
 0x387   :  { %v731_v20 = vmul.f32 %v723_v2, %v1581_v9  ;;  %v717_v21 = vmul.f32 0.044715, %v1585_v16  ;;  %v707_v2 = vmul.f32 0.5, %v1581_v9 }
 0x388   :  { %v730_v23 = vmul.f32 %v722_v19, %v668_v12  ;;  %v716_v24 = vmul.f32 0.044715, %v1587_v0  ;;  %v1158_v10 = vpop.f32.mrb[12].mxu1 }
 0x389   :  { %v739_v27 = vadd.f32 %v731_v20, %v1581_v9  ;;  %v725_v28 = vmul.f32 %v717_v21, %v1585_v16  ;;  %v1594_v29 = vadd.f32 %v1158_v10, %v985_v6  ;;  %v687_v31 = vpop.f32.mrb[13].mxu1 }
 0x38a   :  { %v738_v7 = vadd.f32 %v730_v23, %v668_v12  ;;  %v724_v33 = vmul.f32 %v716_v24, %v1587_v0  ;;  %v1597_v34 = vadd.f32 %v985_v6, %v687_v31  ;;  %v708_v24 = vmul.f32 0.5, %v1587_v0 }
 0x38b   :  { %v747_v35 = vmul.f32 0.7978846, %v739_v27  ;;  %v733_v22 = vmul.f32 %v725_v28, %v1585_v16  ;;  %v719_v18 = vmul.f32 0.044715, %v1594_v29  ;;  %v709_v27 = vmul.f32 0.5, %v1585_v16 }
 0x38c   :  { %v732_v39 = vmul.f32 %v724_v33, %v1587_v0  ;;  %v718_v40 = vmul.f32 0.044715, %v1597_v34  ;;  %v1161_v41 = vpop.f32.mrb[14].mxu1  ;;  %v746_v44 = vmul.f32 0.7978846, %v738_v7  ;;  %v710_v33 = vmul.f32 0.5, %v1597_v34 }
 0x38d   :  { %1269 = vtanh.f32 %v747_v35  ;;  %v741_v46 = vadd.f32 %v733_v22, %v1585_v16  ;;  %v727_v47 = vmul.f32 %v719_v18, %v1594_v29  ;;  %v1605_v48 = vadd.f32 %v1161_v41, %v985_v6  ;;  %v697_v49 = vpop.f32.mrb[15].mxu1 }
 0x38e   :  { %v740_v50 = vadd.f32 %v732_v39, %v1587_v0  ;;  %v726_v51 = vmul.f32 %v718_v40, %v1597_v34  ;;  %v698_v52 = vadd.f32 %v985_v6, %v697_v49  ;;  %1271 = vtanh.f32 %v746_v44  ;;  %v1011_v49 = vld [vmem:[%s1681_s7 + $0x1] ss:$0 sm:$0xff] }
 0x38f   :  { %v735_v53 = vmul.f32 %v727_v47, %v1594_v29  ;;  %v721_v32 = vmul.f32 0.044715, %v1605_v48  ;;  %v749_v55 = vmul.f32 0.7978846, %v741_v46  ;;  %v711_v22 = vmul.f32 0.5, %v1594_v29 }
 0x390   :  { %v734_v56 = vmul.f32 %v726_v51, %v1597_v34  ;;  %v720_v57 = vmul.f32 0.044715, %v698_v52  ;;  %v748_v42 = vmul.f32 0.7978846, %v740_v50  ;;  %v712_v16 = vmul.f32 0.5, %v698_v52 }
 0x391   :  { %v743_v43 = vadd.f32 %v735_v53, %v1594_v29  ;;  %v729_v58 = vmul.f32 %v721_v32, %v1605_v48  ;;  %1273 = vtanh.f32 %v749_v55  ;;  %v713_v46 = vmul.f32 0.5, %v1605_v48 }
 0x392   :  { %v742_v59 = vadd.f32 %v734_v56, %v1597_v34  ;;  %v728_v60 = vmul.f32 %v720_v57, %v698_v52  ;;  %1275 = vtanh.f32 %v748_v42 }
 0x393   :  { %v737_v61 = vmul.f32 %v729_v58, %v1605_v48  ;;  %v751_v62 = vmul.f32 0.7978846, %v743_v43 }
 0x394   :  { %v736_v63 = vmul.f32 %v728_v60, %v698_v52  ;;  %v750_v1 = vmul.f32 0.7978846, %v742_v59 }
 0x395   :  { %v745_v3 = vadd.f32 %v737_v61, %v1605_v48  ;;  %1277 = vtanh.f32 %v751_v62 }
 0x396   :  { %v744_v4 = vadd.f32 %v736_v63, %v698_v52  ;;  %1279 = vtanh.f32 %v750_v1 }
 0x397   :  { %v1270_v5 = vpop.eup %1269  ;;  %v753_v6 = vmul.f32 0.7978846, %v745_v3 }
 0x398   :  { %v1272_v8 = vpop.eup %1271  ;;  %v763_v11 = vadd.f32 1.0, %v1270_v5  ;;  %v752_v13 = vmul.f32 0.7978846, %v744_v4 }
 0x399   :  { %1281 = vtanh.f32 %v753_v6  ;;  %v762_v15 = vadd.f32 1.0, %v1272_v8 }
 0x39a   :  { %1283 = vtanh.f32 %v752_v13  ;;  %v771_v21 = vmul.f32 %v763_v11, %v707_v2 }
 0x39b   :  { %v1274_v17 = vpop.eup %1273  ;;  %v770_v19 = vmul.f32 %v762_v15, %v706_v14 }
 0x39c   :  { %v1276_v20 = vpop.eup %1275  ;;  %v765_v23 = vadd.f32 1.0, %v1274_v17 }
 0x39d   :  { %1178 = vmatprep.mubr.msk.f32.mxu0 %vm411_vm5, %v770_v19  ;;  %v764_v10 = vadd.f32 1.0, %v1276_v20 }
 0x39e   :  { %1179 = vmatmul.mubr.msk.f32.vlgmr.msra.gmra.mrb[16].mxu0 %vm411_vm5, %v771_v21  ;;  %v773_v7 = vmul.f32 %v765_v23, %v709_v27 }
 0x39f   :  { %v1278_v28 = vpop.eup %1277  ;;  %v772_v12 = vmul.f32 %v764_v10, %v708_v24 }
 0x3a0   :  { %v1280_v31 = vpop.eup %1279  ;;  %v767_v9 = vadd.f32 1.0, %v1278_v28 }
 0x3a1   :  { %1181 = vmatprep.mubr.msk.f32.mxu0 %vm411_vm5, %v772_v12  ;;  %v766_v35 = vadd.f32 1.0, %v1280_v31 }
 0x3a2   :  { %1182 = vmatmul.mubr.msk.f32.gmra.mrb[18].mxu0 %vm411_vm5, %v773_v7  ;;  %v775_v41 = vmul.f32 %v767_v9, %v711_v22 }
 0x3a3   :  { %v1282_v0 = vpop.eup %1281  ;;  %v774_v18 = vmul.f32 %v766_v35, %v710_v33 }
 0x3a4   :  { %v1284_v39 = vpop.eup %1283  ;;  %v769_v40 = vadd.f32 1.0, %v1282_v0 }
 0x3a5   :  { %1184 = vmatprep.mubr.msk.f32.mxu0 %vm411_vm5, %v774_v18  ;;  %v768_v44 = vadd.f32 1.0, %v1284_v39 }
 0x3a6   :  { %1185 = vmatmul.mubr.msk.f32.gmra.mrb[20].mxu0 %vm411_vm5, %v775_v41  ;;  %v777_v34 = vmul.f32 %v769_v40, %v713_v46 }
 0x3a7   :  { %v776_v47 = vmul.f32 %v768_v44, %v712_v16 }
 0x3a9   :  { %1187 = vmatprep.mubr.msk.f32.mxu1 %vm411_vm5, %v776_v47 }
 0x3aa   :  { %1188 = vmatmul.mubr.msk.f32.vlgmr.msra.gmra.mrb[16].mxu1 %vm411_vm5, %v777_v34 }
 0x471   :  { %v1180_v29 = vpop.f32.mrb[16].mxu0 }
 0x472   :  { %v917_v50 = vadd.f32 %v1180_v29, %v1518_v37  ;;  %v877_v51 = vpop.f32.mrb[17].mxu0 }
 0x473   :  { %v916_v52 = vadd.f32 %v877_v51, %v1516_v45 }
 0x474   :  { %v933_v53 = vadd.f32 %v1011_v49, %v917_v50 }
 0x475   :  { %v932_v48 = vadd.f32 %v1011_v49, %v916_v52  ;;  %v1183_v32 = vpop.f32.mrb[18].mxu0 }
 0x476   :  { %941 = vst.msk [vmem:[%s1682_s8 + $0x8] sm:$0xff] %vm201_vm4, %v933_v53  ;;  %v919_v55 = vadd.f32 %v1183_v32, %v1528_v25  ;;  %v887_v56 = vpop.f32.mrb[19].mxu0 }
 0x477   :  { %940 = vst.msk [vmem:[%s1682_s8] sm:$0xff] %vm201_vm4, %v932_v48  ;;  %v918_v37 = vadd.f32 %v887_v56, %v1526_v26 }
 0x478   :  { %v935_v57 = vadd.f32 %v1011_v49, %v919_v55 }
 0x479   :  { %v934_v45 = vadd.f32 %v1011_v49, %v918_v37  ;;  %v1186_v42 = vpop.f32.mrb[20].mxu0 }
 0x47a   :  { %943 = vst.msk [vmem:[%s1682_s8 + $0x18] sm:$0xff] %vm201_vm4, %v935_v57  ;;  %v921_v43 = vadd.f32 %v1186_v42, %v1538_v54  ;;  %v897_v58 = vpop.f32.mrb[21].mxu0 }
 0x47b   :  { %942 = vst.msk [vmem:[%s1682_s8 + $0x10] sm:$0xff] %vm201_vm4, %v934_v45  ;;  %v920_v25 = vadd.f32 %v897_v58, %v1536_v30 }
 0x47c   :  { %v937_v59 = vadd.f32 %v1011_v49, %v921_v43 }
 0x47d   :  { %v936_v26 = vadd.f32 %v1011_v49, %v920_v25  ;;  %v1189_v60 = vpop.f32.mrb[16].mxu1 }
 0x47e   :  { %945 = vst.msk [vmem:[%s1682_s8 + $0x28] sm:$0xff] %vm201_vm4, %v937_v59  ;;  %v923_v61 = vadd.f32 %v1189_v60, %v1548_v38  ;;  %v907_v62 = vpop.f32.mrb[17].mxu1 }
 0x47f   :  { %944 = vst.msk [vmem:[%s1682_s8 + $0x20] sm:$0xff] %vm201_vm4, %v936_v26  ;;  %v922_v54 = vadd.f32 %v907_v62, %v1546_v36 }
 0x480   :  { %v939_v63 = vadd.f32 %v1011_v49, %v923_v61 }
 0x481   :  { %v938_v30 = vadd.f32 %v1011_v49, %v922_v54 }
 0x482   :  { %947 = vst.msk [vmem:[%s1682_s8 + $0x38] sm:$0xff] %vm201_vm4, %v939_v63 }
 0x483   :  { %946 = vst.msk [vmem:[%s1682_s8 + $0x30] sm:$0xff] %vm201_vm4, %v938_v30 }

// kernel: retrieval_database_forward.3
= control target key start
LH: loop header
LB: loop body
LE: loop exit
PB: predicated region body
PF: predicated region fallthrough
CT: control target
= control target key end

     0   :  { %s17418_s0 = inlined_call_operand.vmem [shape: s32[4], index: 0, kind: input, shape index: {}]   ;;  %s17419_s1 = inlined_call_operand.vmem [shape: f32[8,80,32], index: 1, kind: input, shape index: {}, may-alias: {1,2}]   ;;  %s17420_s2 = inlined_call_operand.vmem [shape: f32[8,80,32], index: 2, kind: input, shape index: {}, may-alias: {1,2}]   ;;  %s17421_s3 = inlined_call_operand.vmem [shape: f32[2,32,96], index: 3, kind: input, shape index: {}]   ;;  %s17422_s4 = inlined_call_operand.vmem [shape: f32[2,1,96], index: 4, kind: input, shape index: {}]   ;;  %s17423_s5 = inlined_call_operand.vmem [shape: f32[2,32,32], index: 5, kind: input, shape index: {}]   ;;  %s17424_s6 = inlined_call_operand.vmem [shape: f32[2,32,64], index: 6, kind: input, shape index: {}]   ;;  %s17425_s7 = inlined_call_operand.vmem [shape: f32[2,1,64], index: 7, kind: input, shape index: {}]   ;;  %s17426_s8 = inlined_call_operand.vmem [shape: f32[2,64,32], index: 8, kind: input, shape index: {}]   ;;  %s17427_s9 = inlined_call_operand.vmem [shape: f32[2,6,32], index: 9, kind: input, shape index: {}]   ;;  %s17428_s10 = inlined_call_operand.hbm [shape: f32[2,2,32], index: 10, kind: output, shape index: {}]  }
   0x1   :  { %s15_s15 = sshll.u32 %s17418_s0, 4  ;;  %s16_s15 = int_to_ptr.vmem [resolvable:$true] %s15_s15 }
   0x2   :  { %s13051_s16 = scalar_lea.vmem %s16_s15, 16  ;;  %p13056_p1 = scmp.lt.s32.totalorder %s16_s15, %s16_s15 }
   0x3   :  { %p13052_p0 = scmp.ne.s32.totalorder %s16_s15, %s13051_s16  ;;  %p13057_p2 = scmp.lt.s32.totalorder %s13051_s16, %s13051_s16 }
   0x5   :  { %p13058_p3 = por %p13057_p2, %p13056_p1 }
   0x7   :  { %p13059_p4 = pnand %p13058_p3, %p13052_p0 }
   0x9   :  { %13062 = shalt.err (!%p13059_p4)  }
   0xa   :  { %s13129_s17 = smov [#allocation3]  }
   0xb   :  { %18 = dma.vmem_to_smem %s16_s15, 16, %s13129_s17, [#allocation2] }
   0xc   :  { %13107 = dma.done.wait [#allocation2], 16 }
   0xd   :  { %13108 = vsyncadd [#allocation2], 4294967280 }
   0xe   :  { %20 = sfence }
   0xf   :  { %21 = vsyncpa [#allocation5], 0 }
  0x10   :  { %23 = vsyncpa [#allocation5 + $0x1], 0  ;;  %s13195_s18 = smov 0   ;;  %s13197_s19 = smov 0  }
  0x11   :  { %s13199_s0 = smov 0   ;;  %s13201_s20 = smov 0  }
  0x12 LB: > { %s13216_s21 = sadd.s32 4294967295, %s13127_s20   ;;  %s8764_s22 = sadd.s32 4294967294, %s13127_s20   ;;  %s13127_s20 = sphi %s13201_s20, %s17783_s20   ;;  %s13123_s0 = sphi %s13199_s0, %s17782_s0   ;;  %s13119_s19 = sphi %s13197_s19, %s17781_s19   ;;  %s13115_s18 = sphi %s13195_s18, %s17780_s18  }
  0x13   : > { %s13220_s23 = sadd.s32 1, %s13127_s20   ;;  %s245_s24 = sadd.s32 1, %s13123_s0 }
  0x14   : > { %s242_s25 = ssub.s32 %s13127_s20, %s13220_s23  ;;  %p255_p5 = scmp.ne.s32.totalorder %s13123_s0, %s13119_s19 }
  0x15   : > { %p243_p6 = scmp.eq.s32.totalorder %s242_s25, 0  ;;  %p256_p7 = scmp.eq.s32.totalorder %s13216_s21, 1 }
  0x16   : > { %p261_p8 = scmp.ne.s32.totalorder %s13119_s19, %s13115_s18  ;;  %p262_p9 = scmp.eq.s32.totalorder %s8764_s22, 1 }
  0x17   : > { %s13231_s26 = scalar_select %p243_p6, %s13123_s0, %s245_s24  }
  0x18   : > { %p13233_p10 = por %p256_p7, %p255_p5  ;;  %p13237_p11 = por %p262_p9, %p261_p8 }
  0x19   : > { %p8771_p12 = scmp.ge.s32.totalorder %s13127_s20, 1  ;;  %p327_p13 = scmp.lt.s32.totalorder %s13127_s20, 3 }
  0x1b   : > { %p328_p0 = pnand %p8771_p12, %p327_p13 }
  0x1d   : > { %331 = sbr.rel (%p328_p0) target bundleno = 7348 (0x1cb4), region = 56 }
  0x24   : > { %v438_v0 = vld [vmem:[%s17421_s3] sm:$0xff]  ;;  %v439_v1 = vld [vmem:[%s17421_s3 + $0x8] sm:$0xff]  ;;  %v440_v2 = vld [vmem:[%s17421_s3 + $0x10] sm:$0xff]  ;;  %s8773_s15 = sshll.u32 %s13216_s21, 1  ;;  %vm449_vm0 = vcmask 261120   ;;  %v413_v26 = vlaneseq  ;;  %v17429_v45 = vmov 0.0  }
  0x25   : > { %v11140_v3 = vpack.c.bf16 %v439_v1, %v438_v0  ;;  %v441_v4 = vld [vmem:[%s17421_s3 + $0x18] sm:$0xff]  ;;  %s374_s22 = sld [smem:[#allocation3 + %s8773_s15]]  ;;  %s383_s24 = sadd.s32 1, %s8773_s15  ;;  %v437_v31 = vld [vmem:[%s17427_s9] sm:$0x3f]  ;;  %vm13431_vm5 = vmpackc.low %vm449_vm0, %vm449_vm0  ;;  %vm900_vm13 = vcmask 654336  }
  0x26   : > { %v11144_v5 = vpack.c.bf16 %v441_v4, %v440_v2  ;;  %s384_s25 = sld [smem:[#allocation3 + %s383_s24]]  ;;  %v13306_v27 = vshrl.u32 %v413_v26, 7  ;;  %v13326_v39 = vand.u32 127, %v413_v26  ;;  %v13333_v40 = vld [vmem:[%s17422_s4] ss:$0 sm:$0xff]  ;;  %s13132_s30 = smov 64  }
  0x27   : > { %11141 = vmatprep.subr.bf16.mxu0 %v11140_v3  ;;  %vm5522_vm14 = vcmask 523264   ;;  %vm13135_vm15 = vmmov 0   ;;  %s370_s14 = sand.u32 1, %s13119_s19  }
  0x28   : > { %11143 = vmatpush3.bf16.msra.mxu0 %v11140_v3  ;;  %17547 = vst [vmem:[#allocation8_spill] sm:$0xff] %v13306_v27  ;;  %v5048_v28 = vsub.s32 1, %v13306_v27  ;;  %v5072_v29 = vsub.s32 2, %v13306_v27  ;;  %v5520_v30 = vsub.s32 3, %v13306_v27  ;;  %v6030_v32 = vsub.s32 4, %v13306_v27  ;;  %s8772_s15 = sshll.u32 %s370_s14, 1 }
  0x29   : > { %11145 = vmatprep.subr.bf16.mxu0 %v11144_v5  ;;  %v6054_v33 = vsub.s32 5, %v13306_v27  ;;  %vm420_vm1 = vcmp.ge.s32.totalorder %v13326_v39, 8  ;;  %vm421_vm2 = vcmp.lt.s32.totalorder %v13326_v39, 16  ;;  %vm416_vm3 = vcmp.lt.s32.totalorder %v13326_v39, 8  ;;  %s372_s17 = scalar_lea.vmem [#allocation4], %s8772_s15 }
  0x2a   : > { %v13316_v34 = vrot.slane %v437_v31, %v5048_v28  ;;  %v13318_v35 = vrot.slane %v437_v31, %v5072_v29  ;;  %v13320_v36 = vrot.slane %v437_v31, %v5520_v30  ;;  %v13322_v37 = vrot.slane %v437_v31, %v6030_v32  ;;  %vm422_vm4 = vmand %vm420_vm1, %vm421_vm2 }
  0x2b   : > { %p375_p1 = scmp.lt.s32.totalorder %s374_s22, 7  ;;  %v13324_v38 = vrot.slane %v437_v31, %v6054_v33  ;;  %v13343_v46 = vsel %vm416_vm3, 1.0, %v17429_v45  ;;  %v13346_v47 = vsel %vm422_vm4, 1.0, %v17429_v45  ;;  %v17563_v33 = vmov 0 }
  0x2c   : > { %11147 = vmatpush3.bf16.msra.mxu0 %v11144_v5  ;;  %p385_p2 = scmp.lt.s32.totalorder %s384_s25, 7  ;;  %17548 = vst [vmem:[#allocation9_spill] sm:$0xff] %v13316_v34  ;;  %17549 = vst [vmem:[#allocation10_spill] sm:$0xff] %v13318_v35  ;;  %v17564_v33 = vsel %vm13431_vm5, 4294967295, %v17563_v33  ;;  %vm430_vm6 = vcmp.ge.s32.totalorder %v13326_v39, 24  ;;  %vm431_vm7 = vcmp.lt.s32.totalorder %v13326_v39, 32 }
  0x2d   : > { %s17785_s22 = smov (!%p375_p1, %s374_s22), 7  ;;  %17550 = vst [vmem:[#allocation11_spill] sm:$0xff] %v13320_v36  ;;  %17551 = vst [vmem:[#allocation12_spill] sm:$0xff] %v13322_v37  ;;  %vm425_vm8 = vcmp.ge.s32.totalorder %v13326_v39, 16  ;;  %vm426_vm9 = vcmp.lt.s32.totalorder %v13326_v39, 24  ;;  %vm435_vm12 = vcmp.lt.s32.totalorder %v13326_v39, 77 }
  0x2e   : > { %s11988_s29 = smul.u32 80, %s17785_s22  ;;  %s17787_s25 = smov (!%p385_p2, %s384_s25), 7  ;;  %17552 = vst [vmem:[#allocation13_spill] sm:$0xff] %v13324_v38  ;;  %17553 = vst [vmem:[#allocation14_spill] sm:$0xff] %v13343_v46  ;;  %vm6442_vm1 = vcmask 647168   ;;  %vm7288_vm2 = vcmask 258052  }
  0x2f   : > { %s11989_s13 = smul.u32 80, %s17787_s25  ;;  %17554 = vst [vmem:[#allocation15_spill] sm:$0xff] %v13346_v47  ;;  %17565 = vst [vmem:[#allocation24_spill] sm:$0xff] %v17564_v33  ;;  %s8693_s22 = sshll.u32 %s372_s17, 4  ;;  %s17377_s22 = int_to_ptr.vmem [resolvable:$true] %s8693_s22 }
  0x30   : > { %s13259_s12 = scalar_lea.vmem %s17419_s1, %s11988_s29  ;;  %s13131_s29 = smov 96   ;;  %vm432_vm10 = vmand %vm430_vm6, %vm431_vm7 }
  0x31   : > { %v393_v6 = vld [vmem:[%s13259_s12] sm:$0xff]  ;;  %v394_v7 = vld [vmem:[%s13259_s12 + $0x8] sm:$0xff]  ;;  %v395_v8 = vld [vmem:[%s13259_s12 + $0x10] sm:$0xff]  ;;  %s13280_s16 = scalar_lea.vmem %s17420_s2, %s11989_s13  ;;  %s13063_s13 = scalar_lea.vmem %s17377_s22, 32 }
  0x32   : > { %9940 = vmatprep.mubr.msk.f32.mxu0 %vm449_vm0, %v393_v6  ;;  %v396_v9 = vld [vmem:[%s13259_s12 + $0x18] sm:$0xff]  ;;  %v397_v10 = vld [vmem:[%s13259_s12 + $0x20] sm:$0xff]  ;;  %v398_v11 = vld [vmem:[%s13259_s12 + $0x28] sm:$0xff]  ;;  %p13064_p3 = scmp.ne.s32.totalorder %s17377_s22, %s13063_s13 }
  0x33   : > { %9941 = vmatmul.mubr.msk.f32.vlgmr.msra.gmra.mrb[0].mxu0 %vm449_vm0, %v394_v7  ;;  %v399_v12 = vld [vmem:[%s13259_s12 + $0x30] sm:$0xff]  ;;  %v400_v13 = vld [vmem:[%s13259_s12 + $0x38] sm:$0xff]  ;;  %v401_v14 = vld [vmem:[%s13259_s12 + $0x40] sm:$0xff] }
  0x34   : > { %9943 = vmatprep.mubr.msk.f32.mxu0 %vm449_vm0, %v395_v8  ;;  %v402_v15 = vld [vmem:[%s13259_s12 + $0x48] sm:$0xff]  ;;  %v403_v16 = vld [vmem:[%s13280_s16] sm:$0xff]  ;;  %v405_v18 = vld [vmem:[%s13280_s16 + $0x10] sm:$0xff]  ;;  %v12061_v8 = vpack.i.bf16 %v13343_v46, %v13346_v47  ;;  %p13065_p4 = pnand %p13064_p3, %p13233_p10 }
  0x35   : > { %v404_v17 = vld [vmem:[%s13280_s16 + $0x8] sm:$0xff]  ;;  %v406_v19 = vld [vmem:[%s13280_s16 + $0x18] sm:$0xff]  ;;  %v407_v20 = vld [vmem:[%s13280_s16 + $0x20] sm:$0xff] }
  0x36   : > { %v408_v21 = vld [vmem:[%s13280_s16 + $0x28] sm:$0xff]  ;;  %v409_v22 = vld [vmem:[%s13280_s16 + $0x30] sm:$0xff]  ;;  %v410_v23 = vld [vmem:[%s13280_s16 + $0x38] sm:$0xff]  ;;  %p13066_p5 = pneg %p13065_p4 }
  0x37   : > { %9944 = vmatmul.mubr.msk.f32.gmra.mrb[2].mxu0 %vm449_vm0, %v396_v9  ;;  %v411_v24 = vld [vmem:[%s13280_s16 + $0x40] sm:$0xff]  ;;  %v412_v25 = vld [vmem:[%s13280_s16 + $0x48] sm:$0xff]  ;;  %vm427_vm11 = vmand %vm425_vm8, %vm426_vm9 }
  0x38   : > { %9946 = vmatprep.mubr.msk.f32.mxu0 %vm449_vm0, %v397_v10 }
  0x3b   : > { %9947 = vmatmul.mubr.msk.f32.gmra.mrb[4].mxu0 %vm449_vm0, %v398_v11 }
  0x3c   : > { %9949 = vmatprep.mubr.msk.f32.mxu0 %vm449_vm0, %v399_v12 }
  0x3f   : > { %9950 = vmatmul.mubr.msk.f32.gmra.mrb[6].mxu0 %vm449_vm0, %v400_v13 }
  0x40   : > { %9952 = vmatprep.mubr.msk.f32.mxu0 %vm449_vm0, %v401_v14 }
  0x43   : > { %9953 = vmatmul.mubr.msk.f32.gmra.mrb[8].mxu0 %vm449_vm0, %v402_v15 }
  0x44   : > { %9955 = vmatprep.mubr.msk.f32.mxu0 %vm449_vm0, %v403_v16 }
  0x47   : > { %9956 = vmatmul.mubr.msk.f32.gmra.mrb[10].mxu0 %vm449_vm0, %v404_v17 }
  0x48   : > { %9958 = vmatprep.mubr.msk.f32.mxu0 %vm449_vm0, %v405_v18 }
  0x4b   : > { %9959 = vmatmul.mubr.msk.f32.gmra.mrb[12].mxu0 %vm449_vm0, %v406_v19 }
  0x4c   : > { %9961 = vmatprep.mubr.msk.f32.mxu0 %vm449_vm0, %v407_v20 }
  0x4f   : > { %9962 = vmatmul.mubr.msk.f32.gmra.mrb[14].mxu0 %vm449_vm0, %v408_v21 }
  0x50   : > { %9964 = vmatprep.mubr.msk.f32.mxu0 %vm449_vm0, %v409_v22 }
  0x53   : > { %9965 = vmatmul.mubr.msk.f32.gmra.mrb[16].mxu0 %vm449_vm0, %v410_v23 }
  0x54   : > { %9967 = vmatprep.mubr.msk.f32.mxu0 %vm449_vm0, %v411_v24 }
  0x57   : > { %9968 = vmatmul.mubr.msk.f32.gmra.mrb[18].mxu0 %vm449_vm0, %v412_v25 }
 0x106   : > { %v9942_v41 = vpop.f32.mrb[0].mxu0 }
 0x107   : > { %v13337_v42 = vadd.f32 %v9942_v41, %v13333_v40  ;;  %v576_v43 = vpop.f32.mrb[1].mxu0 }
 0x108   : > { %v13340_v44 = vadd.f32 %v13333_v40, %v576_v43 }
 0x10a   : > { %v12036_v48 = vpack.i.bf16 %v13337_v42, %v13340_v44  ;;  %v9945_v49 = vpop.f32.mrb[2].mxu0  ;;  %v13351_v50 = vmul.f32 0.35355338, %v13340_v44 }
 0x10b   : > { %v13354_v51 = vadd.f32 %v9945_v49, %v13333_v40  ;;  %v586_v52 = vpop.f32.mrb[3].mxu0 }
 0x10c   : > { %12037 = vrot.lane.b32.xlu0 %v12036_v48, %s13131_s29  ;;  %v13358_v53 = vadd.f32 %v13333_v40, %v586_v52  ;;  %v695_v54 = vmul.f32 %v13343_v46, %v13351_v50  ;;  %v1025_v55 = vmul.f32 %v13346_v47, %v13351_v50 }
 0x10e   : > { %9990 = vmatprep.mubr.msk.f32.mxu1 %vm449_vm0, %v695_v54  ;;  %10025 = vmatprep.mubr.msk.f32.mxu0 %vm449_vm0, %v1025_v55  ;;  %v9948_v56 = vpop.f32.mrb[4].mxu0  ;;  %v12041_v57 = vpack.i.bf16 %v13354_v51, %v13358_v53 }
 0x10f   : > { %v13369_v58 = vadd.f32 %v9948_v56, %v13333_v40  ;;  %v596_v59 = vpop.f32.mrb[5].mxu0 }
 0x110   : > { %v13372_v60 = vadd.f32 %v13333_v40, %v596_v59  ;;  %12042 = vrot.lane.b32.xlu0 %v12041_v57, %s13131_s29 }
 0x112   : > { %v9951_v61 = vpop.f32.mrb[6].mxu0  ;;  %v12046_v62 = vpack.i.bf16 %v13369_v58, %v13372_v60 }
 0x113   : > { %v13378_v63 = vadd.f32 %v9951_v61, %v13333_v40  ;;  %v606_v0 = vpop.f32.mrb[7].mxu0 }
 0x114   : > { %v13381_v1 = vadd.f32 %v13333_v40, %v606_v0  ;;  %12047 = vrot.lane.b32.xlu1 %v12046_v62, %s13131_s29 }
 0x116   : > { %v9954_v2 = vpop.f32.mrb[8].mxu0  ;;  %v12051_v3 = vpack.i.bf16 %v13378_v63, %v13381_v1 }
 0x117   : > { %v13387_v4 = vadd.f32 %v9954_v2, %v13333_v40  ;;  %v616_v5 = vpop.f32.mrb[9].mxu0 }
 0x118   : > { %v13390_v6 = vadd.f32 %v13333_v40, %v616_v5  ;;  %12052 = vrot.lane.b32.xlu1 %v12051_v3, %s13131_s29  ;;  %v13486_v5 = vsel %vm432_vm10, 1.0, %v17429_v45 }
 0x119   : > { %17567 = vst [vmem:[#allocation26_spill] sm:$0xff] %v13486_v5 }
 0x11a   : > { %v12056_v7 = vpack.i.bf16 %v13387_v4, %v13390_v6  ;;  %v9957_v9 = vpop.f32.mrb[10].mxu0 }
 0x11b   : > { %v13400_v10 = vadd.f32 %v9957_v9, %v13333_v40  ;;  %v626_v11 = vpop.f32.mrb[11].mxu0  ;;  %v13491_v9 = vsel %vm427_vm11, 1.0, %v17429_v45 }
 0x11c   : > { %12057 = vrot.lane.b32.xlu0 %v12056_v7, %s13131_s29  ;;  %v13403_v12 = vadd.f32 %v13333_v40, %v626_v11  ;;  %17568 = vst [vmem:[#allocation27_spill] sm:$0xff] %v13491_v9 }
 0x11d   : > { %17555 = vst [vmem:[#allocation16_spill] sm:$0xff] %v13400_v10 }
 0x11e   : > { %17556 = vst [vmem:[#allocation17_spill] sm:$0xff] %v13403_v12  ;;  %v9960_v13 = vpop.f32.mrb[12].mxu0 }
 0x11f   : > { %v13406_v14 = vadd.f32 %v9960_v13, %v13333_v40  ;;  %v636_v15 = vpop.f32.mrb[13].mxu0 }
 0x120   : > { %12062 = vrot.lane.b32.xlu0 %v12061_v8, %s13132_s30  ;;  %v13409_v16 = vadd.f32 %v13333_v40, %v636_v15 }
 0x121   : > { %17557 = vst [vmem:[#allocation18_spill] sm:$0xff] %v13406_v14 }
 0x122   : > { %17558 = vst [vmem:[#allocation19_spill] sm:$0xff] %v13409_v16  ;;  %v9963_v17 = vpop.f32.mrb[14].mxu0 }
 0x123   : > { %v13412_v18 = vadd.f32 %v9963_v17, %v13333_v40  ;;  %v646_v19 = vpop.f32.mrb[15].mxu0 }
 0x124   : > { %v13415_v20 = vadd.f32 %v13333_v40, %v646_v19 }
 0x125   : > { %17559 = vst [vmem:[#allocation20_spill] sm:$0xff] %v13412_v18 }
 0x126   : > { %17560 = vst [vmem:[#allocation21_spill] sm:$0xff] %v13415_v20  ;;  %v9966_v21 = vpop.f32.mrb[16].mxu0 }
 0x127   : > { %v13418_v22 = vadd.f32 %v9966_v21, %v13333_v40  ;;  %v656_v23 = vpop.f32.mrb[17].mxu0 }
 0x128   : > { %v13421_v24 = vadd.f32 %v13333_v40, %v656_v23 }
 0x129   : > { %17561 = vst [vmem:[#allocation22_spill] sm:$0xff] %v13418_v22 }
 0x12a   : > { %17562 = vst [vmem:[#allocation23_spill] sm:$0xff] %v13421_v24  ;;  %v9969_v25 = vpop.f32.mrb[18].mxu0 }
 0x12b   : > { %v13424_v26 = vadd.f32 %v9969_v25, %v13333_v40  ;;  %v666_v28 = vpop.f32.mrb[19].mxu0 }
 0x12c   : > { %v13427_v29 = vadd.f32 %v13333_v40, %v666_v28 }
 0x17e   : > { %v12038_v30 = vpop.permute.xlu0 %12037 }
 0x17f   : > { %v12040_v31 = vunpack.i.h.bf16 %v12038_v30  ;;  %v12039_v32 = vunpack.i.l.bf16 %v12038_v30 }
 0x181   : > { %v13435_v41 = vpack.c.bf16 %v12040_v31, %v12039_v32 }
 0x182   : > { %v12043_v43 = vpop.permute.xlu0 %12042 }
 0x183   : > { %11150 = vmatprep.subr.msk.bf16.mxu1 %vm13431_vm5, %v13435_v41  ;;  %11180 = vmatprep.subr.msk.bf16.mxu0 %vm13431_vm5, %v13435_v41  ;;  %v12045_v40 = vunpack.i.h.bf16 %v12043_v43  ;;  %v12044_v48 = vunpack.i.l.bf16 %v12043_v43 }
 0x184   : > { %11153 = vmatpush3.bf16.xpose.msk.msra.mxu1 %vm13431_vm5, %v13435_v41  ;;  %11183 = vmatpush3.bf16.xpose.msk.msra.mxu0 %vm13431_vm5, %v13435_v41 }
 0x185   : > { %v13449_v49 = vpack.c.bf16 %v12045_v40, %v12044_v48 }
 0x186   : > { %v12048_v52 = vpop.permute.xlu1 %12047 }
 0x187   : > { %11156 = vmatprep.subr.msk.bf16.mxu1 %vm13431_vm5, %v13449_v49  ;;  %11186 = vmatprep.subr.msk.bf16.mxu0 %vm13431_vm5, %v13449_v49  ;;  %v12050_v54 = vunpack.i.h.bf16 %v12048_v52  ;;  %v12049_v55 = vunpack.i.l.bf16 %v12048_v52 }
 0x189   : > { %v13457_v56 = vpack.c.bf16 %v12050_v54, %v12049_v55 }
 0x18a   : > { %v12053_v57 = vpop.permute.xlu1 %12052 }
 0x18b   : > { %v12055_v59 = vunpack.i.h.bf16 %v12053_v57  ;;  %v12054_v61 = vunpack.i.l.bf16 %v12053_v57 }
 0x18c   : > { %11159 = vmatpush3.bf16.xpose.msk.msra.mxu1 %vm13431_vm5, %v13449_v49  ;;  %11189 = vmatpush3.bf16.xpose.msk.msra.mxu0 %vm13431_vm5, %v13449_v49 }
 0x18d   : > { %11162 = vmatprep.subr.msk.bf16.mxu1 %vm13431_vm5, %v13457_v56  ;;  %11192 = vmatprep.subr.msk.bf16.mxu0 %vm13431_vm5, %v13457_v56  ;;  %v13475_v0 = vpack.c.bf16 %v12055_v59, %v12054_v61 }
 0x18e   : > { %v12058_v62 = vpop.permute.xlu0 %12057 }
 0x18f   : > { %v12060_v7 = vunpack.i.h.bf16 %v12058_v62  ;;  %v12059_v13 = vunpack.i.l.bf16 %v12058_v62 }
 0x191   : > { %v13515_v30 = vpack.c.bf16 %v12060_v7, %v12059_v13  ;;  %v13562_v13 = vmul.f32 0.35355338, %v13337_v42 }
 0x192   : > { %v12063_v2 = vpop.permute.xlu0 %12062 }
 0x193   : > { %v13477_v3 = vunpack.i.l.bf16 %v12063_v2  ;;  %v13501_v15 = vunpack.i.h.bf16 %v12063_v2 }
 0x194   : > { %11165 = vmatpush3.bf16.xpose.msk.msra.mxu1 %vm13431_vm5, %v13457_v56  ;;  %11195 = vmatpush3.bf16.xpose.msk.msra.mxu0 %vm13431_vm5, %v13457_v56 }
 0x195   : > { %17566 = vst [vmem:[#allocation25_spill] sm:$0xff] %v13477_v3  ;;  %v1295_v8 = vmul.f32 %v13477_v3, %v13337_v42  ;;  %v1294_v11 = vmul.f32 %v13477_v3, %v13340_v44  ;;  %11168 = vmatprep.subr.msk.bf16.mxu1 %vm13431_vm5, %v13475_v0  ;;  %11198 = vmatprep.subr.msk.bf16.mxu0 %vm13431_vm5, %v13475_v0  ;;  %17569 = vst [vmem:[#allocation28_spill] sm:$0xff] %v13501_v15 }
 0x196   : > { %v1298_v17 = vmul.f32 %v13477_v3, %v13372_v60  ;;  %v1299_v19 = vmul.f32 %v13477_v3, %v13369_v58  ;;  %v1296_v25 = vmul.f32 %v13477_v3, %v13358_v53  ;;  %v1297_v28 = vmul.f32 %v13477_v3, %v13354_v51 }
 0x197   : > { %v12071_v21 = vpack.i.bf16 %v13486_v5, %v1295_v8  ;;  %v12066_v23 = vpack.i.bf16 %v1294_v11, %v13491_v9  ;;  %v1015_v31 = vmul.f32 %v13501_v15, %v13340_v44  ;;  %v1016_v32 = vmul.f32 %v13501_v15, %v13337_v42 }
 0x198   : > { %v12081_v43 = vpack.i.bf16 %v1299_v19, %v1298_v17  ;;  %v12076_v40 = vpack.i.bf16 %v1297_v28, %v1296_v25  ;;  %v1300_v48 = vmul.f32 %v13477_v3, %v13381_v1  ;;  %v1301_v52 = vmul.f32 %v13477_v3, %v13378_v63 }
 0x199   : > { %12072 = vrot.lane.b32.xlu1 %v12071_v21, %s13132_s30  ;;  %12067 = vrot.lane.b32.xlu0 %v12066_v23, %s13132_s30  ;;  %v12091_v54 = vpack.i.bf16 %v1016_v32, %v1015_v31  ;;  %v1019_v55 = vmul.f32 %v13501_v15, %v13372_v60  ;;  %v1020_v59 = vmul.f32 %v13501_v15, %v13369_v58  ;;  %v13568_v17 = vmul.f32 0.35355338, %v13358_v53 }
 0x19a   : > { %v12086_v57 = vpack.i.bf16 %v1301_v52, %v1300_v48  ;;  %v1017_v61 = vmul.f32 %v13501_v15, %v13358_v53  ;;  %v1018_v62 = vmul.f32 %v13501_v15, %v13354_v51  ;;  %v1021_v8 = vmul.f32 %v13501_v15, %v13381_v1 }
 0x19b   : > { %v12101_v2 = vpack.i.bf16 %v1020_v59, %v1019_v55  ;;  %v1022_v11 = vmul.f32 %v13501_v15, %v13378_v63  ;;  %v696_v21 = vmul.f32 %v13343_v46, %v13562_v13  ;;  %v1026_v23 = vmul.f32 %v13346_v47, %v13562_v13 }
 0x19c   : > { %11171 = vmatpush3.bf16.xpose.msk.msra.mxu1 %vm13431_vm5, %v13475_v0  ;;  %11201 = vmatpush3.bf16.xpose.msk.msra.mxu0 %vm13431_vm5, %v13475_v0  ;;  %v12096_v7 = vpack.i.bf16 %v1018_v62, %v1017_v61  ;;  %v13576_v25 = vmul.f32 0.35355338, %v13354_v51  ;;  %v697_v28 = vmul.f32 %v13343_v46, %v13568_v17  ;;  %v1027_v31 = vmul.f32 %v13346_v47, %v13568_v17 }
 0x19d   : > { %12082 = vrot.lane.b32.xlu1 %v12081_v43, %s13132_s30  ;;  %12077 = vrot.lane.b32.xlu0 %v12076_v40, %s13132_s30  ;;  %v12106_v19 = vpack.i.bf16 %v1022_v11, %v1021_v8  ;;  %v13583_v32 = vmul.f32 0.35355338, %v13372_v60  ;;  %v13597_v48 = vmul.f32 0.35355338, %v13369_v58  ;;  %v13607_v55 = vmul.f32 0.35355338, %v13381_v1 }
 0x19e   : > { %11174 = vmatprep.subr.msk.bf16.mxu1 %vm13431_vm5, %v13515_v30  ;;  %11204 = vmatprep.subr.msk.bf16.mxu0 %vm13431_vm5, %v13515_v30  ;;  %v698_v43 = vmul.f32 %v13343_v46, %v13576_v25  ;;  %v1028_v40 = vmul.f32 %v13346_v47, %v13576_v25  ;;  %v13618_v61 = vmul.f32 0.35355338, %v13378_v63 }
 0x19f   : > { %v699_v52 = vmul.f32 %v13343_v46, %v13583_v32  ;;  %v1030_v59 = vmul.f32 %v13346_v47, %v13597_v48  ;;  %v701_v62 = vmul.f32 %v13343_v46, %v13607_v55 }
 0x1a0   : > { %v702_v8 = vmul.f32 %v13343_v46, %v13618_v61  ;;  %v1032_v11 = vmul.f32 %v13346_v47, %v13618_v61 }
 0x1a1   : > { %12092 = vrot.lane.b32.xlu1 %v12091_v54, %s13132_s30  ;;  %12087 = vrot.lane.b32.xlu0 %v12086_v57, %s13132_s30  ;;  %v1029_v54 = vmul.f32 %v13346_v47, %v13583_v32  ;;  %v700_v57 = vmul.f32 %v13343_v46, %v13597_v48 }
 0x1a4   : > { %11177 = vmatpush3.bf16.xpose.msk.msra.mxu1 %vm13431_vm5, %v13515_v30  ;;  %11207 = vmatpush3.bf16.xpose.msk.msra.mxu0 %vm13431_vm5, %v13515_v30 }
 0x1a5   : > { %12102 = vrot.lane.b32.xlu1 %v12101_v2, %s13132_s30  ;;  %12097 = vrot.lane.b32.xlu0 %v12096_v7, %s13132_s30  ;;  %v1031_v2 = vmul.f32 %v13346_v47, %v13607_v55  ;;  %v13625_v7 = vmul.f32 0.35355338, %v13390_v6 }
 0x1a6   : > { %11250 = vmatprep.subr.msk.bf16.mxu0 %vm13431_vm5, %v13435_v41 }
 0x1a9   : > { %12107 = vrot.lane.b32.xlu0 %v12106_v19, %s13132_s30  ;;  %v13639_v19 = vmul.f32 0.35355338, %v13387_v4 }
 0x1ab   : > { %9991 = vmatmul.mubr.msk.f32.vlgmr.msra.gmra.mrb[0].mxu1 %vm449_vm0, %v696_v21  ;;  %10026 = vmatmul.mubr.msk.f32.vlgmr.msra.gmra.mrb[20].mxu0 %vm449_vm0, %v1026_v23  ;;  %v703_v21 = vmul.f32 %v13343_v46, %v13625_v7  ;;  %v1033_v23 = vmul.f32 %v13346_v47, %v13625_v7 }
 0x1ac   : > { %9993 = vmatprep.mubr.msk.f32.mxu1 %vm449_vm0, %v697_v28  ;;  %10028 = vmatprep.mubr.msk.f32.mxu0 %vm449_vm0, %v1027_v31  ;;  %v704_v28 = vmul.f32 %v13343_v46, %v13639_v19  ;;  %v1034_v31 = vmul.f32 %v13346_v47, %v13639_v19 }
 0x1ad   : > { %11253 = vmatpush3.bf16.xpose.msk.msra.mxu0 %vm13431_vm5, %v13435_v41 }
 0x1ae   : > { %11256 = vmatprep.subr.msk.bf16.mxu0 %vm13431_vm5, %v13449_v49 }
 0x1af   : > { %9994 = vmatmul.mubr.msk.f32.gmra.mrb[2].mxu1 %vm449_vm0, %v698_v43  ;;  %10029 = vmatmul.mubr.msk.f32.gmra.mrb[22].mxu0 %vm449_vm0, %v1028_v40  ;;  %v1674_v43 = vmul.f32 %v13491_v9, %v13351_v50  ;;  %v1675_v40 = vmul.f32 %v13491_v9, %v13562_v13 }
 0x1b0   : > { %9996 = vmatprep.mubr.msk.f32.mxu1 %vm449_vm0, %v699_v52  ;;  %10031 = vmatprep.mubr.msk.f32.mxu0 %vm449_vm0, %v1029_v54  ;;  %v1676_v52 = vmul.f32 %v13491_v9, %v13568_v17  ;;  %v1677_v54 = vmul.f32 %v13491_v9, %v13576_v25 }
 0x1b3   : > { %9997 = vmatmul.mubr.msk.f32.gmra.mrb[4].mxu1 %vm449_vm0, %v700_v57  ;;  %10032 = vmatmul.mubr.msk.f32.gmra.mrb[24].mxu0 %vm449_vm0, %v1030_v59  ;;  %v1678_v57 = vmul.f32 %v13491_v9, %v13583_v32  ;;  %v1679_v59 = vmul.f32 %v13491_v9, %v13597_v48 }
 0x1b4   : > { %9999 = vmatprep.mubr.msk.f32.mxu1 %vm449_vm0, %v701_v62  ;;  %10034 = vmatprep.mubr.msk.f32.mxu0 %vm449_vm0, %v1031_v2  ;;  %v1681_v62 = vmul.f32 %v13491_v9, %v13618_v61  ;;  %v1682_v2 = vmul.f32 %v13491_v9, %v13625_v7 }
 0x1b5   : > { %11259 = vmatpush3.bf16.xpose.msk.msra.mxu0 %vm13431_vm5, %v13449_v49 }
 0x1b6   : > { %11262 = vmatprep.subr.msk.bf16.mxu0 %vm13431_vm5, %v13457_v56 }
 0x1b7   : > { %10000 = vmatmul.mubr.msk.f32.gmra.mrb[6].mxu1 %vm449_vm0, %v702_v8  ;;  %10035 = vmatmul.mubr.msk.f32.gmra.mrb[26].mxu0 %vm449_vm0, %v1032_v11  ;;  %v1683_v8 = vmul.f32 %v13491_v9, %v13639_v19  ;;  %v2152_v11 = vmul.f32 %v13486_v5, %v13583_v32  ;;  %v2156_v32 = vmul.f32 %v13486_v5, %v13625_v7 }
 0x1b8   : > { %10002 = vmatprep.mubr.msk.f32.mxu1 %vm449_vm0, %v703_v21  ;;  %10037 = vmatprep.mubr.msk.f32.mxu0 %vm449_vm0, %v1033_v23 }
 0x1bb   : > { %10003 = vmatmul.mubr.msk.f32.gmra.mrb[8].mxu1 %vm449_vm0, %v704_v28  ;;  %10038 = vmatmul.mubr.msk.f32.gmra.mrb[28].mxu0 %vm449_vm0, %v1034_v31 }
 0x1bc   : > { %10130 = vmatprep.mubr.msk.f32.mxu0 %vm449_vm0, %v1674_v43 }
 0x1bd   : > { %11265 = vmatpush3.bf16.xpose.msk.msra.mxu0 %vm13431_vm5, %v13457_v56 }
 0x1be   : > { %11268 = vmatprep.subr.msk.bf16.mxu0 %vm13431_vm5, %v13475_v0 }
 0x1c5   : > { %11271 = vmatpush3.bf16.xpose.msk.msra.mxu0 %vm13431_vm5, %v13475_v0 }
 0x1c6   : > { %11274 = vmatprep.subr.msk.bf16.mxu0 %vm13431_vm5, %v13515_v30 }
 0x1cd   : > { %11277 = vmatpush3.bf16.xpose.msk.msra.mxu0 %vm13431_vm5, %v13515_v30 }
 0x1ce   : > { %11300 = vmatprep.subr.msk.bf16.mxu0 %vm13431_vm5, %v13435_v41 }
 0x1d4   : > { %10131 = vmatmul.mubr.msk.f32.vlgmr.msra.gmra.mrb[30].mxu0 %vm449_vm0, %v1675_v40 }
 0x1d5   : > { %10133 = vmatprep.mubr.msk.f32.mxu0 %vm449_vm0, %v1676_v52  ;;  %11303 = vmatpush3.bf16.xpose.msk.msra.mxu0 %vm13431_vm5, %v13435_v41  ;;  %v1680_v41 = vmul.f32 %v13491_v9, %v13607_v55 }
 0x1d6   : > { %11306 = vmatprep.subr.msk.bf16.mxu0 %vm13431_vm5, %v13449_v49 }
 0x1d8   : > { %10134 = vmatmul.mubr.msk.f32.gmra.mrb[32].mxu0 %vm449_vm0, %v1677_v54 }
 0x1d9   : > { %10136 = vmatprep.mubr.msk.f32.mxu0 %vm449_vm0, %v1678_v57 }
 0x1dc   : > { %10137 = vmatmul.mubr.msk.f32.gmra.mrb[34].mxu0 %vm449_vm0, %v1679_v59 }
 0x1dd   : > { %10139 = vmatprep.mubr.msk.f32.mxu0 %vm449_vm0, %v1680_v41  ;;  %11309 = vmatpush3.bf16.xpose.msk.msra.mxu0 %vm13431_vm5, %v13449_v49  ;;  %v2148_v49 = vmul.f32 %v13486_v5, %v13351_v50  ;;  %v2149_v50 = vmul.f32 %v13486_v5, %v13562_v13  ;;  %v2154_v13 = vmul.f32 %v13486_v5, %v13607_v55 }
 0x1de   : > { %11312 = vmatprep.subr.msk.bf16.mxu0 %vm13431_vm5, %v13457_v56  ;;  %v2157_v55 = vmul.f32 %v13486_v5, %v13639_v19 }
 0x1e0   : > { %10140 = vmatmul.mubr.msk.f32.gmra.mrb[36].mxu0 %vm449_vm0, %v1681_v62 }
 0x1e1   : > { %10142 = vmatprep.mubr.msk.f32.mxu0 %vm449_vm0, %v1682_v2 }
 0x1e4   : > { %10143 = vmatmul.mubr.msk.f32.gmra.mrb[38].mxu0 %vm449_vm0, %v1683_v8 }
 0x1e5   : > { %11315 = vmatpush3.bf16.xpose.msk.msra.mxu0 %vm13431_vm5, %v13457_v56  ;;  %10200 = vmatprep.mubr.msk.f32.mxu0 %vm449_vm0, %v2148_v49  ;;  %v2150_v56 = vmul.f32 %v13486_v5, %v13568_v17  ;;  %v13755_v17 = vmul.f32 0.35355338, %v13403_v12 }
 0x1e6   : > { %11318 = vmatprep.subr.msk.bf16.mxu0 %vm13431_vm5, %v13475_v0 }
 0x1e7   : > { %17570 = vst [vmem:[#allocation29_spill] sm:$0xff] %v13755_v17 }
 0x1ed   : > { %11321 = vmatpush3.bf16.xpose.msk.msra.mxu0 %vm13431_vm5, %v13475_v0  ;;  %v2151_v0 = vmul.f32 %v13486_v5, %v13576_v25  ;;  %v2155_v25 = vmul.f32 %v13486_v5, %v13618_v61 }
 0x1ee   : > { %11324 = vmatprep.subr.msk.bf16.mxu0 %vm13431_vm5, %v13515_v30 }
 0x1f5   : > { %11327 = vmatpush3.bf16.xpose.msk.msra.mxu0 %vm13431_vm5, %v13515_v30  ;;  %v2153_v30 = vmul.f32 %v13486_v5, %v13597_v48  ;;  %v2947_v48 = vmul.f32 %v13346_v47, %v13755_v17 }
 0x1fc   : > { %10201 = vmatmul.mubr.msk.f32.vlgmr.msra.gmra.mrb[40].mxu0 %vm449_vm0, %v2149_v50 }
 0x1fd   : > { %10203 = vmatprep.mubr.msk.f32.mxu0 %vm449_vm0, %v2150_v56 }
 0x200   : > { %10204 = vmatmul.mubr.msk.f32.gmra.mrb[42].mxu0 %vm449_vm0, %v2151_v0 }
 0x201   : > { %10206 = vmatprep.mubr.msk.f32.mxu0 %vm449_vm0, %v2152_v11 }
 0x204   : > { %10207 = vmatmul.mubr.msk.f32.gmra.mrb[44].mxu0 %vm449_vm0, %v2153_v30 }
 0x205   : > { %10209 = vmatprep.mubr.msk.f32.mxu0 %vm449_vm0, %v2154_v13 }
 0x208   : > { %10210 = vmatmul.mubr.msk.f32.gmra.mrb[46].mxu0 %vm449_vm0, %v2155_v25 }
 0x209   : > { %10212 = vmatprep.mubr.msk.f32.mxu0 %vm449_vm0, %v2156_v32 }
 0x20b   : > { %v12073_v21 = vpop.permute.xlu1 %12072  ;;  %v12068_v23 = vpop.permute.xlu0 %12067 }
 0x20c   : > { %v13767_v28 = vunpack.i.h.bf16 %v12073_v21  ;;  %v12074_v31 = vunpack.i.l.bf16 %v12073_v21  ;;  %v12070_v43 = vunpack.i.h.bf16 %v12068_v23  ;;  %v13769_v61 = vunpack.i.l.bf16 %v12068_v23  ;;  %10213 = vmatmul.mubr.msk.f32.gmra.mrb[48].mxu0 %vm449_vm0, %v2157_v55 }
 0x20d   : > { %10305 = vmatprep.mubr.msk.f32.mxu0 %vm449_vm0, %v2947_v48 }
 0x20e   : > { %17571 = vst [vmem:[#allocation30_spill] sm:$0xff] %v13769_v61  ;;  %v11208_v7 = vpack.c.bf16 %v12074_v31, %v12070_v43  ;;  %v1949_v40 = vmul.f32 %v13769_v61, %v13381_v1  ;;  %v1950_v52 = vmul.f32 %v13769_v61, %v13378_v63  ;;  %v1943_v19 = vmul.f32 %v13769_v61, %v13340_v44 }
 0x20f   : > { %v12083_v54 = vpop.permute.xlu1 %12082  ;;  %v12078_v57 = vpop.permute.xlu0 %12077  ;;  %v1944_v59 = vmul.f32 %v13769_v61, %v13337_v42  ;;  %v2419_v41 = vmul.f32 %v13767_v28, %v13358_v53  ;;  %v2420_v62 = vmul.f32 %v13767_v28, %v13354_v51  ;;  %v1945_v11 = vmul.f32 %v13769_v61, %v13358_v53 }
 0x210   : > { %v12085_v2 = vunpack.i.h.bf16 %v12083_v54  ;;  %v12084_v8 = vunpack.i.l.bf16 %v12083_v54  ;;  %v12080_v49 = vunpack.i.h.bf16 %v12078_v57  ;;  %v12079_v50 = vunpack.i.l.bf16 %v12078_v57  ;;  %11209 = vmatprep.subr.bf16.mxu1 %v11208_v7 }
 0x211   : > { %11211 = vmatpush3.bf16.msra.mxu1 %v11208_v7  ;;  %v12126_v56 = vpack.i.bf16 %v1950_v52, %v1949_v40  ;;  %v12111_v0 = vpack.i.bf16 %v1944_v59, %v1943_v19  ;;  %v1946_v30 = vmul.f32 %v13769_v61, %v13354_v51  ;;  %v12136_v32 = vpack.i.bf16 %v2420_v62, %v2419_v41 }
 0x212   : > { %v11212_v13 = vpack.c.bf16 %v12080_v49, %v12079_v50  ;;  %v11216_v21 = vpack.c.bf16 %v12085_v2, %v12084_v8  ;;  %v1951_v23 = vmul.f32 %v13769_v61, %v13390_v6  ;;  %v1952_v53 = vmul.f32 %v13769_v61, %v13387_v4 }
 0x213   : > { %12127 = vrot.lane.b32.xlu1 %v12126_v56, %s13132_s30  ;;  %12112 = vrot.lane.b32.xlu0 %v12111_v0, %s13132_s30  ;;  %v12088_v25 = vpop.permute.xlu0 %12087  ;;  %v12116_v31 = vpack.i.bf16 %v1946_v30, %v1945_v11  ;;  %v1947_v51 = vmul.f32 %v13769_v61, %v13372_v60  ;;  %v1948_v43 = vmul.f32 %v13769_v61, %v13369_v58  ;;  %v13133_v30 = vmov -1e+30   ;;  %v12093_v38 = vpop.permute.xlu1 %12092 }
 0x214   : > { %v12090_v48 = vunpack.i.h.bf16 %v12088_v25  ;;  %v12089_v55 = vunpack.i.l.bf16 %v12088_v25  ;;  %11213 = vmatprep.subr.bf16.mxu1 %v11212_v13  ;;  %v12156_v40 = vpack.i.bf16 %v1952_v53, %v1951_v23  ;;  %v2417_v19 = vmul.f32 %v13767_v28, %v13340_v44 }
 0x215   : > { %11215 = vmatpush3.bf16.msra.mxu1 %v11212_v13  ;;  %v12121_v52 = vpack.i.bf16 %v1948_v43, %v1947_v51  ;;  %v2418_v54 = vmul.f32 %v13767_v28, %v13337_v42  ;;  %v2421_v59 = vmul.f32 %v13767_v28, %v13372_v60  ;;  %v2422_v41 = vmul.f32 %v13767_v28, %v13369_v58 }
 0x216   : > { %11217 = vmatprep.subr.bf16.mxu1 %v11216_v21  ;;  %v11220_v7 = vpack.c.bf16 %v12090_v48, %v12089_v55  ;;  %v1302_v44 = vmul.f32 %v13477_v3, %v13390_v6  ;;  %v1303_v42 = vmul.f32 %v13477_v3, %v13387_v4  ;;  %v1023_v8 = vmul.f32 %v13501_v15, %v13390_v6 }
 0x217   : > { %12137 = vrot.lane.b32.xlu1 %v12136_v32, %s13132_s30  ;;  %12117 = vrot.lane.b32.xlu0 %v12116_v31, %s13132_s30  ;;  %v12131_v57 = vpack.i.bf16 %v2418_v54, %v2417_v19  ;;  %v12141_v62 = vpack.i.bf16 %v2422_v41, %v2421_v59  ;;  %v1024_v60 = vmul.f32 %v13501_v15, %v13387_v4  ;;  %v13836_v11 = vpop.permute.xlu0 %12097  ;;  %v13838_v13 = vsel %vm435_vm12, 0.0, %v13133_v30  ;;  %v14089_v33 = vpop.permute.xlu1 %12102 }
 0x218   : > { %v12146_v2 = vpack.i.bf16 %v1303_v42, %v1302_v44  ;;  %v12161_v49 = vpack.i.bf16 %v13400_v10, %v13403_v12  ;;  %v12166_v50 = vpack.i.bf16 %v13406_v14, %v13409_v16  ;;  %v12171_v56 = vpack.i.bf16 %v13412_v18, %v13415_v20  ;;  %17572 = vst [vmem:[#allocation31_spill] sm:$0xff] %v13838_v13 }
 0x219   : > { %11219 = vmatpush3.bf16.msra.mxu1 %v11216_v21  ;;  %v12151_v58 = vpack.i.bf16 %v1024_v60, %v1023_v8  ;;  %v12176_v0 = vpack.i.bf16 %v13418_v22, %v13421_v24  ;;  %v12095_v37 = vunpack.i.h.bf16 %v12093_v38  ;;  %v12094_v36 = vunpack.i.l.bf16 %v12093_v38 }
 0x21a   : > { %11221 = vmatprep.subr.bf16.mxu1 %v11220_v7 }
 0x21b   : > { %12157 = vrot.lane.b32.xlu1 %v12156_v40, %s13132_s30  ;;  %12122 = vrot.lane.b32.xlu0 %v12121_v52, %s13132_s30  ;;  %v13846_v31 = vpop.permute.xlu0 %12107 }
 0x21c   : > { %17573 = vst [vmem:[#allocation32_spill] sm:$0xff] %v13846_v31 }
 0x21d   : > { %11223 = vmatpush3.bf16.msra.mxu1 %v11220_v7 }
 0x21f   : > { %12132 = vrot.lane.b32.xlu0 %v12131_v57, %s13132_s30 }
 0x223   : > { %12142 = vrot.lane.b32.xlu0 %v12141_v62, %s13132_s30 }
 0x227   : > { %12147 = vrot.lane.b32.xlu0 %v12146_v2, %s13132_s30 }
 0x22b   : > { %12152 = vrot.lane.b32.xlu0 %v12151_v58, %s13132_s30 }
 0x22f   : > { %12162 = vrot.lane.b32.xlu0 %v12161_v49, %s13131_s29 }
 0x233   : > { %12167 = vrot.lane.b32.xlu0 %v12166_v50, %s13131_s29 }
 0x237   : > { %12172 = vrot.lane.b32.xlu0 %v12171_v56, %s13131_s29 }
 0x23b   : > { %12177 = vrot.lane.b32.xlu0 %v12176_v0, %s13131_s29 }
 0x27e   : > { %v9992_v25 = vpop.f32.mrb[0].mxu1  ;;  %v10027_v32 = vpop.f32.mrb[20].mxu0 }
 0x27f   : > { %v13841_v48 = vadd.f32 %v9992_v25, %v13838_v13  ;;  %v13844_v55 = vadd.f32 %v10027_v32, %v13838_v13  ;;  %v851_v21 = vpop.f32.mrb[1].mxu1  ;;  %v1131_v23 = vpop.f32.mrb[21].mxu0 }
 0x280   : > { %v13849_v39 = vadd.f32 %v851_v21, %v13838_v13  ;;  %v13852_v53 = vadd.f32 %v1131_v23, %v13838_v13 }
 0x281   : > { %v1183_v51 = vsel %vm900_vm13, %v13844_v55, -inf  ;;  %v904_v43 = vsel %vm900_vm13, %v13841_v48, -inf }
 0x282   : > { %1184 = vmax.xlane.f32.xlu0 %v1183_v51  ;;  %v10030_v7 = vpop.f32.mrb[22].mxu0  ;;  %905 = vmax.xlane.f32.xlu1 %v904_v43  ;;  %v9995_v40 = vpop.f32.mrb[2].mxu1  ;;  %v1180_v41 = vsel %vm900_vm13, %v13852_v53, -inf  ;;  %v901_v62 = vsel %vm900_vm13, %v13849_v39, -inf }
 0x283   : > { %v861_v52 = vpop.f32.mrb[3].mxu1  ;;  %v1141_v19 = vpop.f32.mrb[23].mxu0  ;;  %v13859_v54 = vadd.f32 %v10030_v7, %v13838_v13  ;;  %v13871_v60 = vadd.f32 %v9995_v40, %v13838_v13 }
 0x284   : > { %v13862_v57 = vadd.f32 %v1141_v19, %v13838_v13  ;;  %v13874_v58 = vadd.f32 %v861_v52, %v13838_v13 }
 0x285   : > { %v13864_v59 = vpop.permute.xlu0 %12112  ;;  %v1189_v50 = vsel %vm900_vm13, %v13859_v54, -inf  ;;  %v910_v43 = vsel %vm900_vm13, %v13871_v60, -inf }
 0x286   : > { %17574 = vst [vmem:[#allocation33_spill] sm:$0xff] %v13864_v59  ;;  %v10033_v44 = vpop.f32.mrb[24].mxu0  ;;  %1181 = vmax.xlane.f32.xlu1 %v1180_v41  ;;  %v9998_v42 = vpop.f32.mrb[4].mxu1  ;;  %902 = vmax.xlane.f32.xlu0 %v901_v62  ;;  %v1186_v56 = vsel %vm900_vm13, %v13862_v57, -inf  ;;  %v907_v7 = vsel %vm900_vm13, %v13874_v58, -inf }
 0x287   : > { %v871_v2 = vpop.f32.mrb[5].mxu1  ;;  %v1151_v8 = vpop.f32.mrb[25].mxu0  ;;  %v13883_v21 = vadd.f32 %v10033_v44, %v13838_v13  ;;  %v13895_v62 = vadd.f32 %v9998_v42, %v13838_v13 }
 0x288   : > { %v13886_v23 = vadd.f32 %v1151_v8, %v13838_v13  ;;  %v13898_v44 = vadd.f32 %v871_v2, %v13838_v13 }
 0x289   : > { %v13876_v49 = vpop.permute.xlu0 %12117  ;;  %v916_v2 = vsel %vm900_vm13, %v13895_v62, -inf }
 0x28a   : > { %17575 = vst [vmem:[#allocation34_spill] sm:$0xff] %v13876_v49  ;;  %v10036_v0 = vpop.f32.mrb[26].mxu0  ;;  %1190 = vmax.xlane.f32.xlu1 %v1189_v50  ;;  %v10001_v30 = vpop.f32.mrb[6].mxu1  ;;  %1187 = vmax.xlane.f32.xlu0 %v1186_v56  ;;  %v1195_v50 = vsel %vm900_vm13, %v13883_v21, -inf  ;;  %v1192_v56 = vsel %vm900_vm13, %v13886_v23, -inf  ;;  %v913_v45 = vsel %vm900_vm13, %v13898_v44, -inf }
 0x28b   : > { %v881_v25 = vpop.f32.mrb[7].mxu1  ;;  %v1161_v32 = vpop.f32.mrb[27].mxu0 }
 0x28c   : > { %v13926_v35 = vadd.f32 %v881_v25, %v13838_v13  ;;  %v13940_v25 = vpack.c.bf16 %v12095_v37, %v12094_v36 }
 0x28d   : > { %v13888_v51 = vpop.permute.xlu0 %12122 }
 0x28e   : > { %17576 = vst [vmem:[#allocation35_spill] sm:$0xff] %v13888_v51  ;;  %v10039_v40 = vpop.f32.mrb[28].mxu0  ;;  %911 = vmax.xlane.f32.xlu1 %v910_v43  ;;  %v10004_v52 = vpop.f32.mrb[8].mxu1  ;;  %908 = vmax.xlane.f32.xlu0 %v907_v7  ;;  %v13907_v43 = vadd.f32 %v10036_v0, %v13838_v13  ;;  %v13910_v7 = vadd.f32 %v1161_v32, %v13838_v13  ;;  %v919_v38 = vsel %vm900_vm13, %v13926_v35, -inf  ;;  %17580 = vst [vmem:[#allocation39_spill] sm:$0xff] %v13940_v25 }
 0x28f   : > { %v891_v19 = vpop.f32.mrb[9].mxu1  ;;  %v1171_v41 = vpop.f32.mrb[29].mxu0 }
 0x290   : > { %v1201_v32 = vsel %vm900_vm13, %v13907_v43, -inf  ;;  %v13936_v15 = vadd.f32 %v1171_v41, %v13838_v13  ;;  %v13953_v37 = vadd.f32 %v891_v19, %v13838_v13 }
 0x291   : > { %v13900_v8 = vpop.permute.xlu0 %12132 }
 0x292   : > { %17577 = vst [vmem:[#allocation36_spill] sm:$0xff] %v13900_v8  ;;  %1196 = vmax.xlane.f32.xlu1 %v1195_v50  ;;  %1193 = vmax.xlane.f32.xlu0 %v1192_v56  ;;  %v13919_v50 = vadd.f32 %v10001_v30, %v13838_v13  ;;  %v1198_v56 = vsel %vm900_vm13, %v13910_v7, -inf }
 0x294   : > { %v922_v61 = vsel %vm900_vm13, %v13919_v50, -inf }
 0x295   : > { %v13912_v42 = vpop.permute.xlu0 %12142 }
 0x296   : > { %17578 = vst [vmem:[#allocation37_spill] sm:$0xff] %v13912_v42  ;;  %917 = vmax.xlane.f32.xlu1 %v916_v2  ;;  %914 = vmax.xlane.f32.xlu0 %v913_v45  ;;  %v13929_v2 = vadd.f32 %v10039_v40, %v13838_v13 }
 0x299   : > { %v12148_v0 = vpop.permute.xlu0 %12147 }
 0x29a   : > { %v12150_v34 = vunpack.i.h.bf16 %v12148_v0  ;;  %v12149_v27 = vunpack.i.l.bf16 %v12148_v0  ;;  %1202 = vmax.xlane.f32.xlu1 %v1201_v32  ;;  %1199 = vmax.xlane.f32.xlu0 %v1198_v56 }
 0x29c   : > { %v11224_v45 = vpack.c.bf16 %v12150_v34, %v12149_v27  ;;  %v13944_v27 = vadd.f32 %v10004_v52, %v13838_v13  ;;  %v1207_v34 = vsel %vm900_vm13, %v13929_v2, -inf }
 0x29d   : > { %v13931_v30 = vpop.permute.xlu0 %12152 }
 0x29e   : > { %17579 = vst [vmem:[#allocation38_spill] sm:$0xff] %v13931_v30  ;;  %11225 = vmatprep.subr.bf16.mxu1 %v11224_v45  ;;  %923 = vmax.xlane.f32.xlu1 %v922_v61  ;;  %v1204_v61 = vsel %vm900_vm13, %v13936_v15, -inf  ;;  %v928_v52 = vsel %vm900_vm13, %v13944_v27, -inf }
 0x29f   : > { %11227 = vmatpush3.bf16.msra.mxu1 %v11224_v45  ;;  %920 = vmax.xlane.f32.xlu0 %v919_v38 }
 0x2a0   : > { %11229 = vmatprep.subr.bf16.mxu1 %v13940_v25 }
 0x2a1   : > { %v12163_v40 = vpop.permute.xlu0 %12162 }
 0x2a2   : > { %1208 = vmax.xlane.f32.xlu1 %v1207_v34  ;;  %v12165_v41 = vunpack.i.h.bf16 %v12163_v40  ;;  %v12164_v0 = vunpack.i.l.bf16 %v12163_v40 }
 0x2a3   : > { %1205 = vmax.xlane.f32.xlu0 %v1204_v61  ;;  %v925_v61 = vsel %vm900_vm13, %v13953_v37, -inf }
 0x2a4   : > { %v13950_v36 = vpack.c.bf16 %v12165_v41, %v12164_v0 }
 0x2a5   : > { %v12168_v32 = vpop.permute.xlu0 %12167 }
 0x2a6   : > { %17581 = vst [vmem:[#allocation40_spill] sm:$0xff] %v13950_v36  ;;  %929 = vmax.xlane.f32.xlu1 %v928_v52  ;;  %11380 = vmatprep.subr.msk.bf16.mxu0 %vm13431_vm5, %v13950_v36  ;;  %v12170_v56 = vunpack.i.h.bf16 %v12168_v32  ;;  %v12169_v45 = vunpack.i.l.bf16 %v12168_v32 }
 0x2a7   : > { %v10132_v38 = vpop.f32.mrb[30].mxu0  ;;  %11383 = vmatpush3.bf16.xpose.msk.msra.mxu0 %vm13431_vm5, %v13950_v36 }
 0x2a8   : > { %v1780_v34 = vpop.f32.mrb[31].mxu0  ;;  %v13963_v40 = vpack.c.bf16 %v12170_v56, %v12169_v45  ;;  %v13966_v19 = vadd.f32 %v10132_v38, %v13838_v13 }
 0x2a9   : > { %v12173_v41 = vpop.permute.xlu0 %12172  ;;  %v13976_v56 = vadd.f32 %v1780_v34, %v13838_v13 }
 0x2aa   : > { %17582 = vst [vmem:[#allocation41_spill] sm:$0xff] %v13963_v40  ;;  %926 = vmax.xlane.f32.xlu1 %v925_v61  ;;  %11386 = vmatprep.subr.msk.bf16.mxu0 %vm13431_vm5, %v13963_v40  ;;  %v12175_v0 = vunpack.i.h.bf16 %v12173_v41  ;;  %v12174_v52 = vunpack.i.l.bf16 %v12173_v41  ;;  %v1832_v45 = vsel %vm900_vm13, %v13966_v19, -inf }
 0x2ab   : > { %v10135_v32 = vpop.f32.mrb[32].mxu0 }
 0x2ac   : > { %v1790_v12 = vpop.f32.mrb[33].mxu0  ;;  %v13973_v3 = vpack.c.bf16 %v12175_v0, %v12174_v52  ;;  %v13987_v34 = vadd.f32 %v10135_v32, %v13838_v13 }
 0x2ad   : > { %v12178_v38 = vpop.permute.xlu0 %12177 }
 0x2ae   : > { %17583 = vst [vmem:[#allocation42_spill] sm:$0xff] %v13973_v3  ;;  %1833 = vmax.xlane.f32.xlu1 %v1832_v45  ;;  %v12180_v41 = vunpack.i.h.bf16 %v12178_v38  ;;  %v12179_v0 = vunpack.i.l.bf16 %v12178_v38  ;;  %v1829_v45 = vsel %vm900_vm13, %v13976_v56, -inf  ;;  %v13999_v38 = vadd.f32 %v1790_v12, %v13838_v13 }
 0x2af   : > { %v10138_v46 = vpop.f32.mrb[34].mxu0  ;;  %11389 = vmatpush3.bf16.xpose.msk.msra.mxu0 %vm13431_vm5, %v13963_v40  ;;  %v1838_v32 = vsel %vm900_vm13, %v13987_v34, -inf }
 0x2b0   : > { %v1800_v61 = vpop.f32.mrb[35].mxu0  ;;  %11392 = vmatprep.subr.msk.bf16.mxu0 %vm13431_vm5, %v13973_v3  ;;  %v13996_v22 = vpack.c.bf16 %v12180_v41, %v12179_v0  ;;  %v1835_v12 = vsel %vm900_vm13, %v13999_v38, -inf }
 0x2b1   : > { %v13990_v52 = vadd.f32 %v1800_v61, %v13838_v13 }
 0x2b2   : > { %1830 = vmax.xlane.f32.xlu1 %v1829_v45  ;;  %17584 = vst [vmem:[#allocation43_spill] sm:$0xff] %v13996_v22 }
 0x2b3   : > { %v10141_v5 = vpop.f32.mrb[36].mxu0  ;;  %v1841_v9 = vsel %vm900_vm13, %v13990_v52, -inf }
 0x2b4   : > { %v1810_v17 = vpop.f32.mrb[37].mxu0  ;;  %1842 = vmax.xlane.f32.xlu0 %v1841_v9  ;;  %v14010_v9 = vadd.f32 %v10138_v46, %v13838_v13  ;;  %v14015_v41 = vadd.f32 %v10141_v5, %v13838_v13 }
 0x2b6   : > { %1839 = vmax.xlane.f32.xlu1 %v1838_v32  ;;  %v1844_v0 = vsel %vm900_vm13, %v14010_v9, -inf  ;;  %v14023_v32 = vadd.f32 %v1810_v17, %v13838_v13  ;;  %v1850_v46 = vsel %vm900_vm13, %v14015_v41, -inf }
 0x2b7   : > { %v10144_v61 = vpop.f32.mrb[38].mxu0  ;;  %11395 = vmatpush3.bf16.xpose.msk.msra.mxu0 %vm13431_vm5, %v13973_v3 }
 0x2b8   : > { %v1820_v45 = vpop.f32.mrb[39].mxu0  ;;  %11398 = vmatprep.subr.msk.bf16.mxu0 %vm13431_vm5, %v13996_v22  ;;  %v1847_v5 = vsel %vm900_vm13, %v14023_v32, -inf }
 0x2ba   : > { %1836 = vmax.xlane.f32.xlu1 %v1835_v12  ;;  %v14028_v12 = vadd.f32 %v10144_v61, %v13838_v13 }
 0x2be   : > { %1845 = vmax.xlane.f32.xlu1 %v1844_v0  ;;  %v14033_v0 = vadd.f32 %v1820_v45, %v13838_v13 }
 0x2bf   : > { %11401 = vmatpush3.bf16.xpose.msk.msra.mxu0 %vm13431_vm5, %v13996_v22  ;;  %v1856_v22 = vsel %vm900_vm13, %v14028_v12, -inf }
 0x2c0   : > { %v1853_v17 = vsel %vm900_vm13, %v14033_v0, -inf }
 0x2c2   : > { %1851 = vmax.xlane.f32.xlu1 %v1850_v46 }
 0x2c6   : > { %1848 = vmax.xlane.f32.xlu1 %v1847_v5 }
 0x2ca   : > { %1857 = vmax.xlane.f32.xlu1 %v1856_v22 }
 0x2ce   : > { %1854 = vmax.xlane.f32.xlu1 %v1853_v17 }
 0x2cf   : > { %v10202_v3 = vpop.f32.mrb[40].mxu0 }
 0x2d0   : > { %v14040_v46 = vadd.f32 %v10202_v3, %v13838_v13  ;;  %v2254_v61 = vpop.f32.mrb[41].mxu0 }
 0x2d1   : > { %v14043_v24 = vadd.f32 %v2254_v61, %v13838_v13 }
 0x2d2   : > { %v2306_v45 = vsel %vm900_vm13, %v14040_v46, -inf }
 0x2d3   : > { %v10205_v5 = vpop.f32.mrb[42].mxu0  ;;  %2307 = vmax.xlane.f32.xlu1 %v2306_v45  ;;  %v2303_v17 = vsel %vm900_vm13, %v14043_v24, -inf }
 0x2d4   : > { %v2264_v18 = vpop.f32.mrb[43].mxu0  ;;  %v14048_v22 = vadd.f32 %v10205_v5, %v13838_v13 }
 0x2d5   : > { %v14053_v20 = vadd.f32 %v2264_v18, %v13838_v13 }
 0x2d6   : > { %v2312_v61 = vsel %vm900_vm13, %v14048_v22, -inf }
 0x2d7   : > { %v10208_v40 = vpop.f32.mrb[44].mxu0  ;;  %2304 = vmax.xlane.f32.xlu1 %v2303_v17  ;;  %v2309_v16 = vsel %vm900_vm13, %v14053_v20, -inf }
 0x2d8   : > { %v2274_v3 = vpop.f32.mrb[45].mxu0  ;;  %v14061_v5 = vadd.f32 %v10208_v40, %v13838_v13 }
 0x2d9   : > { %v14068_v10 = vadd.f32 %v2274_v3, %v13838_v13 }
 0x2db   : > { %v10211_v14 = vpop.f32.mrb[46].mxu0  ;;  %2313 = vmax.xlane.f32.xlu1 %v2312_v61  ;;  %v2315_v61 = vsel %vm900_vm13, %v14068_v10, -inf }
 0x2dc   : > { %v2284_v47 = vpop.f32.mrb[47].mxu0  ;;  %v14073_v40 = vadd.f32 %v10211_v14, %v13838_v13 }
 0x2dd   : > { %v14058_v45 = vadd.f32 %v2284_v47, %v13838_v13  ;;  %v2318_v47 = vsel %vm900_vm13, %v14061_v5, -inf }
 0x2df   : > { %v10214_v17 = vpop.f32.mrb[48].mxu0  ;;  %2310 = vmax.xlane.f32.xlu1 %v2309_v16  ;;  %v2321_v18 = vsel %vm900_vm13, %v14058_v45, -inf }
 0x2e0   : > { %v2294_v36 = vpop.f32.mrb[49].mxu0  ;;  %2322 = vmax.xlane.f32.xlu0 %v2321_v18  ;;  %v14078_v16 = vadd.f32 %v10214_v17, %v13838_v13  ;;  %v2324_v18 = vsel %vm900_vm13, %v14073_v40, -inf }
 0x2e1   : > { %v14083_v3 = vadd.f32 %v2294_v36, %v13838_v13 }
 0x2e3   : > { %2319 = vmax.xlane.f32.xlu1 %v2318_v47  ;;  %v2330_v47 = vsel %vm900_vm13, %v14078_v16, -inf  ;;  %v2327_v14 = vsel %vm900_vm13, %v14083_v3, -inf }
 0x2e7   : > { %2316 = vmax.xlane.f32.xlu1 %v2315_v61  ;;  %v14091_v61 = vpop.permute.xlu1 %12127 }
 0x2e8   : > { %17585 = vst [vmem:[#allocation44_spill] sm:$0xff] %v14091_v61 }
 0x2eb   : > { %2325 = vmax.xlane.f32.xlu1 %v2324_v18  ;;  %v14093_v17 = vpop.permute.xlu1 %12137 }
 0x2ec   : > { %17586 = vst [vmem:[#allocation45_spill] sm:$0xff] %v14093_v17 }
 0x2ef   : > { %2331 = vmax.xlane.f32.xlu1 %v2330_v47  ;;  %v14095_v42 = vpop.permute.xlu1 %12157 }
 0x2f0   : > { %17587 = vst [vmem:[#allocation46_spill] sm:$0xff] %v14095_v42 }
 0x2f3   : > { %2328 = vmax.xlane.f32.xlu1 %v2327_v14 }
 0x30f   : > { %v1185_v18 = vpop.xlane.xlu0 %1184  ;;  %v906_v8 = vpop.xlane.xlu1 %905 }
 0x310   : > { %v1211_v36 = vsub.f32 %v13844_v55, %v1185_v18  ;;  %v932_v13 = vsub.f32 %v13841_v48, %v906_v8 }
 0x312   : > { %v1222_v51 = vmul.f32 1.442695, %v1211_v36  ;;  %v943_v47 = vmul.f32 1.442695, %v932_v13 }
 0x313   : > { %v1182_v49 = vpop.xlane.xlu1 %1181  ;;  %v903_v59 = vpop.xlane.xlu0 %902 }
 0x314   : > { %12546 = vpow2.f32 %v1222_v51  ;;  %v1210_v14 = vsub.f32 %v13852_v53, %v1182_v49  ;;  %v931_v61 = vsub.f32 %v13849_v39, %v903_v59 }
 0x315   : > { %12548 = vpow2.f32 %v943_v47 }
 0x316   : > { %v1220_v30 = vmul.f32 1.442695, %v1210_v14  ;;  %v941_v25 = vmul.f32 1.442695, %v931_v61 }
 0x317   : > { %v1191_v17 = vpop.xlane.xlu1 %1190  ;;  %v1188_v31 = vpop.xlane.xlu0 %1187 }
 0x318   : > { %v1213_v42 = vsub.f32 %v13859_v54, %v1191_v17  ;;  %12550 = vpow2.f32 %v1220_v30  ;;  %v1212_v48 = vsub.f32 %v13862_v57, %v1188_v31 }
 0x31a   : > { %v1226_v55 = vmul.f32 1.442695, %v1213_v42  ;;  %v1224_v53 = vmul.f32 1.442695, %v1212_v48 }
 0x31b   : > { %v912_v8 = vpop.xlane.xlu1 %911  ;;  %v909_v13 = vpop.xlane.xlu0 %908 }
 0x31c   : > { %12552 = vpow2.f32 %v1226_v55  ;;  %v934_v51 = vsub.f32 %v13871_v60, %v912_v8  ;;  %v933_v39 = vsub.f32 %v13874_v58, %v909_v13 }
 0x31d   : > { %12554 = vpow2.f32 %v941_v25 }
 0x31e   : > { %v14104_v18 = vpop.eup %12546  ;;  %v947_v49 = vmul.f32 1.442695, %v934_v51  ;;  %v945_v60 = vmul.f32 1.442695, %v933_v39 }
 0x31f   : > { %v1197_v59 = vpop.xlane.xlu1 %1196  ;;  %v1194_v36 = vpop.xlane.xlu0 %1193  ;;  %v1243_v54 = vsel %vm900_vm13, %v14104_v18, 0.0 }
 0x320   : > { %v14109_v42 = vpop.eup %12548  ;;  %12556 = vpow2.f32 %v947_v49  ;;  %v1215_v31 = vsub.f32 %v13883_v21, %v1197_v59  ;;  %1244 = vadd.xlane.f32.xlu1 %v1243_v54  ;;  %v1214_v57 = vsub.f32 %v13886_v23, %v1194_v36 }
 0x321   : > { %12558 = vpow2.f32 %v1224_v53  ;;  %v964_v58 = vsel %vm900_vm13, %v14109_v42, 0.0 }
 0x322   : > { %v1230_v30 = vmul.f32 1.442695, %v1215_v31  ;;  %v14115_v17 = vpop.eup %12550  ;;  %v1228_v21 = vmul.f32 1.442695, %v1214_v57 }
 0x323   : > { %v918_v25 = vpop.xlane.xlu1 %917  ;;  %v915_v61 = vpop.xlane.xlu0 %914  ;;  %v1240_v51 = vsel %vm900_vm13, %v14115_v17, 0.0 }
 0x324   : > { %12560 = vpow2.f32 %v1230_v30  ;;  %v936_v47 = vsub.f32 %v13895_v62, %v918_v25  ;;  %v935_v14 = vsub.f32 %v13898_v44, %v915_v61  ;;  %965 = vadd.xlane.f32.xlu1 %v964_v58 }
 0x325   : > { %12562 = vpow2.f32 %v945_v60 }
 0x326   : > { %v14119_v55 = vpop.eup %12552  ;;  %v951_v23 = vmul.f32 1.442695, %v936_v47  ;;  %v949_v48 = vmul.f32 1.442695, %v935_v14 }
 0x327   : > { %v1203_v8 = vpop.xlane.xlu1 %1202  ;;  %v1200_v13 = vpop.xlane.xlu0 %1199  ;;  %v1249_v53 = vsel %vm900_vm13, %v14119_v55, 0.0 }
 0x328   : > { %v14125_v49 = vpop.eup %12554  ;;  %12564 = vpow2.f32 %v951_v23  ;;  %v1217_v62 = vsub.f32 %v13907_v43, %v1203_v8  ;;  %v1216_v44 = vsub.f32 %v13910_v7, %v1200_v13  ;;  %1241 = vadd.xlane.f32.xlu1 %v1240_v51  ;;  %1250 = vadd.xlane.f32.xlu0 %v1249_v53 }
 0x329   : > { %12566 = vpow2.f32 %v1228_v21  ;;  %v961_v57 = vsel %vm900_vm13, %v14125_v49, 0.0 }
 0x32a   : > { %v14129_v39 = vpop.eup %12556  ;;  %12568 = vpow2.f32 %v949_v48  ;;  %v1234_v59 = vmul.f32 1.442695, %v1217_v62  ;;  %v1232_v36 = vmul.f32 1.442695, %v1216_v44 }
 0x32b   : > { %v924_v54 = vpop.xlane.xlu1 %923  ;;  %v970_v31 = vsel %vm900_vm13, %v14129_v39, 0.0  ;;  %v14135_v60 = vpop.eup %12558 }
 0x32c   : > { %v938_v43 = vsub.f32 %v13919_v50, %v924_v54  ;;  %v921_v7 = vpop.xlane.xlu0 %920  ;;  %971 = vadd.xlane.f32.xlu0 %v970_v31  ;;  %962 = vadd.xlane.f32.xlu1 %v961_v57  ;;  %12570 = vpow2.f32 %v1234_v59  ;;  %v1246_v21 = vsel %vm900_vm13, %v14135_v60, 0.0 }
 0x32d   : > { %v937_v30 = vsub.f32 %v13926_v35, %v921_v7  ;;  %12572 = vpow2.f32 %v1232_v36 }
 0x32e   : > { %v14139_v25 = vpop.eup %12560  ;;  %v955_v61 = vmul.f32 1.442695, %v938_v43 }
 0x32f   : > { %v953_v58 = vmul.f32 1.442695, %v937_v30  ;;  %v1209_v47 = vpop.xlane.xlu1 %1208  ;;  %v1255_v14 = vsel %vm900_vm13, %v14139_v25, 0.0  ;;  %v14145_v23 = vpop.eup %12562 }
 0x330   : > { %v1219_v50 = vsub.f32 %v13929_v2, %v1209_v47  ;;  %1256 = vadd.xlane.f32.xlu0 %v1255_v14  ;;  %1247 = vadd.xlane.f32.xlu1 %v1246_v21  ;;  %12574 = vpow2.f32 %v955_v61  ;;  %v1206_v13 = vpop.xlane.xlu0 %1205  ;;  %v967_v62 = vsel %vm900_vm13, %v14145_v23, 0.0 }
 0x331   : > { %12576 = vpow2.f32 %v953_v58  ;;  %v1218_v59 = vsub.f32 %v13936_v15, %v1206_v13 }
 0x332   : > { %v14148_v35 = vpop.eup %12564  ;;  %v1238_v48 = vmul.f32 1.442695, %v1219_v50 }
 0x333   : > { %v14150_v8 = vpop.eup %12566  ;;  %v930_v51 = vpop.xlane.xlu1 %929  ;;  %v976_v53 = vsel %vm900_vm13, %v14148_v35, 0.0 }
 0x334   : > { %v14156_v44 = vpop.eup %12568  ;;  %v940_v2 = vsub.f32 %v13944_v27, %v930_v51  ;;  %977 = vadd.xlane.f32.xlu0 %v976_v53  ;;  %968 = vadd.xlane.f32.xlu1 %v967_v62  ;;  %12578 = vpow2.f32 %v1238_v48  ;;  %v1252_v57 = vsel %vm900_vm13, %v14150_v8, 0.0  ;;  %v1236_v27 = vmul.f32 1.442695, %v1218_v59 }
 0x335   : > { %v973_v43 = vsel %vm900_vm13, %v14156_v44, 0.0 }
 0x336   : > { %v959_v36 = vmul.f32 1.442695, %v940_v2  ;;  %v14160_v54 = vpop.eup %12570 }
 0x337   : > { %v927_v31 = vpop.xlane.xlu1 %926  ;;  %v14166_v7 = vpop.eup %12572  ;;  %v1261_v47 = vsel %vm900_vm13, %v14160_v54, 0.0 }
 0x338   : > { %v939_v30 = vsub.f32 %v13953_v37, %v927_v31  ;;  %1253 = vadd.xlane.f32.xlu0 %v1252_v57  ;;  %974 = vadd.xlane.f32.xlu1 %v973_v43  ;;  %12580 = vpow2.f32 %v959_v36  ;;  %v1258_v14 = vsel %vm900_vm13, %v14166_v7, 0.0 }
 0x33a   : > { %v957_v61 = vmul.f32 1.442695, %v939_v30  ;;  %v14169_v15 = vpop.eup %12574 }
 0x33b   : > { %v1834_v58 = vpop.xlane.xlu1 %1833  ;;  %v14175_v21 = vpop.eup %12576  ;;  %v982_v13 = vsel %vm900_vm13, %v14169_v15, 0.0 }
 0x33c   : > { %12582 = vpow2.f32 %v957_v61  ;;  %v1860_v50 = vsub.f32 %v13966_v19, %v1834_v58  ;;  %1262 = vadd.xlane.f32.xlu0 %v1261_v47  ;;  %1259 = vadd.xlane.f32.xlu1 %v1258_v14  ;;  %v979_v51 = vsel %vm900_vm13, %v14175_v21, 0.0 }
 0x33d   : > { %12584 = vpow2.f32 %v1236_v27 }
 0x33e   : > { %v1871_v37 = vmul.f32 1.442695, %v1860_v50  ;;  %v14182_v53 = vpop.eup %12578 }
 0x33f   : > { %v1831_v48 = vpop.xlane.xlu1 %1830  ;;  %v1267_v59 = vsel %vm900_vm13, %v14182_v53, 0.0 }
 0x340   : > { %12586 = vpow2.f32 %v1871_v37  ;;  %v1859_v62 = vsub.f32 %v13976_v56, %v1831_v48  ;;  %983 = vadd.xlane.f32.xlu0 %v982_v13  ;;  %980 = vadd.xlane.f32.xlu1 %v979_v51 }
 0x341   : > { %v1843_v30 = vpop.xlane.xlu0 %1842 }
 0x342   : > { %v1869_v2 = vmul.f32 1.442695, %v1859_v62  ;;  %v14187_v36 = vpop.eup %12580  ;;  %v1863_v14 = vsub.f32 %v13990_v52, %v1843_v30 }
 0x343   : > { %v1840_v19 = vpop.xlane.xlu1 %1839  ;;  %v988_v56 = vsel %vm900_vm13, %v14187_v36, 0.0 }
 0x344   : > { %12588 = vpow2.f32 %v1869_v2  ;;  %v1862_v31 = vsub.f32 %v13987_v34, %v1840_v19  ;;  %1268 = vadd.xlane.f32.xlu0 %v1267_v59  ;;  %v1877_v62 = vmul.f32 1.442695, %v1863_v14 }
 0x346   : > { %v14190_v57 = vpop.eup %12582  ;;  %v1875_v43 = vmul.f32 1.442695, %v1862_v31 }
 0x347   : > { %v1837_v27 = vpop.xlane.xlu1 %1836  ;;  %v985_v61 = vsel %vm900_vm13, %v14190_v57, 0.0  ;;  %v14196_v58 = vpop.eup %12584 }
 0x348   : > { %12590 = vpow2.f32 %v1875_v43  ;;  %v1861_v47 = vsub.f32 %v13999_v38, %v1837_v27  ;;  %989 = vadd.xlane.f32.xlu0 %v988_v56  ;;  %986 = vadd.xlane.f32.xlu1 %v985_v61  ;;  %v1264_v13 = vsel %vm900_vm13, %v14196_v58, 0.0 }
 0x34a   : > { %v14199_v34 = vpop.eup %12586  ;;  %v1873_v50 = vmul.f32 1.442695, %v1861_v47 }
 0x34b   : > { %v1846_v37 = vpop.xlane.xlu1 %1845  ;;  %v1892_v48 = vsel %vm900_vm13, %v14199_v34, 0.0 }
 0x34c   : > { %12592 = vpow2.f32 %v1873_v50  ;;  %v1864_v51 = vsub.f32 %v14010_v9, %v1846_v37  ;;  %1893 = vadd.xlane.f32.xlu1 %v1892_v48  ;;  %1265 = vadd.xlane.f32.xlu0 %v1264_v13  ;;  %v2423_v13 = vmul.f32 %v13767_v28, %v13381_v1 }
 0x34e   : > { %v14207_v38 = vpop.eup %12588  ;;  %v1879_v2 = vmul.f32 1.442695, %v1864_v51  ;;  %v2424_v51 = vmul.f32 %v13767_v28, %v13378_v63 }
 0x34f   : > { %v1852_v19 = vpop.xlane.xlu1 %1851  ;;  %v1889_v52 = vsel %vm900_vm13, %v14207_v38, 0.0 }
 0x350   : > { %12594 = vpow2.f32 %v1879_v2  ;;  %v1866_v59 = vsub.f32 %v14015_v41, %v1852_v19  ;;  %1890 = vadd.xlane.f32.xlu1 %v1889_v52  ;;  %v12181_v19 = vpack.i.bf16 %v2424_v51, %v2423_v13 }
 0x351   : > { %12596 = vpow2.f32 %v1877_v62 }
 0x352   : > { %v14212_v31 = vpop.eup %12590  ;;  %v1883_v43 = vmul.f32 1.442695, %v1866_v59 }
 0x353   : > { %v1849_v30 = vpop.xlane.xlu1 %1848  ;;  %v1898_v9 = vsel %vm900_vm13, %v14212_v31, 0.0 }
 0x354   : > { %1899 = vadd.xlane.f32.xlu1 %v1898_v9  ;;  %12598 = vpow2.f32 %v1883_v43  ;;  %v1865_v9 = vsub.f32 %v14023_v32, %v1849_v30 }
 0x356   : > { %v14216_v27 = vpop.eup %12592 }
 0x357   : > { %v1858_v56 = vpop.xlane.xlu1 %1857  ;;  %v1895_v61 = vsel %vm900_vm13, %v14216_v27, 0.0 }
 0x358   : > { %v1868_v47 = vsub.f32 %v14028_v12, %v1858_v56  ;;  %1896 = vadd.xlane.f32.xlu1 %v1895_v61  ;;  %v1881_v61 = vmul.f32 1.442695, %v1865_v9 }
 0x35a   : > { %v14221_v41 = vpop.eup %12594  ;;  %v1887_v14 = vmul.f32 1.442695, %v1868_v47 }
 0x35b   : > { %v1855_v50 = vpop.xlane.xlu1 %1854  ;;  %v1904_v37 = vsel %vm900_vm13, %v14221_v41, 0.0  ;;  %v14225_v48 = vpop.eup %12596 }
 0x35c   : > { %12600 = vpow2.f32 %v1887_v14  ;;  %1905 = vadd.xlane.f32.xlu1 %v1904_v37  ;;  %v1901_v12 = vsel %vm900_vm13, %v14225_v48, 0.0 }
 0x35e   : > { %v14233_v62 = vpop.eup %12598 }
 0x35f   : > { %v1910_v43 = vsel %vm900_vm13, %v14233_v62, 0.0 }
 0x360   : > { %v2308_v2 = vpop.xlane.xlu1 %2307  ;;  %1902 = vadd.xlane.f32.xlu1 %v1901_v12 }
 0x361   : > { %v2334_v52 = vsub.f32 %v14040_v46, %v2308_v2  ;;  %v1867_v46 = vsub.f32 %v14033_v0, %v1855_v50  ;;  %v12191_v0 = vpack.i.bf16 %v13424_v26, %v13427_v29 }
 0x362   : > { %12182 = vrot.lane.b32.xlu0 %v12181_v19, %s13132_s30 }
 0x363   : > { %v2345_v59 = vmul.f32 1.442695, %v2334_v52  ;;  %v1885_v37 = vmul.f32 1.442695, %v1867_v46 }
 0x364   : > { %1911 = vadd.xlane.f32.xlu1 %v1910_v43  ;;  %v2305_v47 = vpop.xlane.xlu1 %2304 }
 0x365   : > { %12602 = vpow2.f32 %v2345_v59  ;;  %v2333_v13 = vsub.f32 %v14043_v24, %v2305_v47 }
 0x366   : > { %v14239_v1 = vpop.eup %12600  ;;  %12604 = vpow2.f32 %v1881_v61 }
 0x367   : > { %v1916_v63 = vsel %vm900_vm13, %v14239_v1, 0.0  ;;  %12606 = vpow2.f32 %v1885_v37  ;;  %v2343_v51 = vmul.f32 1.442695, %v2333_v13  ;;  %v2425_v13 = vmul.f32 %v13767_v28, %v13390_v6 }
 0x368   : > { %1917 = vadd.xlane.f32.xlu1 %v1916_v63  ;;  %v2314_v12 = vpop.xlane.xlu1 %2313 }
 0x369   : > { %12608 = vpow2.f32 %v2343_v51  ;;  %v2336_v9 = vsub.f32 %v14048_v22, %v2314_v12  ;;  %v2426_v51 = vmul.f32 %v13767_v28, %v13387_v4 }
 0x36b   : > { %v2349_v61 = vmul.f32 1.442695, %v2336_v9 }
 0x36c   : > { %v2311_v32 = vpop.xlane.xlu1 %2310 }
 0x36d   : > { %12610 = vpow2.f32 %v2349_v61 }
 0x36f   : > { %v14244_v56 = vpop.eup %12602 }
 0x370   : > { %v2366_v14 = vsel %vm900_vm13, %v14244_v56, 0.0  ;;  %v14250_v2 = vpop.eup %12604  ;;  %v2320_v19 = vpop.xlane.xlu1 %2319 }
 0x371   : > { %2367 = vadd.xlane.f32.xlu1 %v2366_v14  ;;  %v1907_v30 = vsel %vm900_vm13, %v14250_v2, 0.0  ;;  %v14256_v50 = vpop.eup %12606 }
 0x372   : > { %v1913_v24 = vsel %vm900_vm13, %v14256_v50, 0.0 }
 0x373   : > { %v14261_v52 = vpop.eup %12608 }
 0x374   : > { %v2363_v59 = vsel %vm900_vm13, %v14261_v52, 0.0  ;;  %v2317_v43 = vpop.xlane.xlu1 %2316 }
 0x377   : > { %v14273_v22 = vpop.eup %12610 }
 0x378   : > { %v2326_v63 = vpop.xlane.xlu1 %2325 }
 0x379   : > { %v2340_v46 = vsub.f32 %v14073_v40, %v2326_v63  ;;  %v2372_v40 = vsel %vm900_vm13, %v14273_v22, 0.0  ;;  %v2338_v63 = vsub.f32 %v14061_v5, %v2320_v19 }
 0x37b   : > { %v2357_v14 = vmul.f32 1.442695, %v2340_v46  ;;  %v2353_v46 = vmul.f32 1.442695, %v2338_v63  ;;  %v12099_v63 = vunpack.i.l.bf16 %v13836_v11 }
 0x37c   : > { %v2332_v47 = vpop.xlane.xlu1 %2331 }
 0x37d   : > { %v2342_v37 = vsub.f32 %v14078_v16, %v2332_v47  ;;  %12612 = vpow2.f32 %v2357_v14  ;;  %v2335_v16 = vsub.f32 %v14053_v20, %v2311_v32  ;;  %v2337_v47 = vsub.f32 %v14068_v10, %v2317_v43  ;;  %v2323_v20 = vpop.xlane.xlu0 %2322 }
 0x37e   : > { %v2339_v14 = vsub.f32 %v14058_v45, %v2323_v20 }
 0x380   : > { %v2329_v6 = vpop.xlane.xlu1 %2328  ;;  %v2355_v5 = vmul.f32 1.442695, %v2339_v14 }
 0x381   : > { %1908 = vadd.xlane.f32.xlu0 %v1907_v30  ;;  %v2361_v30 = vmul.f32 1.442695, %v2342_v37  ;;  %v2351_v37 = vmul.f32 1.442695, %v2337_v47  ;;  %v2341_v19 = vsub.f32 %v14083_v3, %v2329_v6  ;;  %v12100_v6 = vunpack.i.h.bf16 %v13836_v11 }
 0x382   : > { %12192 = vrot.lane.b32.xlu1 %v12191_v0, %s13131_s29  ;;  %v12186_v0 = vpack.i.bf16 %v2426_v51, %v2425_v13  ;;  %v12104_v11 = vunpack.i.l.bf16 %v14089_v33 }
 0x383   : > { %12614 = vpow2.f32 %v2361_v30  ;;  %v2359_v43 = vmul.f32 1.442695, %v2341_v19 }
 0x385   : > { %1914 = vadd.xlane.f32.xlu0 %v1913_v24 }
 0x387   : > { %v14277_v12 = vpop.eup %12612 }
 0x388   : > { %v2384_v4 = vsel %vm900_vm13, %v14277_v12, 0.0 }
 0x389   : > { %2364 = vadd.xlane.f32.xlu0 %v2363_v59  ;;  %v2347_v59 = vmul.f32 1.442695, %v2335_v16 }
 0x38b   : > { %12616 = vpow2.f32 %v2347_v59 }
 0x38c   : > { %12618 = vpow2.f32 %v2353_v46 }
 0x38d   : > { %v14282_v24 = vpop.eup %12614 }
 0x38e   : > { %v2390_v61 = vsel %vm900_vm13, %v14282_v24, 0.0 }
 0x395   : > { %v14296_v10 = vpop.eup %12616 }
 0x396   : > { %v2369_v16 = vsel %vm900_vm13, %v14296_v10, 0.0 }
 0x39f   : > { %12187 = vrot.lane.b32.xlu0 %v12186_v0, %s13132_s30 }
 0x3a6   : > { %2373 = vadd.xlane.f32.xlu1 %v2372_v40 }
 0x3aa   : > { %2385 = vadd.xlane.f32.xlu1 %v2384_v4  ;;  %v14300_v4 = vpop.eup %12618 }
 0x3ab   : > { %v2378_v46 = vsel %vm900_vm13, %v14300_v4, 0.0 }
 0x3ad   : > { %v1245_v9 = vpop.xlane.xlu1 %1244 }
 0x3ae   : > { %2391 = vadd.xlane.f32.xlu1 %v2390_v61  ;;  %12620 = vrcp.f32 %v1245_v9 }
 0x3b1   : > { %v14288_v32 = vpop.xlane.xlu1 %965 }
 0x3b5   : > { %v1242_v13 = vpop.xlane.xlu1 %1241  ;;  %v1251_v51 = vpop.xlane.xlu0 %1250 }
 0x3b6   : > { %12622 = vrcp.f32 %v1242_v13  ;;  %v11232_v13 = vpack.c.bf16 %v12100_v6, %v12099_v63 }
 0x3b7   : > { %12624 = vpow2.f32 %v2351_v37  ;;  %v12105_v37 = vunpack.i.h.bf16 %v14089_v33  ;;  %v17589_v33 = vld [vmem:[#allocation32_spill] sm:$0xff] }
 0x3b8   : > { %12626 = vpow2.f32 %v2355_v5  ;;  %v12621_v59 = vpop.eup %12620 }
 0x3b9   : > { %v14292_v30 = vpop.xlane.xlu1 %962  ;;  %v14294_v0 = vpop.xlane.xlu0 %971  ;;  %12628 = vrcp.f32 %v1251_v51  ;;  %v1281_v14 = vmul.f32 %v12621_v59, %v14104_v18  ;;  %v17588_v51 = vld [vmem:[#allocation39_spill] sm:$0xff]  ;;  %v12109_v59 = vunpack.i.l.bf16 %v17589_v33 }
 0x3bd   : > { %v1248_v45 = vpop.xlane.xlu1 %1247  ;;  %v1257_v40 = vpop.xlane.xlu0 %1256 }
 0x3be   : > { %12630 = vrcp.f32 %v1248_v45  ;;  %2370 = vadd.xlane.f32.xlu0 %v2369_v16  ;;  %v12110_v16 = vunpack.i.h.bf16 %v17589_v33 }
 0x3bf   : > { %12632 = vpow2.f32 %v2359_v43 }
 0x3c0   : > { %v12623_v3 = vpop.eup %12622  ;;  %12634 = vrcp.f32 %v1257_v40 }
 0x3c1   : > { %v14304_v9 = vpop.xlane.xlu1 %968  ;;  %v14306_v61 = vpop.xlane.xlu0 %977  ;;  %v1280_v47 = vmul.f32 %v12623_v3, %v14115_v17  ;;  %v11236_v3 = vpack.c.bf16 %v12105_v37, %v12104_v11 }
 0x3c2   : > { %v14311_v20 = vpop.eup %12624  ;;  %2379 = vadd.xlane.f32.xlu0 %v2378_v46 }
 0x3c3   : > { %10060 = vmatprep.mubr.msk.f32.mxu1 %vm900_vm13, %v1280_v47  ;;  %v2375_v17 = vsel %vm900_vm13, %v14311_v20, 0.0  ;;  %v14323_v43 = vpop.eup %12626 }
 0x3c4   : > { %10061 = vmatmul.mubr.msk.f32.vlgmr.msra.gmra.mrb[10].mxu1 %vm900_vm13, %v1281_v14  ;;  %v12629_v18 = vpop.eup %12628  ;;  %v2381_v46 = vsel %vm900_vm13, %v14323_v43, 0.0 }
 0x3c5   : > { %11231 = vmatpush3.bf16.msra.mxu1 %v17588_v51  ;;  %v14319_v5 = vpop.xlane.xlu1 %974  ;;  %v1254_v19 = vpop.xlane.xlu0 %1253  ;;  %v1283_v40 = vmul.f32 %v12629_v18, %v14119_v55  ;;  %v17590_v51 = vld [vmem:[#allocation38_spill] sm:$0xff]  ;;  %v17591_v18 = vld [vmem:[#allocation33_spill] sm:$0xff] }
 0x3c6   : > { %11233 = vmatprep.subr.bf16.mxu1 %v11232_v13  ;;  %2376 = vadd.xlane.f32.xlu0 %v2375_v17  ;;  %12636 = vrcp.f32 %v1254_v19  ;;  %v12155_v37 = vunpack.i.h.bf16 %v17590_v51  ;;  %v12154_v11 = vunpack.i.l.bf16 %v17590_v51  ;;  %v12115_v33 = vunpack.i.h.bf16 %v17591_v18 }
 0x3c8   : > { %v12631_v45 = vpop.eup %12630 }
 0x3c9   : > { %11235 = vmatpush3.bf16.msra.mxu1 %v11232_v13  ;;  %v1260_v6 = vpop.xlane.xlu1 %1259  ;;  %v1263_v63 = vpop.xlane.xlu0 %1262  ;;  %v1282_v47 = vmul.f32 %v12631_v45, %v14135_v60  ;;  %v11240_v13 = vpack.c.bf16 %v12110_v16, %v12109_v59  ;;  %v11244_v45 = vpack.c.bf16 %v12155_v37, %v12154_v11 }
 0x3ca   : > { %v14330_v14 = vpop.eup %12632  ;;  %11237 = vmatprep.subr.bf16.mxu1 %v11236_v3  ;;  %12638 = vrcp.f32 %v1260_v6  ;;  %2382 = vadd.xlane.f32.xlu0 %v2381_v46  ;;  %v12114_v6 = vunpack.i.l.bf16 %v17591_v18 }
 0x3cb   : > { %12640 = vrcp.f32 %v1263_v63  ;;  %10063 = vmatprep.mubr.msk.f32.mxu1 %vm900_vm13, %v1282_v47  ;;  %v2387_v60 = vsel %vm900_vm13, %v14330_v14, 0.0  ;;  %v12635_v17 = vpop.eup %12634 }
 0x3cc   : > { %10064 = vmatmul.mubr.msk.f32.gmra.mrb[12].mxu1 %vm900_vm13, %v1283_v40  ;;  %v1285_v59 = vmul.f32 %v12635_v17, %v14139_v25  ;;  %v11278_v40 = vpack.c.bf16 %v12115_v33, %v12114_v6  ;;  %12642 = vrcp.f32 %v14292_v30 }
 0x3cd   : > { %11239 = vmatpush3.bf16.msra.mxu1 %v11236_v3  ;;  %v984_v19 = vpop.xlane.xlu0 %983  ;;  %v981_v63 = vpop.xlane.xlu1 %980 }
 0x3ce   : > { %11241 = vmatprep.subr.bf16.mxu1 %v11240_v13  ;;  %2388 = vadd.xlane.f32.xlu0 %v2387_v60 }
 0x3d0   : > { %v12637_v55 = vpop.eup %12636 }
 0x3d1   : > { %11243 = vmatpush3.bf16.msra.mxu1 %v11240_v13  ;;  %v1269_v46 = vpop.xlane.xlu0 %1268  ;;  %v1284_v16 = vmul.f32 %v12637_v55, %v14150_v8 }
 0x3d2   : > { %11245 = vmatprep.subr.bf16.mxu1 %v11244_v45  ;;  %12644 = vrcp.f32 %v1269_v46 }
 0x3d3   : > { %10066 = vmatprep.mubr.msk.f32.mxu1 %vm900_vm13, %v1284_v16  ;;  %v17593_v16 = vld [vmem:[#allocation35_spill] sm:$0xff] }
 0x3d4   : > { %v12639_v3 = vpop.eup %12638  ;;  %10067 = vmatmul.mubr.msk.f32.gmra.mrb[14].mxu1 %vm900_vm13, %v1285_v59  ;;  %v12124_v59 = vunpack.i.l.bf16 %v17593_v16 }
 0x3d5   : > { %v12641_v47 = vpop.eup %12640  ;;  %v987_v51 = vpop.xlane.xlu1 %986  ;;  %v1286_v11 = vmul.f32 %v12639_v3, %v14166_v7  ;;  %11247 = vmatpush3.bf16.msra.mxu1 %v11244_v45 }
 0x3d6   : > { %v990_v37 = vpop.xlane.xlu0 %989  ;;  %v1287_v13 = vmul.f32 %v12641_v47, %v14160_v54  ;;  %11279 = vmatprep.subr.bf16.mxu1 %v11278_v40  ;;  %v12643_v54 = vpop.eup %12642 }
 0x3d7   : > { %10069 = vmatprep.mubr.msk.f32.mxu1 %vm900_vm13, %v1286_v11  ;;  %v17594_v11 = vld [vmem:[#allocation44_spill] sm:$0xff] }
 0x3d8   : > { %10070 = vmatmul.mubr.msk.f32.gmra.mrb[16].mxu1 %vm900_vm13, %v1287_v13  ;;  %v12130_v13 = vunpack.i.h.bf16 %v17594_v11 }
 0x3d9   : > { %v1894_v25 = vpop.xlane.xlu1 %1893 }
 0x3da   : > { %v1266_v8 = vpop.xlane.xlu0 %1265 }
 0x3db   : > { %12646 = vrcp.f32 %v1266_v8  ;;  %v12129_v8 = vunpack.i.l.bf16 %v17594_v11 }
 0x3dc   : > { %12648 = vrcp.f32 %v14288_v32  ;;  %v12645_v17 = vpop.eup %12644  ;;  %v1001_v32 = vmul.f32 %v12643_v54, %v14125_v49  ;;  %v12125_v49 = vunpack.i.h.bf16 %v17593_v16 }
 0x3dd   : > { %v1891_v60 = vpop.xlane.xlu1 %1890  ;;  %12650 = vrcp.f32 %v14304_v9  ;;  %v1289_v18 = vmul.f32 %v12645_v17, %v14182_v53  ;;  %v17595_v17 = vld [vmem:[#allocation46_spill] sm:$0xff] }
 0x3de   : > { %12652 = vrcp.f32 %v14294_v0  ;;  %v17592_v0 = vld [vmem:[#allocation34_spill] sm:$0xff]  ;;  %v11286_v54 = vpack.c.bf16 %v12125_v49, %v12124_v59 }
 0x3df   : > { %12654 = vrcp.f32 %v14319_v5  ;;  %v12120_v6 = vunpack.i.h.bf16 %v17592_v0  ;;  %v12119_v5 = vunpack.i.l.bf16 %v17592_v0 }
 0x3e0   : > { %12656 = vrcp.f32 %v14306_v61 }
 0x3e1   : > { %v1900_v7 = vpop.xlane.xlu1 %1899  ;;  %12658 = vrcp.f32 %v981_v63  ;;  %v11282_v3 = vpack.c.bf16 %v12120_v6, %v12119_v5 }
 0x3e2   : > { %12660 = vrcp.f32 %v984_v19 }
 0x3e3   : > { %12662 = vrcp.f32 %v987_v51 }
 0x3e4   : > { %12664 = vrcp.f32 %v990_v37 }
 0x3e5   : > { %v12647_v45 = vpop.eup %12646  ;;  %v1897_v30 = vpop.xlane.xlu1 %1896  ;;  %12666 = vrcp.f32 %v1891_v60 }
 0x3e6   : > { %v1288_v55 = vmul.f32 %v12647_v45, %v14196_v58  ;;  %v12649_v33 = vpop.eup %12648  ;;  %12668 = vrcp.f32 %v1894_v25  ;;  %v12160_v45 = vunpack.i.h.bf16 %v17595_v17  ;;  %v11290_v25 = vpack.c.bf16 %v12130_v13, %v12129_v8 }
 0x3e7   : > { %v12651_v9 = vpop.eup %12650  ;;  %v1002_v58 = vmul.f32 %v12649_v33, %v14109_v42  ;;  %12670 = vrcp.f32 %v1897_v30  ;;  %v17596_v33 = vld [vmem:[#allocation36_spill] sm:$0xff] }
 0x3e8   : > { %10072 = vmatprep.mubr.msk.f32.mxu1 %vm900_vm13, %v1288_v55  ;;  %v12653_v53 = vpop.eup %12652  ;;  %v1003_v61 = vmul.f32 %v12651_v9, %v14145_v23  ;;  %v12159_v55 = vunpack.i.l.bf16 %v17595_v17  ;;  %12672 = vrcp.f32 %v1900_v7  ;;  %v12134_v9 = vunpack.i.l.bf16 %v17596_v33  ;;  %v17601_v17 = vld [vmem:[#allocation40_spill] sm:$0xff] }
 0x3e9   : > { %10073 = vmatmul.mubr.msk.f32.gmra.mrb[18].mxu1 %vm900_vm13, %v1289_v18  ;;  %v1906_v46 = vpop.xlane.xlu1 %1905  ;;  %v12655_v63 = vpop.eup %12654  ;;  %v1004_v42 = vmul.f32 %v12653_v53, %v14129_v39 }
 0x3ea   : > { %10095 = vmatprep.mubr.msk.f32.mxu1 %vm900_vm13, %v1001_v32  ;;  %v12657_v19 = vpop.eup %12656  ;;  %v1005_v23 = vmul.f32 %v12655_v63, %v14156_v44  ;;  %v12135_v32 = vunpack.i.h.bf16 %v17596_v33  ;;  %v11294_v0 = vpack.c.bf16 %v12160_v45, %v12159_v55  ;;  %v17602_v55 = vld [vmem:[#allocation19_spill] sm:$0xff] }
 0x3eb   : > { %v12659_v51 = vpop.eup %12658 }
 0x3ec   : > { %v12661_v39 = vpop.eup %12660  ;;  %v1007_v44 = vmul.f32 %v12659_v51, %v14175_v21  ;;  %v11328_v63 = vpack.c.bf16 %v12135_v32, %v12134_v9  ;;  %v17605_v32 = vld [vmem:[#allocation21_spill] sm:$0xff] }
 0x3ed   : > { %10096 = vmatmul.mubr.msk.f32.vlgmr.msra.gmra.mrb[10].mxu1 %vm900_vm13, %v1002_v58  ;;  %v1903_v47 = vpop.xlane.xlu1 %1902  ;;  %v12663_v60 = vpop.eup %12662  ;;  %v17597_v58 = vld [vmem:[#allocation45_spill] sm:$0xff]  ;;  %v14435_v9 = vmul.f32 0.35355338, %v17605_v32 }
 0x3ee   : > { %11281 = vmatpush3.bf16.msra.mxu1 %v11278_v40  ;;  %10098 = vmatprep.mubr.msk.f32.mxu1 %vm900_vm13, %v1003_v61  ;;  %v1006_v40 = vmul.f32 %v12657_v19, %v14148_v35  ;;  %12674 = vrcp.f32 %v1903_v47  ;;  %v1008_v35 = vmul.f32 %v12661_v39, %v14169_v15  ;;  %v12665_v30 = vpop.eup %12664  ;;  %v1009_v18 = vmul.f32 %v12663_v60, %v14190_v57  ;;  %v12183_v19 = vpop.permute.xlu0 %12182 }
 0x3ef   : > { %11283 = vmatprep.subr.bf16.mxu1 %v11282_v3  ;;  %v12667_v21 = vpop.eup %12666  ;;  %12676 = vrcp.f32 %v1906_v46  ;;  %v1010_v15 = vmul.f32 %v12665_v30, %v14187_v36  ;;  %v12140_v53 = vunpack.i.h.bf16 %v17597_v58  ;;  %v12139_v61 = vunpack.i.l.bf16 %v17597_v58  ;;  %v17604_v30 = vld [vmem:[#allocation18_spill] sm:$0xff]  ;;  %v17608_v58 = vld [vmem:[#allocation23_spill] sm:$0xff] }
 0x3f0   : > { %v12669_v6 = vpop.eup %12668  ;;  %v1929_v57 = vmul.f32 %v12667_v21, %v14207_v38  ;;  %v17598_v38 = vld [vmem:[#allocation37_spill] sm:$0xff]  ;;  %v12185_v8 = vunpack.i.h.bf16 %v12183_v19 }
 0x3f1   : > { %10099 = vmatmul.mubr.msk.f32.gmra.mrb[12].mxu1 %vm900_vm13, %v1004_v42  ;;  %v14376_v37 = vpop.xlane.xlu1 %1911  ;;  %v12671_v5 = vpop.eup %12670  ;;  %v1930_v16 = vmul.f32 %v12669_v6, %v14199_v34  ;;  %v12144_v47 = vunpack.i.l.bf16 %v17598_v38  ;;  %v11332_v42 = vpack.c.bf16 %v12140_v53, %v12139_v61  ;;  %v14454_v53 = vmul.f32 0.35355338, %v17608_v58 }
 0x3f2   : > { %11285 = vmatpush3.bf16.msra.mxu1 %v11282_v3  ;;  %10101 = vmatprep.mubr.msk.f32.mxu1 %vm900_vm13, %v1005_v23  ;;  %v12673_v49 = vpop.eup %12672  ;;  %v1931_v36 = vmul.f32 %v12671_v5, %v14216_v27  ;;  %v12145_v3 = vunpack.i.h.bf16 %v17598_v38  ;;  %12678 = vrcp.f32 %v14376_v37 }
 0x3f3   : > { %11287 = vmatprep.subr.bf16.mxu1 %v11286_v54  ;;  %v1932_v34 = vmul.f32 %v12673_v49, %v14212_v31 }
 0x3f4   : > { %v11336_v39 = vpack.c.bf16 %v12145_v3, %v12144_v47  ;;  %v17610_v3 = vld [vmem:[#allocation42_spill] sm:$0xff]  ;;  %v14479_v47 = vmul.f32 0.35355338, %v13424_v26 }
 0x3f5   : > { %10102 = vmatmul.mubr.msk.f32.gmra.mrb[14].mxu1 %vm900_vm13, %v1006_v40  ;;  %v14388_v7 = vpop.xlane.xlu1 %1917 }
 0x3f6   : > { %11289 = vmatpush3.bf16.msra.mxu1 %v11286_v54  ;;  %10104 = vmatprep.mubr.msk.f32.mxu1 %vm900_vm13, %v1007_v44  ;;  %v12184_v54 = vunpack.i.l.bf16 %v12183_v19 }
 0x3f7   : > { %11291 = vmatprep.subr.bf16.mxu1 %v11290_v25 }
 0x3f8   : > { %v12675_v59 = vpop.eup %12674  ;;  %v11340_v45 = vpack.c.bf16 %v12185_v8, %v12184_v54 }
 0x3f9   : > { %10105 = vmatmul.mubr.msk.f32.gmra.mrb[16].mxu1 %vm900_vm13, %v1008_v35  ;;  %v12677_v13 = vpop.eup %12676  ;;  %v1933_v27 = vmul.f32 %v12675_v59, %v14225_v48  ;;  %v17600_v48 = vld [vmem:[#allocation16_spill] sm:$0xff] }
 0x3fa   : > { %11293 = vmatpush3.bf16.msra.mxu1 %v11290_v25  ;;  %10107 = vmatprep.mubr.msk.f32.mxu1 %vm900_vm13, %v1009_v18  ;;  %v1934_v31 = vmul.f32 %v12677_v13, %v14221_v41  ;;  %v14417_v60 = vmul.f32 0.35355338, %v17600_v48  ;;  %v14424_v25 = vmul.f32 0.35355338, %v17602_v55  ;;  %v17603_v41 = vld [vmem:[#allocation15_spill] sm:$0xff] }
 0x3fb   : > { %11295 = vmatprep.subr.bf16.mxu1 %v11294_v0  ;;  %v14429_v18 = vmul.f32 0.35355338, %v17604_v30  ;;  %v2951_v5 = vmul.f32 %v17603_v41, %v14435_v9  ;;  %v2953_v49 = vmul.f32 %v17603_v41, %v14454_v53  ;;  %v2956_v8 = vmul.f32 %v17603_v41, %v14479_v47 }
 0x3fc   : > { %v2948_v35 = vmul.f32 %v17603_v41, %v14417_v60  ;;  %v2949_v33 = vmul.f32 %v17603_v41, %v14424_v25  ;;  %v12679_v59 = vpop.eup %12678 }
 0x3fd   : > { %10108 = vmatmul.mubr.msk.f32.gmra.mrb[18].mxu1 %vm900_vm13, %v1010_v15  ;;  %v2950_v37 = vmul.f32 %v17603_v41, %v14429_v18  ;;  %v17607_v15 = vld [vmem:[#allocation20_spill] sm:$0xff] }
 0x3fe   : > { %11297 = vmatpush3.bf16.msra.mxu1 %v11294_v0  ;;  %v2368_v46 = vpop.xlane.xlu1 %2367  ;;  %10165 = vmatprep.mubr.msk.f32.mxu1 %vm900_vm13, %v1929_v57  ;;  %v17606_v0 = vld [vmem:[#allocation41_spill] sm:$0xff]  ;;  %v14448_v6 = vmul.f32 0.35355338, %v17607_v15 }
 0x3ff   : > { %11329 = vmatprep.subr.bf16.mxu1 %v11328_v63 }
 0x400   : > { %v2952_v61 = vmul.f32 %v17603_v41, %v14448_v6 }
 0x401   : > { %10166 = vmatmul.mubr.msk.f32.vlgmr.msra.gmra.mrb[10].mxu1 %vm900_vm13, %v1930_v16 }
 0x402   : > { %11331 = vmatpush3.bf16.msra.mxu1 %v11328_v63  ;;  %v12193_v23 = vpop.permute.xlu1 %12192  ;;  %10168 = vmatprep.mubr.msk.f32.mxu1 %vm900_vm13, %v1931_v36  ;;  %v17609_v63 = vld [vmem:[#allocation22_spill] sm:$0xff]  ;;  %v14466_v36 = vmul.f32 0.35355338, %v13427_v29 }
 0x403   : > { %v12195_v51 = vunpack.i.h.bf16 %v12193_v23  ;;  %v12194_v11 = vunpack.i.l.bf16 %v12193_v23  ;;  %11333 = vmatprep.subr.bf16.mxu1 %v11332_v42  ;;  %v14461_v16 = vmul.f32 0.35355338, %v17609_v63 }
 0x404   : > { %v2955_v19 = vmul.f32 %v17603_v41, %v14466_v36 }
 0x405   : > { %v14405_v40 = vpack.c.bf16 %v12195_v51, %v12194_v11  ;;  %10169 = vmatmul.mubr.msk.f32.gmra.mrb[12].mxu1 %vm900_vm13, %v1932_v34  ;;  %v1936_v34 = vmul.f32 %v12679_v59, %v14233_v62 }
 0x406   : > { %11335 = vmatpush3.bf16.msra.mxu1 %v11332_v42  ;;  %10171 = vmatprep.mubr.msk.f32.mxu1 %vm900_vm13, %v1933_v27 }
 0x407   : > { %11337 = vmatprep.subr.bf16.mxu1 %v11336_v39  ;;  %11404 = vmatprep.subr.msk.bf16.mxu0 %vm13431_vm5, %v14405_v40 }
 0x408   : > { %11407 = vmatpush3.bf16.xpose.msk.msra.mxu0 %vm13431_vm5, %v14405_v40 }
 0x409   : > { %10172 = vmatmul.mubr.msk.f32.gmra.mrb[14].mxu1 %vm900_vm13, %v1934_v31  ;;  %11450 = vmatprep.subr.msk.bf16.mxu0 %vm13431_vm5, %v17601_v17 }
 0x40a   : > { %11339 = vmatpush3.bf16.msra.mxu1 %v11336_v39  ;;  %v17611_v39 = vld [vmem:[#allocation29_spill] sm:$0xff] }
 0x40b   : > { %11341 = vmatprep.subr.bf16.mxu1 %v11340_v45 }
 0x40e   : > { %11343 = vmatpush3.bf16.msra.mxu1 %v11340_v45  ;;  %v1909_v21 = vpop.xlane.xlu0 %1908 }
 0x40f   : > { %10306 = vmatmul.mubr.msk.f32.vlgmr.msra.gmra.mrb[50].mxu0 %vm449_vm0, %v2948_v35  ;;  %12680 = vrcp.f32 %v1909_v21 }
 0x410   : > { %10308 = vmatprep.mubr.msk.f32.mxu0 %vm449_vm0, %v2949_v33  ;;  %11453 = vmatpush3.bf16.xpose.msk.msra.mxu0 %vm13431_vm5, %v17601_v17  ;;  %12682 = vrcp.f32 %v14388_v7  ;;  %v17613_v33 = vld [vmem:[#allocation43_spill] sm:$0xff] }
 0x411   : > { %11456 = vmatprep.subr.msk.bf16.mxu0 %vm13431_vm5, %v17606_v0 }
 0x412   : > { %v1915_v57 = vpop.xlane.xlu0 %1914 }
 0x413   : > { %10309 = vmatmul.mubr.msk.f32.gmra.mrb[52].mxu0 %vm449_vm0, %v2950_v37  ;;  %12684 = vrcp.f32 %v1915_v57 }
 0x414   : > { %10311 = vmatprep.mubr.msk.f32.mxu0 %vm449_vm0, %v2951_v5  ;;  %12686 = vrcp.f32 %v2368_v46  ;;  %v2954_v46 = vmul.f32 %v17603_v41, %v14461_v16 }
 0x416   : > { %v2365_v7 = vpop.xlane.xlu0 %2364 }
 0x417   : > { %10312 = vmatmul.mubr.msk.f32.gmra.mrb[54].mxu0 %vm449_vm0, %v2952_v61  ;;  %12688 = vrcp.f32 %v2365_v7 }
 0x418   : > { %10314 = vmatprep.mubr.msk.f32.mxu0 %vm449_vm0, %v2953_v49  ;;  %11459 = vmatpush3.bf16.xpose.msk.msra.mxu0 %vm13431_vm5, %v17606_v0  ;;  %v17614_v49 = vld [vmem:[#allocation26_spill] sm:$0xff] }
 0x419   : > { %v12681_v38 = vpop.eup %12680  ;;  %11462 = vmatprep.subr.msk.bf16.mxu0 %vm13431_vm5, %v17610_v3  ;;  %v4062_v59 = vmul.f32 %v17614_v49, %v17611_v39 }
 0x41a   : > { %v12188_v42 = vpop.permute.xlu0 %12187  ;;  %v1935_v23 = vmul.f32 %v12681_v38, %v14250_v2  ;;  %v12683_v13 = vpop.eup %12682  ;;  %v17612_v2 = vld [vmem:[#allocation27_spill] sm:$0xff] }
 0x41b   : > { %10315 = vmatmul.mubr.msk.f32.gmra.mrb[56].mxu0 %vm449_vm0, %v2954_v46  ;;  %v12190_v51 = vunpack.i.h.bf16 %v12188_v42  ;;  %v12189_v11 = vunpack.i.l.bf16 %v12188_v42  ;;  %v3592_v31 = vmul.f32 %v17612_v2, %v17611_v39  ;;  %v1938_v35 = vmul.f32 %v12683_v13, %v14239_v1 }
 0x41c   : > { %10317 = vmatprep.mubr.msk.f32.mxu0 %vm449_vm0, %v2955_v19  ;;  %10174 = vmatprep.mubr.msk.f32.mxu1 %vm900_vm13, %v1935_v23  ;;  %v3593_v1 = vmul.f32 %v17612_v2, %v14417_v60  ;;  %v3596_v57 = vmul.f32 %v17612_v2, %v14435_v9  ;;  %v3598_v5 = vmul.f32 %v17612_v2, %v14454_v53 }
 0x41d   : > { %v12685_v27 = vpop.eup %12684  ;;  %10175 = vmatmul.mubr.msk.f32.gmra.mrb[16].mxu1 %vm900_vm13, %v1936_v34  ;;  %v11344_v54 = vpack.c.bf16 %v12190_v51, %v12189_v11  ;;  %v3599_v61 = vmul.f32 %v17612_v2, %v14461_v16  ;;  %v3600_v7 = vmul.f32 %v17612_v2, %v14466_v36 }
 0x41e   : > { %v1937_v45 = vmul.f32 %v12685_v27, %v14256_v50  ;;  %v12687_v62 = vpop.eup %12686 }
 0x41f   : > { %10318 = vmatmul.mubr.msk.f32.gmra.mrb[58].mxu0 %vm449_vm0, %v2956_v8  ;;  %11345 = vmatprep.subr.bf16.mxu1 %v11344_v54  ;;  %v2404_v37 = vmul.f32 %v12687_v62, %v14244_v56  ;;  %v3594_v56 = vmul.f32 %v17612_v2, %v14424_v25 }
 0x420   : > { %11465 = vmatpush3.bf16.xpose.msk.msra.mxu0 %vm13431_vm5, %v17610_v3  ;;  %10410 = vmatprep.mubr.msk.f32.mxu0 %vm449_vm0, %v3592_v31  ;;  %v4063_v31 = vmul.f32 %v17614_v49, %v14417_v60 }
 0x421   : > { %v12689_v21 = vpop.eup %12688  ;;  %10177 = vmatprep.mubr.msk.f32.mxu1 %vm900_vm13, %v1937_v45  ;;  %11347 = vmatpush3.bf16.msra.mxu1 %v11344_v54  ;;  %v4064_v45 = vmul.f32 %v17614_v49, %v14424_v25 }
 0x422   : > { %11468 = vmatprep.subr.msk.bf16.mxu0 %vm13431_vm5, %v17613_v33  ;;  %10178 = vmatmul.mubr.msk.f32.gmra.mrb[18].mxu1 %vm900_vm13, %v1938_v35  ;;  %v2403_v50 = vmul.f32 %v12689_v21, %v14261_v52  ;;  %v3595_v52 = vmul.f32 %v17612_v2, %v14429_v18  ;;  %v4065_v35 = vmul.f32 %v17614_v49, %v14429_v18 }
 0x423   : > { %11350 = vmatprep.subr.msk.bf16.mxu1 %vm13431_vm5, %v17601_v17 }
 0x424   : > { %10235 = vmatprep.mubr.msk.f32.mxu1 %vm900_vm13, %v2403_v50 }
 0x426   : > { %10236 = vmatmul.mubr.msk.f32.vlgmr.msra.gmra.mrb[10].mxu1 %vm900_vm13, %v2404_v37  ;;  %v4067_v37 = vmul.f32 %v17614_v49, %v14448_v6 }
 0x428   : > { %11471 = vmatpush3.bf16.xpose.msk.msra.mxu0 %vm13431_vm5, %v17613_v33 }
 0x429   : > { %11474 = vmatprep.subr.msk.bf16.mxu0 %vm13431_vm5, %v14405_v40 }
 0x42a   : > { %11353 = vmatpush3.bf16.xpose.msk.msra.mxu1 %vm13431_vm5, %v17601_v17 }
 0x42b   : > { %11356 = vmatprep.subr.msk.bf16.mxu1 %vm13431_vm5, %v17606_v0 }
 0x430   : > { %11477 = vmatpush3.bf16.xpose.msk.msra.mxu0 %vm13431_vm5, %v14405_v40 }
 0x431   : > { %11500 = vmatprep.subr.msk.bf16.mxu0 %vm13431_vm5, %v17601_v17 }
 0x432   : > { %11359 = vmatpush3.bf16.xpose.msk.msra.mxu1 %vm13431_vm5, %v17606_v0 }
 0x433   : > { %11362 = vmatprep.subr.msk.bf16.mxu1 %vm13431_vm5, %v17610_v3  ;;  %v2374_v38 = vpop.xlane.xlu1 %2373 }
 0x434   : > { %12690 = vrcp.f32 %v2374_v38 }
 0x437   : > { %10411 = vmatmul.mubr.msk.f32.vlgmr.msra.gmra.mrb[60].mxu0 %vm449_vm0, %v3593_v1 }
 0x438   : > { %10413 = vmatprep.mubr.msk.f32.mxu0 %vm449_vm0, %v3594_v56  ;;  %11503 = vmatpush3.bf16.xpose.msk.msra.mxu0 %vm13431_vm5, %v17601_v17  ;;  %v3597_v17 = vmul.f32 %v17612_v2, %v14448_v6  ;;  %v4068_v56 = vmul.f32 %v17614_v49, %v14454_v53 }
 0x439   : > { %11506 = vmatprep.subr.msk.bf16.mxu0 %vm13431_vm5, %v17606_v0 }
 0x43a   : > { %11365 = vmatpush3.bf16.xpose.msk.msra.mxu1 %vm13431_vm5, %v17610_v3 }
 0x43b   : > { %11368 = vmatprep.subr.msk.bf16.mxu1 %vm13431_vm5, %v17613_v33  ;;  %10414 = vmatmul.mubr.msk.f32.gmra.mrb[62].mxu0 %vm449_vm0, %v3595_v52  ;;  %v4069_v52 = vmul.f32 %v17614_v49, %v14461_v16 }
 0x43c   : > { %10416 = vmatprep.mubr.msk.f32.mxu0 %vm449_vm0, %v3596_v57  ;;  %v17615_v57 = vld [vmem:[#allocation14_spill] sm:$0xff] }
 0x43e   : > { %v12691_v23 = vpop.eup %12690 }
 0x43f   : > { %10417 = vmatmul.mubr.msk.f32.gmra.mrb[64].mxu0 %vm449_vm0, %v3597_v17  ;;  %v2406_v27 = vmul.f32 %v12691_v23, %v14273_v22  ;;  %v2622_v17 = vmul.f32 %v17615_v57, %v17611_v39  ;;  %v2624_v39 = vmul.f32 %v17615_v57, %v14424_v25  ;;  %v2628_v25 = vmul.f32 %v17615_v57, %v14454_v53 }
 0x440   : > { %10419 = vmatprep.mubr.msk.f32.mxu0 %vm449_vm0, %v3598_v5  ;;  %11509 = vmatpush3.bf16.xpose.msk.msra.mxu0 %vm13431_vm5, %v17606_v0  ;;  %v3601_v0 = vmul.f32 %v17612_v2, %v14479_v47  ;;  %v4070_v5 = vmul.f32 %v17614_v49, %v14466_v36 }
 0x441   : > { %11512 = vmatprep.subr.msk.bf16.mxu0 %vm13431_vm5, %v17610_v3 }
 0x442   : > { %11371 = vmatpush3.bf16.xpose.msk.msra.mxu1 %vm13431_vm5, %v17613_v33 }
 0x443   : > { %11374 = vmatprep.subr.msk.bf16.mxu1 %vm13431_vm5, %v14405_v40  ;;  %10420 = vmatmul.mubr.msk.f32.gmra.mrb[66].mxu0 %vm449_vm0, %v3599_v61  ;;  %v2625_v61 = vmul.f32 %v17615_v57, %v14429_v18  ;;  %v2629_v18 = vmul.f32 %v17615_v57, %v14461_v16 }
 0x444   : > { %10422 = vmatprep.mubr.msk.f32.mxu0 %vm449_vm0, %v3600_v7  ;;  %v2626_v7 = vmul.f32 %v17615_v57, %v14435_v9 }
 0x447   : > { %10423 = vmatmul.mubr.msk.f32.gmra.mrb[68].mxu0 %vm449_vm0, %v3601_v0  ;;  %v17616_v0 = vld [vmem:[#allocation31_spill] sm:$0xff] }
 0x448   : > { %11515 = vmatpush3.bf16.xpose.msk.msra.mxu0 %vm13431_vm5, %v17610_v3  ;;  %10480 = vmatprep.mubr.msk.f32.mxu0 %vm449_vm0, %v4062_v59  ;;  %v2386_v3 = vpop.xlane.xlu1 %2385 }
 0x449   : > { %11518 = vmatprep.subr.msk.bf16.mxu0 %vm13431_vm5, %v17613_v33 }
 0x44a   : > { %11377 = vmatpush3.bf16.xpose.msk.msra.mxu1 %vm13431_vm5, %v14405_v40 }
 0x44b   : > { %v2371_v46 = vpop.xlane.xlu0 %2370 }
 0x44c   : > { %12692 = vrcp.f32 %v2371_v46  ;;  %v2392_v13 = vpop.xlane.xlu1 %2391 }
 0x44f   : > { %v2380_v42 = vpop.xlane.xlu0 %2379 }
 0x450   : > { %11521 = vmatpush3.bf16.xpose.msk.msra.mxu0 %vm13431_vm5, %v17613_v33  ;;  %12694 = vrcp.f32 %v2380_v42  ;;  %v4066_v33 = vmul.f32 %v17614_v49, %v14435_v9  ;;  %v2630_v9 = vmul.f32 %v17615_v57, %v14466_v36 }
 0x451   : > { %11524 = vmatprep.subr.msk.bf16.mxu0 %vm13431_vm5, %v14405_v40 }
 0x453   : > { %v2377_v19 = vpop.xlane.xlu0 %2376 }
 0x454   : > { %12696 = vrcp.f32 %v2377_v19 }
 0x455   : > { %12698 = vrcp.f32 %v2386_v3 }
 0x456   : > { %v12693_v51 = vpop.eup %12692 }
 0x457   : > { %v2383_v11 = vpop.xlane.xlu0 %2382  ;;  %v2405_v34 = vmul.f32 %v12693_v51, %v14296_v10 }
 0x458   : > { %11527 = vmatpush3.bf16.xpose.msk.msra.mxu0 %vm13431_vm5, %v14405_v40  ;;  %12700 = vrcp.f32 %v2383_v11 }
 0x459   : > { %10238 = vmatprep.mubr.msk.f32.mxu1 %vm900_vm13, %v2405_v34  ;;  %12702 = vrcp.f32 %v2392_v13 }
 0x45a   : > { %10239 = vmatmul.mubr.msk.f32.gmra.mrb[12].mxu1 %vm900_vm13, %v2406_v27  ;;  %v12695_v54 = vpop.eup %12694 }
 0x45b   : > { %v2389_v8 = vpop.xlane.xlu0 %2388  ;;  %v2408_v22 = vmul.f32 %v12695_v54, %v14300_v4 }
 0x45c   : > { %12704 = vrcp.f32 %v2389_v8 }
 0x45e   : > { %v12697_v10 = vpop.eup %12696 }
 0x45f   : > { %10481 = vmatmul.mubr.msk.f32.vlgmr.msra.gmra.mrb[70].mxu0 %vm449_vm0, %v4063_v31  ;;  %v2407_v40 = vmul.f32 %v12697_v10, %v14311_v20  ;;  %v12699_v62 = vpop.eup %12698 }
 0x460   : > { %10483 = vmatprep.mubr.msk.f32.mxu0 %vm449_vm0, %v4064_v45  ;;  %v2410_v4 = vmul.f32 %v12699_v62, %v14277_v12 }
 0x461   : > { %10241 = vmatprep.mubr.msk.f32.mxu1 %vm900_vm13, %v2407_v40 }
 0x462   : > { %v12701_v21 = vpop.eup %12700  ;;  %10242 = vmatmul.mubr.msk.f32.gmra.mrb[14].mxu1 %vm900_vm13, %v2408_v22 }
 0x463   : > { %10484 = vmatmul.mubr.msk.f32.gmra.mrb[72].mxu0 %vm449_vm0, %v4065_v35  ;;  %v2409_v20 = vmul.f32 %v12701_v21, %v14323_v43  ;;  %v12703_v50 = vpop.eup %12702 }
 0x464   : > { %10486 = vmatprep.mubr.msk.f32.mxu0 %vm449_vm0, %v4066_v33  ;;  %v2412_v12 = vmul.f32 %v12703_v50, %v14282_v24  ;;  %v2623_v24 = vmul.f32 %v17615_v57, %v14417_v60  ;;  %v2627_v60 = vmul.f32 %v17615_v57, %v14448_v6  ;;  %v2631_v6 = vmul.f32 %v17615_v57, %v14479_v47  ;;  %v17630_v57 = vld [vmem:[#allocation25_spill] sm:$0xff] }
 0x465   : > { %10244 = vmatprep.mubr.msk.f32.mxu1 %vm900_vm13, %v2409_v20  ;;  %v3214_v44 = vmul.f32 %v17630_v57, %v17602_v55 }
 0x466   : > { %v12705_v1 = vpop.eup %12704  ;;  %10245 = vmatmul.mubr.msk.f32.gmra.mrb[16].mxu1 %vm900_vm13, %v2410_v4 }
 0x467   : > { %10487 = vmatmul.mubr.msk.f32.gmra.mrb[74].mxu0 %vm449_vm0, %v4067_v37  ;;  %v2411_v43 = vmul.f32 %v12705_v1, %v14330_v14  ;;  %v4071_v14 = vmul.f32 %v17614_v49, %v14479_v47 }
 0x468   : > { %10489 = vmatprep.mubr.msk.f32.mxu0 %vm449_vm0, %v4068_v56 }
 0x469   : > { %10247 = vmatprep.mubr.msk.f32.mxu1 %vm900_vm13, %v2411_v43 }
 0x46a   : > { %10248 = vmatmul.mubr.msk.f32.gmra.mrb[18].mxu1 %vm900_vm13, %v2412_v12 }
 0x46b   : > { %10490 = vmatmul.mubr.msk.f32.gmra.mrb[76].mxu0 %vm449_vm0, %v4069_v52  ;;  %10270 = vmatprep.mubr.msk.f32.mxu1 %vm449_vm0, %v2622_v17 }
 0x46c   : > { %10492 = vmatprep.mubr.msk.f32.mxu0 %vm449_vm0, %v4070_v5 }
 0x46e   : > { %10271 = vmatmul.mubr.msk.f32.vlgmr.msra.gmra.mrb[20].mxu1 %vm449_vm0, %v2623_v24 }
 0x46f   : > { %10493 = vmatmul.mubr.msk.f32.gmra.mrb[78].mxu0 %vm449_vm0, %v4071_v14  ;;  %10273 = vmatprep.mubr.msk.f32.mxu1 %vm449_vm0, %v2624_v39 }
 0x472   : > { %10274 = vmatmul.mubr.msk.f32.gmra.mrb[22].mxu1 %vm449_vm0, %v2625_v61 }
 0x473   : > { %10276 = vmatprep.mubr.msk.f32.mxu1 %vm449_vm0, %v2626_v7 }
 0x476   : > { %10277 = vmatmul.mubr.msk.f32.gmra.mrb[24].mxu1 %vm449_vm0, %v2627_v60 }
 0x477   : > { %10279 = vmatprep.mubr.msk.f32.mxu1 %vm449_vm0, %v2628_v25 }
 0x47a   : > { %10280 = vmatmul.mubr.msk.f32.gmra.mrb[26].mxu1 %vm449_vm0, %v2629_v18 }
 0x47b   : > { %10282 = vmatprep.mubr.msk.f32.mxu1 %vm449_vm0, %v2630_v9 }
 0x47e   : > { %10283 = vmatmul.mubr.msk.f32.gmra.mrb[28].mxu1 %vm449_vm0, %v2631_v6 }
 0x4e2   : > { %v10307_v53 = vpop.f32.mrb[50].mxu0 }
 0x4e3   : > { %v14682_v59 = vadd.f32 %v10307_v53, %v17616_v0  ;;  %v3053_v38 = vpop.f32.mrb[51].mxu0 }
 0x4e4   : > { %v14685_v46 = vadd.f32 %v3053_v38, %v17616_v0 }
 0x4e5   : > { %v3105_v16 = vsel %vm900_vm13, %v14682_v59, -inf }
 0x4e6   : > { %3106 = vmax.xlane.f32.xlu1 %v3105_v16  ;;  %v10310_v36 = vpop.f32.mrb[52].mxu0  ;;  %v3102_v42 = vsel %vm900_vm13, %v14685_v46, -inf }
 0x4e7   : > { %v14692_v47 = vadd.f32 %v10310_v36, %v17616_v0  ;;  %v3063_v3 = vpop.f32.mrb[53].mxu0  ;;  %3103 = vmax.xlane.f32.xlu0 %v3102_v42 }
 0x4e8   : > { %v14695_v19 = vadd.f32 %v3063_v3, %v17616_v0 }
 0x4e9   : > { %v3111_v23 = vsel %vm900_vm13, %v14692_v47, -inf }
 0x4ea   : > { %3112 = vmax.xlane.f32.xlu1 %v3111_v23  ;;  %v10313_v51 = vpop.f32.mrb[54].mxu0  ;;  %v3108_v11 = vsel %vm900_vm13, %v14695_v19, -inf }
 0x4eb   : > { %v14702_v34 = vadd.f32 %v10313_v51, %v17616_v0  ;;  %v3073_v13 = vpop.f32.mrb[55].mxu0  ;;  %3109 = vmax.xlane.f32.xlu0 %v3108_v11 }
 0x4ec   : > { %v14705_v27 = vadd.f32 %v3073_v13, %v17616_v0 }
 0x4ed   : > { %v3117_v8 = vsel %vm900_vm13, %v14702_v34, -inf }
 0x4ee   : > { %3118 = vmax.xlane.f32.xlu1 %v3117_v8  ;;  %v10316_v54 = vpop.f32.mrb[56].mxu0  ;;  %v3114_v31 = vsel %vm900_vm13, %v14705_v27, -inf }
 0x4ef   : > { %v14712_v10 = vadd.f32 %v10316_v54, %v17616_v0  ;;  %v3083_v45 = vpop.f32.mrb[57].mxu0  ;;  %3115 = vmax.xlane.f32.xlu0 %v3114_v31 }
 0x4f0   : > { %v14715_v40 = vadd.f32 %v3083_v45, %v17616_v0 }
 0x4f1   : > { %v3123_v22 = vsel %vm900_vm13, %v14712_v10, -inf }
 0x4f2   : > { %3124 = vmax.xlane.f32.xlu1 %v3123_v22  ;;  %v10319_v62 = vpop.f32.mrb[58].mxu0  ;;  %v3120_v35 = vsel %vm900_vm13, %v14715_v40, -inf }
 0x4f3   : > { %v14722_v21 = vadd.f32 %v10319_v62, %v17616_v0  ;;  %v3093_v33 = vpop.f32.mrb[59].mxu0  ;;  %3121 = vmax.xlane.f32.xlu0 %v3120_v35 }
 0x4f4   : > { %v14725_v20 = vadd.f32 %v3093_v33, %v17616_v0 }
 0x4f5   : > { %v3129_v4 = vsel %vm900_vm13, %v14722_v21, -inf }
 0x4f6   : > { %3130 = vmax.xlane.f32.xlu1 %v3129_v4  ;;  %v3126_v50 = vsel %vm900_vm13, %v14725_v20, -inf }
 0x4f7   : > { %3127 = vmax.xlane.f32.xlu0 %v3126_v50 }
 0x4f9   : > { %v14731_v37 = vpop.f32.mrb[10].mxu1 }
 0x4fa   : > { %17617 = vst [vmem:[#allocation39_spill] sm:$0xff] %v14731_v37  ;;  %v14733_v1 = vpop.f32.mrb[11].mxu1 }
 0x4fb   : > { %17618 = vst [vmem:[#allocation32_spill] sm:$0xff] %v14733_v1  ;;  %v3216_v1 = vmul.f32 %v17630_v57, %v17605_v32 }
 0x50a   : > { %v10412_v56 = vpop.f32.mrb[60].mxu0 }
 0x50b   : > { %v14736_v43 = vadd.f32 %v10412_v56, %v17616_v0  ;;  %v3698_v12 = vpop.f32.mrb[61].mxu0 }
 0x50c   : > { %v14739_v52 = vadd.f32 %v3698_v12, %v17616_v0 }
 0x50d   : > { %v3750_v17 = vsel %vm900_vm13, %v14736_v43, -inf }
 0x50e   : > { %3751 = vmax.xlane.f32.xlu1 %v3750_v17  ;;  %v10415_v5 = vpop.f32.mrb[62].mxu0  ;;  %v3747_v24 = vsel %vm900_vm13, %v14739_v52, -inf }
 0x50f   : > { %v14746_v14 = vadd.f32 %v10415_v5, %v17616_v0  ;;  %v3708_v39 = vpop.f32.mrb[63].mxu0  ;;  %3748 = vmax.xlane.f32.xlu0 %v3747_v24 }
 0x510   : > { %v14749_v61 = vadd.f32 %v3708_v39, %v17616_v0 }
 0x511   : > { %v3756_v7 = vsel %vm900_vm13, %v14746_v14, -inf }
 0x512   : > { %3757 = vmax.xlane.f32.xlu1 %v3756_v7  ;;  %v10418_v60 = vpop.f32.mrb[64].mxu0  ;;  %v3753_v25 = vsel %vm900_vm13, %v14749_v61, -inf }
 0x513   : > { %v14756_v18 = vadd.f32 %v10418_v60, %v17616_v0  ;;  %v3718_v9 = vpop.f32.mrb[65].mxu0  ;;  %3754 = vmax.xlane.f32.xlu0 %v3753_v25 }
 0x514   : > { %v14759_v6 = vadd.f32 %v3718_v9, %v17616_v0 }
 0x515   : > { %v3762_v53 = vsel %vm900_vm13, %v14756_v18, -inf }
 0x516   : > { %3763 = vmax.xlane.f32.xlu1 %v3762_v53  ;;  %v10421_v38 = vpop.f32.mrb[66].mxu0  ;;  %v3759_v16 = vsel %vm900_vm13, %v14759_v6, -inf }
 0x517   : > { %v14766_v36 = vadd.f32 %v10421_v38, %v17616_v0  ;;  %v3728_v42 = vpop.f32.mrb[67].mxu0  ;;  %3760 = vmax.xlane.f32.xlu0 %v3759_v16 }
 0x518   : > { %v14769_v3 = vadd.f32 %v3728_v42, %v17616_v0 }
 0x519   : > { %v3768_v23 = vsel %vm900_vm13, %v14766_v36, -inf }
 0x51a   : > { %3769 = vmax.xlane.f32.xlu1 %v3768_v23  ;;  %v10424_v51 = vpop.f32.mrb[68].mxu0  ;;  %v3765_v11 = vsel %vm900_vm13, %v14769_v3, -inf }
 0x51b   : > { %v14776_v13 = vadd.f32 %v10424_v51, %v17616_v0  ;;  %v3738_v8 = vpop.f32.mrb[69].mxu0  ;;  %3766 = vmax.xlane.f32.xlu0 %v3765_v11 }
 0x51c   : > { %v14779_v54 = vadd.f32 %v3738_v8, %v17616_v0 }
 0x51d   : > { %v3774_v31 = vsel %vm900_vm13, %v14776_v13, -inf }
 0x51e   : > { %3775 = vmax.xlane.f32.xlu1 %v3774_v31  ;;  %v3771_v45 = vsel %vm900_vm13, %v14779_v54, -inf }
 0x51f   : > { %3772 = vmax.xlane.f32.xlu0 %v3771_v45 }
 0x52d   : > { %v14785_v22 = vpop.f32.mrb[12].mxu1 }
 0x52e   : > { %17619 = vst [vmem:[#allocation38_spill] sm:$0xff] %v14785_v22  ;;  %v14787_v62 = vpop.f32.mrb[13].mxu1 }
 0x52f   : > { %17620 = vst [vmem:[#allocation33_spill] sm:$0xff] %v14787_v62  ;;  %v17632_v62 = vld [vmem:[#allocation28_spill] sm:$0xff] }
 0x530   : > { %v2939_v37 = vmul.f32 %v17632_v62, %v17602_v55 }
 0x532   : > { %v10482_v35 = vpop.f32.mrb[70].mxu0 }
 0x533   : > { %v14790_v33 = vadd.f32 %v10482_v35, %v17616_v0  ;;  %v4168_v4 = vpop.f32.mrb[71].mxu0 }
 0x534   : > { %v14793_v50 = vadd.f32 %v4168_v4, %v17616_v0 }
 0x535   : > { %v4220_v56 = vsel %vm900_vm13, %v14790_v33, -inf  ;;  %v14797_v12 = vpop.f32.mrb[14].mxu1 }
 0x536   : > { %17621 = vst [vmem:[#allocation34_spill] sm:$0xff] %v14797_v12  ;;  %4221 = vmax.xlane.f32.xlu1 %v4220_v56  ;;  %v10485_v17 = vpop.f32.mrb[72].mxu0  ;;  %v4217_v5 = vsel %vm900_vm13, %v14793_v50, -inf  ;;  %v14801_v24 = vpop.f32.mrb[15].mxu1 }
 0x537   : > { %17622 = vst [vmem:[#allocation35_spill] sm:$0xff] %v14801_v24  ;;  %v14804_v39 = vadd.f32 %v10485_v17, %v17616_v0  ;;  %v4178_v7 = vpop.f32.mrb[73].mxu0  ;;  %4218 = vmax.xlane.f32.xlu0 %v4217_v5  ;;  %v3213_v24 = vmul.f32 %v17630_v57, %v17600_v48 }
 0x538   : > { %v14807_v60 = vadd.f32 %v4178_v7, %v17616_v0 }
 0x539   : > { %v4226_v25 = vsel %vm900_vm13, %v14804_v39, -inf  ;;  %v14811_v9 = vpop.f32.mrb[16].mxu1 }
 0x53a   : > { %17623 = vst [vmem:[#allocation44_spill] sm:$0xff] %v14811_v9  ;;  %4227 = vmax.xlane.f32.xlu1 %v4226_v25  ;;  %v10488_v53 = vpop.f32.mrb[74].mxu0  ;;  %v4223_v38 = vsel %vm900_vm13, %v14807_v60, -inf  ;;  %v14815_v16 = vpop.f32.mrb[17].mxu1  ;;  %v3219_v9 = vmul.f32 %v17630_v57, %v17609_v63 }
 0x53b   : > { %17624 = vst [vmem:[#allocation46_spill] sm:$0xff] %v14815_v16  ;;  %v14818_v42 = vadd.f32 %v10488_v53, %v17616_v0  ;;  %v4188_v23 = vpop.f32.mrb[75].mxu0  ;;  %4224 = vmax.xlane.f32.xlu0 %v4223_v38  ;;  %v17631_v16 = vld [vmem:[#allocation17_spill] sm:$0xff] }
 0x53c   : > { %v14821_v51 = vadd.f32 %v4188_v23, %v17616_v0  ;;  %v3212_v12 = vmul.f32 %v17630_v57, %v17631_v16 }
 0x53d   : > { %v4232_v11 = vsel %vm900_vm13, %v14818_v42, -inf  ;;  %v14825_v8 = vpop.f32.mrb[18].mxu1 }
 0x53e   : > { %17625 = vst [vmem:[#allocation36_spill] sm:$0xff] %v14825_v8  ;;  %4233 = vmax.xlane.f32.xlu1 %v4232_v11  ;;  %v10491_v31 = vpop.f32.mrb[76].mxu0  ;;  %v4229_v45 = vsel %vm900_vm13, %v14821_v51, -inf  ;;  %v14829_v35 = vpop.f32.mrb[19].mxu1 }
 0x53f   : > { %17626 = vst [vmem:[#allocation45_spill] sm:$0xff] %v14829_v35  ;;  %v14832_v4 = vadd.f32 %v10491_v31, %v17616_v0  ;;  %v4198_v56 = vpop.f32.mrb[77].mxu0  ;;  %4230 = vmax.xlane.f32.xlu0 %v4229_v45 }
 0x540   : > { %v14835_v17 = vadd.f32 %v4198_v56, %v17616_v0 }
 0x541   : > { %v4238_v5 = vsel %vm900_vm13, %v14832_v4, -inf  ;;  %v14839_v7 = vpop.f32.mrb[20].mxu1 }
 0x542   : > { %17627 = vst [vmem:[#allocation37_spill] sm:$0xff] %v14835_v17  ;;  %4239 = vmax.xlane.f32.xlu1 %v4238_v5  ;;  %v10494_v25 = vpop.f32.mrb[78].mxu0  ;;  %v4235_v53 = vsel %vm900_vm13, %v14835_v17, -inf  ;;  %v14843_v38 = vpop.f32.mrb[21].mxu1 }
 0x543   : > { %v14846_v23 = vadd.f32 %v10494_v25, %v17616_v0  ;;  %v4208_v11 = vpop.f32.mrb[79].mxu0  ;;  %4236 = vmax.xlane.f32.xlu0 %v4235_v53 }
 0x544   : > { %v14849_v31 = vadd.f32 %v4208_v11, %v17616_v0 }
 0x545   : > { %17628 = vst [vmem:[#allocation16_spill] sm:$0xff] %v14846_v23  ;;  %v4244_v45 = vsel %vm900_vm13, %v14846_v23, -inf  ;;  %v14853_v56 = vpop.f32.mrb[22].mxu1 }
 0x546   : > { %17629 = vst [vmem:[#allocation40_spill] sm:$0xff] %v14849_v31  ;;  %4245 = vmax.xlane.f32.xlu1 %v4244_v45  ;;  %v4241_v5 = vsel %vm900_vm13, %v14849_v31, -inf  ;;  %v14857_v49 = vpop.f32.mrb[23].mxu1  ;;  %v3215_v45 = vmul.f32 %v17630_v57, %v17604_v30 }
 0x547   : > { %4242 = vmax.xlane.f32.xlu0 %v4241_v5  ;;  %v3218_v5 = vmul.f32 %v17630_v57, %v17608_v58 }
 0x548   : > { %v12201_v35 = vpack.i.bf16 %v3215_v45, %v3214_v44  ;;  %v2940_v44 = vmul.f32 %v17632_v62, %v17604_v30  ;;  %v12196_v45 = vpack.i.bf16 %v3213_v24, %v3212_v12  ;;  %v3221_v12 = vmul.f32 %v17630_v57, %v13424_v26 }
 0x549   : > { %v14859_v2 = vpop.f32.mrb[24].mxu1  ;;  %v12211_v22 = vpack.i.bf16 %v3219_v9, %v3218_v5  ;;  %v2943_v9 = vmul.f32 %v17632_v62, %v17608_v58  ;;  %v2944_v5 = vmul.f32 %v17632_v62, %v17609_v63 }
 0x54a   : > { %v14861_v25 = vpop.f32.mrb[25].mxu1  ;;  %v12226_v23 = vpack.i.bf16 %v2940_v44, %v2939_v37  ;;  %v17633_v37 = vld [vmem:[#allocation30_spill] sm:$0xff] }
 0x54b   : > { %v12236_v24 = vpack.i.bf16 %v2944_v5, %v2943_v9  ;;  %v3857_v44 = vmul.f32 %v17633_v37, %v17631_v16  ;;  %v3862_v9 = vmul.f32 %v17633_v37, %v17607_v15 }
 0x54d   : > { %v14863_v53 = vpop.f32.mrb[26].mxu1 }
 0x54e   : > { %v14865_v11 = vpop.f32.mrb[27].mxu1 }
 0x551   : > { %v14867_v41 = vpop.f32.mrb[28].mxu1 }
 0x552   : > { %v14873_v8 = vpop.f32.mrb[29].mxu1 }
 0x557   : > { %12202 = vrot.lane.b32.xlu1 %v12201_v35, %s13132_s30  ;;  %v3217_v35 = vmul.f32 %v17630_v57, %v17607_v15 }
 0x559   : > { %v12206_v31 = vpack.i.bf16 %v3217_v35, %v3216_v1  ;;  %v2937_v1 = vmul.f32 %v17632_v62, %v17631_v16 }
 0x55b   : > { %12212 = vrot.lane.b32.xlu1 %v12211_v22, %s13132_s30  ;;  %v3220_v22 = vmul.f32 %v17630_v57, %v13427_v29 }
 0x55d   : > { %12197 = vrot.lane.b32.xlu0 %v12196_v45, %s13132_s30  ;;  %v3858_v45 = vmul.f32 %v17633_v37, %v17600_v48  ;;  %v12216_v17 = vpack.i.bf16 %v3221_v12, %v3220_v22  ;;  %v2941_v22 = vmul.f32 %v17632_v62, %v17605_v32  ;;  %v2942_v12 = vmul.f32 %v17632_v62, %v17607_v15 }
 0x55f   : > { %12227 = vrot.lane.b32.xlu1 %v12226_v23, %s13132_s30  ;;  %v2938_v23 = vmul.f32 %v17632_v62, %v17600_v48  ;;  %v12246_v35 = vpack.i.bf16 %v3858_v45, %v3857_v44  ;;  %v2945_v44 = vmul.f32 %v17632_v62, %v13427_v29  ;;  %v2946_v45 = vmul.f32 %v17632_v62, %v13424_v26 }
 0x561   : > { %12207 = vrot.lane.b32.xlu0 %v12206_v31, %s13132_s30  ;;  %v3861_v31 = vmul.f32 %v17633_v37, %v17605_v32  ;;  %v12221_v5 = vpack.i.bf16 %v2938_v23, %v2937_v1  ;;  %v12241_v1 = vpack.i.bf16 %v2946_v45, %v2945_v44  ;;  %v3859_v23 = vmul.f32 %v17633_v37, %v17602_v55 }
 0x563   : > { %12237 = vrot.lane.b32.xlu1 %v12236_v24, %s13132_s30  ;;  %v12256_v24 = vpack.i.bf16 %v3862_v9, %v3861_v31 }
 0x565   : > { %12217 = vrot.lane.b32.xlu0 %v12216_v17, %s13132_s30  ;;  %v12231_v17 = vpack.i.bf16 %v2942_v12, %v2941_v22  ;;  %v3864_v22 = vmul.f32 %v17633_v37, %v17609_v63 }
 0x567   : > { %12247 = vrot.lane.b32.xlu1 %v12246_v35, %s13132_s30  ;;  %v3860_v35 = vmul.f32 %v17633_v37, %v17604_v30 }
 0x569   : > { %12222 = vrot.lane.b32.xlu0 %v12221_v5, %s13132_s30  ;;  %v12251_v9 = vpack.i.bf16 %v3860_v35, %v3859_v23  ;;  %v3863_v5 = vmul.f32 %v17633_v37, %v17608_v58 }
 0x56b   : > { %12257 = vrot.lane.b32.xlu1 %v12256_v24, %s13132_s30  ;;  %v12261_v24 = vpack.i.bf16 %v3864_v22, %v3863_v5 }
 0x56d   : > { %12232 = vrot.lane.b32.xlu0 %v12231_v17, %s13132_s30 }
 0x571   : > { %12242 = vrot.lane.b32.xlu0 %v12241_v1, %s13132_s30 }
 0x573   : > { %v3107_v31 = vpop.xlane.xlu1 %3106 }
 0x574   : > { %v3104_v12 = vpop.xlane.xlu0 %3103  ;;  %v3133_v44 = vsub.f32 %v14682_v59, %v3107_v31 }
 0x575   : > { %12252 = vrot.lane.b32.xlu0 %v12251_v9, %s13132_s30  ;;  %v3132_v63 = vsub.f32 %v14685_v46, %v3104_v12 }
 0x576   : > { %v3144_v62 = vmul.f32 1.442695, %v3133_v44 }
 0x577   : > { %v3113_v17 = vpop.xlane.xlu1 %3112  ;;  %v3142_v59 = vmul.f32 1.442695, %v3132_v63 }
 0x578   : > { %v3110_v45 = vpop.xlane.xlu0 %3109  ;;  %v3135_v1 = vsub.f32 %v14692_v47, %v3113_v17  ;;  %12706 = vpow2.f32 %v3144_v62 }
 0x579   : > { %12262 = vrot.lane.b32.xlu0 %v12261_v24, %s13132_s30  ;;  %v3134_v31 = vsub.f32 %v14695_v19, %v3110_v45 }
 0x57a   : > { %v3148_v35 = vmul.f32 1.442695, %v3135_v1 }
 0x57b   : > { %v3119_v23 = vpop.xlane.xlu1 %3118  ;;  %v3146_v62 = vmul.f32 1.442695, %v3134_v31 }
 0x57c   : > { %v3137_v57 = vsub.f32 %v14702_v34, %v3119_v23  ;;  %v3116_v58 = vpop.xlane.xlu0 %3115  ;;  %12708 = vpow2.f32 %v3148_v35 }
 0x57d   : > { %v3136_v5 = vsub.f32 %v14705_v27, %v3116_v58 }
 0x57e   : > { %v3152_v9 = vmul.f32 1.442695, %v3137_v57 }
 0x57f   : > { %v3125_v15 = vpop.xlane.xlu1 %3124  ;;  %v3150_v24 = vmul.f32 1.442695, %v3136_v5 }
 0x580   : > { %v3122_v22 = vpop.xlane.xlu0 %3121  ;;  %12710 = vpow2.f32 %v3152_v9  ;;  %v3139_v47 = vsub.f32 %v14712_v10, %v3125_v15 }
 0x581   : > { %12712 = vpow2.f32 %v3142_v59  ;;  %v3138_v34 = vsub.f32 %v14715_v40, %v3122_v22 }
 0x582   : > { %v14949_v44 = vpop.eup %12706  ;;  %12714 = vpow2.f32 %v3150_v24  ;;  %v3156_v46 = vmul.f32 1.442695, %v3139_v47 }
 0x583   : > { %v3131_v17 = vpop.xlane.xlu1 %3130  ;;  %12716 = vpow2.f32 %v3146_v62  ;;  %v3154_v58 = vmul.f32 1.442695, %v3138_v34  ;;  %v3165_v19 = vsel %vm900_vm13, %v14949_v44, 0.0 }
 0x584   : > { %v3141_v57 = vsub.f32 %v14722_v21, %v3131_v17  ;;  %v3128_v63 = vpop.xlane.xlu0 %3127  ;;  %12718 = vpow2.f32 %v3156_v46 }
 0x585   : > { %v3140_v10 = vsub.f32 %v14725_v20, %v3128_v63  ;;  %12720 = vpow2.f32 %v3154_v58 }
 0x586   : > { %v14954_v27 = vpop.eup %12708  ;;  %v3160_v15 = vmul.f32 1.442695, %v3141_v57 }
 0x587   : > { %v3171_v40 = vsel %vm900_vm13, %v14954_v27, 0.0  ;;  %v3158_v45 = vmul.f32 1.442695, %v3140_v10 }
 0x588   : > { %12722 = vpow2.f32 %v3160_v15 }
 0x589   : > { %12724 = vpow2.f32 %v3158_v45 }
 0x58a   : > { %v14959_v12 = vpop.eup %12710 }
 0x58b   : > { %v14961_v21 = vpop.eup %12712  ;;  %v3177_v1 = vsel %vm900_vm13, %v14959_v12, 0.0 }
 0x58c   : > { %v14965_v23 = vpop.eup %12714  ;;  %v3162_v20 = vsel %vm900_vm13, %v14961_v21, 0.0 }
 0x58d   : > { %v14969_v35 = vpop.eup %12716  ;;  %v3174_v9 = vsel %vm900_vm13, %v14965_v23, 0.0 }
 0x58e   : > { %v14973_v5 = vpop.eup %12718  ;;  %v3168_v31 = vsel %vm900_vm13, %v14969_v35, 0.0 }
 0x58f   : > { %3166 = vadd.xlane.f32.xlu1 %v3165_v19  ;;  %v14977_v22 = vpop.eup %12720  ;;  %v3183_v17 = vsel %vm900_vm13, %v14973_v5, 0.0 }
 0x590   : > { %v3180_v63 = vsel %vm900_vm13, %v14977_v22, 0.0 }
 0x592   : > { %v14983_v46 = vpop.eup %12722 }
 0x593   : > { %3172 = vadd.xlane.f32.xlu1 %v3171_v40  ;;  %v3189_v10 = vsel %vm900_vm13, %v14983_v46, 0.0  ;;  %v14991_v40 = vpop.eup %12724 }
 0x597   : > { %3178 = vadd.xlane.f32.xlu1 %v3177_v1 }
 0x598   : > { %3163 = vadd.xlane.f32.xlu0 %v3162_v20 }
 0x59b   : > { %v3752_v59 = vpop.xlane.xlu1 %3751  ;;  %3175 = vadd.xlane.f32.xlu1 %v3174_v9 }
 0x59c   : > { %v3778_v24 = vsub.f32 %v14736_v43, %v3752_v59  ;;  %3169 = vadd.xlane.f32.xlu0 %v3168_v31  ;;  %v3749_v47 = vpop.xlane.xlu0 %3748 }
 0x59d   : > { %v3777_v62 = vsub.f32 %v14739_v52, %v3749_v47 }
 0x59e   : > { %v3789_v34 = vmul.f32 1.442695, %v3778_v24 }
 0x59f   : > { %v3787_v57 = vmul.f32 1.442695, %v3777_v62  ;;  %v3758_v58 = vpop.xlane.xlu1 %3757  ;;  %3184 = vadd.xlane.f32.xlu1 %v3183_v17 }
 0x5a0   : > { %12726 = vpow2.f32 %v3789_v34  ;;  %v3780_v19 = vsub.f32 %v14746_v14, %v3758_v58  ;;  %3181 = vadd.xlane.f32.xlu0 %v3180_v63  ;;  %v3755_v43 = vpop.xlane.xlu0 %3754 }
 0x5a1   : > { %12728 = vpow2.f32 %v3787_v57  ;;  %v3779_v52 = vsub.f32 %v14749_v61, %v3755_v43  ;;  %v3186_v61 = vsel %vm900_vm13, %v14991_v40, 0.0 }
 0x5a2   : > { %v3793_v15 = vmul.f32 1.442695, %v3780_v19 }
 0x5a3   : > { %v3791_v45 = vmul.f32 1.442695, %v3779_v52  ;;  %v3764_v1 = vpop.xlane.xlu1 %3763  ;;  %3190 = vadd.xlane.f32.xlu1 %v3189_v10 }
 0x5a4   : > { %12730 = vpow2.f32 %v3793_v15  ;;  %v3782_v20 = vsub.f32 %v14756_v18, %v3764_v1  ;;  %v3761_v9 = vpop.xlane.xlu0 %3760 }
 0x5a5   : > { %12732 = vpow2.f32 %v3791_v45  ;;  %v3781_v14 = vsub.f32 %v14759_v6, %v3761_v9 }
 0x5a6   : > { %v3797_v59 = vmul.f32 1.442695, %v3782_v20 }
 0x5a7   : > { %v3795_v31 = vmul.f32 1.442695, %v3781_v14  ;;  %v3770_v24 = vpop.xlane.xlu1 %3769  ;;  %3187 = vadd.xlane.f32.xlu1 %v3186_v61 }
 0x5a8   : > { %12734 = vpow2.f32 %v3797_v59  ;;  %v3784_v47 = vsub.f32 %v14766_v36, %v3770_v24  ;;  %v3767_v62 = vpop.xlane.xlu0 %3766 }
 0x5a9   : > { %12736 = vpow2.f32 %v3795_v31  ;;  %v3783_v34 = vsub.f32 %v14769_v3, %v3767_v62 }
 0x5aa   : > { %v14999_v17 = vpop.eup %12726  ;;  %v3801_v18 = vmul.f32 1.442695, %v3784_v47 }
 0x5ab   : > { %v15001_v57 = vpop.eup %12728  ;;  %v3799_v6 = vmul.f32 1.442695, %v3783_v34  ;;  %v3776_v58 = vpop.xlane.xlu1 %3775  ;;  %v3810_v63 = vsel %vm900_vm13, %v14999_v17, 0.0 }
 0x5ac   : > { %12738 = vpow2.f32 %v3801_v18  ;;  %v3786_v19 = vsub.f32 %v14776_v13, %v3776_v58  ;;  %3811 = vadd.xlane.f32.xlu0 %v3810_v63  ;;  %v3773_v43 = vpop.xlane.xlu0 %3772  ;;  %v3807_v36 = vsel %vm900_vm13, %v15001_v57, 0.0 }
 0x5ad   : > { %12740 = vpow2.f32 %v3799_v6  ;;  %v3785_v3 = vsub.f32 %v14779_v54, %v3773_v43  ;;  %3808 = vadd.xlane.f32.xlu1 %v3807_v36 }
 0x5ae   : > { %v15009_v52 = vpop.eup %12730  ;;  %v3805_v15 = vmul.f32 1.442695, %v3786_v19 }
 0x5af   : > { %v15011_v10 = vpop.eup %12732  ;;  %v3803_v45 = vmul.f32 1.442695, %v3785_v3  ;;  %v3816_v1 = vsel %vm900_vm13, %v15009_v52, 0.0 }
 0x5b0   : > { %12742 = vpow2.f32 %v3805_v15  ;;  %3817 = vadd.xlane.f32.xlu0 %v3816_v1  ;;  %v3813_v13 = vsel %vm900_vm13, %v15011_v10, 0.0 }
 0x5b1   : > { %12744 = vpow2.f32 %v3803_v45  ;;  %3814 = vadd.xlane.f32.xlu1 %v3813_v13 }
 0x5b2   : > { %v15017_v20 = vpop.eup %12734 }
 0x5b3   : > { %v15019_v54 = vpop.eup %12736  ;;  %v3822_v9 = vsel %vm900_vm13, %v15017_v20, 0.0 }
 0x5b4   : > { %3823 = vadd.xlane.f32.xlu0 %v3822_v9  ;;  %v3819_v14 = vsel %vm900_vm13, %v15019_v54, 0.0 }
 0x5b5   : > { %3820 = vadd.xlane.f32.xlu1 %v3819_v14 }
 0x5b6   : > { %v15025_v59 = vpop.eup %12738 }
 0x5b7   : > { %v15027_v61 = vpop.eup %12740  ;;  %v3828_v31 = vsel %vm900_vm13, %v15025_v59, 0.0 }
 0x5b8   : > { %3829 = vadd.xlane.f32.xlu0 %v3828_v31  ;;  %v3825_v24 = vsel %vm900_vm13, %v15027_v61, 0.0 }
 0x5b9   : > { %3826 = vadd.xlane.f32.xlu1 %v3825_v24 }
 0x5ba   : > { %v15033_v47 = vpop.eup %12742 }
 0x5bb   : > { %17634 = vst [vmem:[#allocation19_spill] sm:$0xff] %v15033_v47  ;;  %v15035_v62 = vpop.eup %12744  ;;  %v3834_v34 = vsel %vm900_vm13, %v15033_v47, 0.0 }
 0x5bc   : > { %3835 = vadd.xlane.f32.xlu0 %v3834_v34  ;;  %v3831_v18 = vsel %vm900_vm13, %v15035_v62, 0.0  ;;  %v15067_v34 = vadd.f32 %v14839_v7, %v17616_v0  ;;  %v15082_v7 = vadd.f32 %v14853_v56, %v17616_v0 }
 0x5bd   : > { %3832 = vadd.xlane.f32.xlu1 %v3831_v18 }
 0x5c3   : > { %v4222_v6 = vpop.xlane.xlu1 %4221 }
 0x5c4   : > { %v4248_v58 = vsub.f32 %v14790_v33, %v4222_v6  ;;  %v4219_v63 = vpop.xlane.xlu0 %4218 }
 0x5c5   : > { %v4247_v19 = vsub.f32 %v14793_v50, %v4219_v63  ;;  %v15059_v50 = vadd.f32 %v14843_v38, %v17616_v0  ;;  %v15076_v38 = vadd.f32 %v14857_v49, %v17616_v0 }
 0x5c6   : > { %v4259_v43 = vmul.f32 1.442695, %v4248_v58 }
 0x5c7   : > { %v4257_v36 = vmul.f32 1.442695, %v4247_v19  ;;  %v4228_v3 = vpop.xlane.xlu1 %4227  ;;  %v2827_v19 = vsel %vm900_vm13, %v15059_v50, -inf }
 0x5c8   : > { %12746 = vpow2.f32 %v4259_v43  ;;  %v15043_v15 = vpop.xlane.xlu0 %4224  ;;  %v4250_v58 = vsub.f32 %v14804_v39, %v4228_v3 }
 0x5c9   : > { %12748 = vpow2.f32 %v4257_v36  ;;  %v2830_v36 = vsel %vm900_vm13, %v15067_v34, -inf }
 0x5ca   : > { %v4263_v49 = vmul.f32 1.442695, %v4250_v58 }
 0x5cb   : > { %v15045_v45 = vpop.xlane.xlu1 %4233 }
 0x5cc   : > { %v15047_v1 = vpop.xlane.xlu0 %4230  ;;  %12750 = vpow2.f32 %v4263_v49 }
 0x5cf   : > { %v15049_v13 = vpop.xlane.xlu1 %4239 }
 0x5d0   : > { %v15051_v9 = vpop.xlane.xlu0 %4236 }
 0x5d2   : > { %v15053_v14 = vpop.eup %12746 }
 0x5d3   : > { %17635 = vst [vmem:[#allocation18_spill] sm:$0xff] %v15053_v14  ;;  %v15055_v33 = vpop.eup %12748  ;;  %v15061_v31 = vpop.xlane.xlu1 %4245  ;;  %v4280_v24 = vsel %vm900_vm13, %v15053_v14, 0.0  ;;  %v15088_v14 = vadd.f32 %v14861_v25, %v17616_v0 }
 0x5d4   : > { %17636 = vst [vmem:[#allocation21_spill] sm:$0xff] %v15055_v33  ;;  %4281 = vadd.xlane.f32.xlu0 %v4280_v24  ;;  %v15069_v18 = vpop.xlane.xlu0 %4242  ;;  %v4277_v6 = vsel %vm900_vm13, %v15055_v33, 0.0  ;;  %v2833_v33 = vsel %vm900_vm13, %v15076_v38, -inf }
 0x5d5   : > { %4278 = vadd.xlane.f32.xlu1 %v4277_v6 }
 0x5d7   : > { %v12203_v63 = vpop.permute.xlu1 %12202 }
 0x5d8   : > { %v12198_v43 = vpop.permute.xlu0 %12197  ;;  %2828 = vmax.xlane.f32.xlu0 %v2827_v19  ;;  %v12205_v24 = vunpack.i.h.bf16 %v12203_v63  ;;  %v12204_v6 = vunpack.i.l.bf16 %v12203_v63  ;;  %v15094_v19 = vadd.f32 %v14859_v2, %v17616_v0  ;;  %v2836_v63 = vsel %vm900_vm13, %v15082_v7, -inf }
 0x5d9   : > { %v12200_v39 = vunpack.i.h.bf16 %v12198_v43  ;;  %v12199_v3 = vunpack.i.l.bf16 %v12198_v43  ;;  %2831 = vmax.xlane.f32.xlu1 %v2830_v36  ;;  %v2839_v2 = vsel %vm900_vm13, %v15088_v14, -inf }
 0x5da   : > { %v11412_v58 = vpack.c.bf16 %v12205_v24, %v12204_v6 }
 0x5db   : > { %v11408_v56 = vpack.c.bf16 %v12200_v39, %v12199_v3  ;;  %v12213_v25 = vpop.permute.xlu1 %12212  ;;  %v15100_v39 = vadd.f32 %v14865_v11, %v17616_v0  ;;  %v15112_v11 = vadd.f32 %v14873_v8, %v17616_v0 }
 0x5dc   : > { %v12208_v47 = vpop.permute.xlu0 %12207  ;;  %2834 = vmax.xlane.f32.xlu0 %v2833_v33  ;;  %v15106_v33 = vadd.f32 %v14863_v53, %v17616_v0  ;;  %v12215_v24 = vunpack.i.h.bf16 %v12213_v25  ;;  %v12214_v6 = vunpack.i.l.bf16 %v12213_v25  ;;  %v15118_v53 = vadd.f32 %v14867_v41, %v17616_v0 }
 0x5dd   : > { %v12210_v43 = vunpack.i.h.bf16 %v12208_v47  ;;  %v12209_v36 = vunpack.i.l.bf16 %v12208_v47  ;;  %11409 = vmatprep.subr.bf16.mxu1 %v11408_v56  ;;  %2837 = vmax.xlane.f32.xlu1 %v2836_v63  ;;  %v2842_v47 = vsel %vm900_vm13, %v15094_v19, -inf  ;;  %v2851_v8 = vsel %vm900_vm13, %v15112_v11, -inf }
 0x5de   : > { %11411 = vmatpush3.bf16.msra.mxu1 %v11408_v56  ;;  %v2845_v56 = vsel %vm900_vm13, %v15100_v39, -inf  ;;  %v2848_v63 = vsel %vm900_vm13, %v15106_v33, -inf  ;;  %v2854_v41 = vsel %vm900_vm13, %v15118_v53, -inf }
 0x5df   : > { %11413 = vmatprep.subr.bf16.mxu1 %v11412_v58  ;;  %v11416_v49 = vpack.c.bf16 %v12210_v43, %v12209_v36  ;;  %v11420_v43 = vpack.c.bf16 %v12215_v24, %v12214_v6  ;;  %v3865_v6 = vmul.f32 %v17633_v37, %v13427_v29 }
 0x5e0   : > { %v12218_v3 = vpop.permute.xlu0 %12217  ;;  %2840 = vmax.xlane.f32.xlu0 %v2839_v2 }
 0x5e1   : > { %2843 = vmax.xlane.f32.xlu1 %v2842_v47  ;;  %v12220_v25 = vunpack.i.h.bf16 %v12218_v3  ;;  %v12219_v2 = vunpack.i.l.bf16 %v12218_v3 }
 0x5e2   : > { %11415 = vmatpush3.bf16.msra.mxu1 %v11412_v58  ;;  %v15124_v58 = vpop.eup %12750 }
 0x5e3   : > { %11417 = vmatprep.subr.bf16.mxu1 %v11416_v49  ;;  %17637 = vst [vmem:[#allocation41_spill] sm:$0xff] %v15124_v58  ;;  %v11424_v0 = vpack.c.bf16 %v12220_v25, %v12219_v2  ;;  %v4286_v3 = vsel %vm900_vm13, %v15124_v58, 0.0  ;;  %v4327_v25 = vmul.f32 %v13767_v28, %v17631_v16  ;;  %v4328_v2 = vmul.f32 %v13767_v28, %v17600_v48 }
 0x5e4   : > { %2846 = vmax.xlane.f32.xlu0 %v2845_v56  ;;  %v12223_v36 = vpop.permute.xlu0 %12222 }
 0x5e5   : > { %2849 = vmax.xlane.f32.xlu1 %v2848_v63  ;;  %v12225_v47 = vunpack.i.h.bf16 %v12223_v36  ;;  %v12224_v56 = vunpack.i.l.bf16 %v12223_v36  ;;  %v4249_v36 = vsub.f32 %v14807_v60, %v15043_v15 }
 0x5e6   : > { %11419 = vmatpush3.bf16.msra.mxu1 %v11416_v49  ;;  %v3866_v49 = vmul.f32 %v17633_v37, %v13424_v26  ;;  %v4329_v37 = vmul.f32 %v13767_v28, %v17602_v55 }
 0x5e7   : > { %11421 = vmatprep.subr.bf16.mxu1 %v11420_v43  ;;  %v15130_v24 = vpack.c.bf16 %v12225_v47, %v12224_v56  ;;  %v4251_v47 = vsub.f32 %v14821_v51, %v15047_v1 }
 0x5e8   : > { %2852 = vmax.xlane.f32.xlu0 %v2851_v8  ;;  %v12266_v63 = vpack.i.bf16 %v3866_v49, %v3865_v6  ;;  %v4252_v8 = vsub.f32 %v14818_v42, %v15045_v45 }
 0x5e9   : > { %2855 = vmax.xlane.f32.xlu1 %v2854_v41  ;;  %v4261_v41 = vmul.f32 1.442695, %v4249_v36  ;;  %v4265_v48 = vmul.f32 1.442695, %v4251_v47 }
 0x5ea   : > { %11423 = vmatpush3.bf16.msra.mxu1 %v11420_v43  ;;  %v12271_v43 = vpack.i.bf16 %v4328_v2, %v4327_v25  ;;  %v4267_v16 = vmul.f32 1.442695, %v4252_v8 }
 0x5eb   : > { %11425 = vmatprep.subr.bf16.mxu1 %v11424_v0  ;;  %12752 = vpow2.f32 %v4261_v41 }
 0x5ec   : > { %4287 = vadd.xlane.f32.xlu0 %v4286_v3  ;;  %v15153_v3 = vpop.permute.xlu0 %12232  ;;  %12754 = vpow2.f32 %v4267_v16 }
 0x5ed   : > { %12756 = vpow2.f32 %v4265_v48 }
 0x5ee   : > { %11427 = vmatpush3.bf16.msra.mxu1 %v11424_v0  ;;  %v15143_v0 = vpop.permute.xlu1 %12227 }
 0x5ef   : > { %11429 = vmatprep.subr.bf16.mxu1 %v15130_v24 }
 0x5f0   : > { %v15157_v49 = vpop.permute.xlu0 %12242 }
 0x5f2   : > { %v15151_v56 = vpop.permute.xlu1 %12237 }
 0x5f4   : > { %v15163_v15 = vpop.permute.xlu0 %12252 }
 0x5f5   : > { %v15161_v42 = vpop.eup %12752 }
 0x5f6   : > { %v15155_v6 = vpop.permute.xlu1 %12247  ;;  %v15165_v45 = vpop.eup %12754  ;;  %v4283_v1 = vsel %vm900_vm13, %v15161_v42, 0.0 }
 0x5f7   : > { %17638 = vst [vmem:[#allocation42_spill] sm:$0xff] %v15165_v45  ;;  %v4292_v2 = vsel %vm900_vm13, %v15165_v45, 0.0 }
 0x5fa   : > { %12267 = vrot.lane.b32.xlu1 %v12266_v63, %s13132_s30  ;;  %v15159_v60 = vpop.permute.xlu1 %12257  ;;  %v15169_v63 = vpop.eup %12756 }
 0x5fb   : > { %17639 = vst [vmem:[#allocation29_spill] sm:$0xff] %v15169_v63  ;;  %v4289_v36 = vsel %vm900_vm13, %v15169_v63, 0.0 }
 0x602   : > { %12272 = vrot.lane.b32.xlu0 %v12271_v43, %s13132_s30  ;;  %v15173_v43 = vpop.permute.xlu0 %12262 }
 0x61c   : > { %v3167_v51 = vpop.xlane.xlu1 %3166 }
 0x61d   : > { %12758 = vrcp.f32 %v3167_v51  ;;  %v12230_v51 = vunpack.i.h.bf16 %v15143_v0 }
 0x61e   : > { %4284 = vadd.xlane.f32.xlu1 %v4283_v1 }
 0x620   : > { %v3173_v25 = vpop.xlane.xlu1 %3172 }
 0x621   : > { %4293 = vadd.xlane.f32.xlu0 %v4292_v2  ;;  %v4330_v2 = vmul.f32 %v13767_v28, %v17604_v30  ;;  %v12235_v30 = vunpack.i.h.bf16 %v15153_v3 }
 0x622   : > { %4290 = vadd.xlane.f32.xlu1 %v4289_v36 }
 0x624   : > { %v3179_v8 = vpop.xlane.xlu1 %3178 }
 0x625   : > { %v3164_v41 = vpop.xlane.xlu0 %3163 }
 0x626   : > { %12760 = vrcp.f32 %v3164_v41 }
 0x627   : > { %12762 = vrcp.f32 %v3173_v25  ;;  %v12759_v36 = vpop.eup %12758  ;;  %v12229_v25 = vunpack.i.l.bf16 %v15143_v0 }
 0x628   : > { %v3176_v47 = vpop.xlane.xlu1 %3175  ;;  %v3203_v63 = vmul.f32 %v12759_v36, %v14949_v44  ;;  %v12239_v36 = vunpack.i.l.bf16 %v15151_v56 }
 0x629   : > { %12764 = vrcp.f32 %v3176_v47  ;;  %v3170_v16 = vpop.xlane.xlu0 %3169 }
 0x62a   : > { %12766 = vrcp.f32 %v3170_v16  ;;  %v12276_v16 = vpack.i.bf16 %v4330_v2, %v4329_v37 }
 0x62b   : > { %12768 = vrcp.f32 %v3179_v8 }
 0x62c   : > { %v3185_v48 = vpop.xlane.xlu1 %3184 }
 0x62d   : > { %v3182_v1 = vpop.xlane.xlu0 %3181 }
 0x62e   : > { %12770 = vrcp.f32 %v3182_v1  ;;  %v12234_v1 = vunpack.i.l.bf16 %v15153_v3  ;;  %v12240_v3 = vunpack.i.h.bf16 %v15151_v56 }
 0x62f   : > { %12772 = vrcp.f32 %v3185_v48  ;;  %v11432_v48 = vpack.c.bf16 %v12230_v51, %v12229_v25  ;;  %v12245_v51 = vunpack.i.h.bf16 %v15157_v49 }
 0x630   : > { %v12761_v45 = vpop.eup %12760  ;;  %v3191_v41 = vpop.xlane.xlu1 %3190 }
 0x631   : > { %v3202_v47 = vmul.f32 %v12761_v45, %v14961_v21  ;;  %v12763_v8 = vpop.eup %12762  ;;  %12774 = vrcp.f32 %v3191_v41 }
 0x632   : > { %v3205_v44 = vmul.f32 %v12763_v8, %v14954_v27 }
 0x633   : > { %v12765_v58 = vpop.eup %12764  ;;  %10340 = vmatprep.mubr.msk.f32.mxu1 %vm900_vm13, %v3202_v47  ;;  %12277 = vrot.lane.b32.xlu1 %v12276_v16, %s13132_s30  ;;  %v12249_v47 = vunpack.i.l.bf16 %v15155_v6 }
 0x634   : > { %v12767_v55 = vpop.eup %12766  ;;  %v3188_v0 = vpop.xlane.xlu1 %3187  ;;  %10341 = vmatmul.mubr.msk.f32.vlgmr.msra.gmra.mrb[30].mxu1 %vm900_vm13, %v3203_v63  ;;  %v3206_v45 = vmul.f32 %v12765_v58, %v14965_v23  ;;  %v11436_v63 = vpack.c.bf16 %v12235_v30, %v12234_v1  ;;  %v12244_v23 = vunpack.i.l.bf16 %v15157_v49  ;;  %v11440_v58 = vpack.c.bf16 %v12240_v3, %v12239_v36 }
 0x635   : > { %12776 = vrcp.f32 %v3188_v0  ;;  %11431 = vmatpush3.bf16.msra.mxu1 %v15130_v24  ;;  %v3204_v37 = vmul.f32 %v12767_v55, %v14969_v35  ;;  %v12769_v21 = vpop.eup %12768 }
 0x636   : > { %11433 = vmatprep.subr.bf16.mxu1 %v11432_v48  ;;  %v3207_v35 = vmul.f32 %v12769_v21, %v14959_v12  ;;  %v12250_v12 = vunpack.i.h.bf16 %v15155_v6 }
 0x637   : > { %10343 = vmatprep.mubr.msk.f32.mxu1 %vm900_vm13, %v3204_v37 }
 0x638   : > { %v12771_v2 = vpop.eup %12770  ;;  %10344 = vmatmul.mubr.msk.f32.gmra.mrb[32].mxu1 %vm900_vm13, %v3205_v44  ;;  %v15213_v8 = vpack.c.bf16 %v12250_v12, %v12249_v47 }
 0x639   : > { %11435 = vmatpush3.bf16.msra.mxu1 %v11432_v48  ;;  %10346 = vmatprep.mubr.msk.f32.mxu1 %vm900_vm13, %v3206_v45  ;;  %v12773_v27 = vpop.eup %12772  ;;  %v3208_v24 = vmul.f32 %v12771_v2, %v14977_v22  ;;  %v11444_v22 = vpack.c.bf16 %v12245_v51, %v12244_v23 }
 0x63a   : > { %11437 = vmatprep.subr.bf16.mxu1 %v11436_v63  ;;  %v3209_v25 = vmul.f32 %v12773_v27, %v14973_v5  ;;  %v15215_v5 = vpop.xlane.xlu0 %3811  ;;  %v15217_v55 = vpop.xlane.xlu1 %3808 }
 0x63b   : > { %v12775_v56 = vpop.eup %12774 }
 0x63c   : > { %10347 = vmatmul.mubr.msk.f32.gmra.mrb[34].mxu1 %vm900_vm13, %v3207_v35  ;;  %v3211_v16 = vmul.f32 %v12775_v56, %v14983_v46 }
 0x63d   : > { %11439 = vmatpush3.bf16.msra.mxu1 %v11436_v63  ;;  %10349 = vmatprep.mubr.msk.f32.mxu1 %vm900_vm13, %v3208_v24 }
 0x63e   : > { %11441 = vmatprep.subr.bf16.mxu1 %v11440_v58  ;;  %v15220_v6 = vpop.xlane.xlu0 %3817 }
 0x63f   : > { %v12777_v41 = vpop.eup %12776 }
 0x640   : > { %10350 = vmatmul.mubr.msk.f32.gmra.mrb[36].mxu1 %vm900_vm13, %v3209_v25  ;;  %v3210_v49 = vmul.f32 %v12777_v41, %v14991_v40  ;;  %v15222_v40 = vpop.xlane.xlu1 %3814 }
 0x641   : > { %11443 = vmatpush3.bf16.msra.mxu1 %v11440_v58 }
 0x642   : > { %11445 = vmatprep.subr.bf16.mxu1 %v11444_v22  ;;  %10352 = vmatprep.mubr.msk.f32.mxu1 %vm900_vm13, %v3210_v49  ;;  %v15224_v30 = vpop.xlane.xlu0 %3823 }
 0x644   : > { %10353 = vmatmul.mubr.msk.f32.gmra.mrb[38].mxu1 %vm900_vm13, %v3211_v16  ;;  %v15226_v1 = vpop.xlane.xlu1 %3820 }
 0x645   : > { %11447 = vmatpush3.bf16.msra.mxu1 %v11444_v22 }
 0x646   : > { %11479 = vmatprep.subr.bf16.mxu1 %v15213_v8  ;;  %v15228_v46 = vpop.xlane.xlu0 %3829 }
 0x648   : > { %v15230_v0 = vpop.xlane.xlu1 %3826 }
 0x64a   : > { %v15232_v48 = vpop.xlane.xlu0 %3835 }
 0x64c   : > { %v15234_v37 = vpop.xlane.xlu1 %3832 }
 0x661   : > { %v15236_v44 = vpop.xlane.xlu0 %4281 }
 0x662   : > { %v15238_v21 = vpop.xlane.xlu1 %4278 }
 0x665   : > { %v2829_v45 = vpop.xlane.xlu0 %2828 }
 0x666   : > { %v2857_v2 = vsub.f32 %v15059_v50, %v2829_v45  ;;  %v2832_v3 = vpop.xlane.xlu1 %2831  ;;  %v4254_v45 = vsub.f32 %v14832_v4, %v15049_v13 }
 0x667   : > { %v2858_v36 = vsub.f32 %v15067_v34, %v2832_v3 }
 0x668   : > { %v2867_v63 = vmul.f32 1.442695, %v2857_v2  ;;  %v4271_v4 = vmul.f32 1.442695, %v4254_v45 }
 0x669   : > { %v2869_v35 = vmul.f32 1.442695, %v2858_v36  ;;  %v2835_v27 = vpop.xlane.xlu0 %2834 }
 0x66a   : > { %12778 = vpow2.f32 %v2867_v63  ;;  %v2859_v24 = vsub.f32 %v15076_v38, %v2835_v27  ;;  %v2838_v51 = vpop.xlane.xlu1 %2837  ;;  %v17640_v27 = vld [vmem:[#allocation37_spill] sm:$0xff] }
 0x66b   : > { %12780 = vpow2.f32 %v2869_v35  ;;  %v2860_v23 = vsub.f32 %v15082_v7, %v2838_v51 }
 0x66c   : > { %v2871_v58 = vmul.f32 1.442695, %v2859_v24  ;;  %v4253_v24 = vsub.f32 %v17640_v27, %v15051_v9  ;;  %v17642_v27 = vld [vmem:[#allocation20_spill] sm:$0xff] }
 0x66d   : > { %v2873_v56 = vmul.f32 1.442695, %v2860_v23  ;;  %v2841_v25 = vpop.xlane.xlu0 %2840 }
 0x66e   : > { %v2861_v41 = vsub.f32 %v15088_v14, %v2841_v25  ;;  %v2844_v12 = vpop.xlane.xlu1 %2843  ;;  %v17641_v25 = vld [vmem:[#allocation40_spill] sm:$0xff] }
 0x66f   : > { %12782 = vpow2.f32 %v2873_v56  ;;  %v2862_v50 = vsub.f32 %v15094_v19, %v2844_v12 }
 0x670   : > { %12784 = vpow2.f32 %v2871_v58  ;;  %v2875_v34 = vmul.f32 1.442695, %v2861_v41  ;;  %v4255_v41 = vsub.f32 %v17641_v25, %v15069_v18 }
 0x671   : > { %v2877_v47 = vmul.f32 1.442695, %v2862_v50  ;;  %v2847_v22 = vpop.xlane.xlu0 %2846 }
 0x672   : > { %v2863_v49 = vsub.f32 %v15100_v39, %v2847_v22  ;;  %v2850_v38 = vpop.xlane.xlu1 %2849 }
 0x673   : > { %12786 = vpow2.f32 %v2877_v47  ;;  %v2864_v16 = vsub.f32 %v15106_v33, %v2850_v38  ;;  %v4273_v47 = vmul.f32 1.442695, %v4255_v41 }
 0x674   : > { %v15248_v7 = vpop.eup %12778  ;;  %12788 = vpow2.f32 %v2875_v34  ;;  %v2879_v2 = vmul.f32 1.442695, %v2863_v49 }
 0x675   : > { %v15252_v14 = vpop.eup %12780  ;;  %v2881_v19 = vmul.f32 1.442695, %v2864_v16  ;;  %v2853_v3 = vpop.xlane.xlu0 %2852  ;;  %v2887_v36 = vsel %vm900_vm13, %v15248_v7, 0.0 }
 0x676   : > { %v2865_v39 = vsub.f32 %v15112_v11, %v2853_v3  ;;  %v2856_v63 = vpop.xlane.xlu1 %2855  ;;  %2888 = vadd.xlane.f32.xlu0 %v2887_v36  ;;  %v2890_v33 = vsel %vm900_vm13, %v15252_v14, 0.0 }
 0x677   : > { %12790 = vpow2.f32 %v2881_v19  ;;  %v2866_v35 = vsub.f32 %v15118_v53, %v2856_v63  ;;  %2891 = vadd.xlane.f32.xlu1 %v2890_v33  ;;  %v4269_v53 = vmul.f32 1.442695, %v4253_v24  ;;  %v4332_v24 = vmul.f32 %v13767_v28, %v17642_v27 }
 0x678   : > { %12792 = vpow2.f32 %v2879_v2  ;;  %v2883_v51 = vmul.f32 1.442695, %v2865_v39 }
 0x679   : > { %v15260_v13 = vpop.eup %12782  ;;  %v2885_v23 = vmul.f32 1.442695, %v2866_v35 }
 0x67a   : > { %v2896_v11 = vsel %vm900_vm13, %v15260_v13, 0.0  ;;  %v15266_v58 = vpop.eup %12784 }
 0x67b   : > { %12794 = vpow2.f32 %v2885_v23  ;;  %2897 = vadd.xlane.f32.xlu1 %v2896_v11  ;;  %v2893_v12 = vsel %vm900_vm13, %v15266_v58, 0.0  ;;  %v17644_v11 = vld [vmem:[#allocation22_spill] sm:$0xff] }
 0x67c   : > { %12796 = vpow2.f32 %v4271_v4  ;;  %v4331_v4 = vmul.f32 %v13767_v28, %v17605_v32 }
 0x67d   : > { %v15268_v56 = vpop.eup %12786  ;;  %12798 = vpow2.f32 %v2883_v51  ;;  %v17643_v51 = vld [vmem:[#allocation23_spill] sm:$0xff] }
 0x67e   : > { %v2902_v9 = vsel %vm900_vm13, %v15268_v56, 0.0  ;;  %v15276_v50 = vpop.eup %12788  ;;  %12800 = vpow2.f32 %v4269_v53  ;;  %v4333_v23 = vmul.f32 %v13767_v28, %v17643_v51  ;;  %v4334_v53 = vmul.f32 %v13767_v28, %v17644_v11 }
 0x67f   : > { %2903 = vadd.xlane.f32.xlu0 %v2902_v9  ;;  %2894 = vadd.xlane.f32.xlu1 %v2893_v12  ;;  %v2899_v18 = vsel %vm900_vm13, %v15276_v50, 0.0  ;;  %12802 = vpow2.f32 %v4273_v47  ;;  %v12281_v25 = vpack.i.bf16 %v4332_v24, %v4331_v4  ;;  %v4335_v9 = vmul.f32 %v13767_v28, %v13427_v29  ;;  %v17645_v47 = vld [vmem:[#allocation16_spill] sm:$0xff]  ;;  %v15329_v29 = vpop.permute.xlu1 %12267 }
 0x680   : > { %v12286_v41 = vpack.i.bf16 %v4334_v53, %v4333_v23  ;;  %v4336_v12 = vmul.f32 %v13767_v28, %v13424_v26  ;;  %v15333_v26 = vpop.xlane.xlu0 %4287  ;;  %v12255_v53 = vunpack.i.h.bf16 %v15163_v15 }
 0x681   : > { %v15278_v34 = vpop.eup %12790 }
 0x682   : > { %v2908_v22 = vsel %vm900_vm13, %v15278_v34, 0.0  ;;  %v15284_v49 = vpop.eup %12792  ;;  %v12291_v32 = vpack.i.bf16 %v4336_v12, %v4335_v9 }
 0x683   : > { %2909 = vadd.xlane.f32.xlu0 %v2908_v22  ;;  %2900 = vadd.xlane.f32.xlu1 %v2899_v18  ;;  %v2905_v2 = vsel %vm900_vm13, %v15284_v49, 0.0  ;;  %v4256_v22 = vsub.f32 %v17645_v47, %v15061_v31 }
 0x685   : > { %v15286_v38 = vpop.eup %12794  ;;  %v4275_v18 = vmul.f32 1.442695, %v4256_v22  ;;  %v12260_v22 = vunpack.i.h.bf16 %v15159_v60 }
 0x686   : > { %v15288_v16 = vpop.eup %12796  ;;  %v2914_v45 = vsel %vm900_vm13, %v15286_v38, 0.0 }
 0x687   : > { %v15294_v19 = vpop.eup %12798  ;;  %2915 = vadd.xlane.f32.xlu0 %v2914_v45  ;;  %2906 = vadd.xlane.f32.xlu1 %v2905_v2  ;;  %v4298_v3 = vsel %vm900_vm13, %v15288_v16, 0.0  ;;  %12804 = vpow2.f32 %v4275_v18  ;;  %v12259_v18 = vunpack.i.l.bf16 %v15159_v60 }
 0x688   : > { %v2911_v36 = vsel %vm900_vm13, %v15294_v19, 0.0  ;;  %v15300_v39 = vpop.eup %12800 }
 0x689   : > { %v4295_v63 = vsel %vm900_vm13, %v15300_v39, 0.0  ;;  %v15304_v33 = vpop.eup %12802 }
 0x68a   : > { %v4301_v35 = vsel %vm900_vm13, %v15304_v33, 0.0 }
 0x68b   : > { %4299 = vadd.xlane.f32.xlu0 %v4298_v3  ;;  %2912 = vadd.xlane.f32.xlu1 %v2911_v36 }
 0x68f   : > { %4296 = vadd.xlane.f32.xlu1 %v4295_v63  ;;  %v15337_v63 = vpop.permute.xlu0 %12272 }
 0x691   : > { %v15325_v45 = vpop.eup %12804 }
 0x692   : > { %v4304_v2 = vsel %vm900_vm13, %v15325_v45, 0.0 }
 0x693   : > { %4302 = vadd.xlane.f32.xlu1 %v4301_v35 }
 0x6a1   : > { %12282 = vrot.lane.b32.xlu0 %v12281_v25, %s13132_s30  ;;  %v12254_v25 = vunpack.i.l.bf16 %v15163_v15 }
 0x6a4   : > { %12287 = vrot.lane.b32.xlu1 %v12286_v41, %s13132_s30 }
 0x6a8   : > { %12292 = vrot.lane.b32.xlu1 %v12291_v32, %s13132_s30 }
 0x6ab   : > { %v15331_v3 = vpop.xlane.xlu1 %4284 }
 0x6ae   : > { %v15339_v35 = vpop.xlane.xlu0 %4293 }
 0x6af   : > { %v15335_v36 = vpop.xlane.xlu1 %4290 }
 0x6b3   : > { %v15341_v31 = vpop.permute.xlu1 %12277 }
 0x6c0   : > { %4305 = vadd.xlane.f32.xlu0 %v4304_v2  ;;  %v11482_v2 = vpack.c.bf16 %v12255_v53, %v12254_v25  ;;  %v12270_v53 = vunpack.i.h.bf16 %v15329_v29 }
 0x703   : > { %v2889_v4 = vpop.xlane.xlu0 %2888 }
 0x704   : > { %12806 = vrcp.f32 %v2889_v4  ;;  %v2892_v27 = vpop.xlane.xlu1 %2891 }
 0x705   : > { %12808 = vrcp.f32 %v2892_v27 }
 0x708   : > { %v2898_v24 = vpop.xlane.xlu1 %2897 }
 0x709   : > { %12810 = vrcp.f32 %v2898_v24  ;;  %v11486_v24 = vpack.c.bf16 %v12260_v22, %v12259_v18 }
 0x70c   : > { %v2895_v51 = vpop.xlane.xlu1 %2894  ;;  %v2904_v23 = vpop.xlane.xlu0 %2903 }
 0x70d   : > { %12812 = vrcp.f32 %v2895_v51 }
 0x70e   : > { %v12807_v11 = vpop.eup %12806  ;;  %12814 = vrcp.f32 %v2904_v23 }
 0x70f   : > { %v12809_v41 = vpop.eup %12808  ;;  %v2927_v9 = vmul.f32 %v12807_v11, %v15248_v7  ;;  %v12265_v7 = vunpack.i.h.bf16 %v15173_v43 }
 0x710   : > { %v2928_v12 = vmul.f32 %v12809_v41, %v15252_v14  ;;  %v2901_v32 = vpop.xlane.xlu1 %2900  ;;  %v2910_v47 = vpop.xlane.xlu0 %2909  ;;  %v12264_v14 = vunpack.i.l.bf16 %v15173_v43  ;;  %v12269_v43 = vunpack.i.l.bf16 %v15329_v29  ;;  %v12274_v29 = vunpack.i.l.bf16 %v15337_v63 }
 0x711   : > { %12816 = vrcp.f32 %v2901_v32  ;;  %10375 = vmatprep.mubr.msk.f32.mxu1 %vm900_vm13, %v2927_v9  ;;  %v12275_v9 = vunpack.i.h.bf16 %v15337_v63 }
 0x712   : > { %10376 = vmatmul.mubr.msk.f32.vlgmr.msra.gmra.mrb[30].mxu1 %vm900_vm13, %v2928_v12  ;;  %12818 = vrcp.f32 %v2910_v47  ;;  %v11494_v12 = vpack.c.bf16 %v12270_v53, %v12269_v43 }
 0x713   : > { %11481 = vmatpush3.bf16.msra.mxu1 %v15213_v8  ;;  %v12811_v27 = vpop.eup %12810  ;;  %v11490_v8 = vpack.c.bf16 %v12265_v7, %v12264_v14  ;;  %v12280_v7 = vunpack.i.h.bf16 %v15341_v31  ;;  %v12279_v14 = vunpack.i.l.bf16 %v15341_v31 }
 0x714   : > { %11483 = vmatprep.subr.bf16.mxu1 %v11482_v2  ;;  %v2907_v15 = vpop.xlane.xlu1 %2906  ;;  %v2916_v4 = vpop.xlane.xlu0 %2915  ;;  %v2930_v25 = vmul.f32 %v12811_v27, %v15260_v13 }
 0x715   : > { %12820 = vrcp.f32 %v2907_v15  ;;  %v11532_v31 = vpack.c.bf16 %v12280_v7, %v12279_v14 }
 0x716   : > { %12822 = vrcp.f32 %v2916_v4 }
 0x717   : > { %v12813_v51 = vpop.eup %12812  ;;  %11485 = vmatpush3.bf16.msra.mxu1 %v11482_v2 }
 0x718   : > { %11487 = vmatprep.subr.bf16.mxu1 %v11486_v24  ;;  %v2913_v60 = vpop.xlane.xlu1 %2912  ;;  %v2929_v23 = vmul.f32 %v12813_v51, %v15266_v58  ;;  %v12815_v11 = vpop.eup %12814 }
 0x719   : > { %12824 = vrcp.f32 %v2913_v60  ;;  %v2932_v13 = vmul.f32 %v12815_v11, %v15268_v56  ;;  %v11528_v56 = vpack.c.bf16 %v12275_v9, %v12274_v29  ;;  %v15376_v22 = vpop.xlane.xlu0 %4299  ;;  %v4534_v29 = vld [vmem:[%s17423_s5 + $0x10] sm:$0xff] }
 0x71a   : > { %12826 = vrcp.f32 %v15217_v55  ;;  %10378 = vmatprep.mubr.msk.f32.mxu1 %vm900_vm13, %v2929_v23 }
 0x71b   : > { %v12817_v41 = vpop.eup %12816  ;;  %11489 = vmatpush3.bf16.msra.mxu1 %v11486_v24  ;;  %12828 = vrcp.f32 %v15215_v5 }
 0x71c   : > { %10379 = vmatmul.mubr.msk.f32.gmra.mrb[32].mxu1 %vm900_vm13, %v2930_v25  ;;  %11491 = vmatprep.subr.bf16.mxu1 %v11490_v8  ;;  %v2931_v58 = vmul.f32 %v12817_v41, %v15276_v50  ;;  %12830 = vrcp.f32 %v15222_v40  ;;  %v12819_v55 = vpop.eup %12818  ;;  %v15368_v47 = vpop.xlane.xlu1 %4296  ;;  %v4533_v25 = vld [vmem:[%s17423_s5 + $0x8] sm:$0xff] }
 0x71d   : > { %12832 = vrcp.f32 %v15220_v6  ;;  %v2934_v50 = vmul.f32 %v12819_v55, %v15278_v34  ;;  %v17647_v55 = vld [vmem:[#allocation21_spill] sm:$0xff] }
 0x71e   : > { %10381 = vmatprep.mubr.msk.f32.mxu1 %vm900_vm13, %v2931_v58  ;;  %12834 = vrcp.f32 %v15226_v1 }
 0x71f   : > { %v12821_v32 = vpop.eup %12820  ;;  %11493 = vmatpush3.bf16.msra.mxu1 %v11490_v8  ;;  %12836 = vrcp.f32 %v15224_v30  ;;  %v12283_v30 = vpop.permute.xlu0 %12282 }
 0x720   : > { %10382 = vmatmul.mubr.msk.f32.gmra.mrb[34].mxu1 %vm900_vm13, %v2932_v13  ;;  %11495 = vmatprep.subr.bf16.mxu1 %v11494_v12  ;;  %v2933_v5 = vmul.f32 %v12821_v32, %v15284_v49  ;;  %v12823_v40 = vpop.eup %12822  ;;  %v15381_v6 = vpop.xlane.xlu1 %4302  ;;  %12838 = vrcp.f32 %v15230_v0  ;;  %v12285_v27 = vunpack.i.h.bf16 %v12283_v30  ;;  %v12284_v24 = vunpack.i.l.bf16 %v12283_v30 }
 0x721   : > { %v2936_v34 = vmul.f32 %v12823_v40, %v15286_v38  ;;  %12840 = vrcp.f32 %v15228_v46 }
 0x722   : > { %10384 = vmatprep.mubr.msk.f32.mxu1 %vm900_vm13, %v2933_v5  ;;  %12842 = vrcp.f32 %v15234_v37  ;;  %v11536_v23 = vpack.c.bf16 %v12285_v27, %v12284_v24  ;;  %v17659_v27 = vld [vmem:[#allocation44_spill] sm:$0xff]  ;;  %v17660_v24 = vld [vmem:[#allocation45_spill] sm:$0xff] }
 0x723   : > { %v12825_v63 = vpop.eup %12824  ;;  %11497 = vmatpush3.bf16.msra.mxu1 %v11494_v12  ;;  %12844 = vrcp.f32 %v15232_v48  ;;  %v17648_v12 = vld [vmem:[#allocation18_spill] sm:$0xff] }
 0x724   : > { %v12827_v18 = vpop.eup %12826  ;;  %10385 = vmatmul.mubr.msk.f32.gmra.mrb[36].mxu1 %vm900_vm13, %v2934_v50  ;;  %11529 = vmatprep.subr.bf16.mxu1 %v11528_v56  ;;  %v2935_v49 = vmul.f32 %v12825_v63, %v15294_v19  ;;  %v12288_v38 = vpop.permute.xlu1 %12287  ;;  %12846 = vrcp.f32 %v15238_v21 }
 0x725   : > { %v12829_v1 = vpop.eup %12828  ;;  %v3847_v15 = vmul.f32 %v12827_v18, %v15001_v57  ;;  %v12290_v51 = vunpack.i.h.bf16 %v12288_v38  ;;  %v12289_v60 = vunpack.i.l.bf16 %v12288_v38  ;;  %12848 = vrcp.f32 %v15236_v44  ;;  %v17650_v18 = vld [vmem:[#allocation29_spill] sm:$0xff]  ;;  %v17653_v38 = vld [vmem:[#allocation39_spill] sm:$0xff] }
 0x726   : > { %10387 = vmatprep.mubr.msk.f32.mxu1 %vm900_vm13, %v2935_v49  ;;  %v12831_v2 = vpop.eup %12830  ;;  %v3848_v0 = vmul.f32 %v12829_v1, %v14999_v17  ;;  %12850 = vrcp.f32 %v15331_v3 }
 0x727   : > { %v12833_v19 = vpop.eup %12832  ;;  %v3849_v4 = vmul.f32 %v12831_v2, %v15011_v10  ;;  %v11540_v43 = vpack.c.bf16 %v12290_v51, %v12289_v60  ;;  %12852 = vrcp.f32 %v15333_v26 }
 0x728   : > { %10388 = vmatmul.mubr.msk.f32.gmra.mrb[38].mxu1 %vm900_vm13, %v2936_v34  ;;  %v12835_v57 = vpop.eup %12834  ;;  %v3850_v17 = vmul.f32 %v12833_v19, %v15009_v52  ;;  %v12293_v48 = vpop.permute.xlu1 %12292  ;;  %12854 = vrcp.f32 %v15335_v36 }
 0x729   : > { %10445 = vmatprep.mubr.msk.f32.mxu1 %vm900_vm13, %v3847_v15  ;;  %v12837_v46 = vpop.eup %12836  ;;  %v3851_v37 = vmul.f32 %v12835_v57, %v15019_v54  ;;  %v12295_v11 = vunpack.i.h.bf16 %v12293_v48  ;;  %v12294_v53 = vunpack.i.l.bf16 %v12293_v48  ;;  %12856 = vrcp.f32 %v15339_v35  ;;  %v4535_v35 = vld [vmem:[%s17423_s5 + $0x18] sm:$0xff] }
 0x72a   : > { %v12839_v10 = vpop.eup %12838  ;;  %v3852_v52 = vmul.f32 %v12837_v46, %v15017_v20  ;;  %12858 = vrcp.f32 %v15368_v47  ;;  %v11552_v47 = vpack.c.bf16 %v4535_v35, %v4534_v29  ;;  %v17657_v57 = vld [vmem:[#allocation34_spill] sm:$0xff] }
 0x72b   : > { %v12841_v21 = vpop.eup %12840  ;;  %v3853_v54 = vmul.f32 %v12839_v10, %v15027_v61  ;;  %v4532_v61 = vld [vmem:[%s17423_s5] sm:$0xff]  ;;  %v11544_v41 = vpack.c.bf16 %v12295_v11, %v12294_v53  ;;  %12860 = vrcp.f32 %v15376_v22  ;;  %v13033_v29 = vld [vmem:[%s13259_s12 + $0x10] sm:$0xff] }
 0x72c   : > { %10446 = vmatmul.mubr.msk.f32.vlgmr.msra.gmra.mrb[30].mxu1 %vm900_vm13, %v3848_v0  ;;  %v12843_v8 = vpop.eup %12842  ;;  %v3854_v44 = vmul.f32 %v12841_v21, %v15025_v59  ;;  %v17646_v59 = vld [vmem:[#allocation19_spill] sm:$0xff]  ;;  %v11548_v36 = vpack.c.bf16 %v4533_v25, %v4532_v61  ;;  %12862 = vrcp.f32 %v15381_v6  ;;  %v17651_v6 = vld [vmem:[#allocation42_spill] sm:$0xff]  ;;  %v13031_v61 = vld [vmem:[%s13259_s12 + $0x8] sm:$0xff] }
 0x72d   : > { %11531 = vmatpush3.bf16.msra.mxu1 %v11528_v56  ;;  %10448 = vmatprep.mubr.msk.f32.mxu1 %vm900_vm13, %v3849_v4  ;;  %v12845_v20 = vpop.eup %12844  ;;  %v3855_v3 = vmul.f32 %v12843_v8, %v15035_v62  ;;  %v17649_v56 = vld [vmem:[#allocation41_spill] sm:$0xff]  ;;  %v17656_v4 = vld [vmem:[#allocation35_spill] sm:$0xff] }
 0x72e   : > { %11533 = vmatprep.subr.bf16.mxu1 %v11532_v31  ;;  %v12847_v26 = vpop.eup %12846  ;;  %v3856_v62 = vmul.f32 %v12845_v20, %v17646_v59  ;;  %v13030_v8 = vld [vmem:[%s17427_s9] sm:$0x3f] }
 0x72f   : > { %v12849_v58 = vpop.eup %12848  ;;  %v4317_v9 = vmul.f32 %v12847_v26, %v17647_v55  ;;  %v13032_v26 = vld [vmem:[%s13259_s12] sm:$0xff] }
 0x730   : > { %10449 = vmatmul.mubr.msk.f32.gmra.mrb[32].mxu1 %vm900_vm13, %v3850_v17  ;;  %v12851_v13 = vpop.eup %12850  ;;  %v4318_v32 = vmul.f32 %v12849_v58, %v17648_v12 }
 0x731   : > { %11535 = vmatpush3.bf16.msra.mxu1 %v11532_v31  ;;  %10451 = vmatprep.mubr.msk.f32.mxu1 %vm900_vm13, %v3851_v37  ;;  %v12853_v5 = vpop.eup %12852  ;;  %v4319_v40 = vmul.f32 %v12851_v13, %v15161_v42  ;;  %v17661_v31 = vld [vmem:[#allocation36_spill] sm:$0xff] }
 0x732   : > { %11537 = vmatprep.subr.bf16.mxu1 %v11536_v23  ;;  %v12855_v50 = vpop.eup %12854  ;;  %v4320_v63 = vmul.f32 %v12853_v5, %v17649_v56 }
 0x733   : > { %v12857_v22 = vpop.eup %12856  ;;  %v4321_v49 = vmul.f32 %v12855_v50, %v17650_v18 }
 0x734   : > { %10452 = vmatmul.mubr.msk.f32.gmra.mrb[34].mxu1 %vm900_vm13, %v3852_v52  ;;  %v12859_v1 = vpop.eup %12858  ;;  %v4322_v42 = vmul.f32 %v12857_v22, %v17651_v6  ;;  %v17662_v52 = vld [vmem:[#allocation8_spill] sm:$0xff] }
 0x735   : > { %11539 = vmatpush3.bf16.msra.mxu1 %v11536_v23  ;;  %10454 = vmatprep.mubr.msk.f32.mxu1 %vm900_vm13, %v3853_v54  ;;  %v12861_v34 = vpop.eup %12860  ;;  %v4323_v2 = vmul.f32 %v12859_v1, %v15300_v39  ;;  %v17652_v39 = vld [vmem:[#allocation32_spill] sm:$0xff]  ;;  %v4538_v21 = vsub.s32 0, %v17662_v52 }
 0x736   : > { %11541 = vmatprep.subr.bf16.mxu1 %v11540_v43  ;;  %v12863_v15 = vpop.eup %12862  ;;  %v4324_v7 = vmul.f32 %v12861_v34, %v15288_v16  ;;  %v17654_v16 = vld [vmem:[#allocation33_spill] sm:$0xff]  ;;  %v13035_v22 = vld [vmem:[%s13259_s12 + $0x20] sm:$0xff] }
 0x737   : > { %v4325_v14 = vmul.f32 %v12863_v15, %v15304_v33  ;;  %v17655_v33 = vld [vmem:[#allocation38_spill] sm:$0xff]  ;;  %v15485_v11 = vrot.slane %v13030_v8, %v4538_v21  ;;  %v13036_v34 = vld [vmem:[%s13259_s12 + $0x28] sm:$0xff] }
 0x738   : > { %10455 = vmatmul.mubr.msk.f32.gmra.mrb[36].mxu1 %vm900_vm13, %v3854_v44 }
 0x739   : > { %11543 = vmatpush3.bf16.msra.mxu1 %v11540_v43  ;;  %10457 = vmatprep.mubr.msk.f32.mxu1 %vm900_vm13, %v3855_v3 }
 0x73a   : > { %11545 = vmatprep.subr.bf16.mxu1 %v11544_v41 }
 0x73c   : > { %10458 = vmatmul.mubr.msk.f32.gmra.mrb[38].mxu1 %vm900_vm13, %v3856_v62 }
 0x73d   : > { %11547 = vmatpush3.bf16.msra.mxu1 %v11544_v41  ;;  %10515 = vmatprep.mubr.msk.f32.mxu1 %vm900_vm13, %v4317_v9 }
 0x73e   : > { %11549 = vmatprep.subr.bf16.mxu1 %v11548_v36 }
 0x740   : > { %10516 = vmatmul.mubr.msk.f32.vlgmr.msra.gmra.mrb[30].mxu1 %vm900_vm13, %v4318_v32  ;;  %v13034_v32 = vld [vmem:[%s13259_s12 + $0x18] sm:$0xff] }
 0x741   : > { %10518 = vmatprep.mubr.msk.f32.mxu1 %vm900_vm13, %v4319_v40  ;;  %11551 = vmatpush3.bf16.msra.mxu1 %v11548_v36 }
 0x742   : > { %11553 = vmatprep.subr.bf16.mxu1 %v11552_v47 }
 0x744   : > { %10519 = vmatmul.mubr.msk.f32.gmra.mrb[32].mxu1 %vm900_vm13, %v4320_v63 }
 0x745   : > { %10521 = vmatprep.mubr.msk.f32.mxu1 %vm900_vm13, %v4321_v49  ;;  %11555 = vmatpush3.bf16.msra.mxu1 %v11552_v47 }
 0x748   : > { %10522 = vmatmul.mubr.msk.f32.gmra.mrb[34].mxu1 %vm900_vm13, %v4322_v42 }
 0x749   : > { %10524 = vmatprep.mubr.msk.f32.mxu1 %vm900_vm13, %v4323_v2 }
 0x74c   : > { %10525 = vmatmul.mubr.msk.f32.gmra.mrb[36].mxu1 %vm900_vm13, %v4324_v7 }
 0x74d   : > { %10527 = vmatprep.mubr.msk.f32.mxu1 %vm900_vm13, %v4325_v14  ;;  %v4306_v30 = vpop.xlane.xlu0 %4305  ;;  %v13037_v14 = vld [vmem:[%s13259_s12 + $0x48] sm:$0xff] }
 0x74e   : > { %12864 = vrcp.f32 %v4306_v30 }
 0x758   : > { %v12865_v0 = vpop.eup %12864 }
 0x759   : > { %v4326_v19 = vmul.f32 %v12865_v0, %v15325_v45  ;;  %v17658_v45 = vld [vmem:[#allocation46_spill] sm:$0xff] }
 0x75b   : > { %10528 = vmatmul.mubr.msk.f32.gmra.mrb[38].mxu1 %vm900_vm13, %v4326_v19 }
 0x75c   : > { %10538 = vmatprep.mubr.msk.f32.mxu1 %vm449_vm0, %v17652_v39  ;;  %v13038_v39 = vld [vmem:[%s13259_s12 + $0x30] sm:$0xff] }
 0x75f   : > { %10539 = vmatmul.mubr.msk.f32.vlgmr.msra.gmra.mrb[40].mxu1 %vm449_vm0, %v17653_v38 }
 0x760   : > { %10541 = vmatprep.mubr.msk.f32.mxu1 %vm449_vm0, %v17654_v16 }
 0x763   : > { %10542 = vmatmul.mubr.msk.f32.gmra.mrb[42].mxu1 %vm449_vm0, %v17655_v33  ;;  %v13039_v33 = vld [vmem:[%s13259_s12 + $0x38] sm:$0xff] }
 0x764   : > { %10544 = vmatprep.mubr.msk.f32.mxu1 %vm449_vm0, %v17656_v4 }
 0x767   : > { %10545 = vmatmul.mubr.msk.f32.gmra.mrb[44].mxu1 %vm449_vm0, %v17657_v57 }
 0x768   : > { %10547 = vmatprep.mubr.msk.f32.mxu1 %vm449_vm0, %v17658_v45 }
 0x76b   : > { %10548 = vmatmul.mubr.msk.f32.gmra.mrb[46].mxu1 %vm449_vm0, %v17659_v27  ;;  %v13040_v27 = vld [vmem:[%s13259_s12 + $0x40] sm:$0xff] }
 0x76c   : > { %10550 = vmatprep.mubr.msk.f32.mxu1 %vm449_vm0, %v17660_v24 }
 0x76f   : > { %10551 = vmatmul.mubr.msk.f32.gmra.mrb[48].mxu1 %vm449_vm0, %v17661_v31 }
 0x813   : > { %v10517_v17 = vpop.f32.mrb[30].mxu1 }
 0x814   : > { %v4473_v46 = vpop.f32.mrb[31].mxu1 }
 0x815   : > { %10553 = vmatprep.mubr.msk.f32.mxu1 %vm449_vm0, %v4473_v46 }
 0x816   : > { %10554 = vmatmul.mubr.msk.f32.gmra.mrb[50].mxu1 %vm449_vm0, %v10517_v17 }
 0x817   : > { %v10520_v37 = vpop.f32.mrb[32].mxu1 }
 0x818   : > { %v4483_v10 = vpop.f32.mrb[33].mxu1 }
 0x819   : > { %10556 = vmatprep.mubr.msk.f32.mxu1 %vm449_vm0, %v4483_v10 }
 0x81a   : > { %10557 = vmatmul.mubr.msk.f32.gmra.mrb[52].mxu1 %vm449_vm0, %v10520_v37 }
 0x81b   : > { %v10523_v51 = vpop.f32.mrb[34].mxu1 }
 0x81c   : > { %v4493_v60 = vpop.f32.mrb[35].mxu1 }
 0x81d   : > { %10559 = vmatprep.mubr.msk.f32.mxu1 %vm449_vm0, %v4493_v60 }
 0x81e   : > { %10560 = vmatmul.mubr.msk.f32.gmra.mrb[54].mxu1 %vm449_vm0, %v10523_v51 }
 0x81f   : > { %v10526_v23 = vpop.f32.mrb[36].mxu1 }
 0x820   : > { %v4503_v48 = vpop.f32.mrb[37].mxu1 }
 0x821   : > { %10562 = vmatprep.mubr.msk.f32.mxu1 %vm449_vm0, %v4503_v48 }
 0x822   : > { %10563 = vmatmul.mubr.msk.f32.gmra.mrb[56].mxu1 %vm449_vm0, %v10526_v23 }
 0x82e   : > { %v10529_v54 = vpop.f32.mrb[38].mxu1 }
 0x82f   : > { %v4513_v53 = vpop.f32.mrb[39].mxu1 }
 0x830   : > { %10565 = vmatprep.mubr.msk.f32.mxu1 %vm449_vm0, %v4513_v53 }
 0x831   : > { %10566 = vmatmul.mubr.msk.f32.gmra.mrb[58].mxu1 %vm449_vm0, %v10529_v54 }
 0x832   : > { %v10540_v43 = vpop.f32.mrb[40].mxu1 }
 0x833   : > { %v4672_v44 = vadd.f32 %v10540_v43, %v15485_v11  ;;  %v4666_v20 = vpop.f32.mrb[41].mxu1 }
 0x834   : > { %v4667_v3 = vadd.f32 %v4666_v20, %v15485_v11 }
 0x835   : > { %v4766_v25 = vadd.f32 %v13031_v61, %v4672_v44 }
 0x836   : > { %v4765_v41 = vadd.f32 %v13032_v26, %v4667_v3  ;;  %v10543_v59 = vpop.f32.mrb[42].mxu1 }
 0x837   : > { %v4676_v62 = vpop.f32.mrb[43].mxu1  ;;  %v4788_v36 = vsel %vm449_vm0, %v4766_v25, 0.0  ;;  %v4682_v58 = vadd.f32 %v10543_v59, %v15485_v11 }
 0x838   : > { %v4677_v55 = vadd.f32 %v4676_v62, %v15485_v11  ;;  %4789 = vadd.xlane.f32.xlu0 %v4788_v36  ;;  %v4785_v9 = vsel %vm449_vm0, %v4765_v41, 0.0 }
 0x839   : > { %4786 = vadd.xlane.f32.xlu1 %v4785_v9  ;;  %v4768_v47 = vadd.f32 %v13034_v32, %v4682_v58 }
 0x83a   : > { %v4767_v35 = vadd.f32 %v13033_v29, %v4677_v55  ;;  %v10546_v13 = vpop.f32.mrb[44].mxu1 }
 0x83b   : > { %v4686_v12 = vpop.f32.mrb[45].mxu1  ;;  %v4692_v63 = vadd.f32 %v10546_v13, %v15485_v11  ;;  %v4794_v49 = vsel %vm449_vm0, %v4768_v47, 0.0 }
 0x83c   : > { %v4687_v5 = vadd.f32 %v4686_v12, %v15485_v11  ;;  %v4791_v40 = vsel %vm449_vm0, %v4767_v35, 0.0 }
 0x83d   : > { %4792 = vadd.xlane.f32.xlu0 %v4791_v40  ;;  %v4770_v2 = vadd.f32 %v13036_v34, %v4692_v63 }
 0x83e   : > { %v10549_v50 = vpop.f32.mrb[46].mxu1  ;;  %v4769_v18 = vadd.f32 %v13035_v22, %v4687_v5 }
 0x83f   : > { %v4696_v56 = vpop.f32.mrb[47].mxu1  ;;  %v4702_v19 = vadd.f32 %v10549_v50, %v15485_v11  ;;  %v4800_v16 = vsel %vm449_vm0, %v4770_v2, 0.0 }
 0x840   : > { %v4697_v15 = vadd.f32 %v4696_v56, %v15485_v11  ;;  %v4797_v7 = vsel %vm449_vm0, %v4769_v18, 0.0 }
 0x841   : > { %4795 = vadd.xlane.f32.xlu0 %v4794_v49  ;;  %v4772_v4 = vadd.f32 %v13039_v33, %v4702_v19  ;;  %v13041_v33 = vld [vmem:[%s13280_s16 + $0x8] sm:$0xff] }
 0x842   : > { %v10552_v1 = vpop.f32.mrb[48].mxu1  ;;  %v4771_v38 = vadd.f32 %v13038_v39, %v4697_v15 }
 0x843   : > { %v4712_v6 = vadd.f32 %v10552_v1, %v15485_v11  ;;  %v4706_v42 = vpop.f32.mrb[49].mxu1  ;;  %v4806_v31 = vsel %vm449_vm0, %v4772_v4, 0.0 }
 0x844   : > { %v4707_v57 = vadd.f32 %v4706_v42, %v15485_v11  ;;  %v4803_v45 = vsel %vm449_vm0, %v4771_v38, 0.0 }
 0x845   : > { %v15509_v30 = vadd.f32 %v13037_v14, %v4712_v6  ;;  %4798 = vadd.xlane.f32.xlu0 %v4797_v7 }
 0x846   : > { %v4773_v24 = vadd.f32 %v13040_v27, %v4707_v57  ;;  %v5094_v57 = vld [vmem:[%s17424_s6] sm:$0xff]  ;;  %v5096_v27 = vld [vmem:[%s17424_s6 + $0x10] sm:$0xff] }
 0x847   : > { %v4812_v0 = vsel %vm449_vm0, %v15509_v30, 0.0 }
 0x848   : > { %4813 = vadd.xlane.f32.xlu1 %v4812_v0  ;;  %v4809_v17 = vsel %vm449_vm0, %v4773_v24, 0.0 }
 0x849   : > { %4801 = vadd.xlane.f32.xlu0 %v4800_v16 }
 0x84d   : > { %4804 = vadd.xlane.f32.xlu0 %v4803_v45  ;;  %v5095_v45 = vld [vmem:[%s17424_s6 + $0x8] sm:$0xff] }
 0x851   : > { %4807 = vadd.xlane.f32.xlu0 %v4806_v31 }
 0x855   : > { %4810 = vadd.xlane.f32.xlu0 %v4809_v17 }
 0x8c5   : > { %v4790_v46 = vpop.xlane.xlu0 %4789 }
 0x8c6   : > { %v4847_v37 = vmul.f32 0.03125, %v4790_v46  ;;  %v4787_v10 = vpop.xlane.xlu1 %4786  ;;  %v11556_v46 = vpack.c.bf16 %v5095_v45, %v5094_v57 }
 0x8c7   : > { %v4846_v51 = vmul.f32 0.03125, %v4787_v10 }
 0x8c8   : > { %v15522_v60 = vsub.f32 %v4766_v25, %v4847_v37  ;;  %v5097_v37 = vld [vmem:[%s17424_s6 + $0x18] sm:$0xff]  ;;  %11557 = vmatprep.subr.bf16.mxu0 %v11556_v46 }
 0x8c9   : > { %v15524_v23 = vsub.f32 %v4765_v41, %v4846_v51  ;;  %11559 = vmatpush3.bf16.msra.mxu0 %v11556_v46 }
 0x8ca   : > { %v4793_v48 = vpop.xlane.xlu0 %4792  ;;  %v4887_v52 = vmul.f32 %v15522_v60, %v15522_v60 }
 0x8cb   : > { %v4848_v21 = vmul.f32 0.03125, %v4793_v48  ;;  %v4886_v54 = vmul.f32 %v15524_v23, %v15524_v23 }
 0x8cc   : > { %v4909_v8 = vsel %vm449_vm0, %v4887_v52, 0.0  ;;  %v11560_v52 = vpack.c.bf16 %v5097_v37, %v5096_v27 }
 0x8cd   : > { %v15531_v53 = vsub.f32 %v4767_v35, %v4848_v21  ;;  %4910 = vadd.xlane.f32.xlu1 %v4909_v8  ;;  %v4906_v43 = vsel %vm449_vm0, %v4886_v54, 0.0  ;;  %v13043_v8 = vld [vmem:[%s13280_s16 + $0x18] sm:$0xff] }
 0x8ce   : > { %v4796_v44 = vpop.xlane.xlu0 %4795  ;;  %4907 = vadd.xlane.f32.xlu0 %v4906_v43  ;;  %11561 = vmatprep.subr.bf16.mxu0 %v11560_v52 }
 0x8cf   : > { %v4849_v20 = vmul.f32 0.03125, %v4796_v44  ;;  %v4888_v3 = vmul.f32 %v15531_v53, %v15531_v53  ;;  %v13044_v44 = vld [vmem:[%s13280_s16 + $0x10] sm:$0xff]  ;;  %11563 = vmatpush3.bf16.msra.mxu0 %v11560_v52 }
 0x8d1   : > { %v15536_v61 = vsub.f32 %v4768_v47, %v4849_v20  ;;  %v4912_v25 = vsel %vm449_vm0, %v4888_v3, 0.0 }
 0x8d2   : > { %v4799_v26 = vpop.xlane.xlu0 %4798  ;;  %4913 = vadd.xlane.f32.xlu0 %v4912_v25 }
 0x8d3   : > { %v4850_v41 = vmul.f32 0.03125, %v4799_v26  ;;  %v4889_v59 = vmul.f32 %v15536_v61, %v15536_v61 }
 0x8d5   : > { %v15541_v62 = vsub.f32 %v4769_v18, %v4850_v41  ;;  %v4915_v36 = vsel %vm449_vm0, %v4889_v59, 0.0  ;;  %v4814_v13 = vpop.xlane.xlu1 %4813 }
 0x8d6   : > { %v4802_v58 = vpop.xlane.xlu0 %4801  ;;  %4916 = vadd.xlane.f32.xlu1 %v4915_v36  ;;  %v4855_v5 = vmul.f32 0.03125, %v4814_v13 }
 0x8d7   : > { %v4851_v55 = vmul.f32 0.03125, %v4802_v58  ;;  %v4890_v9 = vmul.f32 %v15541_v62, %v15541_v62  ;;  %v13045_v58 = vld [vmem:[%s13280_s16 + $0x28] sm:$0xff] }
 0x8d8   : > { %v15557_v18 = vsub.f32 %v15509_v30, %v4855_v5 }
 0x8d9   : > { %v15546_v29 = vsub.f32 %v4770_v2, %v4851_v55  ;;  %v4918_v35 = vsel %vm449_vm0, %v4890_v9, 0.0  ;;  %v13046_v9 = vld [vmem:[%s13280_s16 + $0x20] sm:$0xff] }
 0x8da   : > { %v4805_v12 = vpop.xlane.xlu0 %4804  ;;  %4919 = vadd.xlane.f32.xlu0 %v4918_v35  ;;  %v4895_v7 = vmul.f32 %v15557_v18, %v15557_v18 }
 0x8db   : > { %v4852_v32 = vmul.f32 0.03125, %v4805_v12  ;;  %v4891_v47 = vmul.f32 %v15546_v29, %v15546_v29 }
 0x8dc   : > { %v4933_v19 = vsel %vm449_vm0, %v4895_v7, 0.0 }
 0x8dd   : > { %v15551_v40 = vsub.f32 %v4771_v38, %v4852_v32  ;;  %v4921_v50 = vsel %vm449_vm0, %v4891_v47, 0.0 }
 0x8de   : > { %v4808_v56 = vpop.xlane.xlu0 %4807  ;;  %4922 = vadd.xlane.f32.xlu1 %v4921_v50 }
 0x8df   : > { %v4853_v63 = vmul.f32 0.03125, %v4808_v56  ;;  %v4892_v22 = vmul.f32 %v15551_v40, %v15551_v40  ;;  %v13047_v56 = vld [vmem:[%s13280_s16 + $0x38] sm:$0xff] }
 0x8e1   : > { %v15559_v49 = vsub.f32 %v4772_v4, %v4853_v63  ;;  %v4924_v1 = vsel %vm449_vm0, %v4892_v22, 0.0  ;;  %v13048_v22 = vld [vmem:[%s13280_s16 + $0x30] sm:$0xff] }
 0x8e2   : > { %v4811_v6 = vpop.xlane.xlu0 %4810  ;;  %4925 = vadd.xlane.f32.xlu0 %v4924_v1 }
 0x8e3   : > { %v4854_v42 = vmul.f32 0.03125, %v4811_v6  ;;  %v4893_v34 = vmul.f32 %v15559_v49, %v15559_v49 }
 0x8e5   : > { %v15564_v2 = vsub.f32 %v4773_v24, %v4854_v42  ;;  %v4927_v15 = vsel %vm449_vm0, %v4893_v34, 0.0  ;;  %v13042_v24 = vld [vmem:[%s13280_s16] sm:$0xff] }
 0x8e6   : > { %4928 = vadd.xlane.f32.xlu1 %v4927_v15 }
 0x8e7   : > { %v4894_v14 = vmul.f32 %v15564_v2, %v15564_v2 }
 0x8e9   : > { %v10555_v30 = vpop.f32.mrb[50].mxu1  ;;  %v4930_v0 = vsel %vm449_vm0, %v4894_v14, 0.0 }
 0x8ea   : > { %v4722_v39 = vadd.f32 %v10555_v30, %v15485_v11  ;;  %v4716_v38 = vpop.f32.mrb[51].mxu1  ;;  %4931 = vadd.xlane.f32.xlu0 %v4930_v0  ;;  %4934 = vadd.xlane.f32.xlu1 %v4933_v19  ;;  %v13049_v30 = vld [vmem:[%s13280_s16 + $0x48] sm:$0xff]  ;;  %v13050_v19 = vld [vmem:[%s13280_s16 + $0x40] sm:$0xff]  ;;  %s8680_s16 = scalar_lea.sflag [#allocation5], %s370_s14 }
 0x8eb   : > { %v4717_v16 = vadd.f32 %v4716_v38, %v15485_v11 }
 0x8ec   : > { %v15576_v4 = vadd.f32 %v13041_v33, %v4722_v39 }
 0x8ed   : > { %v15588_v31 = vadd.f32 %v13042_v24, %v4717_v16  ;;  %v10558_v17 = vpop.f32.mrb[52].mxu1 }
 0x8ee   : > { %v4732_v10 = vadd.f32 %v10558_v17, %v15485_v11  ;;  %v4726_v51 = vpop.f32.mrb[53].mxu1  ;;  %v4818_v48 = vsel %vm449_vm0, %v15576_v4, 0.0 }
 0x8ef   : > { %v4727_v21 = vadd.f32 %v4726_v51, %v15485_v11  ;;  %4819 = vadd.xlane.f32.xlu1 %v4818_v48  ;;  %v4815_v54 = vsel %vm449_vm0, %v15588_v31, 0.0 }
 0x8f0   : > { %v15600_v43 = vadd.f32 %v13043_v8, %v4732_v10  ;;  %4816 = vadd.xlane.f32.xlu0 %v4815_v54 }
 0x8f1   : > { %v15603_v20 = vadd.f32 %v13044_v44, %v4727_v21  ;;  %v10561_v3 = vpop.f32.mrb[54].mxu1 }
 0x8f2   : > { %v4742_v25 = vadd.f32 %v10561_v3, %v15485_v11  ;;  %v4736_v26 = vpop.f32.mrb[55].mxu1  ;;  %v4824_v41 = vsel %vm449_vm0, %v15600_v43, 0.0 }
 0x8f3   : > { %v4737_v59 = vadd.f32 %v4736_v26, %v15485_v11  ;;  %4825 = vadd.xlane.f32.xlu1 %v4824_v41  ;;  %v4821_v36 = vsel %vm449_vm0, %v15603_v20, 0.0  ;;  %v17663_v41 = vld [vmem:[#allocation9_spill] sm:$0xff] }
 0x8f4   : > { %v15612_v55 = vadd.f32 %v13045_v58, %v4742_v25  ;;  %4822 = vadd.xlane.f32.xlu0 %v4821_v36 }
 0x8f5   : > { %v15615_v35 = vadd.f32 %v13046_v9, %v4737_v59  ;;  %v10564_v13 = vpop.f32.mrb[56].mxu1 }
 0x8f6   : > { %v4752_v12 = vadd.f32 %v10564_v13, %v15485_v11  ;;  %v4746_v32 = vpop.f32.mrb[57].mxu1  ;;  %v4830_v47 = vsel %vm449_vm0, %v15612_v55, 0.0 }
 0x8f7   : > { %v4747_v5 = vadd.f32 %v4746_v32, %v15485_v11  ;;  %4831 = vadd.xlane.f32.xlu1 %v4830_v47  ;;  %v4827_v50 = vsel %vm449_vm0, %v15615_v35, 0.0  ;;  %v17664_v32 = vld [vmem:[#allocation10_spill] sm:$0xff] }
 0x8f8   : > { %v15624_v63 = vadd.f32 %v13047_v56, %v4752_v12  ;;  %4828 = vadd.xlane.f32.xlu0 %v4827_v50 }
 0x8f9   : > { %v15627_v1 = vadd.f32 %v13048_v22, %v4747_v5 }
 0x8fa   : > { %v4836_v6 = vsel %vm449_vm0, %v15624_v63, 0.0 }
 0x8fb   : > { %4837 = vadd.xlane.f32.xlu1 %v4836_v6  ;;  %v4833_v42 = vsel %vm449_vm0, %v15627_v1, 0.0 }
 0x8fc   : > { %4834 = vadd.xlane.f32.xlu0 %v4833_v42 }
 0x904   : > { %v10567_v34 = vpop.f32.mrb[58].mxu1 }
 0x905   : > { %v4762_v15 = vadd.f32 %v10567_v34, %v15485_v11  ;;  %v4756_v7 = vpop.f32.mrb[59].mxu1 }
 0x906   : > { %v4757_v14 = vadd.f32 %v4756_v7, %v15485_v11 }
 0x907   : > { %v15636_v0 = vadd.f32 %v13049_v30, %v4762_v15 }
 0x908   : > { %v15639_v39 = vadd.f32 %v13050_v19, %v4757_v14 }
 0x909   : > { %v4842_v38 = vsel %vm449_vm0, %v15636_v0, 0.0 }
 0x90a   : > { %4843 = vadd.xlane.f32.xlu1 %v4842_v38  ;;  %v4839_v16 = vsel %vm449_vm0, %v15639_v39, 0.0 }
 0x90b   : > { %4840 = vadd.xlane.f32.xlu0 %v4839_v16 }
 0x95a   : > { %v4911_v33 = vpop.xlane.xlu1 %4910 }
 0x95b   : > { %v4967_v57 = vmul.f32 0.03125, %v4911_v33  ;;  %v4908_v45 = vpop.xlane.xlu0 %4907 }
 0x95c   : > { %v4966_v27 = vmul.f32 0.03125, %v4908_v45 }
 0x95d   : > { %v4987_v24 = vadd.f32 1e-05, %v4967_v57 }
 0x95e   : > { %v4986_v11 = vadd.f32 1e-05, %v4966_v27 }
 0x95f   : > { %12866 = vrsqrt.f32 %v4987_v24  ;;  %v4914_v17 = vpop.xlane.xlu0 %4913 }
 0x960   : > { %12868 = vrsqrt.f32 %v4986_v11  ;;  %v4968_v46 = vmul.f32 0.03125, %v4914_v17 }
 0x962   : > { %v4988_v37 = vadd.f32 1e-05, %v4968_v46 }
 0x963   : > { %v4917_v10 = vpop.xlane.xlu1 %4916 }
 0x964   : > { %12870 = vrsqrt.f32 %v4988_v37  ;;  %v4969_v51 = vmul.f32 0.03125, %v4917_v10 }
 0x966   : > { %v4989_v48 = vadd.f32 1e-05, %v4969_v51 }
 0x967   : > { %v4920_v52 = vpop.xlane.xlu0 %4919 }
 0x968   : > { %12872 = vrsqrt.f32 %v4989_v48  ;;  %v4970_v21 = vmul.f32 0.03125, %v4920_v52 }
 0x969   : > { %v12867_v54 = vpop.eup %12866 }
 0x96a   : > { %v12869_v8 = vpop.eup %12868  ;;  %v5027_v44 = vmul.f32 %v12867_v54, %v15522_v60  ;;  %v4990_v3 = vadd.f32 1e-05, %v4970_v21 }
 0x96b   : > { %v4923_v25 = vpop.xlane.xlu1 %4922  ;;  %v5026_v26 = vmul.f32 %v12869_v8, %v15524_v23 }
 0x96c   : > { %v5051_v59 = vmul.f32 %v17663_v41, %v5027_v44  ;;  %12874 = vrsqrt.f32 %v4990_v3  ;;  %v4971_v36 = vmul.f32 0.03125, %v4923_v25 }
 0x96d   : > { %v5050_v58 = vmul.f32 %v17663_v41, %v5026_v26 }
 0x96e   : > { %v12871_v9 = vpop.eup %12870  ;;  %v4991_v13 = vadd.f32 1e-05, %v4971_v36  ;;  %v15654_v50 = vadd.f32 %v17664_v32, %v5051_v59 }
 0x96f   : > { %v4926_v12 = vpop.xlane.xlu0 %4925  ;;  %v15650_v47 = vadd.f32 %v17664_v32, %v5050_v58  ;;  %v5028_v5 = vmul.f32 %v12871_v9, %v15531_v53 }
 0x970   : > { %12876 = vrsqrt.f32 %v4991_v13  ;;  %v4972_v60 = vmul.f32 0.03125, %v4926_v12 }
 0x971   : > { %10576 = vmatprep.mubr.msk.f32.mxu0 %vm449_vm0, %v15650_v47  ;;  %v5052_v23 = vmul.f32 %v17663_v41, %v5028_v5 }
 0x972   : > { %v12873_v56 = vpop.eup %12872  ;;  %v4992_v22 = vadd.f32 1e-05, %v4972_v60  ;;  %10577 = vmatmul.mubr.msk.f32.vlgmr.msra.gmra.mrb[80].mxu0 %vm449_vm0, %v15654_v50 }
 0x973   : > { %v4929_v6 = vpop.xlane.xlu1 %4928  ;;  %v15662_v42 = vadd.f32 %v17664_v32, %v5052_v23  ;;  %v5029_v53 = vmul.f32 %v12873_v56, %v15536_v61 }
 0x974   : > { %12878 = vrsqrt.f32 %v4992_v22  ;;  %v4973_v34 = vmul.f32 0.03125, %v4929_v6 }
 0x975   : > { %10579 = vmatprep.mubr.msk.f32.mxu0 %vm449_vm0, %v15662_v42  ;;  %v5053_v15 = vmul.f32 %v17663_v41, %v5029_v53 }
 0x976   : > { %v12875_v7 = vpop.eup %12874  ;;  %v4993_v14 = vadd.f32 1e-05, %v4973_v34 }
 0x977   : > { %v4932_v30 = vpop.xlane.xlu0 %4931  ;;  %v4935_v19 = vpop.xlane.xlu1 %4934  ;;  %v15669_v38 = vadd.f32 %v17664_v32, %v5053_v15  ;;  %v5030_v16 = vmul.f32 %v12875_v7, %v15541_v62 }
 0x978   : > { %12880 = vrsqrt.f32 %v4993_v14  ;;  %v4974_v33 = vmul.f32 0.03125, %v4932_v30  ;;  %v4975_v57 = vmul.f32 0.03125, %v4935_v19 }
 0x979   : > { %10580 = vmatmul.mubr.msk.f32.gmra.mrb[82].mxu0 %vm449_vm0, %v15669_v38  ;;  %v5054_v61 = vmul.f32 %v17663_v41, %v5030_v16 }
 0x97a   : > { %v12877_v45 = vpop.eup %12876  ;;  %v4994_v27 = vadd.f32 1e-05, %v4974_v33  ;;  %v4995_v24 = vadd.f32 1e-05, %v4975_v57 }
 0x97b   : > { %v15676_v11 = vadd.f32 %v17664_v32, %v5054_v61  ;;  %v5031_v17 = vmul.f32 %v12877_v45, %v15546_v29 }
 0x97c   : > { %12882 = vrsqrt.f32 %v4994_v27  ;;  %v4820_v46 = vpop.xlane.xlu1 %4819 }
 0x97d   : > { %12884 = vrsqrt.f32 %v4995_v24  ;;  %v4857_v62 = vmul.f32 0.03125, %v4820_v46  ;;  %v4817_v37 = vpop.xlane.xlu0 %4816  ;;  %10582 = vmatprep.mubr.msk.f32.mxu0 %vm449_vm0, %v15676_v11  ;;  %v5055_v10 = vmul.f32 %v17663_v41, %v5031_v17 }
 0x97e   : > { %v12879_v51 = vpop.eup %12878  ;;  %v4856_v48 = vmul.f32 0.03125, %v4817_v37 }
 0x97f   : > { %v15683_v52 = vsub.f32 %v15576_v4, %v4857_v62  ;;  %v15686_v21 = vadd.f32 %v17664_v32, %v5055_v10  ;;  %v5032_v29 = vmul.f32 %v12879_v51, %v15551_v40 }
 0x980   : > { %v15690_v54 = vsub.f32 %v15588_v31, %v4856_v48  ;;  %v4826_v8 = vpop.xlane.xlu1 %4825 }
 0x981   : > { %v4859_v44 = vmul.f32 0.03125, %v4826_v8  ;;  %v4823_v3 = vpop.xlane.xlu0 %4822  ;;  %10583 = vmatmul.mubr.msk.f32.gmra.mrb[84].mxu0 %vm449_vm0, %v15686_v21  ;;  %v4897_v25 = vmul.f32 %v15683_v52, %v15683_v52  ;;  %v5056_v4 = vmul.f32 %v17663_v41, %v5032_v29 }
 0x982   : > { %v12881_v26 = vpop.eup %12880  ;;  %v4858_v59 = vmul.f32 0.03125, %v4823_v3  ;;  %v4896_v36 = vmul.f32 %v15690_v54, %v15690_v54 }
 0x983   : > { %v15700_v40 = vsub.f32 %v15600_v43, %v4859_v44  ;;  %v4939_v31 = vsel %vm449_vm0, %v4897_v25, 0.0  ;;  %v15704_v58 = vadd.f32 %v17664_v32, %v5056_v4  ;;  %v5033_v9 = vmul.f32 %v12881_v26, %v15559_v49 }
 0x984   : > { %v15708_v13 = vsub.f32 %v15603_v20, %v4858_v59  ;;  %4940 = vadd.xlane.f32.xlu1 %v4939_v31  ;;  %v4832_v12 = vpop.xlane.xlu1 %4831  ;;  %v4936_v5 = vsel %vm449_vm0, %v4896_v36, 0.0  ;;  %v5512_v31 = vld [vmem:[%s17426_s8 + $0x10] sm:$0xff] }
 0x985   : > { %v4861_v60 = vmul.f32 0.03125, %v4832_v12  ;;  %4937 = vadd.xlane.f32.xlu0 %v4936_v5  ;;  %v4829_v23 = vpop.xlane.xlu0 %4828  ;;  %10585 = vmatprep.mubr.msk.f32.mxu0 %vm449_vm0, %v15704_v58  ;;  %v4899_v43 = vmul.f32 %v15700_v40, %v15700_v40  ;;  %v5057_v56 = vmul.f32 %v17663_v41, %v5033_v9  ;;  %v5513_v9 = vld [vmem:[%s17426_s8 + $0x18] sm:$0xff]  ;;  %v5514_v12 = vld [vmem:[%s17426_s8 + $0x20] sm:$0xff] }
 0x986   : > { %v12883_v22 = vpop.eup %12882  ;;  %v4860_v49 = vmul.f32 0.03125, %v4829_v23  ;;  %v4898_v20 = vmul.f32 %v15708_v13, %v15708_v13  ;;  %v11568_v5 = vpack.c.bf16 %v5513_v9, %v5512_v31 }
 0x987   : > { %v12885_v6 = vpop.eup %12884  ;;  %v15719_v53 = vsub.f32 %v15612_v55, %v4861_v60  ;;  %v4945_v34 = vsel %vm449_vm0, %v4899_v43, 0.0  ;;  %v15723_v15 = vadd.f32 %v17664_v32, %v5057_v56  ;;  %v5034_v7 = vmul.f32 %v12883_v22, %v15564_v2  ;;  %v5515_v60 = vld [vmem:[%s17426_s8 + $0x28] sm:$0xff]  ;;  %v5516_v43 = vld [vmem:[%s17426_s8 + $0x30] sm:$0xff]  ;;  %v5517_v56 = vld [vmem:[%s17426_s8 + $0x38] sm:$0xff] }
 0x988   : > { %v15727_v14 = vsub.f32 %v15615_v35, %v4860_v49  ;;  %4946 = vadd.xlane.f32.xlu1 %v4945_v34  ;;  %v4838_v30 = vpop.xlane.xlu1 %4837  ;;  %v4942_v19 = vsel %vm449_vm0, %v4898_v20, 0.0  ;;  %v5035_v16 = vmul.f32 %v12885_v6, %v15557_v18  ;;  %v11572_v23 = vpack.c.bf16 %v5515_v60, %v5514_v12 }
 0x989   : > { %v4863_v33 = vmul.f32 0.03125, %v4838_v30  ;;  %4943 = vadd.xlane.f32.xlu0 %v4942_v19  ;;  %v4835_v55 = vpop.xlane.xlu0 %4834  ;;  %10586 = vmatmul.mubr.msk.f32.gmra.mrb[86].mxu0 %vm449_vm0, %v15723_v15  ;;  %v4901_v57 = vmul.f32 %v15719_v53, %v15719_v53  ;;  %v5058_v2 = vmul.f32 %v17663_v41, %v5034_v7  ;;  %v11576_v22 = vpack.c.bf16 %v5517_v56, %v5516_v43 }
 0x98a   : > { %v4862_v61 = vmul.f32 0.03125, %v4835_v55  ;;  %v4900_v35 = vmul.f32 %v15727_v14, %v15727_v14  ;;  %v5059_v45 = vmul.f32 %v17663_v41, %v5035_v16 }
 0x98b   : > { %v15740_v27 = vsub.f32 %v15624_v63, %v4863_v33  ;;  %v4951_v18 = vsel %vm449_vm0, %v4901_v57, 0.0  ;;  %v15744_v24 = vadd.f32 %v17664_v32, %v5058_v2 }
 0x98c   : > { %v15747_v17 = vsub.f32 %v15627_v1, %v4862_v61  ;;  %4952 = vadd.xlane.f32.xlu1 %v4951_v18  ;;  %v4948_v46 = vsel %vm449_vm0, %v4900_v35, 0.0  ;;  %v15751_v62 = vadd.f32 %v17664_v32, %v5059_v45 }
 0x98d   : > { %4949 = vadd.xlane.f32.xlu0 %v4948_v46  ;;  %10588 = vmatprep.mubr.msk.f32.mxu0 %vm449_vm0, %v15744_v24  ;;  %v4903_v63 = vmul.f32 %v15740_v27, %v15740_v27 }
 0x98e   : > { %10589 = vmatmul.mubr.msk.f32.gmra.mrb[88].mxu0 %vm449_vm0, %v15751_v62  ;;  %v4902_v1 = vmul.f32 %v15747_v17, %v15747_v17 }
 0x98f   : > { %v4957_v37 = vsel %vm449_vm0, %v4903_v63, 0.0 }
 0x990   : > { %4958 = vadd.xlane.f32.xlu1 %v4957_v37  ;;  %v4954_v10 = vsel %vm449_vm0, %v4902_v1, 0.0 }
 0x991   : > { %4955 = vadd.xlane.f32.xlu0 %v4954_v10 }
 0x997   : > { %v4844_v51 = vpop.xlane.xlu1 %4843 }
 0x998   : > { %v4865_v48 = vmul.f32 0.03125, %v4844_v51  ;;  %v4841_v29 = vpop.xlane.xlu0 %4840 }
 0x999   : > { %v4864_v8 = vmul.f32 0.03125, %v4841_v29 }
 0x99a   : > { %v15764_v44 = vsub.f32 %v15636_v0, %v4865_v48  ;;  %v5510_v0 = vld [vmem:[%s17426_s8] sm:$0xff] }
 0x99b   : > { %v15767_v3 = vsub.f32 %v15639_v39, %v4864_v8  ;;  %v5511_v39 = vld [vmem:[%s17426_s8 + $0x8] sm:$0xff] }
 0x99c   : > { %v4905_v25 = vmul.f32 %v15764_v44, %v15764_v44  ;;  %v11564_v36 = vpack.c.bf16 %v5511_v39, %v5510_v0 }
 0x99d   : > { %v4904_v4 = vmul.f32 %v15767_v3, %v15767_v3 }
 0x99e   : > { %v4963_v26 = vsel %vm449_vm0, %v4905_v25, 0.0  ;;  %11565 = vmatprep.subr.bf16.mxu1 %v11564_v36 }
 0x99f   : > { %4964 = vadd.xlane.f32.xlu1 %v4963_v26  ;;  %v4960_v59 = vsel %vm449_vm0, %v4904_v4, 0.0  ;;  %11567 = vmatpush3.bf16.msra.mxu1 %v11564_v36 }
 0x9a0   : > { %4961 = vadd.xlane.f32.xlu0 %v4960_v59  ;;  %11569 = vmatprep.subr.bf16.mxu1 %v11568_v5 }
 0x9a3   : > { %11571 = vmatpush3.bf16.msra.mxu1 %v11568_v5 }
 0x9a4   : > { %11573 = vmatprep.subr.bf16.mxu1 %v11572_v23 }
 0x9a7   : > { %11575 = vmatpush3.bf16.msra.mxu1 %v11572_v23 }
 0x9a8   : > { %11577 = vmatprep.subr.bf16.mxu1 %v11576_v22 }
 0x9ab   : > { %11579 = vmatpush3.bf16.msra.mxu1 %v11576_v22 }
 0xa11   : > { %v4941_v49 = vpop.xlane.xlu1 %4940 }
 0xa12   : > { %v4977_v20 = vmul.f32 0.03125, %v4941_v49  ;;  %v4938_v6 = vpop.xlane.xlu0 %4937 }
 0xa13   : > { %v4976_v34 = vmul.f32 0.03125, %v4938_v6 }
 0xa14   : > { %v4997_v7 = vadd.f32 1e-05, %v4977_v20 }
 0xa15   : > { %v4996_v30 = vadd.f32 1e-05, %v4976_v34  ;;  %v4947_v19 = vpop.xlane.xlu1 %4946 }
 0xa16   : > { %12886 = vrsqrt.f32 %v4997_v7  ;;  %v4979_v16 = vmul.f32 0.03125, %v4947_v19  ;;  %v4944_v33 = vpop.xlane.xlu0 %4943 }
 0xa17   : > { %12888 = vrsqrt.f32 %v4996_v30  ;;  %v4978_v55 = vmul.f32 0.03125, %v4944_v33 }
 0xa18   : > { %v4999_v57 = vadd.f32 1e-05, %v4979_v16 }
 0xa19   : > { %v4998_v2 = vadd.f32 1e-05, %v4978_v55  ;;  %v4953_v61 = vpop.xlane.xlu1 %4952 }
 0xa1a   : > { %12890 = vrsqrt.f32 %v4999_v57  ;;  %v4981_v35 = vmul.f32 0.03125, %v4953_v61  ;;  %v4950_v45 = vpop.xlane.xlu0 %4949 }
 0xa1b   : > { %12892 = vrsqrt.f32 %v4998_v2  ;;  %v4980_v18 = vmul.f32 0.03125, %v4950_v45 }
 0xa1c   : > { %v5001_v46 = vadd.f32 1e-05, %v4981_v35 }
 0xa1d   : > { %v5000_v63 = vadd.f32 1e-05, %v4980_v18  ;;  %v4959_v1 = vpop.xlane.xlu1 %4958 }
 0xa1e   : > { %12894 = vrsqrt.f32 %v5001_v46  ;;  %v4983_v37 = vmul.f32 0.03125, %v4959_v1  ;;  %v4956_v10 = vpop.xlane.xlu0 %4955 }
 0xa1f   : > { %12896 = vrsqrt.f32 %v5000_v63  ;;  %v4982_v51 = vmul.f32 0.03125, %v4956_v10 }
 0xa20   : > { %v12887_v48 = vpop.eup %12886  ;;  %v5003_v29 = vadd.f32 1e-05, %v4983_v37 }
 0xa21   : > { %v12889_v8 = vpop.eup %12888  ;;  %v5002_v25 = vadd.f32 1e-05, %v4982_v51  ;;  %v5037_v4 = vmul.f32 %v12887_v48, %v15683_v52  ;;  %v15870_v51 = vld [vmem:[%s17425_s7] ss:$0 sm:$0xff] }
 0xa22   : > { %12898 = vrsqrt.f32 %v5003_v29  ;;  %v5036_v26 = vmul.f32 %v12889_v8, %v15690_v54 }
 0xa23   : > { %12900 = vrsqrt.f32 %v5002_v25  ;;  %v5061_v59 = vmul.f32 %v17663_v41, %v5037_v4 }
 0xa24   : > { %v12891_v0 = vpop.eup %12890  ;;  %v5060_v39 = vmul.f32 %v17663_v41, %v5036_v26 }
 0xa25   : > { %v12893_v36 = vpop.eup %12892  ;;  %v5039_v31 = vmul.f32 %v12891_v0, %v15700_v40  ;;  %v15809_v5 = vadd.f32 %v17664_v32, %v5061_v59 }
 0xa26   : > { %v15805_v9 = vadd.f32 %v17664_v32, %v5060_v39  ;;  %v5038_v12 = vmul.f32 %v12893_v36, %v15708_v13 }
 0xa27   : > { %v5063_v52 = vmul.f32 %v17663_v41, %v5039_v31 }
 0xa28   : > { %v12895_v54 = vpop.eup %12894  ;;  %10591 = vmatprep.mubr.msk.f32.mxu0 %vm449_vm0, %v15805_v9  ;;  %v5062_v60 = vmul.f32 %v17663_v41, %v5038_v12 }
 0xa29   : > { %v12897_v23 = vpop.eup %12896  ;;  %10592 = vmatmul.mubr.msk.f32.gmra.mrb[90].mxu0 %vm449_vm0, %v15809_v5  ;;  %v5041_v40 = vmul.f32 %v12895_v54, %v15719_v53  ;;  %v15823_v56 = vadd.f32 %v17664_v32, %v5063_v52 }
 0xa2a   : > { %v15819_v43 = vadd.f32 %v17664_v32, %v5062_v60  ;;  %v5040_v13 = vmul.f32 %v12897_v23, %v15727_v14 }
 0xa2b   : > { %v5065_v22 = vmul.f32 %v17663_v41, %v5041_v40 }
 0xa2c   : > { %v12899_v49 = vpop.eup %12898  ;;  %10594 = vmatprep.mubr.msk.f32.mxu0 %vm449_vm0, %v15819_v43  ;;  %v4965_v20 = vpop.xlane.xlu1 %4964  ;;  %v5064_v6 = vmul.f32 %v17663_v41, %v5040_v13 }
 0xa2d   : > { %v12901_v34 = vpop.eup %12900  ;;  %10595 = vmatmul.mubr.msk.f32.gmra.mrb[92].mxu0 %vm449_vm0, %v15823_v56  ;;  %v4985_v53 = vmul.f32 0.03125, %v4965_v20  ;;  %v4962_v7 = vpop.xlane.xlu0 %4961  ;;  %v5043_v14 = vmul.f32 %v12899_v49, %v15740_v27  ;;  %v15837_v55 = vadd.f32 %v17664_v32, %v5065_v22 }
 0xa2e   : > { %v4984_v30 = vmul.f32 0.03125, %v4962_v7  ;;  %v15833_v19 = vadd.f32 %v17664_v32, %v5064_v6  ;;  %v5042_v16 = vmul.f32 %v12901_v34, %v15747_v17 }
 0xa2f   : > { %v5005_v33 = vadd.f32 1e-05, %v4985_v53  ;;  %v5067_v57 = vmul.f32 %v17663_v41, %v5043_v14 }
 0xa30   : > { %v5004_v2 = vadd.f32 1e-05, %v4984_v30  ;;  %10597 = vmatprep.mubr.msk.f32.mxu0 %vm449_vm0, %v15833_v19  ;;  %v5066_v61 = vmul.f32 %v17663_v41, %v5042_v16 }
 0xa31   : > { %12902 = vrsqrt.f32 %v5005_v33  ;;  %10598 = vmatmul.mubr.msk.f32.gmra.mrb[94].mxu0 %vm449_vm0, %v15837_v55  ;;  %v15849_v17 = vadd.f32 %v17664_v32, %v5067_v57 }
 0xa32   : > { %12904 = vrsqrt.f32 %v5004_v2  ;;  %v15846_v27 = vadd.f32 %v17664_v32, %v5066_v61 }
 0xa34   : > { %10600 = vmatprep.mubr.msk.f32.mxu0 %vm449_vm0, %v15846_v27 }
 0xa35   : > { %10601 = vmatmul.mubr.msk.f32.gmra.mrb[96].mxu0 %vm449_vm0, %v15849_v17 }
 0xa3b   : > { %v12903_v35 = vpop.eup %12902 }
 0xa3c   : > { %v12905_v45 = vpop.eup %12904  ;;  %v5045_v18 = vmul.f32 %v12903_v35, %v15764_v44 }
 0xa3d   : > { %v5044_v46 = vmul.f32 %v12905_v45, %v15767_v3 }
 0xa3e   : > { %v5069_v63 = vmul.f32 %v17663_v41, %v5045_v18 }
 0xa3f   : > { %v5068_v1 = vmul.f32 %v17663_v41, %v5044_v46 }
 0xa40   : > { %v15863_v10 = vadd.f32 %v17664_v32, %v5069_v63 }
 0xa41   : > { %v15860_v37 = vadd.f32 %v17664_v32, %v5068_v1 }
 0xa43   : > { %10603 = vmatprep.mubr.msk.f32.mxu0 %vm449_vm0, %v15860_v37 }
 0xa44   : > { %10604 = vmatmul.mubr.msk.f32.gmra.mrb[98].mxu0 %vm449_vm0, %v15863_v10 }
 0xa45   : > { %v10578_v44 = vpop.f32.mrb[80].mxu0 }
 0xa46   : > { %v5237_v41 = vadd.f32 %v10578_v44, %v15870_v51  ;;  %v5231_v3 = vpop.f32.mrb[81].mxu0 }
 0xa47   : > { %v5232_v48 = vadd.f32 %v15870_v51, %v5231_v3 }
 0xa48   : > { %v5351_v29 = vmul.f32 0.044715, %v5237_v41 }
 0xa49   : > { %v5350_v32 = vmul.f32 0.044715, %v5232_v48 }
 0xa4a   : > { %v5371_v8 = vmul.f32 %v5351_v29, %v5237_v41 }
 0xa4b   : > { %v5370_v25 = vmul.f32 %v5350_v32, %v5232_v48 }
 0xa4c   : > { %v5391_v4 = vmul.f32 %v5371_v8, %v5237_v41  ;;  %v10581_v26 = vpop.f32.mrb[82].mxu0 }
 0xa4d   : > { %v5390_v59 = vmul.f32 %v5370_v25, %v5232_v48  ;;  %v15877_v0 = vadd.f32 %v10581_v26, %v15870_v51  ;;  %v5241_v39 = vpop.f32.mrb[83].mxu0  ;;  %v5330_v25 = vmul.f32 0.5, %v5232_v48  ;;  %v5331_v26 = vmul.f32 0.5, %v5237_v41 }
 0xa4e   : > { %v5411_v36 = vadd.f32 %v5391_v4, %v5237_v41  ;;  %v15880_v31 = vadd.f32 %v15870_v51, %v5241_v39 }
 0xa4f   : > { %v5410_v12 = vadd.f32 %v5390_v59, %v5232_v48  ;;  %v5353_v52 = vmul.f32 0.044715, %v15877_v0 }
 0xa50   : > { %v5431_v54 = vmul.f32 0.7978846, %v5411_v36  ;;  %v5352_v60 = vmul.f32 0.044715, %v15880_v31 }
 0xa51   : > { %v5373_v23 = vmul.f32 %v5353_v52, %v15877_v0  ;;  %v5430_v40 = vmul.f32 0.7978846, %v5410_v12 }
 0xa52   : > { %12906 = vtanh.f32 %v5431_v54  ;;  %v5372_v13 = vmul.f32 %v5352_v60, %v15880_v31 }
 0xa53   : > { %v5393_v22 = vmul.f32 %v5373_v23, %v15877_v0  ;;  %12908 = vtanh.f32 %v5430_v40 }
 0xa54   : > { %v5392_v49 = vmul.f32 %v5372_v13, %v15880_v31  ;;  %v10584_v20 = vpop.f32.mrb[84].mxu0 }
 0xa55   : > { %v5413_v6 = vadd.f32 %v5393_v22, %v15877_v0  ;;  %v15890_v34 = vadd.f32 %v10584_v20, %v15870_v51  ;;  %v5251_v53 = vpop.f32.mrb[85].mxu0 }
 0xa56   : > { %v5412_v7 = vadd.f32 %v5392_v49, %v15880_v31  ;;  %v15894_v14 = vadd.f32 %v15870_v51, %v5251_v53 }
 0xa57   : > { %v5355_v30 = vmul.f32 0.044715, %v15890_v34  ;;  %v5433_v16 = vmul.f32 0.7978846, %v5413_v6 }
 0xa58   : > { %v5354_v33 = vmul.f32 0.044715, %v15894_v14  ;;  %v5432_v57 = vmul.f32 0.7978846, %v5412_v7 }
 0xa59   : > { %v5375_v2 = vmul.f32 %v5355_v30, %v15890_v34  ;;  %12910 = vtanh.f32 %v5433_v16 }
 0xa5a   : > { %v5374_v61 = vmul.f32 %v5354_v33, %v15894_v14  ;;  %12912 = vtanh.f32 %v5432_v57  ;;  %v5332_v33 = vmul.f32 0.5, %v15880_v31 }
 0xa5b   : > { %v5395_v35 = vmul.f32 %v5375_v2, %v15890_v34 }
 0xa5c   : > { %v12907_v45 = vpop.eup %12906  ;;  %v5394_v18 = vmul.f32 %v5374_v61, %v15894_v14  ;;  %v10587_v46 = vpop.f32.mrb[86].mxu0 }
 0xa5d   : > { %v12909_v63 = vpop.eup %12908  ;;  %v5471_v1 = vadd.f32 1.0, %v12907_v45  ;;  %v5415_v44 = vadd.f32 %v5395_v35, %v15890_v34  ;;  %v15904_v3 = vadd.f32 %v10587_v46, %v15870_v51  ;;  %v5261_v29 = vpop.f32.mrb[87].mxu0  ;;  %v5333_v35 = vmul.f32 0.5, %v15877_v0 }
 0xa5e   : > { %v5414_v32 = vadd.f32 %v5394_v18, %v15894_v14  ;;  %v15908_v8 = vadd.f32 %v15870_v51, %v5261_v29  ;;  %v5470_v4 = vadd.f32 1.0, %v12909_v63  ;;  %v5334_v0 = vmul.f32 0.5, %v15894_v14 }
 0xa5f   : > { %v5357_v59 = vmul.f32 0.044715, %v15904_v3  ;;  %v5435_v39 = vmul.f32 0.7978846, %v5415_v44  ;;  %v5491_v54 = vmul.f32 %v5471_v1, %v5331_v26  ;;  %v5337_v14 = vmul.f32 0.5, %v15904_v3 }
 0xa60   : > { %v5356_v36 = vmul.f32 0.044715, %v15908_v8  ;;  %v5490_v12 = vmul.f32 %v5470_v4, %v5330_v25  ;;  %v5434_v52 = vmul.f32 0.7978846, %v5414_v32 }
 0xa61   : > { %v5377_v60 = vmul.f32 %v5357_v59, %v15904_v3  ;;  %v10590_v23 = vpop.f32.mrb[88].mxu0  ;;  %12914 = vtanh.f32 %v5435_v39 }
 0xa62   : > { %v5376_v40 = vmul.f32 %v5356_v36, %v15908_v8  ;;  %v5277_v13 = vadd.f32 %v10590_v23, %v15870_v51  ;;  %v5271_v48 = vpop.f32.mrb[89].mxu0  ;;  %10622 = vmatprep.mubr.msk.f32.mxu1 %vm5522_vm14, %v5490_v12  ;;  %12916 = vtanh.f32 %v5434_v52  ;;  %v5335_v12 = vmul.f32 0.5, %v15890_v34 }
 0xa63   : > { %v12911_v41 = vpop.eup %12910  ;;  %v5397_v22 = vmul.f32 %v5377_v60, %v15904_v3  ;;  %v5272_v49 = vadd.f32 %v15870_v51, %v5271_v48  ;;  %10623 = vmatmul.mubr.msk.f32.vlgmr.msra.gmra.mrb[60].mxu1 %vm5522_vm14, %v5491_v54  ;;  %v5336_v48 = vmul.f32 0.5, %v15908_v8 }
 0xa64   : > { %v12913_v20 = vpop.eup %12912  ;;  %v5396_v6 = vmul.f32 %v5376_v40, %v15908_v8  ;;  %v5359_v53 = vmul.f32 0.044715, %v5277_v13  ;;  %v5473_v7 = vadd.f32 1.0, %v12911_v41 }
 0xa65   : > { %v5417_v30 = vadd.f32 %v5397_v22, %v15904_v3  ;;  %v5358_v16 = vmul.f32 0.044715, %v5272_v49  ;;  %v5472_v57 = vadd.f32 1.0, %v12913_v20 }
 0xa66   : > { %v5416_v2 = vadd.f32 %v5396_v6, %v15908_v8  ;;  %v5379_v61 = vmul.f32 %v5359_v53, %v5277_v13  ;;  %v5493_v1 = vmul.f32 %v5473_v7, %v5333_v35  ;;  %v5338_v7 = vmul.f32 0.5, %v5272_v49 }
 0xa67   : > { %v5378_v45 = vmul.f32 %v5358_v16, %v5272_v49  ;;  %v5492_v18 = vmul.f32 %v5472_v57, %v5332_v33  ;;  %v5437_v46 = vmul.f32 0.7978846, %v5417_v30  ;;  %v5339_v16 = vmul.f32 0.5, %v5277_v13 }
 0xa68   : > { %v5399_v63 = vmul.f32 %v5379_v61, %v5277_v13  ;;  %v5436_v44 = vmul.f32 0.7978846, %v5416_v2 }
 0xa69   : > { %v5398_v29 = vmul.f32 %v5378_v45, %v5272_v49  ;;  %10625 = vmatprep.mubr.msk.f32.mxu1 %vm5522_vm14, %v5492_v18  ;;  %12918 = vtanh.f32 %v5437_v46 }
 0xa6a   : > { %v5419_v32 = vadd.f32 %v5399_v63, %v5277_v13  ;;  %10626 = vmatmul.mubr.msk.f32.gmra.mrb[62].mxu1 %vm5522_vm14, %v5493_v1  ;;  %12920 = vtanh.f32 %v5436_v44 }
 0xa6b   : > { %v12915_v31 = vpop.eup %12914  ;;  %v5418_v25 = vadd.f32 %v5398_v29, %v5272_v49 }
 0xa6c   : > { %v12917_v4 = vpop.eup %12916  ;;  %v5475_v26 = vadd.f32 1.0, %v12915_v31  ;;  %v5439_v59 = vmul.f32 0.7978846, %v5419_v32 }
 0xa6d   : > { %v5474_v39 = vadd.f32 1.0, %v12917_v4  ;;  %v5438_v36 = vmul.f32 0.7978846, %v5418_v25 }
 0xa6e   : > { %12922 = vtanh.f32 %v5439_v59  ;;  %v5495_v54 = vmul.f32 %v5475_v26, %v5335_v12 }
 0xa6f   : > { %v5494_v52 = vmul.f32 %v5474_v39, %v5334_v0  ;;  %12924 = vtanh.f32 %v5438_v36 }
 0xa71   : > { %10628 = vmatprep.mubr.msk.f32.mxu1 %vm5522_vm14, %v5494_v52 }
 0xa72   : > { %10629 = vmatmul.mubr.msk.f32.gmra.mrb[64].mxu1 %vm5522_vm14, %v5495_v54 }
 0xa73   : > { %v12919_v60 = vpop.eup %12918 }
 0xa74   : > { %v12921_v23 = vpop.eup %12920  ;;  %v5477_v40 = vadd.f32 1.0, %v12919_v60 }
 0xa75   : > { %v5476_v41 = vadd.f32 1.0, %v12921_v23 }
 0xa76   : > { %v5497_v6 = vmul.f32 %v5477_v40, %v5337_v14 }
 0xa77   : > { %v5496_v22 = vmul.f32 %v5476_v41, %v5336_v48 }
 0xa78   : > { %v12923_v20 = vpop.eup %12922 }
 0xa79   : > { %v12925_v34 = vpop.eup %12924  ;;  %10631 = vmatprep.mubr.msk.f32.mxu1 %vm5522_vm14, %v5496_v22  ;;  %v5479_v53 = vadd.f32 1.0, %v12923_v20 }
 0xa7a   : > { %10632 = vmatmul.mubr.msk.f32.gmra.mrb[66].mxu1 %vm5522_vm14, %v5497_v6  ;;  %v5478_v30 = vadd.f32 1.0, %v12925_v34 }
 0xa7b   : > { %v5499_v57 = vmul.f32 %v5479_v53, %v5339_v16 }
 0xa7c   : > { %v5498_v33 = vmul.f32 %v5478_v30, %v5338_v7 }
 0xa7e   : > { %10634 = vmatprep.mubr.msk.f32.mxu1 %vm5522_vm14, %v5498_v33 }
 0xa7f   : > { %10635 = vmatmul.mubr.msk.f32.gmra.mrb[68].mxu1 %vm5522_vm14, %v5499_v57 }
 0xafc   : > { %v10593_v8 = vpop.f32.mrb[90].mxu0 }
 0xafd   : > { %v15937_v3 = vadd.f32 %v10593_v8, %v15870_v51  ;;  %v5281_v2 = vpop.f32.mrb[91].mxu0 }
 0xafe   : > { %v5282_v61 = vadd.f32 %v15870_v51, %v5281_v2 }
 0xaff   : > { %v5361_v35 = vmul.f32 0.044715, %v15937_v3 }
 0xb00   : > { %v5360_v45 = vmul.f32 0.044715, %v5282_v61  ;;  %v10596_v18 = vpop.f32.mrb[92].mxu0 }
 0xb01   : > { %v5381_v49 = vmul.f32 %v5361_v35, %v15937_v3  ;;  %v15943_v13 = vadd.f32 %v10596_v18, %v15870_v51  ;;  %v5291_v46 = vpop.f32.mrb[93].mxu0 }
 0xb02   : > { %v5380_v63 = vmul.f32 %v5360_v45, %v5282_v61  ;;  %v15946_v1 = vadd.f32 %v15870_v51, %v5291_v46 }
 0xb03   : > { %v5401_v44 = vmul.f32 %v5381_v49, %v15937_v3  ;;  %v5363_v29 = vmul.f32 0.044715, %v15943_v13 }
 0xb04   : > { %v5400_v32 = vmul.f32 %v5380_v63, %v5282_v61  ;;  %v5362_v31 = vmul.f32 0.044715, %v15946_v1  ;;  %v10599_v25 = vpop.f32.mrb[94].mxu0 }
 0xb05   : > { %v5421_v4 = vadd.f32 %v5401_v44, %v15937_v3  ;;  %v5383_v26 = vmul.f32 %v5363_v29, %v15943_v13  ;;  %v15954_v59 = vadd.f32 %v10599_v25, %v15870_v51  ;;  %v5301_v0 = vpop.f32.mrb[95].mxu0 }
 0xb06   : > { %v5420_v39 = vadd.f32 %v5400_v32, %v5282_v61  ;;  %v5382_v36 = vmul.f32 %v5362_v31, %v15946_v1  ;;  %v15958_v12 = vadd.f32 %v15870_v51, %v5301_v0 }
 0xb07   : > { %v5403_v52 = vmul.f32 %v5383_v26, %v15943_v13  ;;  %v5365_v54 = vmul.f32 0.044715, %v15954_v59  ;;  %v5441_v60 = vmul.f32 0.7978846, %v5421_v4 }
 0xb08   : > { %v5402_v23 = vmul.f32 %v5382_v36, %v15946_v1  ;;  %v5364_v40 = vmul.f32 0.044715, %v15958_v12  ;;  %v10602_v48 = vpop.f32.mrb[96].mxu0  ;;  %v5440_v41 = vmul.f32 0.7978846, %v5420_v39  ;;  %v5340_v36 = vmul.f32 0.5, %v5282_v61 }
 0xb09   : > { %v5423_v14 = vadd.f32 %v5403_v52, %v15943_v13  ;;  %v5385_v22 = vmul.f32 %v5365_v54, %v15954_v59  ;;  %v15967_v20 = vadd.f32 %v10602_v48, %v15870_v51  ;;  %v5311_v6 = vpop.f32.mrb[97].mxu0  ;;  %12926 = vtanh.f32 %v5441_v60 }
 0xb0a   : > { %v5422_v34 = vadd.f32 %v5402_v23, %v15946_v1  ;;  %v5384_v53 = vmul.f32 %v5364_v40, %v15958_v12  ;;  %v15972_v7 = vadd.f32 %v15870_v51, %v5311_v6  ;;  %12928 = vtanh.f32 %v5440_v41 }
 0xb0b   : > { %v5405_v30 = vmul.f32 %v5385_v22, %v15954_v59  ;;  %v5367_v16 = vmul.f32 0.044715, %v15967_v20  ;;  %v5443_v33 = vmul.f32 0.7978846, %v5423_v14  ;;  %v5341_v54 = vmul.f32 0.5, %v15937_v3 }
 0xb0c   : > { %v5404_v57 = vmul.f32 %v5384_v53, %v15958_v12  ;;  %v5366_v8 = vmul.f32 0.044715, %v15972_v7  ;;  %v5442_v2 = vmul.f32 0.7978846, %v5422_v34  ;;  %v5342_v61 = vmul.f32 0.5, %v15946_v1 }
 0xb0d   : > { %v5425_v35 = vadd.f32 %v5405_v30, %v15954_v59  ;;  %v5387_v45 = vmul.f32 %v5367_v16, %v15967_v20  ;;  %12930 = vtanh.f32 %v5443_v33  ;;  %v5343_v3 = vmul.f32 0.5, %v15943_v13 }
 0xb0e   : > { %v5424_v18 = vadd.f32 %v5404_v57, %v15958_v12  ;;  %v5386_v49 = vmul.f32 %v5366_v8, %v15972_v7  ;;  %12932 = vtanh.f32 %v5442_v2 }
 0xb0f   : > { %v5407_v46 = vmul.f32 %v5387_v45, %v15967_v20  ;;  %v5445_v63 = vmul.f32 0.7978846, %v5425_v35 }
 0xb10   : > { %v5406_v44 = vmul.f32 %v5386_v49, %v15972_v7  ;;  %v5444_v29 = vmul.f32 0.7978846, %v5424_v18 }
 0xb11   : > { %v5427_v32 = vadd.f32 %v5407_v46, %v15967_v20  ;;  %12934 = vtanh.f32 %v5445_v63  ;;  %v5345_v46 = vmul.f32 0.5, %v15954_v59 }
 0xb12   : > { %v5426_v31 = vadd.f32 %v5406_v44, %v15972_v7  ;;  %12936 = vtanh.f32 %v5444_v29 }
 0xb13   : > { %v12927_v25 = vpop.eup %12926  ;;  %v5447_v4 = vmul.f32 0.7978846, %v5427_v32 }
 0xb14   : > { %v12929_v26 = vpop.eup %12928  ;;  %v5481_v0 = vadd.f32 1.0, %v12927_v25  ;;  %v5446_v39 = vmul.f32 0.7978846, %v5426_v31 }
 0xb15   : > { %v5480_v52 = vadd.f32 1.0, %v12929_v26  ;;  %12938 = vtanh.f32 %v5447_v4  ;;  %v5346_v26 = vmul.f32 0.5, %v15972_v7 }
 0xb16   : > { %12940 = vtanh.f32 %v5446_v39  ;;  %v5501_v22 = vmul.f32 %v5481_v0, %v5341_v54 }
 0xb17   : > { %v12931_v60 = vpop.eup %12930  ;;  %v10605_v23 = vpop.f32.mrb[98].mxu0  ;;  %v5500_v40 = vmul.f32 %v5480_v52, %v5340_v36 }
 0xb18   : > { %v12933_v48 = vpop.eup %12932  ;;  %v5327_v41 = vadd.f32 %v10605_v23, %v15870_v51  ;;  %v5321_v14 = vpop.f32.mrb[99].mxu0  ;;  %v5483_v6 = vadd.f32 1.0, %v12931_v60 }
 0xb19   : > { %v5322_v34 = vadd.f32 %v15870_v51, %v5321_v14  ;;  %10637 = vmatprep.mubr.msk.f32.mxu1 %vm5522_vm14, %v5500_v40  ;;  %v5482_v53 = vadd.f32 1.0, %v12933_v48  ;;  %v5344_v51 = vmul.f32 0.5, %v15958_v12  ;;  %v5347_v12 = vmul.f32 0.5, %v15967_v20 }
 0xb1a   : > { %v5369_v30 = vmul.f32 0.044715, %v5327_v41  ;;  %10638 = vmatmul.mubr.msk.f32.gmra.mrb[70].mxu1 %vm5522_vm14, %v5501_v22  ;;  %v5503_v35 = vmul.f32 %v5483_v6, %v5343_v3  ;;  %v5349_v48 = vmul.f32 0.5, %v5327_v41  ;;  %v17665_v6 = vld [vmem:[#allocation11_spill] sm:$0xff] }
 0xb1b   : > { %v12935_v16 = vpop.eup %12934  ;;  %v5368_v33 = vmul.f32 0.044715, %v5322_v34  ;;  %v5502_v57 = vmul.f32 %v5482_v53, %v5342_v61  ;;  %v5348_v40 = vmul.f32 0.5, %v5322_v34 }
 0xb1c   : > { %v12937_v8 = vpop.eup %12936  ;;  %v5389_v2 = vmul.f32 %v5369_v30, %v5327_v41  ;;  %v5485_v45 = vadd.f32 1.0, %v12935_v16 }
 0xb1d   : > { %v5388_v18 = vmul.f32 %v5368_v33, %v5322_v34  ;;  %10640 = vmatprep.mubr.msk.f32.mxu1 %vm5522_vm14, %v5502_v57  ;;  %v5484_v49 = vadd.f32 1.0, %v12937_v8 }
 0xb1e   : > { %v5409_v1 = vmul.f32 %v5389_v2, %v5327_v41  ;;  %10641 = vmatmul.mubr.msk.f32.gmra.mrb[72].mxu1 %vm5522_vm14, %v5503_v35  ;;  %v5505_v31 = vmul.f32 %v5485_v45, %v5345_v46 }
 0xb1f   : > { %v12939_v63 = vpop.eup %12938  ;;  %v5408_v13 = vmul.f32 %v5388_v18, %v5322_v34  ;;  %v5504_v44 = vmul.f32 %v5484_v49, %v5344_v51 }
 0xb20   : > { %v12941_v29 = vpop.eup %12940  ;;  %v5429_v32 = vadd.f32 %v5409_v1, %v5327_v41  ;;  %v5487_v25 = vadd.f32 1.0, %v12939_v63 }
 0xb21   : > { %v5428_v4 = vadd.f32 %v5408_v13, %v5322_v34  ;;  %10643 = vmatprep.mubr.msk.f32.mxu1 %vm5522_vm14, %v5504_v44  ;;  %v5486_v0 = vadd.f32 1.0, %v12941_v29 }
 0xb22   : > { %10644 = vmatmul.mubr.msk.f32.gmra.mrb[74].mxu1 %vm5522_vm14, %v5505_v31  ;;  %v5449_v39 = vmul.f32 0.7978846, %v5429_v32  ;;  %v5507_v52 = vmul.f32 %v5487_v25, %v5347_v12 }
 0xb23   : > { %v5506_v36 = vmul.f32 %v5486_v0, %v5346_v26  ;;  %v5448_v59 = vmul.f32 0.7978846, %v5428_v4 }
 0xb24   : > { %12942 = vtanh.f32 %v5449_v39 }
 0xb25   : > { %10646 = vmatprep.mubr.msk.f32.mxu1 %vm5522_vm14, %v5506_v36  ;;  %12944 = vtanh.f32 %v5448_v59  ;;  %v9104_v59 = vld [vmem:[%s17421_s3 + $0x20] sm:$0xff] }
 0xb26   : > { %10647 = vmatmul.mubr.msk.f32.gmra.mrb[76].mxu1 %vm5522_vm14, %v5507_v52  ;;  %v9105_v52 = vld [vmem:[%s17421_s3 + $0x28] sm:$0xff] }
 0xb2e   : > { %v12943_v54 = vpop.eup %12942 }
 0xb2f   : > { %v12945_v60 = vpop.eup %12944  ;;  %v5489_v23 = vadd.f32 1.0, %v12943_v54  ;;  %v11580_v54 = vpack.c.bf16 %v9105_v52, %v9104_v59 }
 0xb30   : > { %v5488_v7 = vadd.f32 1.0, %v12945_v60 }
 0xb31   : > { %v5509_v22 = vmul.f32 %v5489_v23, %v5349_v48  ;;  %11581 = vmatprep.subr.bf16.mxu0 %v11580_v54 }
 0xb32   : > { %v5508_v14 = vmul.f32 %v5488_v7, %v5348_v40  ;;  %11583 = vmatpush3.bf16.msra.mxu0 %v11580_v54 }
 0xb34   : > { %10649 = vmatprep.mubr.msk.f32.mxu1 %vm5522_vm14, %v5508_v14 }
 0xb35   : > { %10650 = vmatmul.mubr.msk.f32.gmra.mrb[78].mxu1 %vm5522_vm14, %v5509_v22 }
 0xb36   : > { %v10624_v20 = vpop.f32.mrb[60].mxu1 }
 0xb37   : > { %v5655_v61 = vadd.f32 %v10624_v20, %v17665_v6  ;;  %v5649_v53 = vpop.f32.mrb[61].mxu1 }
 0xb38   : > { %v5650_v30 = vadd.f32 %v5649_v53, %v17665_v6 }
 0xb39   : > { %v5749_v3 = vadd.f32 %v5655_v61, %v15654_v50 }
 0xb3a   : > { %v5748_v16 = vadd.f32 %v5650_v30, %v15650_v47 }
 0xb3b   : > { %v5771_v34 = vsel %vm449_vm0, %v5749_v3, 0.0 }
 0xb3c   : > { %5772 = vadd.xlane.f32.xlu1 %v5771_v34  ;;  %v5768_v41 = vsel %vm449_vm0, %v5748_v16, 0.0 }
 0xb3d   : > { %5769 = vadd.xlane.f32.xlu0 %v5768_v41  ;;  %v10627_v33 = vpop.f32.mrb[62].mxu1 }
 0xb3e   : > { %v5665_v57 = vadd.f32 %v10627_v33, %v17665_v6  ;;  %v5659_v8 = vpop.f32.mrb[63].mxu1 }
 0xb3f   : > { %v5660_v2 = vadd.f32 %v5659_v8, %v17665_v6 }
 0xb40   : > { %v5751_v35 = vadd.f32 %v5665_v57, %v15669_v38 }
 0xb41   : > { %v5750_v45 = vadd.f32 %v5660_v2, %v15662_v42 }
 0xb42   : > { %v5777_v50 = vsel %vm449_vm0, %v5751_v35, 0.0 }
 0xb43   : > { %5778 = vadd.xlane.f32.xlu1 %v5777_v50  ;;  %v5774_v47 = vsel %vm449_vm0, %v5750_v45, 0.0 }
 0xb44   : > { %5775 = vadd.xlane.f32.xlu0 %v5774_v47 }
 0xb45   : > { %v10630_v18 = vpop.f32.mrb[64].mxu1 }
 0xb46   : > { %v5675_v51 = vadd.f32 %v10630_v18, %v17665_v6  ;;  %v5669_v49 = vpop.f32.mrb[65].mxu1 }
 0xb47   : > { %v5670_v1 = vadd.f32 %v5669_v49, %v17665_v6 }
 0xb48   : > { %v5753_v46 = vadd.f32 %v5675_v51, %v15686_v21 }
 0xb49   : > { %v5752_v63 = vadd.f32 %v5670_v1, %v15676_v11 }
 0xb4a   : > { %v5783_v38 = vsel %vm449_vm0, %v5753_v46, 0.0 }
 0xb4b   : > { %5784 = vadd.xlane.f32.xlu1 %v5783_v38  ;;  %v5780_v42 = vsel %vm449_vm0, %v5752_v63, 0.0 }
 0xb4c   : > { %5781 = vadd.xlane.f32.xlu0 %v5780_v42 }
 0xb4d   : > { %v10633_v13 = vpop.f32.mrb[66].mxu1 }
 0xb4e   : > { %v5685_v44 = vadd.f32 %v10633_v13, %v17665_v6  ;;  %v5679_v29 = vpop.f32.mrb[67].mxu1 }
 0xb4f   : > { %v5680_v32 = vadd.f32 %v5679_v29, %v17665_v6 }
 0xb50   : > { %v5755_v31 = vadd.f32 %v5685_v44, %v15723_v15 }
 0xb51   : > { %v5754_v25 = vadd.f32 %v5680_v32, %v15704_v58 }
 0xb52   : > { %v10636_v4 = vpop.f32.mrb[68].mxu1  ;;  %v5789_v21 = vsel %vm449_vm0, %v5755_v31, 0.0 }
 0xb53   : > { %v5695_v11 = vadd.f32 %v10636_v4, %v17665_v6  ;;  %v5689_v26 = vpop.f32.mrb[69].mxu1  ;;  %5790 = vadd.xlane.f32.xlu1 %v5789_v21  ;;  %v5786_v0 = vsel %vm449_vm0, %v5754_v25, 0.0 }
 0xb54   : > { %v5690_v12 = vadd.f32 %v5689_v26, %v17665_v6  ;;  %5787 = vadd.xlane.f32.xlu0 %v5786_v0 }
 0xb55   : > { %v5757_v39 = vadd.f32 %v5695_v11, %v15751_v62 }
 0xb56   : > { %v5756_v36 = vadd.f32 %v5690_v12, %v15744_v24 }
 0xb57   : > { %v5795_v15 = vsel %vm449_vm0, %v5757_v39, 0.0 }
 0xb58   : > { %5796 = vadd.xlane.f32.xlu1 %v5795_v15  ;;  %v5792_v58 = vsel %vm449_vm0, %v5756_v36, 0.0 }
 0xb59   : > { %5793 = vadd.xlane.f32.xlu0 %v5792_v58 }
 0xbc9   : > { %v5773_v62 = vpop.xlane.xlu1 %5772 }
 0xbca   : > { %v5829_v60 = vmul.f32 0.03125, %v5773_v62  ;;  %v5770_v24 = vpop.xlane.xlu0 %5769 }
 0xbcb   : > { %v5828_v23 = vmul.f32 0.03125, %v5770_v24 }
 0xbcc   : > { %v16041_v40 = vsub.f32 %v5749_v3, %v5829_v60 }
 0xbcd   : > { %v16043_v7 = vsub.f32 %v5748_v16, %v5828_v23  ;;  %v9106_v23 = vld [vmem:[%s17421_s3 + $0x30] sm:$0xff] }
 0xbce   : > { %v5869_v48 = vmul.f32 %v16041_v40, %v16041_v40 }
 0xbcf   : > { %v5868_v14 = vmul.f32 %v16043_v7, %v16043_v7 }
 0xbd0   : > { %v5779_v22 = vpop.xlane.xlu1 %5778  ;;  %v5891_v20 = vsel %vm449_vm0, %v5869_v48, 0.0  ;;  %v9107_v48 = vld [vmem:[%s17421_s3 + $0x38] sm:$0xff] }
 0xbd1   : > { %v5831_v61 = vmul.f32 0.03125, %v5779_v22  ;;  %v5776_v53 = vpop.xlane.xlu0 %5775  ;;  %5892 = vadd.xlane.f32.xlu1 %v5891_v20  ;;  %v5888_v30 = vsel %vm449_vm0, %v5868_v14, 0.0  ;;  %v11584_v20 = vpack.c.bf16 %v9107_v48, %v9106_v23 }
 0xbd2   : > { %v5830_v34 = vmul.f32 0.03125, %v5776_v53  ;;  %5889 = vadd.xlane.f32.xlu0 %v5888_v30 }
 0xbd3   : > { %v16051_v3 = vsub.f32 %v5751_v35, %v5831_v61  ;;  %11585 = vmatprep.subr.bf16.mxu0 %v11584_v20 }
 0xbd4   : > { %v16053_v16 = vsub.f32 %v5750_v45, %v5830_v34  ;;  %11587 = vmatpush3.bf16.msra.mxu0 %v11584_v20 }
 0xbd5   : > { %v5871_v41 = vmul.f32 %v16051_v3, %v16051_v3 }
 0xbd6   : > { %v5870_v33 = vmul.f32 %v16053_v16, %v16053_v16 }
 0xbd7   : > { %v5897_v57 = vsel %vm449_vm0, %v5871_v41, 0.0 }
 0xbd8   : > { %5898 = vadd.xlane.f32.xlu1 %v5897_v57  ;;  %v5785_v8 = vpop.xlane.xlu1 %5784  ;;  %v5894_v2 = vsel %vm449_vm0, %v5870_v33, 0.0 }
 0xbd9   : > { %v5833_v50 = vmul.f32 0.03125, %v5785_v8  ;;  %v5782_v47 = vpop.xlane.xlu0 %5781  ;;  %5895 = vadd.xlane.f32.xlu0 %v5894_v2 }
 0xbda   : > { %v5832_v18 = vmul.f32 0.03125, %v5782_v47 }
 0xbdb   : > { %v16061_v35 = vsub.f32 %v5753_v46, %v5833_v50 }
 0xbdc   : > { %v16063_v45 = vsub.f32 %v5752_v63, %v5832_v18 }
 0xbdd   : > { %v5873_v51 = vmul.f32 %v16061_v35, %v16061_v35 }
 0xbde   : > { %v5872_v49 = vmul.f32 %v16063_v45, %v16063_v45 }
 0xbdf   : > { %v5903_v1 = vsel %vm449_vm0, %v5873_v51, 0.0 }
 0xbe0   : > { %5904 = vadd.xlane.f32.xlu1 %v5903_v1  ;;  %v5791_v38 = vpop.xlane.xlu1 %5790  ;;  %v5900_v42 = vsel %vm449_vm0, %v5872_v49, 0.0 }
 0xbe1   : > { %v5835_v13 = vmul.f32 0.03125, %v5791_v38  ;;  %v5788_v44 = vpop.xlane.xlu0 %5787  ;;  %5901 = vadd.xlane.f32.xlu0 %v5900_v42 }
 0xbe2   : > { %v5834_v29 = vmul.f32 0.03125, %v5788_v44 }
 0xbe3   : > { %v16071_v46 = vsub.f32 %v5755_v31, %v5835_v13 }
 0xbe4   : > { %v16073_v63 = vsub.f32 %v5754_v25, %v5834_v29 }
 0xbe5   : > { %v5797_v32 = vpop.xlane.xlu1 %5796  ;;  %v5875_v4 = vmul.f32 %v16071_v46, %v16071_v46 }
 0xbe6   : > { %v5837_v21 = vmul.f32 0.03125, %v5797_v32  ;;  %v5794_v11 = vpop.xlane.xlu0 %5793  ;;  %v5874_v26 = vmul.f32 %v16073_v63, %v16073_v63 }
 0xbe7   : > { %v5836_v0 = vmul.f32 0.03125, %v5794_v11  ;;  %v5909_v12 = vsel %vm449_vm0, %v5875_v4, 0.0 }
 0xbe8   : > { %v16080_v15 = vsub.f32 %v5757_v39, %v5837_v21  ;;  %5910 = vadd.xlane.f32.xlu1 %v5909_v12  ;;  %v5906_v31 = vsel %vm449_vm0, %v5874_v26, 0.0 }
 0xbe9   : > { %v16083_v58 = vsub.f32 %v5756_v36, %v5836_v0  ;;  %5907 = vadd.xlane.f32.xlu0 %v5906_v31 }
 0xbea   : > { %v5877_v25 = vmul.f32 %v16080_v15, %v16080_v15 }
 0xbeb   : > { %v5876_v59 = vmul.f32 %v16083_v58, %v16083_v58 }
 0xbec   : > { %v5915_v52 = vsel %vm449_vm0, %v5877_v25, 0.0 }
 0xbed   : > { %v10639_v54 = vpop.f32.mrb[70].mxu1  ;;  %5916 = vadd.xlane.f32.xlu1 %v5915_v52  ;;  %v5912_v62 = vsel %vm449_vm0, %v5876_v59, 0.0 }
 0xbee   : > { %v5705_v39 = vadd.f32 %v10639_v54, %v17665_v6  ;;  %v5699_v60 = vpop.f32.mrb[71].mxu1  ;;  %5913 = vadd.xlane.f32.xlu0 %v5912_v62 }
 0xbef   : > { %v5700_v36 = vadd.f32 %v5699_v60, %v17665_v6 }
 0xbf0   : > { %v16094_v24 = vadd.f32 %v5705_v39, %v15809_v5 }
 0xbf1   : > { %v16103_v14 = vadd.f32 %v5700_v36, %v15805_v9  ;;  %v10642_v22 = vpop.f32.mrb[72].mxu1 }
 0xbf2   : > { %v5715_v61 = vadd.f32 %v10642_v22, %v17665_v6  ;;  %v5709_v53 = vpop.f32.mrb[73].mxu1  ;;  %v5801_v5 = vsel %vm449_vm0, %v16094_v24, 0.0 }
 0xbf3   : > { %v5710_v30 = vadd.f32 %v5709_v53, %v17665_v6  ;;  %5802 = vadd.xlane.f32.xlu1 %v5801_v5  ;;  %v5798_v34 = vsel %vm449_vm0, %v16103_v14, 0.0  ;;  %v17666_v5 = vld [vmem:[#allocation12_spill] sm:$0xff] }
 0xbf4   : > { %v16112_v41 = vadd.f32 %v5715_v61, %v15823_v56  ;;  %5799 = vadd.xlane.f32.xlu0 %v5798_v34 }
 0xbf5   : > { %v16115_v9 = vadd.f32 %v5710_v30, %v15819_v43  ;;  %v10645_v33 = vpop.f32.mrb[74].mxu1 }
 0xbf6   : > { %v5725_v57 = vadd.f32 %v10645_v33, %v17665_v6  ;;  %v5719_v8 = vpop.f32.mrb[75].mxu1  ;;  %v5807_v2 = vsel %vm449_vm0, %v16112_v41, 0.0 }
 0xbf7   : > { %v5720_v50 = vadd.f32 %v5719_v8, %v17665_v6  ;;  %5808 = vadd.xlane.f32.xlu1 %v5807_v2  ;;  %v5804_v47 = vsel %vm449_vm0, %v16115_v9, 0.0  ;;  %v17667_v8 = vld [vmem:[#allocation13_spill] sm:$0xff] }
 0xbf8   : > { %v16124_v56 = vadd.f32 %v5725_v57, %v15837_v55  ;;  %5805 = vadd.xlane.f32.xlu0 %v5804_v47 }
 0xbf9   : > { %v16127_v43 = vadd.f32 %v5720_v50, %v15833_v19  ;;  %v10648_v18 = vpop.f32.mrb[76].mxu1 }
 0xbfa   : > { %v5735_v51 = vadd.f32 %v10648_v18, %v17665_v6  ;;  %v5729_v49 = vpop.f32.mrb[77].mxu1  ;;  %v5813_v1 = vsel %vm449_vm0, %v16124_v56, 0.0 }
 0xbfb   : > { %v5730_v38 = vadd.f32 %v5729_v49, %v17665_v6  ;;  %5814 = vadd.xlane.f32.xlu1 %v5813_v1  ;;  %v5810_v42 = vsel %vm449_vm0, %v16127_v43, 0.0 }
 0xbfc   : > { %v16136_v55 = vadd.f32 %v5735_v51, %v15849_v17  ;;  %5811 = vadd.xlane.f32.xlu0 %v5810_v42 }
 0xbfd   : > { %v16139_v19 = vadd.f32 %v5730_v38, %v15846_v27 }
 0xbfe   : > { %v5819_v13 = vsel %vm449_vm0, %v16136_v55, 0.0 }
 0xbff   : > { %5820 = vadd.xlane.f32.xlu1 %v5819_v13  ;;  %v5816_v44 = vsel %vm449_vm0, %v16139_v19, 0.0 }
 0xc00   : > { %5817 = vadd.xlane.f32.xlu0 %v5816_v44 }
 0xc08   : > { %v10651_v29 = vpop.f32.mrb[78].mxu1 }
 0xc09   : > { %v5745_v32 = vadd.f32 %v10651_v29, %v17665_v6  ;;  %v5739_v4 = vpop.f32.mrb[79].mxu1 }
 0xc0a   : > { %v5740_v21 = vadd.f32 %v5739_v4, %v17665_v6 }
 0xc0b   : > { %v16148_v17 = vadd.f32 %v5745_v32, %v15863_v10 }
 0xc0c   : > { %v16151_v27 = vadd.f32 %v5740_v21, %v15860_v37 }
 0xc0d   : > { %v5825_v11 = vsel %vm449_vm0, %v16148_v17, 0.0 }
 0xc0e   : > { %5826 = vadd.xlane.f32.xlu1 %v5825_v11  ;;  %v5822_v26 = vsel %vm449_vm0, %v16151_v27, 0.0 }
 0xc0f   : > { %5823 = vadd.xlane.f32.xlu0 %v5822_v26 }
 0xc5e   : > { %v5893_v0 = vpop.xlane.xlu1 %5892 }
 0xc5f   : > { %v5949_v12 = vmul.f32 0.03125, %v5893_v0  ;;  %v5890_v31 = vpop.xlane.xlu0 %5889 }
 0xc60   : > { %v5948_v25 = vmul.f32 0.03125, %v5890_v31 }
 0xc61   : > { %v5969_v59 = vadd.f32 1e-05, %v5949_v12 }
 0xc62   : > { %v5968_v6 = vadd.f32 1e-05, %v5948_v25 }
 0xc63   : > { %12946 = vrsqrt.f32 %v5969_v59 }
 0xc64   : > { %12948 = vrsqrt.f32 %v5968_v6 }
 0xc65   : > { %v5899_v10 = vpop.xlane.xlu1 %5898 }
 0xc66   : > { %v5951_v52 = vmul.f32 0.03125, %v5899_v10  ;;  %v5896_v37 = vpop.xlane.xlu0 %5895 }
 0xc67   : > { %v5950_v54 = vmul.f32 0.03125, %v5896_v37 }
 0xc68   : > { %v5971_v62 = vadd.f32 1e-05, %v5951_v52 }
 0xc69   : > { %v5970_v39 = vadd.f32 1e-05, %v5950_v54 }
 0xc6a   : > { %12950 = vrsqrt.f32 %v5971_v62 }
 0xc6b   : > { %12952 = vrsqrt.f32 %v5970_v39 }
 0xc6d   : > { %v12947_v60 = vpop.eup %12946  ;;  %v5905_v36 = vpop.xlane.xlu1 %5904 }
 0xc6e   : > { %v12949_v23 = vpop.eup %12948  ;;  %v6009_v48 = vmul.f32 %v12947_v60, %v16041_v40  ;;  %v5953_v22 = vmul.f32 0.03125, %v5905_v36  ;;  %v5902_v20 = vpop.xlane.xlu0 %5901 }
 0xc6f   : > { %v5952_v61 = vmul.f32 0.03125, %v5902_v20  ;;  %v6008_v53 = vmul.f32 %v12949_v23, %v16043_v7 }
 0xc70   : > { %v6033_v30 = vmul.f32 %v17666_v5, %v6009_v48  ;;  %v5973_v34 = vadd.f32 1e-05, %v5953_v22 }
 0xc71   : > { %v5972_v33 = vadd.f32 1e-05, %v5952_v61  ;;  %v6032_v57 = vmul.f32 %v17666_v5, %v6008_v53 }
 0xc72   : > { %12954 = vrsqrt.f32 %v5973_v34  ;;  %v6057_v47 = vadd.f32 %v17667_v8, %v6033_v30 }
 0xc73   : > { %12956 = vrsqrt.f32 %v5972_v33  ;;  %v6056_v2 = vadd.f32 %v17667_v8, %v6032_v57 }
 0xc74   : > { %v12951_v50 = vpop.eup %12950 }
 0xc75   : > { %v12953_v18 = vpop.eup %12952  ;;  %10660 = vmatprep.mubr.msk.f32.mxu0 %vm449_vm0, %v6056_v2  ;;  %v5911_v40 = vpop.xlane.xlu1 %5910  ;;  %v6011_v51 = vmul.f32 %v12951_v50, %v16051_v3 }
 0xc76   : > { %v5955_v7 = vmul.f32 0.03125, %v5911_v40  ;;  %v5908_v49 = vpop.xlane.xlu0 %5907  ;;  %10661 = vmatmul.mubr.msk.f32.vlgmr.msra.gmra.mrb[100].mxu0 %vm449_vm0, %v6057_v47  ;;  %v6010_v1 = vmul.f32 %v12953_v18, %v16053_v16 }
 0xc77   : > { %v5954_v38 = vmul.f32 0.03125, %v5908_v49  ;;  %v6035_v42 = vmul.f32 %v17666_v5, %v6011_v51 }
 0xc78   : > { %v5975_v13 = vadd.f32 1e-05, %v5955_v7  ;;  %v6034_v44 = vmul.f32 %v17666_v5, %v6010_v1 }
 0xc79   : > { %v5974_v29 = vadd.f32 1e-05, %v5954_v38  ;;  %v6059_v11 = vadd.f32 %v17667_v8, %v6035_v42 }
 0xc7a   : > { %12958 = vrsqrt.f32 %v5975_v13  ;;  %v5917_v32 = vpop.xlane.xlu1 %5916  ;;  %v6058_v4 = vadd.f32 %v17667_v8, %v6034_v44 }
 0xc7b   : > { %12960 = vrsqrt.f32 %v5974_v29  ;;  %v5957_v21 = vmul.f32 0.03125, %v5917_v32  ;;  %v5914_v3 = vpop.xlane.xlu0 %5913 }
 0xc7c   : > { %v12955_v26 = vpop.eup %12954  ;;  %v5956_v0 = vmul.f32 0.03125, %v5914_v3  ;;  %10663 = vmatprep.mubr.msk.f32.mxu0 %vm449_vm0, %v6058_v4 }
 0xc7d   : > { %v12957_v16 = vpop.eup %12956  ;;  %v5977_v12 = vadd.f32 1e-05, %v5957_v21  ;;  %10664 = vmatmul.mubr.msk.f32.gmra.mrb[102].mxu0 %vm449_vm0, %v6059_v11  ;;  %v6013_v31 = vmul.f32 %v12955_v26, %v16061_v35 }
 0xc7e   : > { %v5976_v25 = vadd.f32 1e-05, %v5956_v0  ;;  %v6012_v59 = vmul.f32 %v12957_v16, %v16063_v45 }
 0xc7f   : > { %12962 = vrsqrt.f32 %v5977_v12  ;;  %v6037_v6 = vmul.f32 %v17666_v5, %v6013_v31 }
 0xc80   : > { %12964 = vrsqrt.f32 %v5976_v25  ;;  %v5803_v10 = vpop.xlane.xlu1 %5802  ;;  %v6036_v52 = vmul.f32 %v17666_v5, %v6012_v59 }
 0xc81   : > { %v5839_v37 = vmul.f32 0.03125, %v5803_v10  ;;  %v5800_v54 = vpop.xlane.xlu0 %5799  ;;  %v6061_v35 = vadd.f32 %v17667_v8, %v6037_v6 }
 0xc82   : > { %v5838_v62 = vmul.f32 0.03125, %v5800_v54  ;;  %v6060_v39 = vadd.f32 %v17667_v8, %v6036_v52 }
 0xc83   : > { %v16179_v60 = vsub.f32 %v16094_v24, %v5839_v37 }
 0xc84   : > { %v12959_v36 = vpop.eup %12958  ;;  %v16183_v45 = vsub.f32 %v16103_v14, %v5838_v62  ;;  %v5809_v23 = vpop.xlane.xlu1 %5808  ;;  %10666 = vmatprep.mubr.msk.f32.mxu0 %vm449_vm0, %v6060_v39 }
 0xc85   : > { %v12961_v48 = vpop.eup %12960  ;;  %v5841_v22 = vmul.f32 0.03125, %v5809_v23  ;;  %v5806_v20 = vpop.xlane.xlu0 %5805  ;;  %10667 = vmatmul.mubr.msk.f32.gmra.mrb[104].mxu0 %vm449_vm0, %v6061_v35  ;;  %v5879_v61 = vmul.f32 %v16179_v60, %v16179_v60  ;;  %v6015_v24 = vmul.f32 %v12959_v36, %v16071_v46 }
 0xc86   : > { %v5840_v53 = vmul.f32 0.03125, %v5806_v20  ;;  %v5878_v30 = vmul.f32 %v16183_v45, %v16183_v45  ;;  %v6014_v14 = vmul.f32 %v12961_v48, %v16073_v63 }
 0xc87   : > { %v16194_v34 = vsub.f32 %v16112_v41, %v5841_v22  ;;  %v5921_v33 = vsel %vm449_vm0, %v5879_v61, 0.0  ;;  %v6039_v57 = vmul.f32 %v17666_v5, %v6015_v24 }
 0xc88   : > { %v16199_v2 = vsub.f32 %v16115_v9, %v5840_v53  ;;  %5922 = vadd.xlane.f32.xlu1 %v5921_v33  ;;  %v5815_v50 = vpop.xlane.xlu1 %5814  ;;  %v5918_v46 = vsel %vm449_vm0, %v5878_v30, 0.0  ;;  %v6038_v47 = vmul.f32 %v17666_v5, %v6014_v14 }
 0xc89   : > { %v12963_v18 = vpop.eup %12962  ;;  %v5843_v40 = vmul.f32 0.03125, %v5815_v50  ;;  %v5812_v51 = vpop.xlane.xlu0 %5811  ;;  %5919 = vadd.xlane.f32.xlu0 %v5918_v46  ;;  %v5881_v63 = vmul.f32 %v16194_v34, %v16194_v34  ;;  %v6063_v13 = vadd.f32 %v17667_v8, %v6039_v57 }
 0xc8a   : > { %v12965_v41 = vpop.eup %12964  ;;  %v5842_v7 = vmul.f32 0.03125, %v5812_v51  ;;  %v5880_v49 = vmul.f32 %v16199_v2, %v16199_v2  ;;  %v6062_v9 = vadd.f32 %v17667_v8, %v6038_v47  ;;  %v6017_v1 = vmul.f32 %v12963_v18, %v16080_v15 }
 0xc8b   : > { %v16210_v38 = vsub.f32 %v16124_v56, %v5843_v40  ;;  %v5927_v42 = vsel %vm449_vm0, %v5881_v63, 0.0  ;;  %v6016_v44 = vmul.f32 %v12965_v41, %v16083_v58 }
 0xc8c   : > { %v16216_v29 = vsub.f32 %v16127_v43, %v5842_v7  ;;  %5928 = vadd.xlane.f32.xlu1 %v5927_v42  ;;  %v5821_v32 = vpop.xlane.xlu1 %5820  ;;  %v5924_v4 = vsel %vm449_vm0, %v5880_v49, 0.0  ;;  %10669 = vmatprep.mubr.msk.f32.mxu0 %vm449_vm0, %v6062_v9  ;;  %v6041_v15 = vmul.f32 %v17666_v5, %v6017_v1 }
 0xc8d   : > { %v5845_v21 = vmul.f32 0.03125, %v5821_v32  ;;  %v5818_v56 = vpop.xlane.xlu0 %5817  ;;  %5925 = vadd.xlane.f32.xlu0 %v5924_v4  ;;  %10670 = vmatmul.mubr.msk.f32.gmra.mrb[106].mxu0 %vm449_vm0, %v6063_v13  ;;  %v5883_v3 = vmul.f32 %v16210_v38, %v16210_v38  ;;  %v6040_v58 = vmul.f32 %v17666_v5, %v6016_v44 }
 0xc8e   : > { %v5844_v43 = vmul.f32 0.03125, %v5818_v56  ;;  %v5882_v11 = vmul.f32 %v16216_v29, %v16216_v29  ;;  %v16237_v25 = vadd.f32 %v17667_v8, %v6041_v15 }
 0xc8f   : > { %v16228_v26 = vsub.f32 %v16136_v55, %v5845_v21  ;;  %v5933_v0 = vsel %vm449_vm0, %v5883_v3, 0.0  ;;  %v6064_v16 = vadd.f32 %v17667_v8, %v6040_v58 }
 0xc90   : > { %v16233_v12 = vsub.f32 %v16139_v19, %v5844_v43  ;;  %5934 = vadd.xlane.f32.xlu1 %v5933_v0  ;;  %v5930_v31 = vsel %vm449_vm0, %v5882_v11, 0.0 }
 0xc91   : > { %5931 = vadd.xlane.f32.xlu0 %v5930_v31  ;;  %10672 = vmatprep.mubr.msk.f32.mxu0 %vm449_vm0, %v6064_v16  ;;  %v5885_v55 = vmul.f32 %v16228_v26, %v16228_v26 }
 0xc92   : > { %10673 = vmatmul.mubr.msk.f32.gmra.mrb[108].mxu0 %vm449_vm0, %v16237_v25  ;;  %v5884_v59 = vmul.f32 %v16233_v12, %v16233_v12 }
 0xc93   : > { %v5939_v19 = vsel %vm449_vm0, %v5885_v55, 0.0 }
 0xc94   : > { %5940 = vadd.xlane.f32.xlu1 %v5939_v19  ;;  %v5936_v6 = vsel %vm449_vm0, %v5884_v59, 0.0 }
 0xc95   : > { %5937 = vadd.xlane.f32.xlu0 %v5936_v6 }
 0xc9b   : > { %v5827_v10 = vpop.xlane.xlu1 %5826 }
 0xc9c   : > { %v5847_v52 = vmul.f32 0.03125, %v5827_v10  ;;  %v5824_v37 = vpop.xlane.xlu0 %5823 }
 0xc9d   : > { %v5846_v54 = vmul.f32 0.03125, %v5824_v37 }
 0xc9e   : > { %v16249_v62 = vsub.f32 %v16148_v17, %v5847_v52 }
 0xc9f   : > { %v16252_v39 = vsub.f32 %v16151_v27, %v5846_v54 }
 0xca0   : > { %v5887_v23 = vmul.f32 %v16249_v62, %v16249_v62 }
 0xca1   : > { %v5886_v35 = vmul.f32 %v16252_v39, %v16252_v39 }
 0xca2   : > { %v5945_v48 = vsel %vm449_vm0, %v5887_v23, 0.0 }
 0xca3   : > { %v5942_v36 = vsel %vm449_vm0, %v5886_v35, 0.0 }
 0xca4   : > { %5943 = vadd.xlane.f32.xlu1 %v5942_v36 }
 0xca8   : > { %5946 = vadd.xlane.f32.xlu1 %v5945_v48 }
 0xd15   : > { %v5923_v22 = vpop.xlane.xlu1 %5922 }
 0xd16   : > { %v5959_v20 = vmul.f32 0.03125, %v5923_v22  ;;  %v5920_v61 = vpop.xlane.xlu0 %5919 }
 0xd17   : > { %v5958_v17 = vmul.f32 0.03125, %v5920_v61 }
 0xd18   : > { %v5979_v24 = vadd.f32 1e-05, %v5959_v20 }
 0xd19   : > { %v5978_v53 = vadd.f32 1e-05, %v5958_v17  ;;  %v5929_v27 = vpop.xlane.xlu1 %5928 }
 0xd1a   : > { %12966 = vrsqrt.f32 %v5979_v24  ;;  %v5961_v30 = vmul.f32 0.03125, %v5929_v27  ;;  %v5926_v14 = vpop.xlane.xlu0 %5925 }
 0xd1b   : > { %12968 = vrsqrt.f32 %v5978_v53  ;;  %v5960_v33 = vmul.f32 0.03125, %v5926_v14 }
 0xd1c   : > { %v5981_v57 = vadd.f32 1e-05, %v5961_v30 }
 0xd1d   : > { %v5980_v50 = vadd.f32 1e-05, %v5960_v33  ;;  %v5935_v46 = vpop.xlane.xlu1 %5934 }
 0xd1e   : > { %12970 = vrsqrt.f32 %v5981_v57  ;;  %v5963_v47 = vmul.f32 0.03125, %v5935_v46  ;;  %v5932_v18 = vpop.xlane.xlu0 %5931  ;;  %v17513_v57 = vmov 0.0|0.0  }
 0xd1f   : > { %12972 = vrsqrt.f32 %v5980_v50  ;;  %v5962_v40 = vmul.f32 0.03125, %v5932_v18  ;;  %11588 = vmatprep.subr.bf16.mxu1 %v17513_v57  ;;  %11608 = vmatprep.subr.bf16.mxu0 %v17513_v57  ;;  %v16302_v50 = vld [vmem:[%s17422_s4 + $0x1] ss:$0 sm:$0xff] }
 0xd20   : > { %v5983_v51 = vadd.f32 1e-05, %v5963_v47 }
 0xd21   : > { %v5982_v63 = vadd.f32 1e-05, %v5962_v40  ;;  %v5941_v41 = vpop.xlane.xlu1 %5940 }
 0xd22   : > { %12974 = vrsqrt.f32 %v5983_v51  ;;  %v5965_v7 = vmul.f32 0.03125, %v5941_v41  ;;  %v5938_v49 = vpop.xlane.xlu0 %5937  ;;  %v17669_v51 = vld [vmem:[#allocation25_spill] sm:$0xff]  ;;  %v17670_v41 = vld [vmem:[#allocation28_spill] sm:$0xff] }
 0xd23   : > { %12976 = vrsqrt.f32 %v5982_v63  ;;  %v5964_v9 = vmul.f32 0.03125, %v5938_v49  ;;  %v17671_v49 = vld [vmem:[#allocation30_spill] sm:$0xff] }
 0xd24   : > { %v12967_v1 = vpop.eup %12966  ;;  %v5985_v42 = vadd.f32 1e-05, %v5965_v7 }
 0xd25   : > { %v12969_v13 = vpop.eup %12968  ;;  %v5984_v44 = vadd.f32 1e-05, %v5964_v9  ;;  %v6019_v32 = vmul.f32 %v12967_v1, %v16179_v60 }
 0xd26   : > { %12978 = vrsqrt.f32 %v5985_v42  ;;  %v6018_v4 = vmul.f32 %v12969_v13, %v16183_v45 }
 0xd27   : > { %12980 = vrsqrt.f32 %v5984_v44  ;;  %v6043_v15 = vmul.f32 %v17666_v5, %v6019_v32 }
 0xd28   : > { %v12971_v21 = vpop.eup %12970  ;;  %v6042_v56 = vmul.f32 %v17666_v5, %v6018_v4 }
 0xd29   : > { %v12973_v3 = vpop.eup %12972  ;;  %v6021_v58 = vmul.f32 %v12971_v21, %v16194_v34  ;;  %v6067_v0 = vadd.f32 %v17667_v8, %v6043_v15 }
 0xd2a   : > { %v6066_v43 = vadd.f32 %v17667_v8, %v6042_v56  ;;  %v6020_v11 = vmul.f32 %v12973_v3, %v16199_v2 }
 0xd2b   : > { %v6045_v60 = vmul.f32 %v17666_v5, %v6021_v58 }
 0xd2c   : > { %v12975_v16 = vpop.eup %12974  ;;  %10675 = vmatprep.mubr.msk.f32.mxu0 %vm449_vm0, %v6066_v43  ;;  %v6044_v45 = vmul.f32 %v17666_v5, %v6020_v11 }
 0xd2d   : > { %v12977_v31 = vpop.eup %12976  ;;  %10676 = vmatmul.mubr.msk.f32.gmra.mrb[110].mxu0 %vm449_vm0, %v6067_v0  ;;  %v6023_v55 = vmul.f32 %v12975_v16, %v16210_v38  ;;  %v6069_v2 = vadd.f32 %v17667_v8, %v6045_v60 }
 0xd2e   : > { %v6068_v34 = vadd.f32 %v17667_v8, %v6044_v45  ;;  %v6022_v59 = vmul.f32 %v12977_v31, %v16216_v29 }
 0xd2f   : > { %v6047_v19 = vmul.f32 %v17666_v5, %v6023_v55 }
 0xd30   : > { %v12979_v6 = vpop.eup %12978  ;;  %10678 = vmatprep.mubr.msk.f32.mxu0 %vm449_vm0, %v6068_v34  ;;  %v6046_v10 = vmul.f32 %v17666_v5, %v6022_v59 }
 0xd31   : > { %v12981_v52 = vpop.eup %12980  ;;  %10679 = vmatmul.mubr.msk.f32.gmra.mrb[112].mxu0 %vm449_vm0, %v6069_v2  ;;  %v5944_v37 = vpop.xlane.xlu1 %5943  ;;  %v6025_v54 = vmul.f32 %v12979_v6, %v16228_v26  ;;  %v6071_v36 = vadd.f32 %v17667_v8, %v6047_v19 }
 0xd32   : > { %v5966_v38 = vmul.f32 0.03125, %v5944_v37  ;;  %v6070_v35 = vadd.f32 %v17667_v8, %v6046_v10  ;;  %v6024_v29 = vmul.f32 %v12981_v52, %v16233_v12 }
 0xd33   : > { %v6049_v23 = vmul.f32 %v17666_v5, %v6025_v54 }
 0xd34   : > { %v5986_v48 = vadd.f32 1e-05, %v5966_v38  ;;  %10681 = vmatprep.mubr.msk.f32.mxu0 %vm449_vm0, %v6070_v35  ;;  %v6048_v22 = vmul.f32 %v17666_v5, %v6024_v29 }
 0xd35   : > { %10682 = vmatmul.mubr.msk.f32.gmra.mrb[114].mxu0 %vm449_vm0, %v6071_v36  ;;  %v5947_v20 = vpop.xlane.xlu1 %5946  ;;  %v6073_v17 = vadd.f32 %v17667_v8, %v6049_v23 }
 0xd36   : > { %12982 = vrsqrt.f32 %v5986_v48  ;;  %v5967_v61 = vmul.f32 0.03125, %v5947_v20  ;;  %v6072_v26 = vadd.f32 %v17667_v8, %v6048_v22 }
 0xd38   : > { %v5987_v24 = vadd.f32 1e-05, %v5967_v61  ;;  %10684 = vmatprep.mubr.msk.f32.mxu0 %vm449_vm0, %v6072_v26 }
 0xd39   : > { %10685 = vmatmul.mubr.msk.f32.gmra.mrb[116].mxu0 %vm449_vm0, %v6073_v17 }
 0xd3a   : > { %12984 = vrsqrt.f32 %v5987_v24 }
 0xd40   : > { %v12983_v12 = vpop.eup %12982 }
 0xd41   : > { %v6026_v53 = vmul.f32 %v12983_v12, %v16252_v39 }
 0xd43   : > { %v6050_v27 = vmul.f32 %v17666_v5, %v6026_v53 }
 0xd44   : > { %v12985_v30 = vpop.eup %12984 }
 0xd45   : > { %v6074_v14 = vadd.f32 %v17667_v8, %v6050_v27  ;;  %v6027_v33 = vmul.f32 %v12985_v30, %v16249_v62 }
 0xd47   : > { %10687 = vmatprep.mubr.msk.f32.mxu0 %vm449_vm0, %v6074_v14  ;;  %v6051_v39 = vmul.f32 %v17666_v5, %v6027_v33 }
 0xd49   : > { %v10662_v46 = vpop.f32.mrb[100].mxu0  ;;  %v16306_v47 = vadd.f32 %v17667_v8, %v6051_v39 }
 0xd4a   : > { %v6223_v62 = vadd.f32 %v10662_v46, %v16302_v50  ;;  %v6217_v18 = vpop.f32.mrb[101].mxu0 }
 0xd4b   : > { %17668 = vst [vmem:[#allocation43_spill] sm:$0xff] %v16306_v47  ;;  %v6218_v40 = vadd.f32 %v16302_v50, %v6217_v18  ;;  %10688 = vmatmul.mubr.msk.f32.gmra.mrb[118].mxu0 %vm449_vm0, %v16306_v47 }
 0xd4c   : > { %v16313_v63 = vmul.f32 %v17669_v51, %v6223_v62  ;;  %v16316_v7 = vmul.f32 %v17670_v41, %v6223_v62  ;;  %v16319_v5 = vmul.f32 %v17671_v49, %v6223_v62  ;;  %v16322_v8 = vmul.f32 %v13767_v28, %v6223_v62 }
 0xd4d   : > { %v12296_v9 = vpack.i.bf16 %v6223_v62, %v6218_v40  ;;  %v16325_v1 = vmul.f32 %v17669_v51, %v6218_v40  ;;  %v16328_v42 = vmul.f32 %v17670_v41, %v6218_v40  ;;  %v16331_v13 = vmul.f32 %v17671_v49, %v6218_v40 }
 0xd4e   : > { %v16334_v44 = vmul.f32 %v13767_v28, %v6218_v40 }
 0xd4f   : > { %12297 = vrot.lane.b32.xlu0 %v12296_v9, %s13131_s29  ;;  %v12321_v32 = vpack.i.bf16 %v16313_v63, %v16325_v1  ;;  %v12341_v4 = vpack.i.bf16 %v16316_v7, %v16328_v42 }
 0xd50   : > { %v10665_v21 = vpop.f32.mrb[102].mxu0 }
 0xd51   : > { %v6233_v3 = vadd.f32 %v10665_v21, %v16302_v50  ;;  %v6227_v58 = vpop.f32.mrb[103].mxu0 }
 0xd52   : > { %v6228_v43 = vadd.f32 %v16302_v50, %v6227_v58 }
 0xd53   : > { %v6553_v11 = vmul.f32 %v17669_v51, %v6233_v3  ;;  %v16349_v0 = vmul.f32 %v17670_v41, %v6233_v3  ;;  %v16352_v60 = vmul.f32 %v17671_v49, %v6233_v3  ;;  %v16355_v16 = vmul.f32 %v13767_v28, %v6233_v3 }
 0xd54   : > { %v12301_v45 = vpack.i.bf16 %v6233_v3, %v6228_v43  ;;  %v6552_v31 = vmul.f32 %v17669_v51, %v6228_v43  ;;  %v16359_v55 = vmul.f32 %v17670_v41, %v6228_v43  ;;  %v16362_v34 = vmul.f32 %v17671_v49, %v6228_v43 }
 0xd55   : > { %v16365_v59 = vmul.f32 %v13767_v28, %v6228_v43 }
 0xd56   : > { %12302 = vrot.lane.b32.xlu1 %v12301_v45, %s13131_s29  ;;  %v12326_v2 = vpack.i.bf16 %v6553_v11, %v6552_v31 }
 0xd58   : > { %v10668_v52 = vpop.f32.mrb[104].mxu0 }
 0xd59   : > { %v6243_v37 = vadd.f32 %v10668_v52, %v16302_v50  ;;  %v6237_v54 = vpop.f32.mrb[105].mxu0 }
 0xd5a   : > { %v6238_v38 = vadd.f32 %v16302_v50, %v6237_v54 }
 0xd5b   : > { %v6555_v35 = vmul.f32 %v17669_v51, %v6243_v37  ;;  %v16378_v29 = vmul.f32 %v17670_v41, %v6243_v37  ;;  %v16381_v36 = vmul.f32 %v17671_v49, %v6243_v37  ;;  %v16384_v23 = vmul.f32 %v13767_v28, %v6243_v37 }
 0xd5c   : > { %v12306_v48 = vpack.i.bf16 %v6243_v37, %v6238_v38  ;;  %v6554_v22 = vmul.f32 %v17669_v51, %v6238_v38  ;;  %v16388_v20 = vmul.f32 %v17670_v41, %v6238_v38  ;;  %v16391_v61 = vmul.f32 %v17671_v49, %v6238_v38 }
 0xd5d   : > { %v16394_v26 = vmul.f32 %v13767_v28, %v6238_v38 }
 0xd5e   : > { %12307 = vrot.lane.b32.xlu0 %v12306_v48, %s13131_s29  ;;  %v12331_v17 = vpack.i.bf16 %v6555_v35, %v6554_v22 }
 0xd60   : > { %v10671_v27 = vpop.f32.mrb[106].mxu0 }
 0xd61   : > { %v6253_v30 = vadd.f32 %v10671_v27, %v16302_v50  ;;  %v6247_v14 = vpop.f32.mrb[107].mxu0 }
 0xd62   : > { %v6248_v33 = vadd.f32 %v16302_v50, %v6247_v14 }
 0xd63   : > { %v6557_v39 = vmul.f32 %v17669_v51, %v6253_v30  ;;  %v16407_v46 = vmul.f32 %v17670_v41, %v6253_v30  ;;  %v16410_v62 = vmul.f32 %v17671_v49, %v6253_v30  ;;  %v16413_v18 = vmul.f32 %v13767_v28, %v6253_v30 }
 0xd64   : > { %v12311_v40 = vpack.i.bf16 %v6253_v30, %v6248_v33  ;;  %v6556_v9 = vmul.f32 %v17669_v51, %v6248_v33  ;;  %v16417_v21 = vmul.f32 %v17670_v41, %v6248_v33  ;;  %v16420_v3 = vmul.f32 %v17671_v49, %v6248_v33 }
 0xd65   : > { %v10674_v58 = vpop.f32.mrb[108].mxu0  ;;  %v16423_v43 = vmul.f32 %v13767_v28, %v6248_v33 }
 0xd66   : > { %v16426_v11 = vadd.f32 %v10674_v58, %v16302_v50  ;;  %v6257_v45 = vpop.f32.mrb[109].mxu0  ;;  %12312 = vrot.lane.b32.xlu1 %v12311_v40, %s13131_s29  ;;  %v12336_v31 = vpack.i.bf16 %v6557_v39, %v6556_v9  ;;  %v17672_v58 = vmov 0.0  }
 0xd67   : > { %v6258_v54 = vadd.f32 %v16302_v50, %v6257_v45  ;;  %10710 = vmatprep.mubr.msk.f32.mxu1 %vm13135_vm15, %v17672_v58  ;;  %10733 = vmatprep.mubr.msk.f32.mxu0 %vm13135_vm15, %v17672_v58 }
 0xd68   : > { %v6463_v35 = vmul.f32 %v17670_v41, %v16426_v11  ;;  %v6559_v48 = vmul.f32 %v17669_v51, %v16426_v11  ;;  %v16442_v22 = vmul.f32 %v17671_v49, %v16426_v11 }
 0xd69   : > { %v12316_v27 = vpack.i.bf16 %v16426_v11, %v6258_v54  ;;  %v6462_v30 = vmul.f32 %v17670_v41, %v6258_v54  ;;  %v6558_v14 = vmul.f32 %v17669_v51, %v6258_v54  ;;  %v16448_v33 = vmul.f32 %v17671_v49, %v6258_v54 }
 0xd6a   : > { %12327 = vrot.lane.b32.xlu1 %v12326_v2, %s13132_s30  ;;  %v16459_v45 = vmul.f32 %v13767_v28, %v6258_v54  ;;  %v16463_v2 = vmul.f32 %v13767_v28, %v16426_v11 }
 0xd6b   : > { %12317 = vrot.lane.b32.xlu0 %v12316_v27, %s13131_s29  ;;  %v12366_v39 = vpack.i.bf16 %v6463_v35, %v6462_v30  ;;  %v12346_v40 = vpack.i.bf16 %v6559_v48, %v6558_v14 }
 0xd6e   : > { %12332 = vrot.lane.b32.xlu1 %v12331_v17, %s13132_s30 }
 0xd6f   : > { %12322 = vrot.lane.b32.xlu0 %v12321_v32, %s13132_s30 }
 0xd72   : > { %12337 = vrot.lane.b32.xlu1 %v12336_v31, %s13132_s30 }
 0xd73   : > { %12367 = vrot.lane.b32.xlu0 %v12366_v39, %s13132_s30 }
 0xd76   : > { %12342 = vrot.lane.b32.xlu1 %v12341_v4, %s13132_s30 }
 0xd7a   : > { %12347 = vrot.lane.b32.xlu1 %v12346_v40, %s13132_s30 }
 0xdc1   : > { %v12298_v17 = vpop.permute.xlu0 %12297 }
 0xdc2   : > { %v12300_v54 = vunpack.i.h.bf16 %v12298_v17  ;;  %v12299_v48 = vunpack.i.l.bf16 %v12298_v17 }
 0xdc4   : > { %v16479_v27 = vpack.c.bf16 %v12300_v54, %v12299_v48 }
 0xdc6   : > { %11591 = vmatpush3.bf16.xpose.msk.msra.mxu1 %vm13431_vm5, %v16479_v27  ;;  %11611 = vmatpush3.bf16.xpose.msk.msra.mxu0 %vm13431_vm5, %v16479_v27 }
 0xdc7   : > { %11592 = vmatprep.subr.bf16.mxu1 %v17513_v57  ;;  %11612 = vmatprep.subr.bf16.mxu0 %v17513_v57 }
 0xdc8   : > { %v12303_v7 = vpop.permute.xlu1 %12302 }
 0xdc9   : > { %v12305_v1 = vunpack.i.h.bf16 %v12303_v7  ;;  %v12304_v42 = vunpack.i.l.bf16 %v12303_v7 }
 0xdcb   : > { %v16489_v32 = vpack.c.bf16 %v12305_v1, %v12304_v42 }
 0xdce   : > { %11595 = vmatpush3.bf16.xpose.msk.msra.mxu1 %vm13431_vm5, %v16489_v32  ;;  %11615 = vmatpush3.bf16.xpose.msk.msra.mxu0 %vm13431_vm5, %v16489_v32 }
 0xdcf   : > { %11596 = vmatprep.subr.bf16.mxu1 %v17513_v57  ;;  %11616 = vmatprep.subr.bf16.mxu0 %v17513_v57 }
 0xdd0   : > { %v12308_v4 = vpop.permute.xlu0 %12307 }
 0xdd1   : > { %v12310_v31 = vunpack.i.h.bf16 %v12308_v4  ;;  %v12309_v30 = vunpack.i.l.bf16 %v12308_v4  ;;  %v16520_v4 = vmul.f32 0.35355338, %v16426_v11 }
 0xdd3   : > { %v16499_v14 = vpack.c.bf16 %v12310_v31, %v12309_v30 }
 0xdd6   : > { %11599 = vmatpush3.bf16.xpose.msk.msra.mxu1 %vm13431_vm5, %v16499_v14  ;;  %11619 = vmatpush3.bf16.xpose.msk.msra.mxu0 %vm13431_vm5, %v16499_v14 }
 0xdd7   : > { %11600 = vmatprep.subr.bf16.mxu1 %v17513_v57  ;;  %11620 = vmatprep.subr.bf16.mxu0 %v17513_v57 }
 0xdd8   : > { %v12313_v39 = vpop.permute.xlu1 %12312 }
 0xdd9   : > { %v12315_v40 = vunpack.i.h.bf16 %v12313_v39  ;;  %v12314_v17 = vunpack.i.l.bf16 %v12313_v39 }
 0xddb   : > { %v16509_v54 = vpack.c.bf16 %v12315_v40, %v12314_v17  ;;  %v17674_v40 = vld [vmem:[#allocation14_spill] sm:$0xff] }
 0xddc   : > { %v12328_v48 = vpop.permute.xlu1 %12327  ;;  %v6317_v17 = vmul.f32 %v17674_v40, %v16520_v4 }
 0xddd   : > { %v12318_v7 = vpop.permute.xlu0 %12317  ;;  %v12330_v10 = vunpack.i.h.bf16 %v12328_v48  ;;  %v12329_v37 = vunpack.i.l.bf16 %v12328_v48 }
 0xdde   : > { %11603 = vmatpush3.bf16.xpose.msk.msra.mxu1 %vm13431_vm5, %v16509_v54  ;;  %11623 = vmatpush3.bf16.xpose.msk.msra.mxu0 %vm13431_vm5, %v16509_v54  ;;  %v12320_v1 = vunpack.i.h.bf16 %v12318_v7  ;;  %v12319_v42 = vunpack.i.l.bf16 %v12318_v7  ;;  %v17675_v7 = vld [vmem:[#allocation15_spill] sm:$0xff]  ;;  %v6319_v38 = vrot.slane %v6317_v17, 4 }
 0xddf   : > { %11604 = vmatprep.subr.bf16.mxu1 %v17513_v57  ;;  %11624 = vmatprep.subr.bf16.mxu0 %v17513_v57  ;;  %v6464_v35 = vmul.f32 %v17675_v7, %v16520_v4 }
 0xde0   : > { %v12333_v31 = vpop.permute.xlu1 %12332  ;;  %v16522_v30 = vpack.c.bf16 %v12320_v1, %v12319_v42 }
 0xde1   : > { %v12323_v39 = vpop.permute.xlu0 %12322  ;;  %v6466_v53 = vrot.slane %v6464_v35, 4  ;;  %v12335_v35 = vunpack.i.h.bf16 %v12333_v31  ;;  %v12334_v17 = vunpack.i.l.bf16 %v12333_v31 }
 0xde2   : > { %v12325_v11 = vunpack.i.h.bf16 %v12323_v39  ;;  %v12324_v1 = vunpack.i.l.bf16 %v12323_v39  ;;  %v11632_v39 = vpack.c.bf16 %v12330_v10, %v12329_v37 }
 0xde4   : > { %v12338_v42 = vpop.permute.xlu1 %12337  ;;  %v11629_v56 = vpack.c.bf16 %v12325_v11, %v12324_v1 }
 0xde6   : > { %11607 = vmatpush3.bf16.xpose.msk.msra.mxu1 %vm13431_vm5, %v16522_v30  ;;  %11627 = vmatpush3.bf16.xpose.msk.msra.mxu0 %vm13431_vm5, %v16522_v30 }
 0xde7   : > { %11628 = vmatprep.subr.bf16.mxu1 %v17513_v57  ;;  %11658 = vmatprep.subr.bf16.mxu0 %v17513_v57 }
 0xde8   : > { %v16541_v9 = vpop.permute.xlu1 %12342 }
 0xdec   : > { %v12348_v48 = vpop.permute.xlu1 %12347 }
 0xded   : > { %10711 = vmatmul.mubr.msk.f32.vlgmr.msra.gmra.mrb[80].mxu1 %vm449_vm0, %v6319_v38  ;;  %10734 = vmatmul.mubr.msk.f32.vlgmr.msra.gmra.mrb[120].mxu0 %vm449_vm0, %v6466_v53  ;;  %v12340_v53 = vunpack.i.h.bf16 %v12338_v42  ;;  %v12339_v38 = vunpack.i.l.bf16 %v12338_v42  ;;  %v12350_v37 = vunpack.i.h.bf16 %v12348_v48  ;;  %v12349_v31 = vunpack.i.l.bf16 %v12348_v48 }
 0xdee   : > { %11630 = vmatpush3.bf16.msra.mxu1 %v11629_v56  ;;  %11661 = vmatpush3.bf16.xpose.msk.msra.mxu0 %vm13431_vm5, %v16479_v27  ;;  %v11635_v56 = vpack.c.bf16 %v12335_v35, %v12334_v17 }
 0xdef   : > { %11631 = vmatprep.subr.bf16.mxu1 %v17513_v57  ;;  %11662 = vmatprep.subr.bf16.mxu0 %v17513_v57  ;;  %v11638_v10 = vpack.c.bf16 %v12340_v53, %v12339_v38  ;;  %v11641_v11 = vpack.c.bf16 %v12350_v37, %v12349_v31 }
 0xdf0   : > { %10802 = vmatprep.mubr.msk.f32.mxu0 %vm13135_vm15, %v17672_v58  ;;  %10756 = vmatprep.mubr.msk.f32.mxu1 %vm13135_vm15, %v17672_v58 }
 0xdf2   : > { %11633 = vmatpush3.bf16.msra.mxu1 %v11632_v39 }
 0xdf3   : > { %11634 = vmatprep.subr.bf16.mxu1 %v17513_v57 }
 0xdf6   : > { %11636 = vmatpush3.bf16.msra.mxu1 %v11635_v56  ;;  %11665 = vmatpush3.bf16.xpose.msk.msra.mxu0 %vm13431_vm5, %v16489_v32 }
 0xdf7   : > { %11637 = vmatprep.subr.bf16.mxu1 %v17513_v57  ;;  %11666 = vmatprep.subr.bf16.mxu0 %v17513_v57 }
 0xdfa   : > { %11639 = vmatpush3.bf16.msra.mxu1 %v11638_v10 }
 0xdfb   : > { %11640 = vmatprep.subr.bf16.mxu1 %v17513_v57 }
 0xdfe   : > { %11642 = vmatpush3.bf16.msra.mxu1 %v11641_v11  ;;  %11669 = vmatpush3.bf16.xpose.msk.msra.mxu0 %vm13431_vm5, %v16499_v14 }
 0xdff   : > { %11670 = vmatprep.subr.bf16.mxu0 %v17513_v57  ;;  %11643 = vmatprep.subr.bf16.mxu1 %v17513_v57 }
 0xe00   : > { %v10677_v1 = vpop.f32.mrb[110].mxu0 }
 0xe01   : > { %v16562_v42 = vadd.f32 %v10677_v1, %v16302_v50  ;;  %v6267_v39 = vpop.f32.mrb[111].mxu0 }
 0xe02   : > { %v16565_v35 = vadd.f32 %v16302_v50, %v6267_v39 }
 0xe03   : > { %v16569_v17 = vmul.f32 %v17669_v51, %v16562_v42  ;;  %v16573_v56 = vmul.f32 %v17670_v41, %v16562_v42  ;;  %v16577_v53 = vmul.f32 %v17671_v49, %v16562_v42  ;;  %v16581_v38 = vmul.f32 %v13767_v28, %v16562_v42 }
 0xe04   : > { %v10680_v48 = vpop.f32.mrb[112].mxu0  ;;  %v16587_v37 = vmul.f32 %v17669_v51, %v16565_v35  ;;  %v16591_v31 = vmul.f32 %v17670_v41, %v16565_v35  ;;  %v16595_v11 = vmul.f32 %v17671_v49, %v16565_v35  ;;  %v16602_v6 = vmul.f32 %v13767_v28, %v16565_v35 }
 0xe05   : > { %17676 = vst [vmem:[#allocation17_spill] sm:$0xff] %v16573_v56  ;;  %17677 = vst [vmem:[#allocation37_spill] sm:$0xff] %v16577_v53  ;;  %v16598_v1 = vadd.f32 %v10680_v48, %v16302_v50  ;;  %v6277_v39 = vpop.f32.mrb[113].mxu0 }
 0xe06   : > { %17678 = vst [vmem:[#allocation40_spill] sm:$0xff] %v16581_v38  ;;  %17679 = vst [vmem:[#allocation20_spill] sm:$0xff] %v16587_v37  ;;  %v16605_v10 = vadd.f32 %v16302_v50, %v6277_v39  ;;  %11673 = vmatpush3.bf16.xpose.msk.msra.mxu0 %vm13431_vm5, %v16509_v54 }
 0xe07   : > { %17680 = vst [vmem:[#allocation23_spill] sm:$0xff] %v16591_v31  ;;  %17681 = vst [vmem:[#allocation22_spill] sm:$0xff] %v16595_v11  ;;  %11674 = vmatprep.subr.bf16.mxu0 %v17513_v57  ;;  %v16619_v15 = vmul.f32 %v17670_v41, %v16598_v1  ;;  %v16623_v39 = vmul.f32 %v17669_v51, %v16598_v1  ;;  %v16627_v24 = vmul.f32 %v17671_v49, %v16598_v1  ;;  %v17701_v31 = vmov 0.0|0.0  }
 0xe08   : > { %17682 = vst [vmem:[#allocation16_spill] sm:$0xff] %v16598_v1  ;;  %17683 = vst [vmem:[#allocation19_spill] sm:$0xff] %v16602_v6  ;;  %v10683_v12 = vpop.f32.mrb[114].mxu0  ;;  %v16633_v48 = vmul.f32 %v17670_v41, %v16605_v10  ;;  %v16639_v57 = vmul.f32 %v17669_v51, %v16605_v10  ;;  %v16643_v47 = vmul.f32 %v17671_v49, %v16605_v10 }
 0xe09   : > { %17684 = vst [vmem:[#allocation21_spill] sm:$0xff] %v16605_v10  ;;  %17685 = vst [vmem:[#allocation18_spill] sm:$0xff] %v16619_v15  ;;  %v16646_v11 = vadd.f32 %v10683_v12, %v16302_v50  ;;  %v6287_v52 = vpop.f32.mrb[115].mxu0  ;;  %v16650_v6 = vmul.f32 %v13767_v28, %v16605_v10  ;;  %v16654_v38 = vmul.f32 %v13767_v28, %v16598_v1 }
 0xe0a   : > { %17686 = vst [vmem:[#allocation41_spill] sm:$0xff] %v16623_v39  ;;  %17687 = vst [vmem:[#allocation29_spill] sm:$0xff] %v16627_v24  ;;  %v16657_v19 = vadd.f32 %v16302_v50, %v6287_v52 }
 0xe0b   : > { %17688 = vst [vmem:[#allocation42_spill] sm:$0xff] %v16633_v48  ;;  %17689 = vst [vmem:[#allocation32_spill] sm:$0xff] %v16639_v57  ;;  %v16667_v40 = vmul.f32 %v17669_v51, %v16646_v11  ;;  %v16671_v10 = vmul.f32 %v17670_v41, %v16646_v11  ;;  %v16675_v52 = vmul.f32 %v17671_v49, %v16646_v11 }
 0xe0c   : > { %17690 = vst [vmem:[#allocation39_spill] sm:$0xff] %v16643_v47  ;;  %17691 = vst [vmem:[#allocation33_spill] sm:$0xff] %v16650_v6  ;;  %v10686_v1 = vpop.f32.mrb[116].mxu0  ;;  %v16683_v12 = vmul.f32 %v17669_v51, %v16657_v19  ;;  %v16687_v47 = vmul.f32 %v17670_v41, %v16657_v19  ;;  %v16691_v24 = vmul.f32 %v17671_v49, %v16657_v19  ;;  %v17698_v6 = vld [vmem:[#allocation27_spill] sm:$0xff] }
 0xe0d   : > { %17692 = vst [vmem:[#allocation38_spill] sm:$0xff] %v16654_v38  ;;  %17693 = vst [vmem:[#allocation35_spill] sm:$0xff] %v16671_v10  ;;  %v16694_v57 = vadd.f32 %v10686_v1, %v16302_v50  ;;  %v6297_v53 = vpop.f32.mrb[117].mxu0  ;;  %v6786_v38 = vmul.f32 %v17698_v6, %v16520_v4  ;;  %v16700_v7 = vmul.f32 %v13767_v28, %v16657_v19 }
 0xe0e   : > { %17694 = vst [vmem:[#allocation34_spill] sm:$0xff] %v16675_v52  ;;  %17695 = vst [vmem:[#allocation46_spill] sm:$0xff] %v16683_v12  ;;  %v16704_v39 = vmul.f32 %v13767_v28, %v16646_v11  ;;  %v16707_v48 = vadd.f32 %v16302_v50, %v6297_v53  ;;  %11677 = vmatpush3.bf16.xpose.msk.msra.mxu0 %vm13431_vm5, %v16522_v30 }
 0xe0f   : > { %17696 = vst [vmem:[#allocation44_spill] sm:$0xff] %v16687_v47  ;;  %17697 = vst [vmem:[#allocation45_spill] sm:$0xff] %v16691_v24  ;;  %11693 = vmatprep.subr.bf16.mxu0 %v17701_v31  ;;  %v16721_v56 = vmul.f32 %v17669_v51, %v16694_v57  ;;  %v16725_v53 = vmul.f32 %v17670_v41, %v16694_v57  ;;  %v16729_v37 = vmul.f32 %v17671_v49, %v16694_v57 }
 0xe10   : > { %17699 = vst [vmem:[#allocation36_spill] sm:$0xff] %v16700_v7  ;;  %17700 = vst [vmem:[#allocation8_spill] sm:$0xff] %v16704_v39  ;;  %v16737_v1 = vmul.f32 %v17669_v51, %v16707_v48  ;;  %v16741_v24 = vmul.f32 %v17670_v41, %v16707_v48  ;;  %v16745_v52 = vmul.f32 %v17671_v49, %v16707_v48  ;;  %v6788_v10 = vrot.slane %v6786_v38, 4 }
 0xe11   : > { %v16749_v47 = vmul.f32 %v13767_v28, %v16707_v48  ;;  %v16753_v6 = vmul.f32 %v13767_v28, %v16694_v57 }
 0xe13   : > { %17702 = vst [vmem:[#allocation9_spill] sm:$0xff] %v16749_v47  ;;  %17703 = vst [vmem:[#allocation10_spill] sm:$0xff] %v16753_v6 }
 0xe15   : > { %10803 = vmatmul.mubr.msk.f32.vlgmr.msra.gmra.mrb[122].mxu0 %vm449_vm0, %v6788_v10 }
 0xe16   : > { %11696 = vmatpush3.bf16.xpose.msk.msra.mxu0 %vm13431_vm5, %v16479_v27  ;;  %10848 = vmatprep.mubr.msk.f32.mxu0 %vm13135_vm15, %v17672_v58 }
 0xe17   : > { %11697 = vmatprep.subr.bf16.mxu0 %v17701_v31 }
 0xe1e   : > { %v10689_v15 = vpop.f32.mrb[118].mxu0  ;;  %11700 = vmatpush3.bf16.xpose.msk.msra.mxu0 %vm13431_vm5, %v16489_v32 }
 0xe1f   : > { %v16774_v38 = vadd.f32 %v10689_v15, %v16302_v50  ;;  %v6307_v12 = vpop.f32.mrb[119].mxu0  ;;  %11701 = vmatprep.subr.bf16.mxu0 %v17701_v31 }
 0xe20   : > { %v16778_v10 = vadd.f32 %v16302_v50, %v6307_v12 }
 0xe21   : > { %v16782_v27 = vmul.f32 %v17669_v51, %v16774_v38  ;;  %v16786_v39 = vmul.f32 %v17670_v41, %v16774_v38  ;;  %v16790_v32 = vmul.f32 %v17671_v49, %v16774_v38 }
 0xe22   : > { %v16796_v7 = vmul.f32 %v17669_v51, %v16778_v10  ;;  %v16800_v50 = vmul.f32 %v17670_v41, %v16778_v10  ;;  %v16804_v12 = vmul.f32 %v17671_v49, %v16778_v10  ;;  %v16814_v51 = vmul.f32 %v13767_v28, %v16778_v10 }
 0xe23   : > { %v16821_v41 = vmul.f32 %v13767_v28, %v16774_v38 }
 0xe24   : > { %17704 = vst [vmem:[#allocation11_spill] sm:$0xff] %v16804_v12  ;;  %17705 = vst [vmem:[#allocation12_spill] sm:$0xff] %v16814_v51 }
 0xe25   : > { %17706 = vst [vmem:[#allocation13_spill] sm:$0xff] %v16821_v41 }
 0xe26   : > { %11704 = vmatpush3.bf16.xpose.msk.msra.mxu0 %vm13431_vm5, %v16499_v14  ;;  %v17707_v14 = vld [vmem:[#allocation26_spill] sm:$0xff] }
 0xe27   : > { %11705 = vmatprep.subr.bf16.mxu0 %v17701_v31  ;;  %v6996_v15 = vmul.f32 %v17707_v14, %v16520_v4 }
 0xe29   : > { %v6998_v28 = vrot.slane %v6996_v15, 4  ;;  %v17709_v15 = vpack.i.bf16 %v16349_v0, %v16359_v55  ;;  %v17713_v0 = vpack.i.bf16 %v16381_v36, %v16391_v61  ;;  %v16871_v36 = vpop.permute.xlu0 %12367 }
 0xe2e   : > { %11708 = vmatpush3.bf16.xpose.msk.msra.mxu0 %vm13431_vm5, %v16509_v54  ;;  %v17708_v54 = vld [vmem:[#allocation31_spill] sm:$0xff] }
 0xe2f   : > { %11709 = vmatprep.subr.bf16.mxu0 %v17701_v31 }
 0xe36   : > { %11712 = vmatpush3.bf16.xpose.msk.msra.mxu0 %vm13431_vm5, %v16522_v30 }
 0xe37   : > { %11734 = vmatprep.subr.bf16.mxu0 %v17701_v31 }
 0xe3d   : > { %10849 = vmatmul.mubr.msk.f32.vlgmr.msra.gmra.mrb[124].mxu0 %vm449_vm0, %v6998_v28  ;;  %v17710_v28 = vpack.i.bf16 %v16378_v29, %v16388_v20 }
 0xe3e   : > { %10893 = vmatprep.mubr.msk.f32.mxu0 %vm13135_vm15, %v17672_v58 }
 0xec0   : > { %v6438_v49 = vpop.f32.mrb[80].mxu1  ;;  %v6535_v6 = vpop.f32.mrb[120].mxu0 }
 0xec1   : > { %v6439_v47 = vadd.f32 %v6438_v49, %v17708_v54  ;;  %v6536_v51 = vadd.f32 %v6535_v6, %v17708_v54  ;;  %v10712_v41 = vpop.f32.mrb[81].mxu1  ;;  %v10735_v30 = vpop.f32.mrb[121].mxu0  ;;  %v17711_v6 = vpack.i.bf16 %v16319_v5, %v16331_v13 }
 0xec3   : > { %v6539_v12 = vsel %vm6442_vm1, %v6536_v51, -inf  ;;  %v6443_v4 = vsel %vm6442_vm1, %v6439_v47, -inf }
 0xec4   : > { %6540 = vmax.xlane.f32.xlu1 %v6539_v12  ;;  %6444 = vmax.xlane.f32.xlu0 %v6443_v4  ;;  %v17712_v12 = vpack.i.bf16 %v16407_v46, %v16417_v21  ;;  %v17714_v46 = vpack.i.bf16 %v16352_v60, %v16362_v34  ;;  %v17715_v34 = vpack.i.bf16 %v16442_v22, %v16448_v33 }
 0xed5   : > { %12352 = vrot.lane.b32.xlu1 %v17709_v15, %s13132_s30 }
 0xed9   : > { %12357 = vrot.lane.b32.xlu1 %v17710_v28, %s13132_s30 }
 0xeda   : > { %12372 = vrot.lane.b32.xlu0 %v17711_v6, %s13132_s30 }
 0xedd   : > { %12362 = vrot.lane.b32.xlu1 %v17712_v12, %s13132_s30 }
 0xee1   : > { %12382 = vrot.lane.b32.xlu1 %v17713_v0, %s13132_s30 }
 0xee8   : > { %v6857_v55 = vpop.f32.mrb[122].mxu0 }
 0xee9   : > { %v10804_v41 = vpop.f32.mrb[123].mxu0  ;;  %v6858_v29 = vadd.f32 %v6857_v55, %v17708_v54 }
 0xeea   : > { %v17718_v41 = vpack.i.bf16 %v16355_v16, %v16365_v59  ;;  %v17719_v16 = vpack.i.bf16 %v16384_v23, %v16394_v26  ;;  %v12345_v26 = vunpack.i.h.bf16 %v16541_v9 }
 0xeeb   : > { %v6861_v20 = vsel %vm6442_vm1, %v6858_v29, -inf }
 0xef9   : > { %6862 = vmax.xlane.f32.xlu0 %v6861_v20 }
 0xf10   : > { %v7067_v49 = vpop.f32.mrb[124].mxu0 }
 0xf11   : > { %v7068_v5 = vadd.f32 %v7067_v49, %v17708_v54  ;;  %v10850_v13 = vpop.f32.mrb[125].mxu0 }
 0xf13   : > { %v7071_v30 = vsel %vm6442_vm1, %v7068_v5, -inf }
 0xf14   : > { %7072 = vmax.xlane.f32.xlu0 %v7071_v30 }
 0xf2a   : > { %12377 = vrot.lane.b32.xlu0 %v17714_v46, %s13132_s30 }
 0xf51   : > { %v6541_v61 = vpop.xlane.xlu1 %6540  ;;  %v6445_v21 = vpop.xlane.xlu0 %6444 }
 0xf52   : > { %v6542_v4 = vsub.f32 %v6536_v51, %v6541_v61  ;;  %v6446_v15 = vsub.f32 %v6439_v47, %v6445_v21  ;;  %v17716_v47 = vpack.i.bf16 %v16322_v8, %v16334_v44  ;;  %v17717_v51 = vpack.i.bf16 %v16410_v62, %v16420_v3 }
 0xf54   : > { %v6543_v28 = vmul.f32 1.442695, %v6542_v4  ;;  %v6447_v6 = vmul.f32 1.442695, %v6446_v15  ;;  %v12344_v15 = vunpack.i.l.bf16 %v16541_v9 }
 0xf55   : > { %v12373_v20 = vpop.permute.xlu0 %12372  ;;  %v12353_v46 = vpop.permute.xlu1 %12352 }
 0xf56   : > { %12986 = vpow2.f32 %v6543_v28 }
 0xf57   : > { %12988 = vpow2.f32 %v6447_v6 }
 0xf59   : > { %v12358_v61 = vpop.permute.xlu1 %12357 }
 0xf5d   : > { %v12363_v21 = vpop.permute.xlu1 %12362 }
 0xf60   : > { %v12987_v12 = vpop.eup %12986 }
 0xf61   : > { %v16873_v0 = vpop.eup %12988  ;;  %v6545_v55 = vsel %vm6442_vm1, %v12987_v12, 0.0  ;;  %v12383_v4 = vpop.permute.xlu1 %12382 }
 0xf62   : > { %6546 = vadd.xlane.f32.xlu1 %v6545_v55  ;;  %v6449_v60 = vsel %vm6442_vm1, %v16873_v0, 0.0 }
 0xf63   : > { %6450 = vadd.xlane.f32.xlu0 %v6449_v60  ;;  %v12354_v60 = vunpack.i.l.bf16 %v12353_v46 }
 0xf73   : > { %12392 = vrot.lane.b32.xlu1 %v17715_v34, %s13132_s30  ;;  %v12360_v34 = vunpack.i.h.bf16 %v12358_v61 }
 0xf77   : > { %12397 = vrot.lane.b32.xlu1 %v17716_v47, %s13132_s30  ;;  %v12359_v47 = vunpack.i.l.bf16 %v12358_v61 }
 0xf79   : > { %12387 = vrot.lane.b32.xlu0 %v17717_v51, %s13132_s30  ;;  %v11650_v9 = vpack.c.bf16 %v12360_v34, %v12359_v47  ;;  %v12364_v51 = vunpack.i.l.bf16 %v12363_v21 }
 0xf7b   : > { %12402 = vrot.lane.b32.xlu1 %v17718_v41, %s13132_s30  ;;  %v12370_v41 = vunpack.i.h.bf16 %v16871_v36 }
 0xf86   : > { %v6863_v49 = vpop.xlane.xlu0 %6862 }
 0xf87   : > { %v6864_v13 = vsub.f32 %v6858_v29, %v6863_v49  ;;  %v17720_v29 = vpack.i.bf16 %v16413_v18, %v16423_v43  ;;  %v11644_v18 = vpack.c.bf16 %v12345_v26, %v12344_v15  ;;  %v12355_v43 = vunpack.i.h.bf16 %v12353_v46 }
 0xf88   : > { %v12369_v49 = vunpack.i.l.bf16 %v16871_v36  ;;  %v12385_v36 = vunpack.i.h.bf16 %v12383_v4 }
 0xf89   : > { %v6865_v22 = vmul.f32 1.442695, %v6864_v13 }
 0xf8b   : > { %12990 = vpow2.f32 %v6865_v22 }
 0xf95   : > { %v16894_v33 = vpop.eup %12990 }
 0xf96   : > { %v6867_v8 = vsel %vm6442_vm1, %v16894_v33, 0.0 }
 0xf9f   : > { %6868 = vadd.xlane.f32.xlu1 %v6867_v8  ;;  %v11656_v8 = vpack.c.bf16 %v12370_v41, %v12369_v49 }
 0xfa1   : > { %v7073_v44 = vpop.xlane.xlu0 %7072 }
 0xfa2   : > { %v7074_v30 = vsub.f32 %v7068_v5, %v7073_v44  ;;  %v17721_v5 = vpack.i.bf16 %v16463_v2, %v16459_v45  ;;  %v11647_v2 = vpack.c.bf16 %v12355_v43, %v12354_v60  ;;  %v12375_v44 = vunpack.i.h.bf16 %v12373_v20 }
 0xfa4   : > { %v7075_v62 = vmul.f32 1.442695, %v7074_v30  ;;  %v12374_v30 = vunpack.i.l.bf16 %v12373_v20 }
 0xfa5   : > { %v12378_v6 = vpop.permute.xlu0 %12377 }
 0xfa6   : > { %12992 = vpow2.f32 %v7075_v62 }
 0xfb0   : > { %v16898_v3 = vpop.eup %12992  ;;  %12407 = vrot.lane.b32.xlu1 %v17719_v16, %s13132_s30  ;;  %v11679_v16 = vpack.c.bf16 %v12375_v44, %v12374_v30 }
 0xfb1   : > { %v7077_v59 = vsel %vm6442_vm1, %v16898_v3, 0.0 }
 0xfb2   : > { %7078 = vadd.xlane.f32.xlu0 %v7077_v59  ;;  %v12380_v59 = vunpack.i.h.bf16 %v12378_v6 }
 0xfb4   : > { %12412 = vrot.lane.b32.xlu1 %v17720_v29, %s13132_s30  ;;  %v12379_v29 = vunpack.i.l.bf16 %v12378_v6 }
 0xfb6   : > { %v11682_v46 = vpack.c.bf16 %v12380_v59, %v12379_v29  ;;  %v9178_v29 = vld [vmem:[%s17423_s5 + $0x20] sm:$0xff] }
 0xfc8   : > { %12417 = vrot.lane.b32.xlu0 %v17721_v5, %s13132_s30  ;;  %v12384_v5 = vunpack.i.l.bf16 %v12383_v4 }
 0xfef   : > { %v6547_v23 = vpop.xlane.xlu1 %6546 }
 0xff0   : > { %12994 = vrcp.f32 %v6547_v23  ;;  %v6451_v45 = vpop.xlane.xlu0 %6450 }
 0xff1   : > { %12996 = vrcp.f32 %v6451_v45 }
 0xff3   : > { %v12393_v23 = vpop.permute.xlu1 %12392 }
 0xff4   : > { %v12388_v20 = vpop.permute.xlu0 %12387  ;;  %v12395_v26 = vunpack.i.h.bf16 %v12393_v23  ;;  %v12394_v15 = vunpack.i.l.bf16 %v12393_v23 }
 0xff5   : > { %v12390_v61 = vunpack.i.h.bf16 %v12388_v20 }
 0xff6   : > { %v11691_v6 = vpack.c.bf16 %v12395_v26, %v12394_v15  ;;  %v16974_v15 = vld [vmem:[%s17427_s9 + $0x8] sm:$0x3f] }
 0xff7   : > { %v12398_v4 = vpop.permute.xlu1 %12397 }
 0xff8   : > { %v12400_v43 = vunpack.i.h.bf16 %v12398_v4  ;;  %v12399_v60 = vunpack.i.l.bf16 %v12398_v4 }
 0xffa   : > { %v12995_v28 = vpop.eup %12994  ;;  %v11714_v47 = vpack.c.bf16 %v12400_v43, %v12399_v60  ;;  %v17722_v60 = vpack.i.bf16 %v16562_v42, %v16565_v35  ;;  %v17728_v35 = vld [vmem:[#allocation46_spill] sm:$0xff] }
 0xffb   : > { %v6549_v55 = vmul.f32 %v12995_v28, %v12987_v12  ;;  %v12365_v12 = vunpack.i.h.bf16 %v12363_v21  ;;  %v12997_v22 = vpop.eup %12996  ;;  %v12389_v21 = vunpack.i.l.bf16 %v12388_v20 }
 0xffc   : > { %v6453_v62 = vmul.f32 %v12997_v22, %v16873_v0  ;;  %v11685_v0 = vpack.c.bf16 %v12385_v36, %v12384_v5  ;;  %v9179_v36 = vld [vmem:[%s17423_s5 + $0x28] sm:$0xff] }
 0xffd   : > { %10757 = vmatmul.mubr.msk.f32.vlgmr.msra.gmra.mrb[82].mxu1 %vm900_vm13, %v6549_v55  ;;  %v11653_v13 = vpack.c.bf16 %v12365_v12, %v12364_v51  ;;  %v11688_v28 = vpack.c.bf16 %v12390_v61, %v12389_v21  ;;  %v12403_v55 = vpop.permute.xlu1 %12402  ;;  %v9180_v61 = vld [vmem:[%s17423_s5 + $0x30] sm:$0xff]  ;;  %v9181_v21 = vld [vmem:[%s17423_s5 + $0x38] sm:$0xff] }
 0xffe   : > { %11645 = vmatpush3.bf16.msra.mxu1 %v11644_v18  ;;  %10779 = vmatprep.mubr.msk.f32.mxu1 %vm13135_vm15, %v17672_v58  ;;  %v12404_v12 = vunpack.i.l.bf16 %v12403_v55  ;;  %v16961_v23 = vpack.c.bf16 %v9181_v21, %v9180_v61 }
 0xfff   : > { %11646 = vmatprep.subr.bf16.mxu1 %v17701_v31 }
0x1002   : > { %11648 = vmatpush3.bf16.msra.mxu1 %v11647_v2 }
0x1003   : > { %11649 = vmatprep.subr.bf16.mxu1 %v17701_v31 }
0x1006   : > { %11651 = vmatpush3.bf16.msra.mxu1 %v11650_v9  ;;  %v12405_v9 = vunpack.i.h.bf16 %v12403_v55 }
0x1007   : > { %11652 = vmatprep.subr.bf16.mxu1 %v17701_v31 }
0x1008   : > { %v11717_v51 = vpack.c.bf16 %v12405_v9, %v12404_v12  ;;  %v17736_v9 = vld [vmem:[#allocation42_spill] sm:$0xff] }
0x100a   : > { %11654 = vmatpush3.bf16.msra.mxu1 %v11653_v13 }
0x100b   : > { %11655 = vmatprep.subr.bf16.mxu1 %v17701_v31 }
0x100e   : > { %11657 = vmatpush3.bf16.msra.mxu1 %v11656_v8 }
0x100f   : > { %11678 = vmatprep.subr.bf16.mxu1 %v17701_v31 }
0x1011   : > { %10780 = vmatmul.mubr.msk.f32.vlgmr.msra.gmra.mrb[82].mxu1 %vm900_vm13, %v6453_v62 }
0x1012   : > { %11680 = vmatpush3.bf16.msra.mxu1 %v11679_v16  ;;  %10825 = vmatprep.mubr.msk.f32.mxu1 %vm13135_vm15, %v17672_v58 }
0x1013   : > { %11681 = vmatprep.subr.bf16.mxu1 %v17701_v31 }
0x1016   : > { %11683 = vmatpush3.bf16.msra.mxu1 %v11682_v46 }
0x1017   : > { %11684 = vmatprep.subr.bf16.mxu1 %v17701_v31 }
0x101a   : > { %11686 = vmatpush3.bf16.msra.mxu1 %v11685_v0  ;;  %v16950_v0 = vpack.c.bf16 %v9179_v36, %v9178_v29  ;;  %v7303_v29 = vrot.slane %v16974_v15, 5 }
0x101b   : > { %11687 = vmatprep.subr.bf16.mxu1 %v17701_v31 }
0x101e   : > { %11689 = vmatpush3.bf16.msra.mxu1 %v11688_v28 }
0x101f   : > { %11690 = vmatprep.subr.bf16.mxu1 %v17701_v31 }
0x1022   : > { %11692 = vmatpush3.bf16.msra.mxu1 %v11691_v6 }
0x1023   : > { %11713 = vmatprep.subr.bf16.mxu1 %v17701_v31 }
0x102c   : > { %v6869_v18 = vpop.xlane.xlu1 %6868 }
0x102d   : > { %12998 = vrcp.f32 %v6869_v18 }
0x1030   : > { %v12408_v34 = vpop.permute.xlu1 %12407 }
0x1031   : > { %v12410_v41 = vunpack.i.h.bf16 %v12408_v34  ;;  %v12409_v49 = vunpack.i.l.bf16 %v12408_v34  ;;  %v17726_v34 = vld [vmem:[#allocation20_spill] sm:$0xff] }
0x1032   : > { %v17727_v42 = vpack.i.bf16 %v16569_v17, %v17726_v34 }
0x1034   : > { %v12413_v13 = vpop.permute.xlu1 %12412 }
0x1035   : > { %v12415_v8 = vunpack.i.h.bf16 %v12413_v13  ;;  %v12414_v44 = vunpack.i.l.bf16 %v12413_v13  ;;  %v9183_v13 = vld [vmem:[%s17424_s6 + $0x20] sm:$0xff] }
0x1037   : > { %v12999_v45 = vpop.eup %12998  ;;  %v11723_v62 = vpack.c.bf16 %v12415_v8, %v12414_v44  ;;  %v9186_v44 = vld [vmem:[%s17424_s6 + $0x38] sm:$0xff] }
0x1038   : > { %v6871_v2 = vmul.f32 %v12999_v45, %v16894_v33  ;;  %v11720_v33 = vpack.c.bf16 %v12410_v41, %v12409_v49  ;;  %v17723_v45 = vpack.i.bf16 %v16646_v11, %v16657_v19  ;;  %v17729_v19 = vpack.i.bf16 %v16667_v40, %v17728_v35 }
0x1039   : > { %v17731_v11 = vpack.i.bf16 %v16782_v27, %v16796_v7  ;;  %v17738_v7 = vld [vmem:[#allocation16_spill] sm:$0xff]  ;;  %v17739_v27 = vld [vmem:[#allocation21_spill] sm:$0xff] }
0x103a   : > { %10826 = vmatmul.mubr.msk.f32.vlgmr.msra.gmra.mrb[82].mxu1 %vm900_vm13, %v6871_v2  ;;  %v17724_v2 = vpack.i.bf16 %v16694_v57, %v16707_v48  ;;  %v17730_v57 = vpack.i.bf16 %v16721_v56, %v16737_v1  ;;  %v17732_v48 = vld [vmem:[#allocation17_spill] sm:$0xff]  ;;  %v17740_v49 = vpack.i.bf16 %v17738_v7, %v17739_v27 }
0x103b   : > { %11715 = vmatpush3.bf16.msra.mxu1 %v11714_v47  ;;  %10871 = vmatprep.mubr.msk.f32.mxu1 %vm13135_vm15, %v17672_v58  ;;  %v17735_v47 = vld [vmem:[#allocation18_spill] sm:$0xff] }
0x103c   : > { %11716 = vmatprep.subr.bf16.mxu1 %v17701_v31  ;;  %v17737_v40 = vpack.i.bf16 %v17735_v47, %v17736_v9  ;;  %v17741_v9 = vld [vmem:[#allocation14_spill] sm:$0xff] }
0x103d   : > { %v9191_v7 = vld [vmem:[%s17426_s8 + $0x50] sm:$0xff] }
0x103f   : > { %11718 = vmatpush3.bf16.msra.mxu1 %v11717_v51  ;;  %v7079_v22 = vpop.xlane.xlu0 %7078 }
0x1040   : > { %13000 = vrcp.f32 %v7079_v22  ;;  %11719 = vmatprep.subr.bf16.mxu1 %v17701_v31  ;;  %v9184_v22 = vld [vmem:[%s17424_s6 + $0x28] sm:$0xff] }
0x1041   : > { %v17033_v8 = vpack.c.bf16 %v9184_v22, %v9183_v13  ;;  %v9193_v22 = vld [vmem:[%s17426_s8 + $0x60] sm:$0xff] }
0x1043   : > { %11721 = vmatpush3.bf16.msra.mxu1 %v11720_v33  ;;  %v12418_v30 = vpop.permute.xlu0 %12417  ;;  %v9185_v33 = vld [vmem:[%s17424_s6 + $0x30] sm:$0xff]  ;;  %11736 = vmatpush3.bf16.msra.mxu0 %v17033_v8 }
0x1044   : > { %11722 = vmatprep.subr.bf16.mxu1 %v17701_v31  ;;  %v12420_v16 = vunpack.i.h.bf16 %v12418_v30  ;;  %v12419_v59 = vunpack.i.l.bf16 %v12418_v30  ;;  %v17039_v30 = vpack.c.bf16 %v9186_v44, %v9185_v33  ;;  %11737 = vmatprep.subr.bf16.mxu0 %v17701_v31  ;;  %v9194_v33 = vld [vmem:[%s17426_s8 + $0x68] sm:$0xff] }
0x1045   : > { %v17120_v44 = vpack.c.bf16 %v9194_v33, %v9193_v22 }
0x1046   : > { %v11726_v5 = vpack.c.bf16 %v12420_v16, %v12419_v59 }
0x1047   : > { %11724 = vmatpush3.bf16.msra.mxu1 %v11723_v62  ;;  %11739 = vmatpush3.bf16.msra.mxu0 %v17039_v30 }
0x1048   : > { %11725 = vmatprep.subr.bf16.mxu1 %v17701_v31  ;;  %11752 = vmatprep.subr.bf16.mxu0 %v17701_v31 }
0x104a   : > { %v13001_v46 = vpop.eup %13000 }
0x104b   : > { %v7081_v20 = vmul.f32 %v13001_v46, %v16898_v3  ;;  %11727 = vmatpush3.bf16.msra.mxu1 %v11726_v5 }
0x104c   : > { %11728 = vmatprep.subr.bf16.mxu1 %v17701_v31 }
0x104e   : > { %10872 = vmatmul.mubr.msk.f32.vlgmr.msra.gmra.mrb[82].mxu1 %vm900_vm13, %v7081_v20  ;;  %v7306_v20 = vrot.slane %v16974_v15, 6 }
0x104f   : > { %11730 = vmatpush3.bf16.msra.mxu1 %v16950_v0  ;;  %10882 = vmatprep.mubr.msk.f32.mxu1 %vm13135_vm15, %v17672_v58 }
0x1050   : > { %11731 = vmatprep.subr.bf16.mxu1 %v17701_v31 }
0x1053   : > { %11733 = vmatpush3.bf16.msra.mxu1 %v16961_v23 }
0x1054   : > { %11740 = vmatprep.subr.bf16.mxu1 %v17701_v31 }
0x1121   : > { %v7201_v3 = vpop.f32.mrb[82].mxu1 }
0x1122   : > { %v10873_v26 = vpop.f32.mrb[83].mxu1  ;;  %10883 = vmatmul.mubr.msk.f32.vlgmr.msra.gmra.mrb[84].mxu1 %vm449_vm0, %v7201_v3 }
0x1123   : > { %10912 = vmatprep.mubr.msk.f32.mxu1 %vm13135_vm15, %v17672_v58 }
0x11f5   : > { %v7280_v28 = vpop.f32.mrb[84].mxu1 }
0x11f6   : > { %v7281_v6 = vadd.f32 %v16974_v15, %v7280_v28  ;;  %v10884_v4 = vpop.f32.mrb[85].mxu1 }
0x11f8   : > { %v7285_v55 = vrot.slane %v7281_v6, 4 }
0x11fa   : > { %v7287_v18 = vadd.f32 %v7285_v55, %v16237_v25  ;;  %v17725_v25 = vpack.i.bf16 %v16774_v38, %v16778_v10  ;;  %v17733_v10 = vld [vmem:[#allocation23_spill] sm:$0xff] }
0x11fb   : > { %v17734_v17 = vpack.i.bf16 %v17732_v48, %v17733_v10  ;;  %v17081_v10 = vmul.f32 0.35355338, %v16774_v38  ;;  %v9189_v38 = vld [vmem:[%s17426_s8 + $0x40] sm:$0xff] }
0x11fc   : > { %v7289_v43 = vsel %vm7288_vm2, %v7287_v18, 0.0 }
0x11fd   : > { %7290 = vadd.xlane.f32.xlu1 %v7289_v43 }
0x120e   : > { %12422 = vrot.lane.b32.xlu1 %v17722_v60, %s13131_s29 }
0x1212   : > { %12432 = vrot.lane.b32.xlu1 %v17723_v45, %s13131_s29 }
0x1216   : > { %12437 = vrot.lane.b32.xlu1 %v17724_v2, %s13131_s29 }
0x121a   : > { %12442 = vrot.lane.b32.xlu1 %v17725_v25, %s13131_s29 }
0x121e   : > { %12447 = vrot.lane.b32.xlu1 %v17727_v42, %s13132_s30 }
0x1222   : > { %12457 = vrot.lane.b32.xlu1 %v17729_v19, %s13132_s30 }
0x1226   : > { %12462 = vrot.lane.b32.xlu1 %v17730_v57, %s13132_s30 }
0x122a   : > { %12467 = vrot.lane.b32.xlu1 %v17731_v11, %s13132_s30 }
0x122e   : > { %12472 = vrot.lane.b32.xlu1 %v17734_v17, %s13132_s30 }
0x1232   : > { %12477 = vrot.lane.b32.xlu1 %v17737_v40, %s13132_s30  ;;  %v7506_v40 = vmul.f32 %v17741_v9, %v17081_v10  ;;  %v17744_v9 = vld [vmem:[#allocation32_spill] sm:$0xff] }
0x128a   : > { %v7291_v12 = vpop.xlane.xlu1 %7290 }
0x128b   : > { %v7292_v51 = vmul.f32 0.03125, %v7291_v12 }
0x128d   : > { %v7293_v41 = vsub.f32 %v7287_v18, %v7292_v51 }
0x128e   : > { %v12423_v5 = vpop.permute.xlu1 %12422 }
0x128f   : > { %v7294_v56 = vmul.f32 %v7293_v41, %v7293_v41  ;;  %v12425_v21 = vunpack.i.h.bf16 %v12423_v5  ;;  %v12424_v3 = vunpack.i.l.bf16 %v12423_v5 }
0x1291   : > { %v7295_v1 = vsel %vm7288_vm2, %v7294_v56, 0.0  ;;  %v17053_v6 = vpack.c.bf16 %v12425_v21, %v12424_v3 }
0x1292   : > { %7296 = vadd.xlane.f32.xlu0 %v7295_v1  ;;  %v12433_v60 = vpop.permute.xlu1 %12432  ;;  %v9190_v1 = vld [vmem:[%s17426_s8 + $0x48] sm:$0xff] }
0x1293   : > { %v12435_v45 = vunpack.i.h.bf16 %v12433_v60  ;;  %v12434_v2 = vunpack.i.l.bf16 %v12433_v60  ;;  %v17104_v27 = vpack.c.bf16 %v9190_v1, %v9189_v38 }
0x1295   : > { %v17068_v25 = vpack.c.bf16 %v12435_v45, %v12434_v2  ;;  %11742 = vmatpush3.bf16.msra.mxu1 %v17104_v27 }
0x1296   : > { %v12438_v34 = vpop.permute.xlu1 %12437  ;;  %11743 = vmatprep.subr.bf16.mxu1 %v17701_v31 }
0x1297   : > { %v12440_v42 = vunpack.i.h.bf16 %v12438_v34  ;;  %v12439_v35 = vunpack.i.l.bf16 %v12438_v34 }
0x1299   : > { %v17074_v19 = vpack.c.bf16 %v12440_v42, %v12439_v35 }
0x129a   : > { %v12443_v57 = vpop.permute.xlu1 %12442 }
0x129b   : > { %v12445_v11 = vunpack.i.h.bf16 %v12443_v57  ;;  %v12444_v48 = vunpack.i.l.bf16 %v12443_v57 }
0x129d   : > { %v17083_v17 = vpack.c.bf16 %v12445_v11, %v12444_v48  ;;  %v17742_v11 = vld [vmem:[#allocation15_spill] sm:$0xff] }
0x129e   : > { %v12448_v47 = vpop.permute.xlu1 %12447  ;;  %v7652_v48 = vmul.f32 %v17742_v11, %v17081_v10 }
0x129f   : > { %v12450_v12 = vunpack.i.h.bf16 %v12448_v47  ;;  %v12449_v51 = vunpack.i.l.bf16 %v12448_v47  ;;  %v17743_v47 = vld [vmem:[#allocation41_spill] sm:$0xff] }
0x12a1   : > { %v11793_v56 = vpack.c.bf16 %v12450_v12, %v12449_v51  ;;  %v7654_v12 = vrot.slane %v7652_v48, 4  ;;  %v17746_v51 = vld [vmem:[#allocation27_spill] sm:$0xff] }
0x12a2   : > { %v12458_v63 = vpop.permute.xlu1 %12457 }
0x12a6   : > { %v12463_v1 = vpop.permute.xlu1 %12462 }
0x12a7   : > { %v12465_v22 = vunpack.i.h.bf16 %v12463_v1  ;;  %v12464_v33 = vunpack.i.l.bf16 %v12463_v1 }
0x12a8   : > { %12427 = vrot.lane.b32.xlu0 %v17740_v49, %s13131_s29  ;;  %v9192_v49 = vld [vmem:[%s17426_s8 + $0x58] sm:$0xff]  ;;  %s9267_s29 = sshll.u32 %s13216_s21, 5  ;;  %s13136_s21 = smov [#allocation4]  }
0x12a9   : > { %v17110_v13 = vpack.c.bf16 %v9192_v49, %v9191_v7  ;;  %v12460_v7 = vunpack.i.h.bf16 %v12458_v63  ;;  %s17375_s11 = scalar_lea.hbm %s17428_s10, %s9267_s29 }
0x12ab   : > { %11745 = vmatpush3.bf16.msra.mxu1 %v17110_v13 }
0x12ac   : > { %11746 = vmatprep.subr.bf16.mxu1 %v17701_v31 }
0x12af   : > { %11748 = vmatpush3.bf16.msra.mxu1 %v17120_v44 }
0x12b0   : > { %11749 = vmatprep.subr.bf16.mxu1 %v17701_v31 }
0x131f   : > { %v7297_v62 = vpop.xlane.xlu0 %7296 }
0x1320   : > { %v7298_v16 = vmul.f32 0.03125, %v7297_v62  ;;  %v9195_v62 = vld [vmem:[%s17426_s8 + $0x70] sm:$0xff] }
0x1322   : > { %v7299_v59 = vadd.f32 1e-05, %v7298_v16  ;;  %v9196_v16 = vld [vmem:[%s17426_s8 + $0x78] sm:$0xff] }
0x1323   : > { %v12428_v4 = vpop.permute.xlu0 %12427 }
0x1324   : > { %13002 = vrsqrt.f32 %v7299_v59  ;;  %v12430_v55 = vunpack.i.h.bf16 %v12428_v4  ;;  %v12429_v18 = vunpack.i.l.bf16 %v12428_v4  ;;  %v17130_v59 = vpack.c.bf16 %v9196_v16, %v9195_v62 }
0x1325   : > { %v11802_v16 = vpack.c.bf16 %v12465_v22, %v12464_v33  ;;  %v17764_v33 = vld [vmem:[#allocation40_spill] sm:$0xff] }
0x1326   : > { %v17062_v43 = vpack.c.bf16 %v12430_v55, %v12429_v18  ;;  %11751 = vmatpush3.bf16.msra.mxu1 %v17130_v59 }
0x1327   : > { %11772 = vmatprep.subr.bf16.mxu1 %v17701_v31 }
0x132e   : > { %v13003_v36 = vpop.eup %13002 }
0x132f   : > { %v7301_v46 = vmul.f32 %v13003_v36, %v7293_v41  ;;  %v7508_v41 = vrot.slane %v7506_v40, 4  ;;  %v9187_v36 = vld [vmem:[%s17425_s7 + $0x1] sm:$0x1]  ;;  %v17745_v40 = vpack.i.bf16 %v17743_v47, %v17744_v9  ;;  %v17751_v47 = vpack.i.bf16 %v16725_v53, %v16741_v24  ;;  %v17752_v9 = vld [vmem:[#allocation34_spill] sm:$0xff] }
0x1331   : > { %v7305_v61 = vmul.f32 %v7303_v29, %v7301_v46 }
0x1333   : > { %v17050_v26 = vadd.f32 %v7306_v20, %v7305_v61 }
0x1335   : > { %v7317_v28 = vrot.slane %v17050_v26, 4 }
0x1337   : > { %10894 = vmatmul.mubr.msk.f32.vlgmr.msra.gmra.mrb[126].mxu0 %vm449_vm0, %v7317_v28 }
0x1338   : > { %11755 = vmatpush3.bf16.xpose.msk.msra.mxu0 %vm13431_vm5, %v17053_v6  ;;  %10935 = vmatprep.mubr.msk.f32.mxu0 %vm13135_vm15, %v17672_v58 }
0x1339   : > { %11756 = vmatprep.subr.bf16.mxu0 %v17701_v31 }
0x1340   : > { %11759 = vmatpush3.bf16.xpose.msk.msra.mxu0 %vm13431_vm5, %v17062_v43 }
0x1341   : > { %11760 = vmatprep.subr.bf16.mxu0 %v17701_v31 }
0x1348   : > { %11763 = vmatpush3.bf16.xpose.msk.msra.mxu0 %vm13431_vm5, %v17068_v25 }
0x1349   : > { %11764 = vmatprep.subr.bf16.mxu0 %v17701_v31 }
0x1350   : > { %11767 = vmatpush3.bf16.xpose.msk.msra.mxu0 %vm13431_vm5, %v17074_v19 }
0x1351   : > { %11768 = vmatprep.subr.bf16.mxu0 %v17701_v31 }
0x1358   : > { %11771 = vmatpush3.bf16.xpose.msk.msra.mxu0 %vm13431_vm5, %v17083_v17 }
0x1359   : > { %11792 = vmatprep.subr.bf16.mxu0 %v17701_v31 }
0x135f   : > { %10936 = vmatmul.mubr.msk.f32.vlgmr.msra.gmra.mrb[128].mxu0 %vm449_vm0, %v7508_v41  ;;  %v7974_v41 = vmul.f32 %v17746_v51, %v17081_v10 }
0x1360   : > { %11794 = vmatpush3.bf16.msra.mxu0 %v11793_v56  ;;  %10981 = vmatprep.mubr.msk.f32.mxu0 %vm13135_vm15, %v17672_v58 }
0x1361   : > { %11795 = vmatprep.subr.bf16.mxu0 %v17701_v31  ;;  %v7976_v56 = vrot.slane %v7974_v41, 4 }
0x140a   : > { %v7386_v5 = vpop.f32.mrb[126].mxu0 }
0x140b   : > { %v7387_v46 = vadd.f32 %v9187_v36, %v7386_v5  ;;  %v10895_v61 = vpop.f32.mrb[127].mxu0 }
0x140c   : > { %v17747_v61 = vpack.i.bf16 %v16786_v39, %v16800_v50  ;;  %v17748_v39 = vld [vmem:[#allocation35_spill] sm:$0xff]  ;;  %v17749_v50 = vld [vmem:[#allocation44_spill] sm:$0xff] }
0x140d   : > { %v7391_v21 = vmul.f32 0.044715, %v7387_v46  ;;  %v7390_v60 = vmul.f32 0.5, %v7387_v46 }
0x140f   : > { %v7392_v3 = vmul.f32 %v7391_v21, %v7387_v46 }
0x1411   : > { %v7393_v28 = vmul.f32 %v7392_v3, %v7387_v46 }
0x1413   : > { %v7394_v4 = vadd.f32 %v7393_v28, %v7387_v46 }
0x1415   : > { %v7395_v55 = vmul.f32 0.7978846, %v7394_v4 }
0x1417   : > { %13004 = vtanh.f32 %v7395_v55 }
0x1421   : > { %v13005_v18 = vpop.eup %13004 }
0x1422   : > { %v7397_v45 = vadd.f32 1.0, %v13005_v18 }
0x1424   : > { %v7398_v2 = vmul.f32 %v7397_v45, %v7390_v60 }
0x1426   : > { %10913 = vmatmul.mubr.msk.f32.vlgmr.msra.gmra.mrb[86].mxu1 %vm5522_vm14, %v7398_v2 }
0x1427   : > { %11775 = vmatpush3.bf16.xpose.msk.msra.mxu1 %vm13431_vm5, %v17053_v6  ;;  %10958 = vmatprep.mubr.msk.f32.mxu1 %vm13135_vm15, %v17672_v58 }
0x1428   : > { %11776 = vmatprep.subr.bf16.mxu1 %v17701_v31 }
0x142f   : > { %11779 = vmatpush3.bf16.xpose.msk.msra.mxu1 %vm13431_vm5, %v17062_v43 }
0x1430   : > { %11780 = vmatprep.subr.bf16.mxu1 %v17701_v31 }
0x1432   : > { %v7627_v34 = vpop.f32.mrb[128].mxu0 }
0x1433   : > { %v7628_v42 = vadd.f32 %v7627_v34, %v17708_v54  ;;  %v10937_v35 = vpop.f32.mrb[129].mxu0 }
0x1435   : > { %v7631_v57 = vsel %vm6442_vm1, %v7628_v42, -inf }
0x1436   : > { %7632 = vmax.xlane.f32.xlu0 %v7631_v57 }
0x1437   : > { %11783 = vmatpush3.bf16.xpose.msk.msra.mxu1 %vm13431_vm5, %v17068_v25 }
0x1438   : > { %11784 = vmatprep.subr.bf16.mxu1 %v17701_v31 }
0x143f   : > { %11787 = vmatpush3.bf16.xpose.msk.msra.mxu1 %vm13431_vm5, %v17074_v19 }
0x1440   : > { %11788 = vmatprep.subr.bf16.mxu1 %v17701_v31 }
0x1447   : > { %11791 = vmatpush3.bf16.xpose.msk.msra.mxu1 %vm13431_vm5, %v17083_v17 }
0x1448   : > { %11822 = vmatprep.subr.bf16.mxu1 %v17701_v31 }
0x144c   : > { %12452 = vrot.lane.b32.xlu0 %v17745_v40, %s13132_s30  ;;  %v17753_v40 = vld [vmem:[#allocation45_spill] sm:$0xff] }
0x144e   : > { %10959 = vmatmul.mubr.msk.f32.vlgmr.msra.gmra.mrb[88].mxu1 %vm449_vm0, %v7654_v12  ;;  %v17754_v12 = vpack.i.bf16 %v17752_v9, %v17753_v40 }
0x144f   : > { %11825 = vmatpush3.bf16.xpose.msk.msra.mxu1 %vm13431_vm5, %v17053_v6  ;;  %11027 = vmatprep.mubr.msk.f32.mxu1 %vm13135_vm15, %v17672_v58 }
0x1450   : > { %11826 = vmatprep.subr.bf16.mxu1 %v17701_v31 }
0x1457   : > { %11829 = vmatpush3.bf16.xpose.msk.msra.mxu1 %vm13431_vm5, %v17062_v43 }
0x1458   : > { %11830 = vmatprep.subr.bf16.mxu1 %v17701_v31 }
0x145f   : > { %11833 = vmatpush3.bf16.xpose.msk.msra.mxu1 %vm13431_vm5, %v17068_v25 }
0x1460   : > { %11834 = vmatprep.subr.bf16.mxu1 %v17701_v31 }
0x1467   : > { %11837 = vmatpush3.bf16.xpose.msk.msra.mxu1 %vm13431_vm5, %v17074_v19 }
0x1468   : > { %11838 = vmatprep.subr.bf16.mxu1 %v17701_v31 }
0x146f   : > { %11841 = vmatpush3.bf16.xpose.msk.msra.mxu1 %vm13431_vm5, %v17083_v17 }
0x1470   : > { %11857 = vmatprep.subr.bf16.mxu1 %v17701_v31 }
0x1476   : > { %11028 = vmatmul.mubr.msk.f32.vlgmr.msra.gmra.mrb[90].mxu1 %vm449_vm0, %v7976_v56 }
0x1477   : > { %11860 = vmatpush3.bf16.xpose.msk.msra.mxu1 %vm13431_vm5, %v17053_v6  ;;  %11073 = vmatprep.mubr.msk.f32.mxu1 %vm13135_vm15, %v17672_v58  ;;  %v8184_v6 = vmul.f32 %v17707_v14, %v17081_v10 }
0x1478   : > { %11861 = vmatprep.subr.bf16.mxu1 %v17701_v31 }
0x147f   : > { %11864 = vmatpush3.bf16.xpose.msk.msra.mxu1 %vm13431_vm5, %v17062_v43  ;;  %v8186_v43 = vrot.slane %v8184_v6, 4 }
0x1480   : > { %11865 = vmatprep.subr.bf16.mxu1 %v17701_v31 }
0x1487   : > { %11868 = vmatpush3.bf16.xpose.msk.msra.mxu1 %vm13431_vm5, %v17068_v25 }
0x1488   : > { %11869 = vmatprep.subr.bf16.mxu1 %v17701_v31 }
0x148f   : > { %11872 = vmatpush3.bf16.xpose.msk.msra.mxu1 %vm13431_vm5, %v17074_v19 }
0x1490   : > { %11873 = vmatprep.subr.bf16.mxu1 %v17701_v31 }
0x1497   : > { %11876 = vmatpush3.bf16.xpose.msk.msra.mxu1 %vm13431_vm5, %v17083_v17 }
0x1498   : > { %11904 = vmatprep.subr.bf16.mxu1 %v17701_v31 }
0x149e   : > { %11074 = vmatmul.mubr.msk.f32.vlgmr.msra.gmra.mrb[92].mxu1 %vm449_vm0, %v8186_v43 }
0x149f   : > { %11906 = vmatpush3.bf16.msra.mxu1 %v17104_v27  ;;  %11137 = vmatprep.mubr.msk.f32.mxu1 %vm13135_vm15, %v17672_v58  ;;  %v12459_v27 = vunpack.i.l.bf16 %v12458_v63 }
0x14a0   : > { %11907 = vmatprep.subr.bf16.mxu1 %v17701_v31 }
0x14a3   : > { %11909 = vmatpush3.bf16.msra.mxu1 %v17110_v13  ;;  %v11799_v13 = vpack.c.bf16 %v12460_v7, %v12459_v27  ;;  %v17761_v7 = vpack.i.bf16 %v16729_v37, %v16745_v52  ;;  %v17768_v37 = vld [vmem:[#allocation33_spill] sm:$0xff] }
0x14a4   : > { %11910 = vmatprep.subr.bf16.mxu1 %v17701_v31 }
0x14a7   : > { %11912 = vmatpush3.bf16.msra.mxu1 %v17120_v44  ;;  %v12468_v44 = vpop.permute.xlu1 %12467 }
0x14a8   : > { %11913 = vmatprep.subr.bf16.mxu1 %v17701_v31  ;;  %v12469_v36 = vunpack.i.l.bf16 %v12468_v44 }
0x14ab   : > { %11915 = vmatpush3.bf16.msra.mxu1 %v17130_v59  ;;  %v12470_v59 = vunpack.i.h.bf16 %v12468_v44  ;;  %v12473_v51 = vpop.permute.xlu1 %12472  ;;  %v17765_v44 = vld [vmem:[#allocation19_spill] sm:$0xff] }
0x14ad   : > { %v11805_v46 = vpack.c.bf16 %v12470_v59, %v12469_v36  ;;  %v17767_v59 = vld [vmem:[#allocation38_spill] sm:$0xff]  ;;  %v17770_v36 = vld [vmem:[#allocation8_spill] sm:$0xff] }
0x14ae   : > { %v17769_v52 = vpack.i.bf16 %v17767_v59, %v17768_v37 }
0x14af   : > { %v12478_v41 = vpop.permute.xlu1 %12477 }
0x14b0   : > { %v12480_v40 = vunpack.i.h.bf16 %v12478_v41 }
0x14c3   : > { %v7633_v14 = vpop.xlane.xlu0 %7632 }
0x14c4   : > { %v7634_v25 = vsub.f32 %v7628_v42, %v7633_v14  ;;  %v17750_v42 = vpack.i.bf16 %v17748_v39, %v17749_v50  ;;  %v17755_v14 = vld [vmem:[#allocation37_spill] sm:$0xff] }
0x14c6   : > { %v7635_v19 = vmul.f32 1.442695, %v7634_v25  ;;  %v17756_v25 = vld [vmem:[#allocation22_spill] sm:$0xff] }
0x14c7   : > { %v12453_v10 = vpop.permute.xlu0 %12452  ;;  %v17757_v24 = vpack.i.bf16 %v17755_v14, %v17756_v25 }
0x14c8   : > { %13006 = vpow2.f32 %v7635_v19  ;;  %v12455_v17 = vunpack.i.h.bf16 %v12453_v10  ;;  %v12454_v38 = vunpack.i.l.bf16 %v12453_v10 }
0x14ca   : > { %v11796_v49 = vpack.c.bf16 %v12455_v17, %v12454_v38  ;;  %v17758_v17 = vld [vmem:[#allocation29_spill] sm:$0xff]  ;;  %v17759_v38 = vld [vmem:[#allocation39_spill] sm:$0xff] }
0x14cb   : > { %v17760_v1 = vpack.i.bf16 %v17758_v17, %v17759_v38 }
0x14cc   : > { %11797 = vmatpush3.bf16.msra.mxu0 %v11796_v49 }
0x14cd   : > { %11798 = vmatprep.subr.bf16.mxu0 %v17701_v31 }
0x14d0   : > { %11800 = vmatpush3.bf16.msra.mxu0 %v11799_v13  ;;  %v17762_v13 = vld [vmem:[#allocation11_spill] sm:$0xff] }
0x14d1   : > { %11801 = vmatprep.subr.bf16.mxu0 %v17701_v31  ;;  %v17763_v22 = vpack.i.bf16 %v16790_v32, %v17762_v13  ;;  %v17774_v32 = vld [vmem:[#allocation9_spill] sm:$0xff] }
0x14d2   : > { %v17231_v62 = vpop.eup %13006 }
0x14d3   : > { %v7637_v5 = vsel %vm6442_vm1, %v17231_v62, 0.0 }
0x14d4   : > { %7638 = vadd.xlane.f32.xlu0 %v7637_v5  ;;  %11803 = vmatpush3.bf16.msra.mxu0 %v11802_v16  ;;  %v17766_v16 = vpack.i.bf16 %v17764_v33, %v17765_v44  ;;  %v17771_v5 = vld [vmem:[#allocation36_spill] sm:$0xff] }
0x14d5   : > { %11804 = vmatprep.subr.bf16.mxu0 %v17701_v31 }
0x14d8   : > { %11806 = vmatpush3.bf16.msra.mxu0 %v11805_v46  ;;  %v17772_v46 = vpack.i.bf16 %v17770_v36, %v17771_v5 }
0x14d9   : > { %11807 = vmatprep.subr.bf16.mxu0 %v17701_v31 }
0x14ea   : > { %12492 = vrot.lane.b32.xlu0 %v17747_v61, %s13132_s30 }
0x14f9   : > { %v17241_v21 = vpop.f32.mrb[86].mxu1 }
0x14fa   : > { %v10914_v3 = vpop.f32.mrb[87].mxu1 }
0x14fb   : > { %v17773_v3 = vld [vmem:[#allocation10_spill] sm:$0xff] }
0x1521   : > { %v7723_v28 = vpop.f32.mrb[88].mxu1 }
0x1522   : > { %v7724_v4 = vadd.f32 %v7723_v28, %v17708_v54  ;;  %v10960_v55 = vpop.f32.mrb[89].mxu1  ;;  %v17775_v28 = vpack.i.bf16 %v17773_v3, %v17774_v32 }
0x1524   : > { %v7727_v18 = vsel %vm6442_vm1, %v7724_v4, -inf }
0x1525   : > { %7728 = vmax.xlane.f32.xlu1 %v7727_v18  ;;  %v17776_v18 = vld [vmem:[#allocation13_spill] sm:$0xff] }
0x1549   : > { %v8045_v60 = vpop.f32.mrb[90].mxu1 }
0x154a   : > { %v8046_v45 = vadd.f32 %v8045_v60, %v17708_v54  ;;  %v11029_v2 = vpop.f32.mrb[91].mxu1  ;;  %v17777_v60 = vld [vmem:[#allocation12_spill] sm:$0xff] }
0x154c   : > { %v8049_v34 = vsel %vm6442_vm1, %v8046_v45, -inf }
0x154d   : > { %8050 = vmax.xlane.f32.xlu1 %v8049_v34 }
0x155e   : > { %12482 = vrot.lane.b32.xlu1 %v17750_v42, %s13132_s30 }
0x1561   : > { %v7639_v50 = vpop.xlane.xlu0 %7638 }
0x1565   : > { %v12493_v42 = vpop.permute.xlu0 %12492 }
0x1566   : > { %v12495_v25 = vunpack.i.h.bf16 %v12493_v42 }
0x1571   : > { %v8255_v35 = vpop.f32.mrb[92].mxu1 }
0x1572   : > { %v11075_v57 = vpop.f32.mrb[93].mxu1  ;;  %v8256_v11 = vadd.f32 %v8255_v35, %v17708_v54 }
0x1573   : > { %v12475_v57 = vunpack.i.h.bf16 %v12473_v51 }
0x1574   : > { %v8259_v48 = vsel %vm6442_vm1, %v8256_v11, -inf }
0x1582   : > { %8260 = vmax.xlane.f32.xlu1 %v8259_v48  ;;  %v12474_v48 = vunpack.i.l.bf16 %v12473_v51 }
0x1584   : > { %v11808_v9 = vpack.c.bf16 %v12475_v57, %v12474_v48 }
0x1593   : > { %12487 = vrot.lane.b32.xlu1 %v17751_v47, %s13132_s30 }
0x1597   : > { %12507 = vrot.lane.b32.xlu1 %v17754_v12, %s13132_s30  ;;  %v12479_v12 = vunpack.i.l.bf16 %v12478_v41 }
0x15b2   : > { %v7729_v56 = vpop.xlane.xlu1 %7728 }
0x15b3   : > { %v7730_v6 = vsub.f32 %v7724_v4, %v7729_v56  ;;  %v11811_v56 = vpack.c.bf16 %v12480_v40, %v12479_v12 }
0x15b5   : > { %v7731_v43 = vmul.f32 1.442695, %v7730_v6 }
0x15b7   : > { %13008 = vpow2.f32 %v7731_v43 }
0x15c1   : > { %v13009_v54 = vpop.eup %13008 }
0x15c2   : > { %v7733_v63 = vsel %vm6442_vm1, %v13009_v54, 0.0 }
0x15c3   : > { %7734 = vadd.xlane.f32.xlu0 %v7733_v63 }
0x15d9   : > { %12497 = vrot.lane.b32.xlu0 %v17757_v24, %s13132_s30  ;;  %v12494_v24 = vunpack.i.l.bf16 %v12493_v42 }
0x15da   : > { %v8051_v53 = vpop.xlane.xlu1 %8050 }
0x15db   : > { %v8052_v19 = vsub.f32 %v8046_v45, %v8051_v53  ;;  %v17778_v45 = vpack.i.bf16 %v17776_v18, %v17777_v60 }
0x15dd   : > { %v8053_v10 = vmul.f32 1.442695, %v8052_v19  ;;  %12502 = vrot.lane.b32.xlu0 %v17760_v1, %s13132_s30 }
0x15de   : > { %v12483_v61 = vpop.permute.xlu1 %12482 }
0x15df   : > { %13010 = vpow2.f32 %v8053_v10  ;;  %v12485_v6 = vunpack.i.h.bf16 %v12483_v61  ;;  %v12484_v43 = vunpack.i.l.bf16 %v12483_v61  ;;  %v11820_v10 = vpack.c.bf16 %v12495_v25, %v12494_v24 }
0x15e1   : > { %12512 = vrot.lane.b32.xlu0 %v17761_v7, %s13132_s30  ;;  %v11814_v51 = vpack.c.bf16 %v12485_v6, %v12484_v43 }
0x15e9   : > { %v17274_v27 = vpop.eup %13010 }
0x15ea   : > { %v8055_v49 = vsel %vm6442_vm1, %v17274_v27, 0.0 }
0x15eb   : > { %8056 = vadd.xlane.f32.xlu1 %v8055_v49 }
0x15fc   : > { %12517 = vrot.lane.b32.xlu1 %v17763_v22, %s13132_s30 }
0x1600   : > { %12522 = vrot.lane.b32.xlu1 %v17766_v16, %s13132_s30 }
0x1604   : > { %12527 = vrot.lane.b32.xlu1 %v17769_v52, %s13132_s30 }
0x1608   : > { %12532 = vrot.lane.b32.xlu1 %v17772_v46, %s13132_s30 }
0x160c   : > { %12537 = vrot.lane.b32.xlu1 %v17775_v28, %s13132_s30 }
0x160f   : > { %v8261_v4 = vpop.xlane.xlu1 %8260 }
0x1610   : > { %v8262_v55 = vsub.f32 %v8256_v11, %v8261_v4  ;;  %12542 = vrot.lane.b32.xlu1 %v17778_v45, %s13132_s30  ;;  %s13067_s30 = sshll.u32 %s13136_s21, 4  ;;  %s13068_s30 = int_to_ptr.vmem [resolvable:$false] %s13067_s30 }
0x1611   : > { %s13069_s12 = scalar_lea.vmem %s13068_s30, 64  ;;  %p13070_p6 = scmp.lt.s32.totalorder %s17377_s22, %s13068_s30 }
0x1612   : > { %v8263_v2 = vmul.f32 1.442695, %v8262_v55  ;;  %p13071_p7 = scmp.lt.s32.totalorder %s13069_s12, %s13063_s13 }
0x1613   : > { %v12488_v63 = vpop.permute.xlu1 %12487 }
0x1614   : > { %13012 = vpow2.f32 %v8263_v2  ;;  %v12489_v14 = vunpack.i.l.bf16 %v12488_v63  ;;  %p13072_p8 = por %p13071_p7, %p13070_p6 }
0x1616   : > { %p13073_p9 = pnand %p13072_p8, %p13066_p5 }
0x1617   : > { %v12508_v33 = vpop.permute.xlu1 %12507 }
0x1618   : > { %v12510_v44 = vunpack.i.h.bf16 %v12508_v33  ;;  %v12509_v16 = vunpack.i.l.bf16 %v12508_v33 }
0x161a   : > { %v11849_v52 = vpack.c.bf16 %v12510_v44, %v12509_v16 }
0x161e   : > { %v17302_v34 = vpop.eup %13012 }
0x161f   : > { %v8265_v39 = vsel %vm6442_vm1, %v17302_v34, 0.0 }
0x1620   : > { %8266 = vadd.xlane.f32.xlu0 %v8265_v39 }
0x1650   : > { %v7735_v35 = vpop.xlane.xlu0 %7734 }
0x1651   : > { %13014 = vrcp.f32 %v7735_v35 }
0x1652   : > { %13016 = vrcp.f32 %v7639_v50 }
0x1654   : > { %v12498_v41 = vpop.permute.xlu0 %12497 }
0x1655   : > { %v12500_v17 = vunpack.i.h.bf16 %v12498_v41  ;;  %v12499_v38 = vunpack.i.l.bf16 %v12498_v41 }
0x1657   : > { %v11843_v49 = vpack.c.bf16 %v12500_v17, %v12499_v38  ;;  %v17779_v17 = vld [vmem:[#allocation43_spill] sm:$0xff] }
0x1658   : > { %v12503_v1 = vpop.permute.xlu0 %12502 }
0x1659   : > { %v12505_v13 = vunpack.i.h.bf16 %v12503_v1  ;;  %v12504_v22 = vunpack.i.l.bf16 %v12503_v1 }
0x165b   : > { %v13015_v11 = vpop.eup %13014  ;;  %v11846_v59 = vpack.c.bf16 %v12505_v13, %v12504_v22 }
0x165c   : > { %v7737_v47 = vmul.f32 %v13015_v11, %v13009_v54  ;;  %v12490_v54 = vunpack.i.h.bf16 %v12488_v63  ;;  %v13017_v19 = vpop.eup %13016  ;;  %v12513_v37 = vpop.permute.xlu0 %12512 }
0x165d   : > { %v7641_v7 = vmul.f32 %v13017_v19, %v17231_v62  ;;  %v12515_v36 = vunpack.i.h.bf16 %v12513_v37  ;;  %v12514_v5 = vunpack.i.l.bf16 %v12513_v37 }
0x165e   : > { %10982 = vmatmul.mubr.msk.f32.vlgmr.msra.gmra.mrb[130].mxu0 %vm900_vm13, %v7737_v47  ;;  %v11817_v53 = vpack.c.bf16 %v12490_v54, %v12489_v14 }
0x165f   : > { %11809 = vmatpush3.bf16.msra.mxu0 %v11808_v9  ;;  %11004 = vmatprep.mubr.msk.f32.mxu0 %vm13135_vm15, %v17672_v58  ;;  %v11852_v61 = vpack.c.bf16 %v12515_v36, %v12514_v5 }
0x1660   : > { %11810 = vmatprep.subr.bf16.mxu0 %v17701_v31 }
0x1663   : > { %11812 = vmatpush3.bf16.msra.mxu0 %v11811_v56 }
0x1664   : > { %11813 = vmatprep.subr.bf16.mxu0 %v17701_v31 }
0x1667   : > { %11815 = vmatpush3.bf16.msra.mxu0 %v11814_v51 }
0x1668   : > { %11816 = vmatprep.subr.bf16.mxu0 %v17701_v31 }
0x166b   : > { %11818 = vmatpush3.bf16.msra.mxu0 %v11817_v53 }
0x166c   : > { %11819 = vmatprep.subr.bf16.mxu0 %v17701_v31 }
0x166f   : > { %11821 = vmatpush3.bf16.msra.mxu0 %v11820_v10 }
0x1670   : > { %11842 = vmatprep.subr.bf16.mxu0 %v17701_v31 }
0x1672   : > { %11005 = vmatmul.mubr.msk.f32.vlgmr.msra.gmra.mrb[130].mxu0 %vm900_vm13, %v7641_v7 }
0x1673   : > { %11844 = vmatpush3.bf16.msra.mxu0 %v11843_v49  ;;  %11050 = vmatprep.mubr.msk.f32.mxu0 %vm13135_vm15, %v17672_v58 }
0x1674   : > { %11845 = vmatprep.subr.bf16.mxu0 %v17701_v31 }
0x1677   : > { %11847 = vmatpush3.bf16.msra.mxu0 %v11846_v59 }
0x1678   : > { %v8057_v62 = vpop.xlane.xlu1 %8056  ;;  %11848 = vmatprep.subr.bf16.mxu0 %v17701_v31 }
0x1679   : > { %13018 = vrcp.f32 %v8057_v62  ;;  %v9255_v62 = vld [vmem:[%s17425_s7 + $0x1] sm:$0x1] }
0x167b   : > { %11850 = vmatpush3.bf16.msra.mxu0 %v11849_v52 }
0x167c   : > { %v12518_v46 = vpop.permute.xlu1 %12517  ;;  %11851 = vmatprep.subr.bf16.mxu0 %v17701_v31 }
0x167d   : > { %v12520_v3 = vunpack.i.h.bf16 %v12518_v46  ;;  %v12519_v32 = vunpack.i.l.bf16 %v12518_v46 }
0x167f   : > { %v11855_v28 = vpack.c.bf16 %v12520_v3, %v12519_v32  ;;  %11853 = vmatpush3.bf16.msra.mxu0 %v11852_v61 }
0x1680   : > { %v12523_v4 = vpop.permute.xlu1 %12522  ;;  %11854 = vmatprep.subr.bf16.mxu0 %v17701_v31 }
0x1681   : > { %v12525_v55 = vunpack.i.h.bf16 %v12523_v4  ;;  %v12524_v18 = vunpack.i.l.bf16 %v12523_v4 }
0x1683   : > { %v13019_v60 = vpop.eup %13018  ;;  %v11878_v45 = vpack.c.bf16 %v12525_v55, %v12524_v18  ;;  %11856 = vmatpush3.bf16.msra.mxu0 %v11855_v28 }
0x1684   : > { %v8059_v2 = vmul.f32 %v13019_v60, %v17274_v27  ;;  %v12528_v39 = vpop.permute.xlu1 %12527  ;;  %11877 = vmatprep.subr.bf16.mxu0 %v17701_v31 }
0x1685   : > { %v12530_v50 = vunpack.i.h.bf16 %v12528_v39  ;;  %v12529_v42 = vunpack.i.l.bf16 %v12528_v39 }
0x1686   : > { %11051 = vmatmul.mubr.msk.f32.vlgmr.msra.gmra.mrb[130].mxu0 %vm900_vm13, %v8059_v2 }
0x1687   : > { %v11881_v35 = vpack.c.bf16 %v12530_v50, %v12529_v42  ;;  %11879 = vmatpush3.bf16.msra.mxu0 %v11878_v45  ;;  %11096 = vmatprep.mubr.msk.f32.mxu0 %vm13135_vm15, %v17672_v58 }
0x1688   : > { %v12533_v57 = vpop.permute.xlu1 %12532  ;;  %11880 = vmatprep.subr.bf16.mxu0 %v17701_v31 }
0x1689   : > { %v12535_v48 = vunpack.i.h.bf16 %v12533_v57  ;;  %v12534_v11 = vunpack.i.l.bf16 %v12533_v57 }
0x168b   : > { %v11884_v47 = vpack.c.bf16 %v12535_v48, %v12534_v11  ;;  %11882 = vmatpush3.bf16.msra.mxu0 %v11881_v35 }
0x168c   : > { %v12538_v27 = vpop.permute.xlu1 %12537  ;;  %11883 = vmatprep.subr.bf16.mxu0 %v17701_v31 }
0x168d   : > { %v12540_v9 = vunpack.i.h.bf16 %v12538_v27  ;;  %v12539_v40 = vunpack.i.l.bf16 %v12538_v27 }
0x168f   : > { %v11887_v12 = vpack.c.bf16 %v12540_v9, %v12539_v40  ;;  %11885 = vmatpush3.bf16.msra.mxu0 %v11884_v47 }
0x1690   : > { %v12543_v56 = vpop.permute.xlu1 %12542  ;;  %11886 = vmatprep.subr.bf16.mxu0 %v17701_v31 }
0x1691   : > { %v12545_v6 = vunpack.i.h.bf16 %v12543_v56  ;;  %v12544_v43 = vunpack.i.l.bf16 %v12543_v56 }
0x1693   : > { %v11890_v63 = vpack.c.bf16 %v12545_v6, %v12544_v43  ;;  %11888 = vmatpush3.bf16.msra.mxu0 %v11887_v12 }
0x1694   : > { %11889 = vmatprep.subr.bf16.mxu0 %v17701_v31 }
0x1697   : > { %11891 = vmatpush3.bf16.msra.mxu0 %v11890_v63 }
0x1698   : > { %11892 = vmatprep.subr.bf16.mxu0 %v17701_v31 }
0x16ad   : > { %v8267_v51 = vpop.xlane.xlu0 %8266 }
0x16ae   : > { %13020 = vrcp.f32 %v8267_v51 }
0x16b8   : > { %v13021_v54 = vpop.eup %13020 }
0x16b9   : > { %v8269_v14 = vmul.f32 %v13021_v54, %v17302_v34  ;;  %v7501_v54 = vrot.slane %v16974_v15, 1 }
0x16bb   : > { %11097 = vmatmul.mubr.msk.f32.vlgmr.msra.gmra.mrb[130].mxu0 %vm900_vm13, %v8269_v14 }
0x16bc   : > { %11894 = vmatpush3.bf16.msra.mxu0 %v16950_v0  ;;  %11107 = vmatprep.mubr.msk.f32.mxu0 %vm13135_vm15, %v17672_v58  ;;  %v7408_v0 = vrot.slane %v16974_v15, 3 }
0x16bd   : > { %11895 = vmatprep.subr.bf16.mxu0 %v17701_v31 }
0x16be   : > { %v7480_v34 = vadd.f32 %v17241_v21, %v7408_v0 }
0x16c0   : > { %11897 = vmatpush3.bf16.msra.mxu0 %v16961_v23  ;;  %v7484_v19 = vrot.slane %v7480_v34, 4 }
0x16c1   : > { %11898 = vmatprep.subr.bf16.mxu0 %v17701_v31 }
0x178e   : > { %v8389_v41 = vpop.f32.mrb[130].mxu0 }
0x178f   : > { %v11098_v25 = vpop.f32.mrb[131].mxu0  ;;  %11108 = vmatmul.mubr.msk.f32.vlgmr.msra.gmra.mrb[132].mxu0 %vm449_vm0, %v8389_v41 }
0x1790   : > { %11900 = vmatpush3.bf16.msra.mxu0 %v17033_v8  ;;  %11118 = vmatprep.mubr.msk.f32.mxu0 %vm13135_vm15, %v17672_v58  ;;  %v7486_v8 = vadd.f32 %v7484_v19, %v17050_v26 }
0x1791   : > { %11901 = vmatprep.subr.bf16.mxu0 %v17701_v31 }
0x1792   : > { %v7487_v31 = vsel %vm7288_vm2, %v7486_v8, 0.0 }
0x1794   : > { %11903 = vmatpush3.bf16.msra.mxu0 %v17039_v30 }
0x1862   : > { %v8467_v23 = vpop.f32.mrb[132].mxu0 }
0x1863   : > { %v8468_v24 = vadd.f32 %v16974_v15, %v8467_v23  ;;  %v11109_v53 = vpop.f32.mrb[133].mxu0 }
0x1865   : > { %v8472_v10 = vrot.slane %v8468_v24, 4 }
0x1867   : > { %v8474_v38 = vadd.f32 %v8472_v10, %v17779_v17 }
0x1869   : > { %v8475_v58 = vsel %vm7288_vm2, %v8474_v38, 0.0 }
0x186a   : > { %8476 = vadd.xlane.f32.xlu0 %v8475_v58 }
0x186e   : > { %7488 = vadd.xlane.f32.xlu0 %v7487_v31 }
0x18f7   : > { %v8477_v30 = vpop.xlane.xlu0 %8476 }
0x18f8   : > { %v8478_v1 = vmul.f32 0.03125, %v8477_v30 }
0x18fa   : > { %v8479_v7 = vsub.f32 %v8474_v38, %v8478_v1 }
0x18fb   : > { %v7489_v18 = vpop.xlane.xlu0 %7488 }
0x18fc   : > { %v8480_v21 = vmul.f32 %v8479_v7, %v8479_v7  ;;  %v7490_v60 = vmul.f32 0.03125, %v7489_v18 }
0x18fe   : > { %v8481_v49 = vsel %vm7288_vm2, %v8480_v21, 0.0  ;;  %v7491_v50 = vsub.f32 %v7486_v8, %v7490_v60 }
0x18ff   : > { %8482 = vadd.xlane.f32.xlu1 %v8481_v49 }
0x1900   : > { %v7492_v48 = vmul.f32 %v7491_v50, %v7491_v50 }
0x1902   : > { %v7493_v11 = vsel %vm7288_vm2, %v7492_v48, 0.0 }
0x198c   : > { %v8483_v13 = vpop.xlane.xlu1 %8482 }
0x198d   : > { %v8484_v22 = vmul.f32 0.03125, %v8483_v13 }
0x198f   : > { %v8485_v33 = vadd.f32 1e-05, %v8484_v22 }
0x1991   : > { %13022 = vrsqrt.f32 %v8485_v33 }
0x199b   : > { %v13023_v44 = vpop.eup %13022 }
0x199c   : > { %v8487_v16 = vmul.f32 %v13023_v44, %v8479_v7 }
0x199e   : > { %v8488_v26 = vmul.f32 %v8487_v16, %v7303_v29 }
0x19a0   : > { %v8489_v59 = vadd.f32 %v8488_v26, %v7306_v20 }
0x19a2   : > { %v8496_v37 = vrot.slane %v8489_v59, 4 }
0x19a4   : > { %11119 = vmatmul.mubr.msk.f32.vlgmr.msra.gmra.mrb[134].mxu0 %vm449_vm0, %v8496_v37 }
0x1a77   : > { %v8565_v52 = vpop.f32.mrb[134].mxu0 }
0x1a78   : > { %v8566_v36 = vadd.f32 %v9255_v62, %v8565_v52  ;;  %v11120_v5 = vpop.f32.mrb[135].mxu0 }
0x1a7a   : > { %v8570_v46 = vmul.f32 0.044715, %v8566_v36  ;;  %v8569_v4 = vmul.f32 0.5, %v8566_v36 }
0x1a7c   : > { %v8571_v61 = vmul.f32 %v8570_v46, %v8566_v36 }
0x1a7e   : > { %v8572_v3 = vmul.f32 %v8571_v61, %v8566_v36 }
0x1a80   : > { %v8573_v32 = vadd.f32 %v8572_v3, %v8566_v36 }
0x1a82   : > { %v8574_v28 = vmul.f32 0.7978846, %v8573_v32 }
0x1a84   : > { %13024 = vtanh.f32 %v8574_v28 }
0x1a8e   : > { %v13025_v29 = vpop.eup %13024 }
0x1a8f   : > { %v8576_v55 = vadd.f32 1.0, %v13025_v29 }
0x1a91   : > { %v8577_v20 = vmul.f32 %v8576_v55, %v8569_v4 }
0x1a93   : > { %11138 = vmatmul.mubr.msk.f32.vlgmr.msra.gmra.mrb[94].mxu1 %vm5522_vm14, %v8577_v20 }
0x1b66   : > { %v8655_v45 = vpop.f32.mrb[94].mxu1 }
0x1b67   : > { %v8656_v2 = vadd.f32 %v8655_v45, %v7408_v0  ;;  %v11139_v39 = vpop.f32.mrb[95].mxu1 }
0x1b69   : > { %v8660_v42 = vrot.slane %v8656_v2, 4 }
0x1b6b   : > { %v8662_v35 = vadd.f32 %v8660_v42, %v8489_v59 }
0x1b6d   : > { %v8663_v57 = vsel %vm7288_vm2, %v8662_v35, 0.0 }
0x1b6e   : > { %8664 = vadd.xlane.f32.xlu0 %v8663_v57 }
0x1b72   : > { %7494 = vadd.xlane.f32.xlu0 %v7493_v11 }
0x1bfb   : > { %v8665_v47 = vpop.xlane.xlu0 %8664 }
0x1bfc   : > { %v8666_v27 = vmul.f32 0.03125, %v8665_v47 }
0x1bfe   : > { %v8667_v9 = vsub.f32 %v8662_v35, %v8666_v27 }
0x1bff   : > { %v7495_v40 = vpop.xlane.xlu0 %7494 }
0x1c00   : > { %v7496_v12 = vmul.f32 0.03125, %v7495_v40  ;;  %v8668_v56 = vmul.f32 %v8667_v9, %v8667_v9 }
0x1c02   : > { %v7497_v6 = vadd.f32 1e-05, %v7496_v12  ;;  %v8669_v43 = vsel %vm7288_vm2, %v8668_v56, 0.0 }
0x1c03   : > { %8670 = vadd.xlane.f32.xlu0 %v8669_v43 }
0x1c04   : > { %13026 = vrsqrt.f32 %v7497_v6 }
0x1c0e   : > { %v13027_v63 = vpop.eup %13026 }
0x1c0f   : > { %v7499_v51 = vmul.f32 %v13027_v63, %v7491_v50 }
0x1c11   : > { %v7500_v14 = vmul.f32 %v16974_v15, %v7499_v51 }
0x1c13   : > { %v7503_v41 = vadd.f32 %v7501_v54, %v7500_v14 }
0x1c15   : > { %7504 = vst.msk [vmem:[%s372_s17 - $0x4] sm:$0x10] %vm7288_vm2, %v7503_v41 }
0x1c90   : > { %v8671_v25 = vpop.xlane.xlu0 %8670 }
0x1c91   : > { %v8672_v0 = vmul.f32 0.03125, %v8671_v25 }
0x1c93   : > { %v8673_v34 = vadd.f32 1e-05, %v8672_v0 }
0x1c95   : > { %13028 = vrsqrt.f32 %v8673_v34 }
0x1c9f   : > { %v13029_v23 = vpop.eup %13028 }
0x1ca0   : > { %v8675_v24 = vmul.f32 %v13029_v23, %v8667_v9 }
0x1ca2   : > { %v8676_v53 = vmul.f32 %v16974_v15, %v8675_v24 }
0x1ca4   : > { %v8677_v19 = vadd.f32 %v8676_v53, %v7501_v54 }
0x1ca6   : > { %8678 = vst.msk [vmem:[%s372_s17 - $0x3] sm:$0x10] %vm7288_vm2, %v8677_v19 }
0x1ca7   : > { %13076 = shalt.err (!%p13073_p9)
}
0x1ca8   : > { %s13077_s14 = scalar_lea.hbm %s17375_s11, 32  ;;  %s13081_s29 = scalar_lea.hbm %s17428_s10, 64 }
0x1ca9   : > { %p13078_p12 = scmp.ne.s32.totalorder %s17375_s11, %s13077_s14  ;;  %p13082_p1 = scmp.lt.u32.totalorder %s17375_s11, %s17428_s10 }
0x1caa   : > { %p13083_p2 = scmp.lt.u32.totalorder %s13081_s29, %s13077_s14  ;;  %p13085_p4 = scmp.lt.u32.totalorder %s13077_s14, %s17375_s11 }
0x1cab   : > { %p13079_p13 = pnand %p13078_p12, %p13233_p10 }
0x1cac   : > { %p13084_p3 = por %p13083_p2, %p13082_p1 }
0x1cad   : > { %p13080_p0 = pneg %p13079_p13 }
0x1cae   : > { %p13086_p5 = por %p13085_p4, %p13084_p3 }
0x1cb0   : > { %p13087_p6 = pnand %p13086_p5, %p13080_p0 }
0x1cb2   : > { %13090 = shalt.err (!%p13087_p6)
}
0x1cb3   : > { %11990 = dma.vmem_to_hbm [thread:$0]  (%p13233_p10), %s17377_s22, 32, %s17375_s11, %s8680_s16  }
0x1cb4 PF: > { %p11996_p7 = scmp.ge.s32.totalorder %s13127_s20, 2  ;;  %s8705_s13 = sand.u32 1, %s13115_s18  }
0x1cb5   : > { %s8706_s21 = scalar_lea.sflag [#allocation5], %s8705_s13 }
0x1cb6   : > { %p11993_p8 = pnand %p11996_p7, %p13237_p11 }
0x1cb8   : > { %13110 = dma.done.wait (!%p11993_p8), %s8706_s21, 32  }
0x1cb9   : > { %13112 = vsyncadd (!%p11993_p8), %s8706_s21, 4294967264  ;;  %p26_p9 = scmp.ge.s32.totalorder %s13220_s23, 4   ;;  %s17780_s18 = smov %s13119_s19 }
0x1cba   : > { %s17781_s19 = smov %s13123_s0  ;;  %s17782_s0 = smov %s13231_s26 }
0x1cbb   : > { %s17783_s20 = smov %s13220_s23  ;;  %28 = sbr.rel (!%p26_p9) target bundleno = 18 (0x12), region = 101 }
0x1cc2   :  { %8711 = vsyncpa [#allocation5], 1 }
0x1cc3   :  { %8713 = vsyncpa [#allocation5 + $0x1], 1 }

</bundles_post_ra>
